<compile_context>
chip_gen: v5e
topology: v5e:2x2
jax: 0.10.0
libtpu: 0.0.40
codegen_flags: <defaults>
</compile_context>

<pallas_src>
import functools
import math

import numpy as np
import jax
import jax.numpy as jnp
from jax import lax
from jax.experimental import pallas as pl
from jax.experimental.pallas import tpu as pltpu

# ---------------- model hyper-parameters (small synthetic config) -----------
NU = 64                 # num_units
NU2 = 2 * NU            # fused slab width (128 lanes)
DIM = 3                 # RF_Diffusion "dim": temporal (1) + spatial (DIM-1 = 2)
COND_DIM = 8            # cond_dim; cond last dim = 3*COND_DIM
CIN = 3 * COND_DIM      # 24

# (name, fan_in, fan_out) for every nn.Linear in the module (PyTorch order).
LAYERS = [
    ("time1", NU, NU), ("time2", NU, NU),
    ("sp0", DIM - 1, NU), ("sp1", NU, NU), ("sp2", NU, NU), ("sp3", NU, NU),
    ("tp0", 1, NU), ("tp1", NU, NU), ("tp2", NU, NU), ("tp3", NU, NU),
    ("os0", NU, NU), ("os1", NU, DIM - 1),
    ("ot0", NU, NU), ("ot1", NU, 1),
    ("lt0", 2 * NU, NU), ("lt1", NU, NU), ("lt2", NU, 2),
    ("ls0", 2 * NU, NU), ("ls1", NU, NU), ("ls2", NU, 2),
    ("ca0", CIN, NU), ("ca1", NU, NU),
    ("ct0", COND_DIM, NU), ("ct1", COND_DIM, NU), ("ct2", COND_DIM, NU),
    ("cs0", COND_DIM, NU), ("cs1", COND_DIM, NU), ("cs2", COND_DIM, NU),
    ("cj0", COND_DIM, NU), ("cj1", COND_DIM, NU), ("cj2", COND_DIM, NU),
]

# w128 slab slots (each a [128,128] block matrix, stored [in, out]).
W_TC0, W_TC1, W_HEAD0, W_HEAD1, W_TW1, W_TW2, W_TW3, W_OUT0 = range(8)
NW128 = 8

# aux slab rows (f32, each row 128 lanes wide).
A_FREQ, A_PHASE = 0, 1              # sinusoidal freq / phase tables (first 64 lanes)
A_BTC0, A_BTC1 = 2, 3               # biases of fused (cond_all | time_mlp) layers
A_BH0, A_BH1, A_BH2 = 4, 5, 6       # biases of fused attention-head layers
A_XR0, A_XR1, A_XR2 = 7, 8, 9       # tower layer-0 broadcast-FMA weight rows
A_BT0, A_BT1, A_BT2, A_BT3 = 10, 11, 12, 13   # tower biases
A_BO0, A_BO1 = 14, 15               # output-head biases
A_BC0 = 16                          # cond-projection biases (rows 16,17,18)
AUX_ROWS = 19


# ------------------------------ Pallas kernel -------------------------------
def rf_kernel(x_ref, t_ref, c_ref, w128_ref, wcond_ref, whead2_ref,
              wout1_ref, aux_ref, o_ref):
    f32, bf16 = jnp.float32, jnp.bfloat16
    aux = aux_ref[...]                                   # [AUX_ROWS, 128]

    def arow(k):                                         # static row slice
        return aux[k:k + 1, :]                           # [1, 128]

    def mm(a, slot):                                     # bf16 MXU, f32 acc
        return jnp.dot(a.astype(bf16), w128_ref[slot],
                       preferred_element_type=f32)

    relu = lambda v: jnp.maximum(v, 0.0)

    x = x_ref[...]                                       # [TB, 3]   (t, s0, s1)
    t = t_ref[...]                                       # [TB, 1]
    cond = c_ref[...]                                    # [TB, 24]

    # ---- sinusoidal time embedding: cat(sin, cos) == sin(t*f + phase) ------
    sinu = jnp.sin(t * arow(A_FREQ)[:, :NU] + arow(A_PHASE)[:, :NU])  # [TB,64]

    # ---- fused (cond_all | time_mlp) MLP ------------------------------------
    # input slab: [cond(24) | sinu(64) | 0(40)]; W_TC0 routes cond->left half
    # (ca0) and sinu->right half (time1).
    pad = jnp.zeros((x.shape[0], NU2 - CIN - NU), dtype=f32)
    em_in = jnp.concatenate([cond, sinu, pad], axis=-1)               # [TB,128]
    h0 = mm(em_in, W_TC0) + arow(A_BTC0)
    lane = lax.broadcasted_iota(jnp.int32, (1, NU2), 1)
    left = lane < NU
    gelu = 0.5 * h0 * (1.0 + lax.erf(h0 * (1.0 / math.sqrt(2.0))))    # exact GELU
    h0 = jnp.where(left, relu(h0), gelu)                 # ReLU on cond, GELU on time
    ct_emb = mm(h0, W_TC1) + arow(A_BTC1)                # [:, :64]=cond_emb, [:,64:]=t_emb

    # ---- attention heads (linear_t | linear_s), both in one 128-wide path ---
    hb = relu(mm(ct_emb, W_HEAD0) + arow(A_BH0))
    hb = relu(mm(hb, W_HEAD1) + arow(A_BH1))
    logits = jnp.dot(hb.astype(bf16), whead2_ref[...],
                     preferred_element_type=f32) + arow(A_BH2)[:, :4]  # [TB,4]
    # 2-class softmax == sigmoid of the logit difference (exact).
    a_t0 = 1.0 / (1.0 + jnp.exp(logits[:, 1:2] - logits[:, 0:1]))
    a_t1 = 1.0 - a_t0
    a_s0 = 1.0 / (1.0 + jnp.exp(logits[:, 3:4] - logits[:, 2:3]))
    a_s1 = 1.0 - a_s0

    # ---- hoisted & fused cond projections (ct_i/cs_i/cj_i, i=0..2) ----------
    cond_proj = jnp.dot(cond.astype(bf16), wcond_ref[...],
                        preferred_element_type=f32)      # [TB, 384]

    # ---- fused spatial/temporal towers: slab = [temporal(64) | spatial(64)] -
    t_emb = ct_emb[:, NU:]
    t_emb2 = jnp.concatenate([t_emb, t_emb], axis=-1)    # [TB,128]

    # layer 0: fan-in 1 (temporal) and 2 (spatial) -> broadcast FMAs on the VPU
    h = (x[:, 0:1] * arow(A_XR0) + x[:, 1:2] * arow(A_XR1)
         + x[:, 2:3] * arow(A_XR2) + arow(A_BT0))
    h = relu(h + t_emb2 + cond_proj[:, 0:NU2] + arow(A_BC0))
    # layer 1
    h = mm(h, W_TW1) + arow(A_BT1)
    h = relu(h + t_emb2 + cond_proj[:, NU2:2 * NU2] + arow(A_BC0 + 1))
    # layer 2
    h = mm(h, W_TW2) + arow(A_BT2)
    h = relu(h + t_emb2 + cond_proj[:, 2 * NU2:3 * NU2] + arow(A_BC0 + 2))
    # final tower linear (no ReLU, no adds)
    h = mm(h, W_TW3) + arow(A_BT3)                       # [:, :64]=x_temporal, [:,64:]=x_spatial

    # ---- attention-weighted mixing ------------------------------------------
    x_t, x_s = h[:, :NU], h[:, NU:]
    xo_t = a_t0 * x_t + a_t1 * x_s
    xo_s = a_s0 * x_t + a_s1 * x_s
    xo = jnp.concatenate([xo_t, xo_s], axis=-1)          # [TB,128]

    # ---- output heads (output_temporal | output_spatial), single store ------
    ho = relu(mm(xo, W_OUT0) + arow(A_BO0))
    pred = jnp.dot(ho.astype(bf16), wout1_ref[...],
                   preferred_element_type=f32) + arow(A_BO1)[:, :DIM]  # [TB,3]
    o_ref[...] = pred


# ------------------------------ wrapper --------------------------------------
def _round_up(v, m):
    return ((v + m - 1) // m) * m


@functools.partial(jax.jit, static_argnames=("block_b",))
def rf_diffusion_forward(packed, x, t, cond, block_b=None):
    """x: [B,1,DIM], t: [B], cond: [B,1,3*COND_DIM]  ->  pred: [B,1,DIM]"""
    B = x.shape[0]
    x2 = x.reshape(B, DIM).astype(jnp.float32)
    t2 = t.reshape(B, 1).astype(jnp.float32)
    c2 = cond.reshape(B, CIN).astype(jnp.float32)

    if block_b is None:
        if B <= 8:
            block_b = 8
        else:
            # Big tiles (amortize per-step overhead, fill MXU rows), but keep
            # >=2 grid steps so v7x's two TensorCores both get work.
            block_b = min(1024, _round_up(max(8, B // 2), 8))
    Bp = _round_up(B, block_b)
    if Bp != B:
        p = Bp - B
        x2 = jnp.pad(x2, ((0, p), (0, 0)))
        t2 = jnp.pad(t2, ((0, p), (0, 0)))
        c2 = jnp.pad(c2, ((0, p), (0, 0)))

    out = pl.pallas_call(
        rf_kernel,
        out_shape=jax.ShapeDtypeStruct((Bp, DIM), jnp.float32),
        grid=(Bp // block_b,),
        in_specs=[
            pl.BlockSpec((block_b, DIM), lambda i: (i, 0)),
            pl.BlockSpec((block_b, 1), lambda i: (i, 0)),
            pl.BlockSpec((block_b, CIN), lambda i: (i, 0)),
            pl.BlockSpec(packed["w128"].shape, lambda i: (0, 0, 0)),
            pl.BlockSpec(packed["wcond"].shape, lambda i: (0, 0)),
            pl.BlockSpec(packed["whead2"].shape, lambda i: (0, 0)),
            pl.BlockSpec(packed["wout1"].shape, lambda i: (0, 0)),
            pl.BlockSpec(packed["aux"].shape, lambda i: (0, 0)),
        ],
        out_specs=pl.BlockSpec((block_b, DIM), lambda i: (i, 0)),
        compiler_params=pltpu.CompilerParams(
            dimension_semantics=("parallel",),
            vmem_limit_bytes=48 * 1024 * 1024),
    )(x2, t2, c2, packed["w128"], packed["wcond"], packed["whead2"],
      packed["wout1"], packed["aux"])
    return out[:B].reshape(B, 1, DIM)


# ------------------------ parameter init & packing ---------------------------
def init_raw_params(key):
    """PyTorch-Linear-style init: U(-1/sqrt(fan_in), +1/sqrt(fan_in)).
    Weights stored as [in, out] (transpose of torch's [out, in])."""
    raw = {}
    for name, fin, fout in LAYERS:
        key, kw, kb = jax.random.split(key, 3)
        bound = 1.0 / math.sqrt(fin)
        w = jax.random.uniform(kw, (fin, fout), jnp.float32, -bound, bound)
        b = jax.random.uniform(kb, (fout,), jnp.float32, -bound, bound)
        raw[name] = (np.asarray(w), np.asarray(b))
    return raw


def pack_params(raw):
    w = lambda n: raw[n][0]
    b = lambda n: raw[n][1]

    w128 = np.zeros((NW128, NU2, NU2), np.float32)
    # fused (cond_all | time_mlp) layer 1: input slab = [cond(24) | sinu(64) | 0]
    w128[W_TC0, :CIN, :NU] = w("ca0")
    w128[W_TC0, CIN:CIN + NU, NU:] = w("time1")
    # layer 2: block-diag(ca1, time2)
    w128[W_TC1, :NU, :NU] = w("ca1")
    w128[W_TC1, NU:, NU:] = w("time2")
    # attention heads layer 1: cols 0:64 = linear_t[0], cols 64:128 = linear_s[0]
    w128[W_HEAD0, :, :NU] = w("lt0")
    w128[W_HEAD0, :, NU:] = w("ls0")
    # heads layer 2: block-diag(lt1, ls1)
    w128[W_HEAD1, :NU, :NU] = w("lt1")
    w128[W_HEAD1, NU:, NU:] = w("ls1")
    # towers: block-diag(temporal, spatial)
    for slot, i in ((W_TW1, 1), (W_TW2, 2), (W_TW3, 3)):
        w128[slot, :NU, :NU] = w(f"tp{i}")
        w128[slot, NU:, NU:] = w(f"sp{i}")
    # output heads layer 1: block-diag(ot0, os0)
    w128[W_OUT0, :NU, :NU] = w("ot0")
    w128[W_OUT0, NU:, NU:] = w("os0")

    # fused cond projections: cond[TB,24] @ wcond[24, 3*128]
    wcond = np.zeros((CIN, 3 * NU2), np.float32)
    for i in range(3):
        c0 = i * NU2
        wcond[:COND_DIM, c0:c0 + NU] = w(f"ct{i}")                 # temporal half
        wcond[COND_DIM:2 * COND_DIM, c0 + NU:c0 + NU2] = w(f"cs{i}")  # spatial half
        wcond[2 * COND_DIM:, c0:c0 + NU] = w(f"cj{i}")             # joint -> both
        wcond[2 * COND_DIM:, c0 + NU:c0 + NU2] = w(f"cj{i}")

    # heads layer 3: cols 0:2 = linear_t logits, cols 2:4 = linear_s logits
    whead2 = np.zeros((NU2, 4), np.float32)
    whead2[:NU, 0:2] = w("lt2")
    whead2[NU:, 2:4] = w("ls2")

    # output heads layer 2: col 0 = temporal pred, cols 1:3 = spatial pred
    wout1 = np.zeros((NU2, DIM), np.float32)
    wout1[:NU, 0:1] = w("ot1")
    wout1[NU:, 1:DIM] = w("os1")

    aux = np.zeros((AUX_ROWS, NU2), np.float32)
    half = NU // 2
    freq = np.exp(-math.log(10000.0) / (half - 1) * np.arange(half, dtype=np.float32))
    aux[A_FREQ, :half] = freq
    aux[A_FREQ, half:NU] = freq
    aux[A_PHASE, half:NU] = math.pi / 2.0                # cos(x) = sin(x + pi/2)
    aux[A_BTC0, :NU] = b("ca0"); aux[A_BTC0, NU:] = b("time1")
    aux[A_BTC1, :NU] = b("ca1"); aux[A_BTC1, NU:] = b("time2")
    aux[A_BH0, :NU] = b("lt0");  aux[A_BH0, NU:] = b("ls0")
    aux[A_BH1, :NU] = b("lt1");  aux[A_BH1, NU:] = b("ls1")
    aux[A_BH2, 0:2] = b("lt2");  aux[A_BH2, 2:4] = b("ls2")
    # tower layer-0 FMA rows: x[:,0]=temporal coord, x[:,1:3]=spatial coords
    aux[A_XR0, :NU] = w("tp0")[0]
    aux[A_XR1, NU:] = w("sp0")[0]
    aux[A_XR2, NU:] = w("sp0")[1]
    aux[A_BT0, :NU] = b("tp0"); aux[A_BT0, NU:] = b("sp0")
    for row, i in ((A_BT1, 1), (A_BT2, 2), (A_BT3, 3)):
        aux[row, :NU] = b(f"tp{i}"); aux[row, NU:] = b(f"sp{i}")
    aux[A_BO0, :NU] = b("ot0"); aux[A_BO0, NU:] = b("os0")
    aux[A_BO1, 0:1] = b("ot1"); aux[A_BO1, 1:DIM] = b("os1")
    for i in range(3):
        aux[A_BC0 + i, :NU] = b(f"ct{i}") + b(f"cj{i}")
        aux[A_BC0 + i, NU:] = b(f"cs{i}") + b(f"cj{i}")

    return dict(
        w128=jnp.asarray(w128, jnp.bfloat16),
        wcond=jnp.asarray(wcond, jnp.bfloat16),
        whead2=jnp.asarray(whead2, jnp.bfloat16),
        wout1=jnp.asarray(wout1, jnp.bfloat16),
        aux=jnp.asarray(aux, jnp.float32),
    )


if __name__ == "__main__":
    key = jax.random.PRNGKey(0)
    kp, kx, kt, kc = jax.random.split(key, 4)

    packed = pack_params(init_raw_params(kp))

    B = 256
    x = jax.random.normal(kx, (B, 1, DIM), jnp.float32)
    t = jax.random.randint(kt, (B,), 0, 100).astype(jnp.float32)
    cond = jax.random.normal(kc, (B, 1, CIN), jnp.float32)

    pred = rf_diffusion_forward(packed, x, t, cond)
    jax.block_until_ready(pred)
    assert pred.shape == (B, 1, DIM) and pred.dtype == jnp.float32
    print("KERNEL_OK")
</pallas_src>

<mosaic_0001>
module attributes {stable_mosaic.version = 11 : i64} {
  func.func @rf_kernel(%arg0: i32, %arg1: memref<128x3xf32, #tpu.memory_space<vmem>>, %arg2: memref<128x1xf32, #tpu.memory_space<vmem>>, %arg3: memref<128x24xf32, #tpu.memory_space<vmem>>, %arg4: memref<8x128x128xbf16, #tpu.memory_space<vmem>>, %arg5: memref<24x384xbf16, #tpu.memory_space<vmem>>, %arg6: memref<128x4xbf16, #tpu.memory_space<vmem>>, %arg7: memref<128x3xbf16, #tpu.memory_space<vmem>>, %arg8: memref<19x128xf32, #tpu.memory_space<vmem>>, %arg9: memref<128x3xf32, #tpu.memory_space<vmem>>) attributes {dimension_semantics = [#tpu.dimension_semantics<parallel>], iteration_bounds = array<i64: 2>, scalar_prefetch = 0 : i64, scratch_operands = 0 : i64, tpu.core_type = #tpu.core_type<tc>, window_params = [{transform_indices = @transform_0, window_bounds = array<i64: 128, 3>}, {transform_indices = @transform_1, window_bounds = array<i64: 128, 1>}, {transform_indices = @transform_2, window_bounds = array<i64: 128, 24>}, {pipeline_mode = #tpu.pipeline_mode<synchronous>, transform_indices = @transform_3, window_bounds = array<i64: 8, 128, 128>}, {pipeline_mode = #tpu.pipeline_mode<synchronous>, transform_indices = @transform_4, window_bounds = array<i64: 24, 384>}, {pipeline_mode = #tpu.pipeline_mode<synchronous>, transform_indices = @transform_5, window_bounds = array<i64: 128, 4>}, {pipeline_mode = #tpu.pipeline_mode<synchronous>, transform_indices = @transform_6, window_bounds = array<i64: 128, 3>}, {pipeline_mode = #tpu.pipeline_mode<synchronous>, transform_indices = @transform_7, window_bounds = array<i64: 19, 128>}, {transform_indices = @transform_8, window_bounds = array<i64: 128, 3>}]} {
    %c0 = arith.constant 0 : index
    %c0_0 = arith.constant 0 : index
    %0 = vector.load %arg8[%c0, %c0_0] : memref<19x128xf32, #tpu.memory_space<vmem>>, vector<19x128xf32>
    %c0_1 = arith.constant 0 : index
    %c0_2 = arith.constant 0 : index
    %1 = vector.load %arg1[%c0_1, %c0_2] : memref<128x3xf32, #tpu.memory_space<vmem>>, vector<128x3xf32>
    %c0_3 = arith.constant 0 : index
    %c0_4 = arith.constant 0 : index
    %2 = vector.load %arg2[%c0_3, %c0_4] : memref<128x1xf32, #tpu.memory_space<vmem>>, vector<128x1xf32>
    %c0_5 = arith.constant 0 : index
    %c0_6 = arith.constant 0 : index
    %3 = vector.load %arg3[%c0_5, %c0_6] : memref<128x24xf32, #tpu.memory_space<vmem>>, vector<128x24xf32>
    %4 = vector.extract_strided_slice %0 {offsets = [0, 0], sizes = [1, 128], strides = [1, 1]} : vector<19x128xf32> to vector<1x128xf32>
    %5 = vector.extract_strided_slice %4 {offsets = [0, 0], sizes = [1, 64], strides = [1, 1]} : vector<1x128xf32> to vector<1x64xf32>
    %6 = vector.broadcast %2 : vector<128x1xf32> to vector<128x64xf32>
    %7 = vector.broadcast %5 : vector<1x64xf32> to vector<128x64xf32>
    %8 = arith.mulf %6, %7 : vector<128x64xf32>
    %9 = vector.extract_strided_slice %0 {offsets = [1, 0], sizes = [1, 128], strides = [1, 1]} : vector<19x128xf32> to vector<1x128xf32>
    %10 = vector.extract_strided_slice %9 {offsets = [0, 0], sizes = [1, 64], strides = [1, 1]} : vector<1x128xf32> to vector<1x64xf32>
    %11 = vector.broadcast %10 : vector<1x64xf32> to vector<128x64xf32>
    %12 = arith.addf %8, %11 : vector<128x64xf32>
    %13 = math.sin %12 : vector<128x64xf32>
    %cst = arith.constant 0.000000e+00 : f32
    %14 = vector.broadcast %cst : f32 to vector<128x40xf32>
    %15 = tpu.concatenate %3, %13, %14 in 1 : vector<128x24xf32>, vector<128x64xf32>, vector<128x40xf32> -> vector<128x128xf32>
    %16 = arith.truncf %15 : vector<128x128xf32> to vector<128x128xbf16>
    %c0_7 = arith.constant 0 : index
    %c0_8 = arith.constant 0 : index
    %c0_9 = arith.constant 0 : index
    %17 = vector.load %arg4[%c0_7, %c0_8, %c0_9] : memref<8x128x128xbf16, #tpu.memory_space<vmem>>, vector<1x128x128xbf16>
    %18 = vector.shape_cast %17 : vector<1x128x128xbf16> to vector<128x128xbf16>
    %cst_10 = arith.constant dense<0.000000e+00> : vector<128x128xf32>
    %19 = tpu.matmul %16, %18, %cst_10 {dimension_numbers = #tpu.dot_dimension_numbers<[1], [0], [0], [1], [0, 0, 1, 1], [], []>} : vector<128x128xbf16>, vector<128x128xbf16>, vector<128x128xf32> -> vector<128x128xf32>
    %20 = vector.extract_strided_slice %0 {offsets = [2, 0], sizes = [1, 128], strides = [1, 1]} : vector<19x128xf32> to vector<1x128xf32>
    %21 = vector.broadcast %20 : vector<1x128xf32> to vector<128x128xf32>
    %22 = arith.addf %19, %21 : vector<128x128xf32>
    %23 = tpu.iota {dimensions = array<i32: 1>} : vector<1x128xi32>
    %c64_i32 = arith.constant 64 : i32
    %24 = vector.broadcast %c64_i32 : i32 to vector<1x128xi32>
    %25 = arith.cmpi slt, %23, %24 : vector<1x128xi32>
    %cst_11 = arith.constant 5.000000e-01 : f32
    %26 = vector.broadcast %cst_11 : f32 to vector<128x128xf32>
    %27 = arith.mulf %26, %22 : vector<128x128xf32>
    %cst_12 = arith.constant 0.707106769 : f32
    %28 = vector.broadcast %cst_12 : f32 to vector<128x128xf32>
    %29 = arith.mulf %22, %28 : vector<128x128xf32>
    %30 = math.erf %29 : vector<128x128xf32>
    %cst_13 = arith.constant 1.000000e+00 : f32
    %31 = vector.broadcast %cst_13 : f32 to vector<128x128xf32>
    %32 = arith.addf %31, %30 : vector<128x128xf32>
    %33 = arith.mulf %27, %32 : vector<128x128xf32>
    %cst_14 = arith.constant 0.000000e+00 : f32
    %34 = vector.broadcast %cst_14 : f32 to vector<128x128xf32>
    %35 = arith.maximumf %22, %34 : vector<128x128xf32>
    %36 = vector.shape_cast %25 : vector<1x128xi1> to vector<1x128xi1>
    %37 = vector.broadcast %36 : vector<1x128xi1> to vector<128x128xi1>
    %38 = arith.select %37, %35, %33 : vector<128x128xi1>, vector<128x128xf32>
    %39 = arith.truncf %38 : vector<128x128xf32> to vector<128x128xbf16>
    %c1 = arith.constant 1 : index
    %c0_15 = arith.constant 0 : index
    %c0_16 = arith.constant 0 : index
    %40 = vector.load %arg4[%c1, %c0_15, %c0_16] : memref<8x128x128xbf16, #tpu.memory_space<vmem>>, vector<1x128x128xbf16>
    %41 = vector.shape_cast %40 : vector<1x128x128xbf16> to vector<128x128xbf16>
    %cst_17 = arith.constant dense<0.000000e+00> : vector<128x128xf32>
    %42 = tpu.matmul %39, %41, %cst_17 {dimension_numbers = #tpu.dot_dimension_numbers<[1], [0], [0], [1], [0, 0, 1, 1], [], []>} : vector<128x128xbf16>, vector<128x128xbf16>, vector<128x128xf32> -> vector<128x128xf32>
    %43 = vector.extract_strided_slice %0 {offsets = [3, 0], sizes = [1, 128], strides = [1, 1]} : vector<19x128xf32> to vector<1x128xf32>
    %44 = vector.broadcast %43 : vector<1x128xf32> to vector<128x128xf32>
    %45 = arith.addf %42, %44 : vector<128x128xf32>
    %46 = arith.truncf %45 : vector<128x128xf32> to vector<128x128xbf16>
    %c2 = arith.constant 2 : index
    %c0_18 = arith.constant 0 : index
    %c0_19 = arith.constant 0 : index
    %47 = vector.load %arg4[%c2, %c0_18, %c0_19] : memref<8x128x128xbf16, #tpu.memory_space<vmem>>, vector<1x128x128xbf16>
    %48 = vector.shape_cast %47 : vector<1x128x128xbf16> to vector<128x128xbf16>
    %cst_20 = arith.constant dense<0.000000e+00> : vector<128x128xf32>
    %49 = tpu.matmul %46, %48, %cst_20 {dimension_numbers = #tpu.dot_dimension_numbers<[1], [0], [0], [1], [0, 0, 1, 1], [], []>} : vector<128x128xbf16>, vector<128x128xbf16>, vector<128x128xf32> -> vector<128x128xf32>
    %50 = vector.extract_strided_slice %0 {offsets = [4, 0], sizes = [1, 128], strides = [1, 1]} : vector<19x128xf32> to vector<1x128xf32>
    %51 = vector.broadcast %50 : vector<1x128xf32> to vector<128x128xf32>
    %52 = arith.addf %49, %51 : vector<128x128xf32>
    %cst_21 = arith.constant 0.000000e+00 : f32
    %53 = vector.broadcast %cst_21 : f32 to vector<128x128xf32>
    %54 = arith.maximumf %52, %53 : vector<128x128xf32>
    %55 = arith.truncf %54 : vector<128x128xf32> to vector<128x128xbf16>
    %c3 = arith.constant 3 : index
    %c0_22 = arith.constant 0 : index
    %c0_23 = arith.constant 0 : index
    %56 = vector.load %arg4[%c3, %c0_22, %c0_23] : memref<8x128x128xbf16, #tpu.memory_space<vmem>>, vector<1x128x128xbf16>
    %57 = vector.shape_cast %56 : vector<1x128x128xbf16> to vector<128x128xbf16>
    %cst_24 = arith.constant dense<0.000000e+00> : vector<128x128xf32>
    %58 = tpu.matmul %55, %57, %cst_24 {dimension_numbers = #tpu.dot_dimension_numbers<[1], [0], [0], [1], [0, 0, 1, 1], [], []>} : vector<128x128xbf16>, vector<128x128xbf16>, vector<128x128xf32> -> vector<128x128xf32>
    %59 = vector.extract_strided_slice %0 {offsets = [5, 0], sizes = [1, 128], strides = [1, 1]} : vector<19x128xf32> to vector<1x128xf32>
    %60 = vector.broadcast %59 : vector<1x128xf32> to vector<128x128xf32>
    %61 = arith.addf %58, %60 : vector<128x128xf32>
    %cst_25 = arith.constant 0.000000e+00 : f32
    %62 = vector.broadcast %cst_25 : f32 to vector<128x128xf32>
    %63 = arith.maximumf %61, %62 : vector<128x128xf32>
    %64 = arith.truncf %63 : vector<128x128xf32> to vector<128x128xbf16>
    %c0_26 = arith.constant 0 : index
    %c0_27 = arith.constant 0 : index
    %65 = vector.load %arg6[%c0_26, %c0_27] : memref<128x4xbf16, #tpu.memory_space<vmem>>, vector<128x4xbf16>
    %cst_28 = arith.constant dense<0.000000e+00> : vector<128x4xf32>
    %66 = tpu.matmul %64, %65, %cst_28 {dimension_numbers = #tpu.dot_dimension_numbers<[1], [0], [0], [1], [0, 0, 1, 1], [], []>} : vector<128x128xbf16>, vector<128x4xbf16>, vector<128x4xf32> -> vector<128x4xf32>
    %67 = vector.extract_strided_slice %0 {offsets = [6, 0], sizes = [1, 128], strides = [1, 1]} : vector<19x128xf32> to vector<1x128xf32>
    %68 = vector.extract_strided_slice %67 {offsets = [0, 0], sizes = [1, 4], strides = [1, 1]} : vector<1x128xf32> to vector<1x4xf32>
    %69 = vector.broadcast %68 : vector<1x4xf32> to vector<128x4xf32>
    %70 = arith.addf %66, %69 : vector<128x4xf32>
    %71 = vector.extract_strided_slice %70 {offsets = [0, 1], sizes = [128, 1], strides = [1, 1]} : vector<128x4xf32> to vector<128x1xf32>
    %72 = vector.extract_strided_slice %70 {offsets = [0, 0], sizes = [128, 1], strides = [1, 1]} : vector<128x4xf32> to vector<128x1xf32>
    %73 = arith.subf %71, %72 : vector<128x1xf32>
    %74 = math.exp %73 : vector<128x1xf32>
    %cst_29 = arith.constant 1.000000e+00 : f32
    %75 = vector.broadcast %cst_29 : f32 to vector<128x1xf32>
    %76 = arith.addf %75, %74 : vector<128x1xf32>
    %cst_30 = arith.constant 1.000000e+00 : f32
    %77 = vector.broadcast %cst_30 : f32 to vector<128x1xf32>
    %78 = arith.divf %77, %76 : vector<128x1xf32>
    %cst_31 = arith.constant 1.000000e+00 : f32
    %79 = vector.broadcast %cst_31 : f32 to vector<128x1xf32>
    %80 = arith.subf %79, %78 : vector<128x1xf32>
    %81 = vector.extract_strided_slice %70 {offsets = [0, 3], sizes = [128, 1], strides = [1, 1]} : vector<128x4xf32> to vector<128x1xf32>
    %82 = vector.extract_strided_slice %70 {offsets = [0, 2], sizes = [128, 1], strides = [1, 1]} : vector<128x4xf32> to vector<128x1xf32>
    %83 = arith.subf %81, %82 : vector<128x1xf32>
    %84 = math.exp %83 : vector<128x1xf32>
    %cst_32 = arith.constant 1.000000e+00 : f32
    %85 = vector.broadcast %cst_32 : f32 to vector<128x1xf32>
    %86 = arith.addf %85, %84 : vector<128x1xf32>
    %cst_33 = arith.constant 1.000000e+00 : f32
    %87 = vector.broadcast %cst_33 : f32 to vector<128x1xf32>
    %88 = arith.divf %87, %86 : vector<128x1xf32>
    %cst_34 = arith.constant 1.000000e+00 : f32
    %89 = vector.broadcast %cst_34 : f32 to vector<128x1xf32>
    %90 = arith.subf %89, %88 : vector<128x1xf32>
    %91 = arith.truncf %3 : vector<128x24xf32> to vector<128x24xbf16>
    %c0_35 = arith.constant 0 : index
    %c0_36 = arith.constant 0 : index
    %92 = vector.load %arg5[%c0_35, %c0_36] : memref<24x384xbf16, #tpu.memory_space<vmem>>, vector<24x384xbf16>
    %cst_37 = arith.constant dense<0.000000e+00> : vector<128x384xf32>
    %93 = tpu.matmul %91, %92, %cst_37 {dimension_numbers = #tpu.dot_dimension_numbers<[1], [0], [0], [1], [0, 0, 1, 1], [], []>} : vector<128x24xbf16>, vector<24x384xbf16>, vector<128x384xf32> -> vector<128x384xf32>
    %94 = vector.extract_strided_slice %45 {offsets = [0, 64], sizes = [128, 64], strides = [1, 1]} : vector<128x128xf32> to vector<128x64xf32>
    %95 = tpu.concatenate %94, %94 in 1 : vector<128x64xf32>, vector<128x64xf32> -> vector<128x128xf32>
    %96 = vector.extract_strided_slice %1 {offsets = [0, 0], sizes = [128, 1], strides = [1, 1]} : vector<128x3xf32> to vector<128x1xf32>
    %97 = vector.extract_strided_slice %0 {offsets = [7, 0], sizes = [1, 128], strides = [1, 1]} : vector<19x128xf32> to vector<1x128xf32>
    %98 = vector.broadcast %96 : vector<128x1xf32> to vector<128x128xf32>
    %99 = vector.broadcast %97 : vector<1x128xf32> to vector<128x128xf32>
    %100 = arith.mulf %98, %99 : vector<128x128xf32>
    %101 = vector.extract_strided_slice %1 {offsets = [0, 1], sizes = [128, 1], strides = [1, 1]} : vector<128x3xf32> to vector<128x1xf32>
    %102 = vector.extract_strided_slice %0 {offsets = [8, 0], sizes = [1, 128], strides = [1, 1]} : vector<19x128xf32> to vector<1x128xf32>
    %103 = vector.broadcast %101 : vector<128x1xf32> to vector<128x128xf32>
    %104 = vector.broadcast %102 : vector<1x128xf32> to vector<128x128xf32>
    %105 = arith.mulf %103, %104 : vector<128x128xf32>
    %106 = arith.addf %100, %105 : vector<128x128xf32>
    %107 = vector.extract_strided_slice %1 {offsets = [0, 2], sizes = [128, 1], strides = [1, 1]} : vector<128x3xf32> to vector<128x1xf32>
    %108 = vector.extract_strided_slice %0 {offsets = [9, 0], sizes = [1, 128], strides = [1, 1]} : vector<19x128xf32> to vector<1x128xf32>
    %109 = vector.broadcast %107 : vector<128x1xf32> to vector<128x128xf32>
    %110 = vector.broadcast %108 : vector<1x128xf32> to vector<128x128xf32>
    %111 = arith.mulf %109, %110 : vector<128x128xf32>
    %112 = arith.addf %106, %111 : vector<128x128xf32>
    %113 = vector.extract_strided_slice %0 {offsets = [10, 0], sizes = [1, 128], strides = [1, 1]} : vector<19x128xf32> to vector<1x128xf32>
    %114 = vector.broadcast %113 : vector<1x128xf32> to vector<128x128xf32>
    %115 = arith.addf %112, %114 : vector<128x128xf32>
    %116 = arith.addf %115, %95 : vector<128x128xf32>
    %117 = vector.extract_strided_slice %93 {offsets = [0, 0], sizes = [128, 128], strides = [1, 1]} : vector<128x384xf32> to vector<128x128xf32>
    %118 = arith.addf %116, %117 : vector<128x128xf32>
    %119 = vector.extract_strided_slice %0 {offsets = [16, 0], sizes = [1, 128], strides = [1, 1]} : vector<19x128xf32> to vector<1x128xf32>
    %120 = vector.broadcast %119 : vector<1x128xf32> to vector<128x128xf32>
    %121 = arith.addf %118, %120 : vector<128x128xf32>
    %cst_38 = arith.constant 0.000000e+00 : f32
    %122 = vector.broadcast %cst_38 : f32 to vector<128x128xf32>
    %123 = arith.maximumf %121, %122 : vector<128x128xf32>
    %124 = arith.truncf %123 : vector<128x128xf32> to vector<128x128xbf16>
    %c4 = arith.constant 4 : index
    %c0_39 = arith.constant 0 : index
    %c0_40 = arith.constant 0 : index
    %125 = vector.load %arg4[%c4, %c0_39, %c0_40] : memref<8x128x128xbf16, #tpu.memory_space<vmem>>, vector<1x128x128xbf16>
    %126 = vector.shape_cast %125 : vector<1x128x128xbf16> to vector<128x128xbf16>
    %cst_41 = arith.constant dense<0.000000e+00> : vector<128x128xf32>
    %127 = tpu.matmul %124, %126, %cst_41 {dimension_numbers = #tpu.dot_dimension_numbers<[1], [0], [0], [1], [0, 0, 1, 1], [], []>} : vector<128x128xbf16>, vector<128x128xbf16>, vector<128x128xf32> -> vector<128x128xf32>
    %128 = vector.extract_strided_slice %0 {offsets = [11, 0], sizes = [1, 128], strides = [1, 1]} : vector<19x128xf32> to vector<1x128xf32>
    %129 = vector.broadcast %128 : vector<1x128xf32> to vector<128x128xf32>
    %130 = arith.addf %127, %129 : vector<128x128xf32>
    %131 = arith.addf %130, %95 : vector<128x128xf32>
    %132 = vector.extract_strided_slice %93 {offsets = [0, 128], sizes = [128, 128], strides = [1, 1]} : vector<128x384xf32> to vector<128x128xf32>
    %133 = arith.addf %131, %132 : vector<128x128xf32>
    %134 = vector.extract_strided_slice %0 {offsets = [17, 0], sizes = [1, 128], strides = [1, 1]} : vector<19x128xf32> to vector<1x128xf32>
    %135 = vector.broadcast %134 : vector<1x128xf32> to vector<128x128xf32>
    %136 = arith.addf %133, %135 : vector<128x128xf32>
    %cst_42 = arith.constant 0.000000e+00 : f32
    %137 = vector.broadcast %cst_42 : f32 to vector<128x128xf32>
    %138 = arith.maximumf %136, %137 : vector<128x128xf32>
    %139 = arith.truncf %138 : vector<128x128xf32> to vector<128x128xbf16>
    %c5 = arith.constant 5 : index
    %c0_43 = arith.constant 0 : index
    %c0_44 = arith.constant 0 : index
    %140 = vector.load %arg4[%c5, %c0_43, %c0_44] : memref<8x128x128xbf16, #tpu.memory_space<vmem>>, vector<1x128x128xbf16>
    %141 = vector.shape_cast %140 : vector<1x128x128xbf16> to vector<128x128xbf16>
    %cst_45 = arith.constant dense<0.000000e+00> : vector<128x128xf32>
    %142 = tpu.matmul %139, %141, %cst_45 {dimension_numbers = #tpu.dot_dimension_numbers<[1], [0], [0], [1], [0, 0, 1, 1], [], []>} : vector<128x128xbf16>, vector<128x128xbf16>, vector<128x128xf32> -> vector<128x128xf32>
    %143 = vector.extract_strided_slice %0 {offsets = [12, 0], sizes = [1, 128], strides = [1, 1]} : vector<19x128xf32> to vector<1x128xf32>
    %144 = vector.broadcast %143 : vector<1x128xf32> to vector<128x128xf32>
    %145 = arith.addf %142, %144 : vector<128x128xf32>
    %146 = arith.addf %145, %95 : vector<128x128xf32>
    %147 = vector.extract_strided_slice %93 {offsets = [0, 256], sizes = [128, 128], strides = [1, 1]} : vector<128x384xf32> to vector<128x128xf32>
    %148 = arith.addf %146, %147 : vector<128x128xf32>
    %149 = vector.extract_strided_slice %0 {offsets = [18, 0], sizes = [1, 128], strides = [1, 1]} : vector<19x128xf32> to vector<1x128xf32>
    %150 = vector.broadcast %149 : vector<1x128xf32> to vector<128x128xf32>
    %151 = arith.addf %148, %150 : vector<128x128xf32>
    %cst_46 = arith.constant 0.000000e+00 : f32
    %152 = vector.broadcast %cst_46 : f32 to vector<128x128xf32>
    %153 = arith.maximumf %151, %152 : vector<128x128xf32>
    %154 = arith.truncf %153 : vector<128x128xf32> to vector<128x128xbf16>
    %c6 = arith.constant 6 : index
    %c0_47 = arith.constant 0 : index
    %c0_48 = arith.constant 0 : index
    %155 = vector.load %arg4[%c6, %c0_47, %c0_48] : memref<8x128x128xbf16, #tpu.memory_space<vmem>>, vector<1x128x128xbf16>
    %156 = vector.shape_cast %155 : vector<1x128x128xbf16> to vector<128x128xbf16>
    %cst_49 = arith.constant dense<0.000000e+00> : vector<128x128xf32>
    %157 = tpu.matmul %154, %156, %cst_49 {dimension_numbers = #tpu.dot_dimension_numbers<[1], [0], [0], [1], [0, 0, 1, 1], [], []>} : vector<128x128xbf16>, vector<128x128xbf16>, vector<128x128xf32> -> vector<128x128xf32>
    %158 = vector.extract_strided_slice %0 {offsets = [13, 0], sizes = [1, 128], strides = [1, 1]} : vector<19x128xf32> to vector<1x128xf32>
    %159 = vector.broadcast %158 : vector<1x128xf32> to vector<128x128xf32>
    %160 = arith.addf %157, %159 : vector<128x128xf32>
    %161 = vector.extract_strided_slice %160 {offsets = [0, 0], sizes = [128, 64], strides = [1, 1]} : vector<128x128xf32> to vector<128x64xf32>
    %162 = vector.extract_strided_slice %160 {offsets = [0, 64], sizes = [128, 64], strides = [1, 1]} : vector<128x128xf32> to vector<128x64xf32>
    %163 = vector.broadcast %78 : vector<128x1xf32> to vector<128x64xf32>
    %164 = arith.mulf %163, %161 : vector<128x64xf32>
    %165 = vector.broadcast %80 : vector<128x1xf32> to vector<128x64xf32>
    %166 = arith.mulf %165, %162 : vector<128x64xf32>
    %167 = arith.addf %164, %166 : vector<128x64xf32>
    %168 = vector.broadcast %88 : vector<128x1xf32> to vector<128x64xf32>
    %169 = arith.mulf %168, %161 : vector<128x64xf32>
    %170 = vector.broadcast %90 : vector<128x1xf32> to vector<128x64xf32>
    %171 = arith.mulf %170, %162 : vector<128x64xf32>
    %172 = arith.addf %169, %171 : vector<128x64xf32>
    %173 = tpu.concatenate %167, %172 in 1 : vector<128x64xf32>, vector<128x64xf32> -> vector<128x128xf32>
    %174 = arith.truncf %173 : vector<128x128xf32> to vector<128x128xbf16>
    %c7 = arith.constant 7 : index
    %c0_50 = arith.constant 0 : index
    %c0_51 = arith.constant 0 : index
    %175 = vector.load %arg4[%c7, %c0_50, %c0_51] : memref<8x128x128xbf16, #tpu.memory_space<vmem>>, vector<1x128x128xbf16>
    %176 = vector.shape_cast %175 : vector<1x128x128xbf16> to vector<128x128xbf16>
    %cst_52 = arith.constant dense<0.000000e+00> : vector<128x128xf32>
    %177 = tpu.matmul %174, %176, %cst_52 {dimension_numbers = #tpu.dot_dimension_numbers<[1], [0], [0], [1], [0, 0, 1, 1], [], []>} : vector<128x128xbf16>, vector<128x128xbf16>, vector<128x128xf32> -> vector<128x128xf32>
    %178 = vector.extract_strided_slice %0 {offsets = [14, 0], sizes = [1, 128], strides = [1, 1]} : vector<19x128xf32> to vector<1x128xf32>
    %179 = vector.broadcast %178 : vector<1x128xf32> to vector<128x128xf32>
    %180 = arith.addf %177, %179 : vector<128x128xf32>
    %cst_53 = arith.constant 0.000000e+00 : f32
    %181 = vector.broadcast %cst_53 : f32 to vector<128x128xf32>
    %182 = arith.maximumf %180, %181 : vector<128x128xf32>
    %183 = arith.truncf %182 : vector<128x128xf32> to vector<128x128xbf16>
    %c0_54 = arith.constant 0 : index
    %c0_55 = arith.constant 0 : index
    %184 = vector.load %arg7[%c0_54, %c0_55] : memref<128x3xbf16, #tpu.memory_space<vmem>>, vector<128x3xbf16>
    %cst_56 = arith.constant dense<0.000000e+00> : vector<128x3xf32>
    %185 = tpu.matmul %183, %184, %cst_56 {dimension_numbers = #tpu.dot_dimension_numbers<[1], [0], [0], [1], [0, 0, 1, 1], [], []>} : vector<128x128xbf16>, vector<128x3xbf16>, vector<128x3xf32> -> vector<128x3xf32>
    %186 = vector.extract_strided_slice %0 {offsets = [15, 0], sizes = [1, 128], strides = [1, 1]} : vector<19x128xf32> to vector<1x128xf32>
    %187 = vector.extract_strided_slice %186 {offsets = [0, 0], sizes = [1, 3], strides = [1, 1]} : vector<1x128xf32> to vector<1x3xf32>
    %188 = vector.broadcast %187 : vector<1x3xf32> to vector<128x3xf32>
    %189 = arith.addf %185, %188 : vector<128x3xf32>
    %c0_57 = arith.constant 0 : index
    %c0_58 = arith.constant 0 : index
    %190 = vector.load %arg9[%c0_57, %c0_58] : memref<128x3xf32, #tpu.memory_space<vmem>>, vector<128x3xf32>
    tpu.vector_store %arg9[%c0_57, %c0_58], %189 {strides = array<i32>} : memref<128x3xf32, #tpu.memory_space<vmem>>, vector<128x3xf32>,
    return
  }
  func.func @transform_0(%arg0: i32) -> (i32, i32) {
    %c0_i32 = arith.constant 0 : i32
    %c0_i32_0 = arith.constant 0 : i32
    return %arg0, %c0_i32 : i32, i32
  }
  func.func @transform_1(%arg0: i32) -> (i32, i32) {
    %c0_i32 = arith.constant 0 : i32
    %c0_i32_0 = arith.constant 0 : i32
    return %arg0, %c0_i32 : i32, i32
  }
  func.func @transform_2(%arg0: i32) -> (i32, i32) {
    %c0_i32 = arith.constant 0 : i32
    %c0_i32_0 = arith.constant 0 : i32
    return %arg0, %c0_i32 : i32, i32
  }
  func.func @transform_3(%arg0: i32) -> (i32, i32, i32) {
    %c0_i32 = arith.constant 0 : i32
    %c0_i32_0 = arith.constant 0 : i32
    %c0_i32_1 = arith.constant 0 : i32
    %c0_i32_2 = arith.constant 0 : i32
    return %c0_i32, %c0_i32_0, %c0_i32_1 : i32, i32, i32
  }
  func.func @transform_4(%arg0: i32) -> (i32, i32) {
    %c0_i32 = arith.constant 0 : i32
    %c0_i32_0 = arith.constant 0 : i32
    %c0_i32_1 = arith.constant 0 : i32
    return %c0_i32, %c0_i32_0 : i32, i32
  }
  func.func @transform_5(%arg0: i32) -> (i32, i32) {
    %c0_i32 = arith.constant 0 : i32
    %c0_i32_0 = arith.constant 0 : i32
    %c0_i32_1 = arith.constant 0 : i32
    return %c0_i32, %c0_i32_0 : i32, i32
  }
  func.func @transform_6(%arg0: i32) -> (i32, i32) {
    %c0_i32 = arith.constant 0 : i32
    %c0_i32_0 = arith.constant 0 : i32
    %c0_i32_1 = arith.constant 0 : i32
    return %c0_i32, %c0_i32_0 : i32, i32
  }
  func.func @transform_7(%arg0: i32) -> (i32, i32) {
    %c0_i32 = arith.constant 0 : i32
    %c0_i32_0 = arith.constant 0 : i32
    %c0_i32_1 = arith.constant 0 : i32
    return %c0_i32, %c0_i32_0 : i32, i32
  }
  func.func @transform_8(%arg0: i32) -> (i32, i32) {
    %c0_i32 = arith.constant 0 : i32
    %c0_i32_0 = arith.constant 0 : i32
    return %arg0, %c0_i32 : i32, i32
  }
}

</mosaic_0001>

<bundles_post_ra>
// kernel: rf_diffusion_forward.1
= control target key start
LH: loop header
LB: loop body
LE: loop exit
PB: predicated region body
PF: predicated region fallthrough
CT: control target
= control target key end

     0   :  { %s8028_s27 = smov 0   ;;  %s13526_s0 = inlined_call_operand.vmem [shape: f32[256,3], index: 0, kind: input, shape index: {}]   ;;  %s13527_s1 = inlined_call_operand.vmem [shape: f32[256,1], index: 1, kind: input, shape index: {}]   ;;  %s13528_s2 = inlined_call_operand.vmem [shape: f32[256,24], index: 2, kind: input, shape index: {}]   ;;  %s13529_s3 = inlined_call_operand.vmem [shape: bf16[8,128,128], index: 3, kind: input, shape index: {}]   ;;  %s13530_s4 = inlined_call_operand.vmem [shape: bf16[24,384], index: 4, kind: input, shape index: {}]   ;;  %s13531_s5 = inlined_call_operand.vmem [shape: bf16[128,4], index: 5, kind: input, shape index: {}]   ;;  %s13532_s6 = inlined_call_operand.vmem [shape: bf16[128,3], index: 6, kind: input, shape index: {}]   ;;  %s13533_s7 = inlined_call_operand.vmem [shape: f32[19,128], index: 7, kind: input, shape index: {}]   ;;  %s13534_s8 = inlined_call_operand.vmem [shape: f32[256,3], index: 8, kind: output, shape index: {}]  }
   0x1 LB: > { %s6989_s28 = sadd.s32 4294967295, %s7968_s27   ;;  %p6993_p0 = scmp.ge.s32.totalorder %s7968_s27, 1  ;;  %s7968_s27 = sphi %s8028_s27, %s18_s27  }
   0x2   : > { %p285_p1 = scmp.lt.s32.totalorder %s7968_s27, 3 }
   0x4   : > { %p286_p2 = pnand %p6993_p0, %p285_p1 }
   0x6   : > { %289 = sbr.rel (%p286_p2) target bundleno = 2718 (0xa9e), region = 52 }
   0xb   : > { %s6994_s29 = sshll.u32 %s6989_s28, 4  ;;  %v13539_v0 = vmov 0   ;;  %v354_v17 = vld [vmem:[%s13533_s7] sm:$0xff]  ;;  %v13560_v51 = vmov 683565275   ;;  %s7977_s14 = smov 24  }
   0xc   : > { %7690 = vset.pattern.permute.xlu2 %v13539_v0  ;;  %7689 = vset.pattern.permute.xlu1 %v13539_v0  ;;  %p330_p3 = scmp.lt.s32.totalorder %s6994_s29, 31  ;;  %v8066_v19 = vperm.slane %v354_v17, 0  ;;  %v8068_v20 = vperm.slane %v354_v17, 1  ;;  %v13545_v56 = vmov 2475754826   ;;  %s7980_s22 = smov 64  }
   0xd   : > { %7688 = vset.pattern.permute.xlu0 %v13539_v0  ;;  %v13550_v59 = vmov 2131351028   ;;  %s7981_s21 = smov 1  }
   0xe   : > { %s14287_s29 = smov (!%p330_p3, %s6994_s29), 31 }
   0xf   : > { %s8039_s30 = sshll.u32 %s14287_s29, 3 }
  0x10   : > { %s8045_s11 = scalar_lea.vmem %s13527_s1, %s8039_s30  ;;  %s10689_s17 = scalar_lea.vmem %s13526_s0, %s8039_s30 }
  0x11   : > { %v377_v1 = vld [vmem:[%s8045_s11 + $0x20] sm:$0xff]  ;;  %v375_v2 = vld [vmem:[%s8045_s11 + $0x10] sm:$0xff]  ;;  %v378_v4 = vld [vmem:[%s8045_s11 + $0x28] sm:$0xff]  ;;  %s10852_s26 = scalar_lea.vmem %s13528_s2, %s8039_s30  ;;  %s13469_s29 = scalar_lea.vmem %s13534_s8, %s8039_s30 }
  0x12   : > { %v373_v3 = vld [vmem:[%s8045_s11] sm:$0xff]  ;;  %427 = vperm.xlu2 %7690, %v377_v1   ;;  %417 = vperm.xlu1 %7689, %v375_v2   ;;  %v376_v5 = vld [vmem:[%s8045_s11 + $0x18] sm:$0xff]  ;;  %v374_v6 = vld [vmem:[%s8045_s11 + $0x8] sm:$0xff]  ;;  %v13548_v1 = vmov 2102212464  }
  0x13   : > { %407 = vperm.xlu0 %7688, %v373_v3   ;;  %v381_v7 = vld [vmem:[%s8045_s11 + $0x40] sm:$0xff]  ;;  %v380_v8 = vld [vmem:[%s8045_s11 + $0x38] sm:$0xff]  ;;  %v379_v9 = vld [vmem:[%s8045_s11 + $0x30] sm:$0xff] }
  0x14   : > { %v384_v10 = vld [vmem:[%s8045_s11 + $0x58] sm:$0xff]  ;;  %v383_v11 = vld [vmem:[%s8045_s11 + $0x50] sm:$0xff]  ;;  %v382_v12 = vld [vmem:[%s8045_s11 + $0x48] sm:$0xff] }
  0x15   : > { %v387_v13 = vld [vmem:[%s8045_s11 + $0x70] sm:$0xff]  ;;  %v386_v14 = vld [vmem:[%s8045_s11 + $0x68] sm:$0xff]  ;;  %v385_v15 = vld [vmem:[%s8045_s11 + $0x60] sm:$0xff] }
  0x16   : > { %v388_v16 = vld [vmem:[%s8045_s11 + $0x78] sm:$0xff] }
  0x1a   : > { %432 = vperm.xlu2 %7690, %v378_v4   ;;  %422 = vperm.xlu1 %7689, %v376_v5   ;;  %v13543_v5 = vmov 920167782  }
  0x1b   : > { %412 = vperm.xlu0 %7688, %v374_v6  }
  0x22   : > { %447 = vperm.xlu2 %7690, %v381_v7   ;;  %442 = vperm.xlu1 %7689, %v380_v8   ;;  %v13541_v8 = vmov 1326507024  }
  0x23   : > { %437 = vperm.xlu0 %7688, %v379_v9  }
  0x2a   : > { %462 = vperm.xlu2 %7690, %v384_v10   ;;  %457 = vperm.xlu1 %7689, %v383_v11  }
  0x2b   : > { %452 = vperm.xlu0 %7688, %v382_v12  }
  0x32   : > { %477 = vperm.xlu2 %7690, %v387_v13   ;;  %472 = vperm.xlu1 %7689, %v386_v14  }
  0x33   : > { %467 = vperm.xlu0 %7688, %v385_v15  }
  0x3b   : > { %482 = vperm.xlu0 %7688, %v388_v16  }
  0x6c   : > { %v428_v18 = vpop.permute.xlu2 %427 }
  0x6d   : > { %v490_v21 = vmul.f32 %v8066_v19, %v428_v18 }
  0x6f   : > { %v8072_v22 = vadd.f32 %v8068_v20, %v490_v21 }
  0x71   : > { %13765 = vst [vmem:[#allocation2_spill] sm:$0xff] %v8072_v22  ;;  %v1142_v24 = vand.u32 2139095040, %v8072_v22  ;;  %v13538_v34 = vand.u32 2147483647, %v8072_v22 }
  0x73   : > { %v1143_v26 = vshrl.u32 %v1142_v24, 23  ;;  %v1146_v38 = vand.u32 8388607, %v13538_v34 }
  0x74   : > { %v433_v23 = vpop.permute.xlu2 %432 }
  0x75   : > { %v491_v25 = vmul.f32 %v8066_v19, %v433_v23  ;;  %v7014_v28 = vadd.s32 4294967169, %v1143_v26  ;;  %v1147_v43 = vor.u32 8388608, %v1146_v38 }
  0x77   : > { %v8077_v27 = vadd.f32 %v8068_v20, %v491_v25  ;;  %v1149_v31 = vadd.s32 1, %v7014_v28  ;;  %v8092_v49 = vshll.u32 %v1147_v43, 8 }
  0x79   : > { %13766 = vst [vmem:[#allocation3_spill] sm:$0xff] %v8077_v27  ;;  %v1297_v29 = vand.u32 2139095040, %v8077_v27  ;;  %vm1150_vm0 = vcmp.gt.s32.totalorder %v1149_v31, 0  ;;  %v13537_v44 = vand.u32 2147483647, %v8077_v27  ;;  %v8123_v15 = vand.u32 65535, %v8092_v49 }
  0x7a   : > { %v1151_v37 = vsel %vm1150_vm0, %v1149_v31, 0  ;;  %v8130_v17 = vshrl.u32 %v8092_v49, 16 }
  0x7b   : > { %v1298_v32 = vshrl.u32 %v1297_v29, 23  ;;  %v1153_v41 = vand.u32 31, %v1151_v37  ;;  %v1301_v53 = vand.u32 8388607, %v13537_v44  ;;  %v8105_v62 = vshrl.u32 %v1151_v37, 5 }
  0x7c   : > { %v448_v30 = vpop.permute.xlu2 %447 }
  0x7d   : > { %v494_v33 = vmul.f32 %v8066_v19, %v448_v30  ;;  %v7017_v35 = vadd.s32 4294967169, %v1298_v32  ;;  %v8090_v47 = vsub.s32 32, %v1153_v41  ;;  %v1156_v52 = vshll.u32 %v13560_v51, %v1153_v41 }
  0x7e   : > { %v1159_v58 = vshll.u32 %v13545_v56, %v1153_v41  ;;  %v1162_v63 = vshll.u32 %v13550_v59, %v1153_v41  ;;  %v1165_v2 = vshll.u32 %v13548_v1, %v1153_v41  ;;  %v1168_v7 = vshll.u32 %v13543_v5, %v1153_v41 }
  0x7f   : > { %v8083_v36 = vadd.f32 %v8068_v20, %v494_v33  ;;  %v1304_v39 = vadd.s32 1, %v7017_v35  ;;  %v1157_v57 = vshrl.u32 %v13545_v56, %v8090_v47  ;;  %v1160_v60 = vshrl.u32 %v13550_v59, %v8090_v47 }
  0x80   : > { %v1163_v4 = vshrl.u32 %v13548_v1, %v8090_v47  ;;  %v1166_v6 = vshrl.u32 %v13543_v5, %v8090_v47  ;;  %v1169_v9 = vshrl.u32 %v13541_v8, %v8090_v47  ;;  %v1302_v10 = vor.u32 8388608, %v1301_v53 }
  0x81   : > { %13767 = vst [vmem:[#allocation4_spill] sm:$0xff] %v8083_v36  ;;  %v1762_v40 = vand.u32 2139095040, %v8083_v36  ;;  %vm1305_vm1 = vcmp.gt.s32.totalorder %v1304_v39, 0  ;;  %v8118_v13 = vor.u32 %v1157_v57, %v1156_v52  ;;  %v8120_v14 = vor.u32 %v1160_v60, %v1159_v58 }
  0x82   : > { %v1306_v48 = vsel %vm1305_vm1, %v1304_v39, 0  ;;  %vm1171_vm2 = vcmp.lt.s32.totalorder %v8105_v62, 1  ;;  %vm1173_vm3 = vcmp.lt.s32.totalorder %v8105_v62, 3  ;;  %v8135_v21 = vor.u32 %v1163_v4, %v1162_v63 }
  0x83   : > { %v1763_v45 = vshrl.u32 %v1762_v40, 23  ;;  %v1308_v61 = vand.u32 31, %v1306_v48  ;;  %v1167_v23 = vor.u32 %v1166_v6, %v1165_v2  ;;  %v1170_v24 = vor.u32 %v1169_v9, %v1168_v7 }
  0x84   : > { %v463_v42 = vpop.permute.xlu2 %462  ;;  %v418_v50 = vpop.permute.xlu1 %417  ;;  %vm1174_vm4 = vcmp.lt.s32.totalorder %v8105_v62, 4  ;;  %v8138_v25 = vshll.u32 %v1302_v10, 8  ;;  %v13535_v26 = vand.u32 2147483647, %v8083_v36  ;;  %v8145_v29 = vsel %vm1171_vm2, %v8118_v13, %v8120_v14 }
  0x85   : > { %v497_v46 = vmul.f32 %v8066_v19, %v463_v42  ;;  %v7026_v54 = vadd.s32 4294967169, %v1763_v45  ;;  %v488_v3 = vmul.f32 %v8066_v19, %v418_v50  ;;  %v8125_v16 = vsub.s32 32, %v1308_v61  ;;  %v408_v39 = vpop.permute.xlu0 %407 }
  0x86   : > { %13770 = vst [vmem:[#allocation7_spill] sm:$0xff] %v8138_v25  ;;  %v8147_v30 = vshrl.u32 %v1306_v48, 5  ;;  %v1320_v31 = vshll.u32 %v13548_v1, %v1308_v61  ;;  %v1311_v33 = vshll.u32 %v13560_v51, %v1308_v61  ;;  %v1323_v35 = vshll.u32 %v13543_v5, %v1308_v61 }
  0x87   : > { %v8098_v55 = vadd.f32 %v8068_v20, %v497_v46  ;;  %v1769_v11 = vadd.s32 1, %v7026_v54  ;;  %v8133_v18 = vadd.f32 %v8068_v20, %v488_v3  ;;  %v1321_v32 = vshrl.u32 %v13543_v5, %v8125_v16 }
  0x88   : > { %v1324_v37 = vshrl.u32 %v13541_v8, %v8125_v16  ;;  %v1312_v40 = vshrl.u32 %v13545_v56, %v8125_v16  ;;  %v1314_v41 = vshll.u32 %v13545_v56, %v1308_v61  ;;  %v1315_v42 = vshrl.u32 %v13550_v59, %v8125_v16 }
  0x89   : > { %13768 = vst [vmem:[#allocation5_spill] sm:$0xff] %v8098_v55  ;;  %v2227_v12 = vand.u32 2139095040, %v8098_v55  ;;  %vm1770_vm5 = vcmp.gt.s32.totalorder %v1769_v11, 0  ;;  %v832_v38 = vand.u32 2139095040, %v8133_v18  ;;  %v1317_v45 = vshll.u32 %v13550_v59, %v1308_v61 }
  0x8a   : > { %13769 = vst [vmem:[#allocation6_spill] sm:$0xff] %v8133_v18  ;;  %v1771_v43 = vsel %vm1770_vm5, %v1769_v11, 0  ;;  %v1318_v46 = vshrl.u32 %v13548_v1, %v8125_v16  ;;  %v1766_v48 = vand.u32 8388607, %v13535_v26  ;;  %v1180_v52 = vsel %vm1174_vm4, %v1167_v23, 920167782 }
  0x8b   : > { %v2228_v28 = vshrl.u32 %v2227_v12, 23  ;;  %v1322_v53 = vor.u32 %v1321_v32, %v1320_v31  ;;  %v13536_v54 = vand.u32 2147483647, %v8098_v55  ;;  %v486_v57 = vmul.f32 %v8066_v19, %v408_v39 }
  0x8c   : > { %v1325_v58 = vor.u32 %v1324_v37, %v1323_v35  ;;  %vm1329_vm6 = vcmp.lt.s32.totalorder %v8147_v30, 4  ;;  %v1773_v60 = vand.u32 31, %v1771_v43  ;;  %v833_v61 = vshrl.u32 %v832_v38, 23 }
  0x8d   : > { %v7035_v50 = vadd.s32 4294967169, %v2228_v28  ;;  %v8176_v63 = vsel %vm1171_vm2, %v8120_v14, %v8135_v21  ;;  %v1184_v2 = vsel %vm1174_vm4, %v1170_v24, 1326507024  ;;  %v8180_v3 = vor.u32 %v1312_v40, %v1311_v33 }
  0x8e   : > { %v8182_v4 = vor.u32 %v1315_v42, %v1314_v41  ;;  %v8184_v6 = vor.u32 %v1318_v46, %v1317_v45  ;;  %vm1326_vm7 = vcmp.lt.s32.totalorder %v8147_v30, 1  ;;  %v1767_v7 = vor.u32 8388608, %v1766_v48  ;;  %v478_v41 = vpop.permute.xlu2 %477 }
  0x8f   : > { %13771 = vst [vmem:[#allocation8_spill] sm:$0xff] %v8180_v3  ;;  %v2234_v9 = vadd.s32 1, %v7035_v50  ;;  %v8190_v10 = vsel %vm1173_vm3, %v8135_v21, %v1180_v52  ;;  %vm1328_vm8 = vcmp.lt.s32.totalorder %v8147_v30, 3  ;;  %v1335_v11 = vsel %vm1329_vm6, %v1322_v53, 920167782 }
  0x90   : > { %13772 = vst [vmem:[#allocation9_spill] sm:$0xff] %v8182_v4  ;;  %v2231_v12 = vand.u32 8388607, %v13536_v54  ;;  %v1339_v24 = vsel %vm1329_vm6, %v1325_v58, 1326507024  ;;  %v8199_v28 = vsub.s32 32, %v1773_v60  ;;  %v8202_v32 = vadd.f32 %v8068_v20, %v486_v57 }
  0x91   : > { %v7008_v31 = vadd.s32 4294967169, %v833_v61  ;;  %v8206_v33 = vsel %vm1173_vm3, %v1167_v23, %v1184_v2  ;;  %v8212_v35 = vsel %vm1326_vm7, %v8180_v3, %v8182_v4  ;;  %v8215_v37 = vand.u32 65535, %v8138_v25 }
  0x92   : > { %13773 = vst [vmem:[#allocation10_spill] sm:$0xff] %v8199_v28  ;;  %v8218_v38 = vshrl.u32 %v8138_v25, 16  ;;  %v8223_v39 = vsel %vm1328_vm8, %v8184_v6, %v1335_v11  ;;  %v8229_v23 = vsel %vm1326_vm7, %v8182_v4, %v8184_v6  ;;  %v8231_v40 = vshll.u32 %v1767_v7, 8 }
  0x93   : > { %13774 = vst [vmem:[#allocation11_spill] sm:$0xff] %v8202_v32  ;;  %vm2235_vm9 = vcmp.gt.s32.totalorder %v2234_v9, 0  ;;  %v8235_v42 = vsel %vm1328_vm8, %v1322_v53, %v1339_v24  ;;  %v8237_v45 = vshrl.u32 %v1771_v43, 5  ;;  %v2232_v46 = vor.u32 8388608, %v2231_v12 }
  0x94   : > { %13775 = vst [vmem:[#allocation12_spill] sm:$0xff] %v8231_v40  ;;  %v13547_v48 = vand.u32 2147483647, %v8133_v18  ;;  %v1785_v50 = vshll.u32 %v13548_v1, %v1773_v60  ;;  %v1786_v52 = vshrl.u32 %v13543_v5, %v8199_v28  ;;  %v839_v57 = vadd.s32 1, %v7008_v31 }
  0x95   : > { %13776 = vst [vmem:[#allocation13_spill] sm:$0xff] %v8237_v45  ;;  %v522_v58 = vand.u32 2139095040, %v8202_v32  ;;  %v1788_v61 = vshll.u32 %v13543_v5, %v1773_v60  ;;  %v1789_v2 = vshrl.u32 %v13541_v8, %v8199_v28  ;;  %v2236_v53 = vsel %vm2235_vm9, %v2234_v9, 0 }
  0x96   : > { %v500_v43 = vmul.f32 %v8066_v19, %v478_v41  ;;  %v1776_v7 = vshll.u32 %v13560_v51, %v1773_v60  ;;  %v1777_v11 = vshrl.u32 %v13545_v56, %v8199_v28  ;;  %v1779_v12 = vshll.u32 %v13545_v56, %v1773_v60 }
  0x97   : > { %v8253_v24 = vand.u32 65535, %v8231_v40  ;;  %v1780_v31 = vshrl.u32 %v13550_v59, %v8199_v28  ;;  %v1782_v26 = vshll.u32 %v13550_v59, %v1773_v60  ;;  %v1783_v9 = vshrl.u32 %v13548_v1, %v8199_v28 }
  0x98   : > { %v8260_v54 = vshll.u32 %v2232_v46, 8  ;;  %v1787_v41 = vor.u32 %v1786_v52, %v1785_v50  ;;  %v2238_v44 = vand.u32 31, %v2236_v53  ;;  %vm840_vm10 = vcmp.gt.s32.totalorder %v839_v57, 0 }
  0x99   : > { %13777 = vst [vmem:[#allocation14_spill] sm:$0xff] %v8253_v24  ;;  %v523_v34 = vshrl.u32 %v522_v58, 23  ;;  %v1790_v0 = vor.u32 %v1789_v2, %v1788_v61  ;;  %vm13597_vm11 = vcmp.lt.s32.totalorder %v8237_v45, 4  ;;  %v836_v8 = vand.u32 8388607, %v13547_v48  ;;  %v423_v61 = vpop.permute.xlu1 %422 }
  0x9a   : > { %13778 = vst [vmem:[#allocation15_spill] sm:$0xff] %v8260_v54  ;;  %v8266_v5 = vadd.f32 %v8068_v20, %v500_v43  ;;  %v8268_v56 = vor.u32 %v1777_v11, %v1776_v7  ;;  %vm13596_vm12 = vcmp.lt.s32.totalorder %v8237_v45, 1  ;;  %vm13593_vm13 = vcmp.lt.s32.totalorder %v8237_v45, 3 }
  0x9b   : > { %v8273_v60 = vshrl.u32 %v8231_v40, 16  ;;  %v8275_v46 = vor.u32 %v1780_v31, %v1779_v12  ;;  %v8277_v50 = vor.u32 %v1783_v9, %v1782_v26  ;;  %v8280_v52 = vand.u32 65535, %v8260_v54 }
  0x9c   : > { %13779 = vst [vmem:[#allocation16_spill] sm:$0xff] %v8266_v5  ;;  %v841_v58 = vsel %vm840_vm10, %v839_v57, 0  ;;  %v1800_v2 = vsel %vm13597_vm11, %v1787_v41, 920167782  ;;  %v8284_v43 = vsub.s32 32, %v2238_v44  ;;  %v8287_v7 = vshrl.u32 %v8260_v54, 16 }
  0x9d   : > { %13780 = vst [vmem:[#allocation17_spill] sm:$0xff] %v8268_v56  ;;  %v7002_v11 = vadd.s32 4294967169, %v523_v34  ;;  %v1804_v12 = vsel %vm13597_vm11, %v1790_v0, 1326507024  ;;  %v8291_v31 = vshrl.u32 %v2236_v53, 5  ;;  %v837_v26 = vor.u32 8388608, %v836_v8 }
  0x9e   : > { %13781 = vst [vmem:[#allocation18_spill] sm:$0xff] %v8273_v60  ;;  %v2692_v9 = vand.u32 2139095040, %v8266_v5  ;;  %v2241_v57 = vshll.u32 %v13560_v51, %v2238_v44  ;;  %v843_v48 = vand.u32 31, %v841_v58  ;;  %v489_v59 = vmul.f32 %v8066_v19, %v423_v61 }
  0x9f   : > { %13782 = vst [vmem:[#allocation19_spill] sm:$0xff] %v8275_v46  ;;  %v13788_v36 = vmov 2475754826   ;;  %v13789_v55 = vmov 2131351028   ;;  %v529_v1 = vadd.s32 1, %v7002_v11  ;;  %v8323_v11 = vsel %vm13596_vm12, %v8275_v46, %v8277_v50 }
  0xa0   : > { %13783 = vst [vmem:[#allocation20_spill] sm:$0xff] %v8277_v50  ;;  %v2244_v40 = vshll.u32 %v13788_v36, %v2238_v44  ;;  %v2247_v28 = vshll.u32 %v13789_v55, %v2238_v44  ;;  %v13790_v34 = vmov 2102212464   ;;  %v13791_v24 = vmov 920167782  }
  0xa1   : > { %13784 = vst [vmem:[#allocation21_spill] sm:$0xff] %v8280_v52  ;;  %v2250_v60 = vshll.u32 %v13790_v34, %v2238_v44  ;;  %v2253_v0 = vshll.u32 %v13791_v24, %v2238_v44  ;;  %v2242_v8 = vshrl.u32 %v13788_v36, %v8284_v43  ;;  %v2245_v53 = vshrl.u32 %v13789_v55, %v8284_v43 }
  0xa2   : > { %13785 = vst [vmem:[#allocation22_spill] sm:$0xff] %v8284_v43  ;;  %v2248_v51 = vshrl.u32 %v13790_v34, %v8284_v43  ;;  %v2251_v61 = vshrl.u32 %v13791_v24, %v8284_v43  ;;  %v13792_v54 = vmov 1326507024   ;;  %v8311_v52 = vshll.u32 %v837_v26, 8 }
  0xa3   : > { %13786 = vst [vmem:[#allocation23_spill] sm:$0xff] %v8287_v7  ;;  %v2254_v7 = vshrl.u32 %v13792_v54, %v8284_v43  ;;  %v2693_v18 = vshrl.u32 %v2692_v9, 23  ;;  %v8317_v44 = vsel %vm13596_vm12, %v8268_v56, %v8275_v46  ;;  %v8325_v27 = vsub.s32 32, %v843_v48 }
  0xa4   : > { %13787 = vst [vmem:[#allocation24_spill] sm:$0xff] %v8291_v31  ;;  %v8328_v22 = vadd.f32 %v8068_v20, %v489_v59  ;;  %v8333_v26 = vsel %vm13593_vm13, %v8277_v50, %v1800_v2  ;;  %v8337_v9 = vsel %vm13593_vm13, %v1787_v41, %v1804_v12  ;;  %vm13612_vm14 = vcmp.lt.s32.totalorder %v8291_v31, 4 }
  0xa5   : > { %13793 = vst [vmem:[#allocation25_spill] sm:$0xff] %v8311_v52  ;;  %v13800_v56 = vand.u32 2147483647, %v8202_v32  ;;  %v8346_v59 = vor.u32 %v2248_v51, %v2247_v28  ;;  %vm13611_vm15 = vcmp.lt.s32.totalorder %v8291_v31, 1  ;;  %vm13609_vm0 = vcmp.lt.s32.totalorder %v8291_v31, 3 }
  0xa6   : > { %13794 = vst [vmem:[#allocation26_spill] sm:$0xff] %v8317_v44  ;;  %v8344_v44 = vor.u32 %v2245_v53, %v2244_v40  ;;  %vm530_vm1 = vcmp.gt.s32.totalorder %v529_v1, 0  ;;  %v2252_v2 = vor.u32 %v2251_v61, %v2250_v60  ;;  %v2255_v50 = vor.u32 %v2254_v7, %v2253_v0 }
  0xa7   : > { %13795 = vst [vmem:[#allocation27_spill] sm:$0xff] %v8323_v11  ;;  %v526_v46 = vand.u32 8388607, %v13800_v56  ;;  %v8342_v11 = vor.u32 %v2242_v8, %v2241_v57  ;;  %v8351_v41 = vand.u32 65535, %v8311_v52  ;;  %v7044_v12 = vadd.s32 4294967169, %v2693_v18 }
  0xa8   : > { %13796 = vst [vmem:[#allocation28_spill] sm:$0xff] %v8325_v27  ;;  %v856_v56 = vshrl.u32 %v13791_v24, %v8325_v27  ;;  %v8357_v40 = vshrl.u32 %v8311_v52, 16  ;;  %v987_v51 = vand.u32 2139095040, %v8328_v22  ;;  %v8360_v28 = vshrl.u32 %v841_v58, 5 }
  0xa9   : > { %13797 = vst [vmem:[#allocation29_spill] sm:$0xff] %v8328_v22  ;;  %v13807_v57 = vmov 683565275   ;;  %v527_v60 = vor.u32 8388608, %v526_v46  ;;  %v531_v7 = vsel %vm530_vm1, %v529_v1, 0  ;;  %v847_v0 = vshrl.u32 %v13788_v36, %v8325_v27 }
  0xaa   : > { %13798 = vst [vmem:[#allocation30_spill] sm:$0xff] %v8333_v26  ;;  %v846_v8 = vshll.u32 %v13807_v57, %v843_v48  ;;  %v849_v18 = vshll.u32 %v13788_v36, %v843_v48  ;;  %v858_v53 = vshll.u32 %v13791_v24, %v843_v48  ;;  %v859_v61 = vshrl.u32 %v13792_v54, %v8325_v27 }
  0xab   : > { %13799 = vst [vmem:[#allocation31_spill] sm:$0xff] %v8337_v9  ;;  %v855_v9 = vshll.u32 %v13790_v34, %v843_v48  ;;  %v850_v26 = vshrl.u32 %v13789_v55, %v8325_v27  ;;  %v852_v58 = vshll.u32 %v13789_v55, %v843_v48  ;;  %v853_v45 = vshrl.u32 %v13790_v34, %v8325_v27 }
  0xac   : > { %13801 = vst [vmem:[#allocation32_spill] sm:$0xff] %v8342_v11  ;;  %v2699_v46 = vadd.s32 1, %v7044_v12  ;;  %v533_v43 = vand.u32 31, %v531_v7  ;;  %v988_v52 = vshrl.u32 %v987_v51, 23  ;;  %v2269_v25 = vsel %vm13612_vm14, %v2255_v50, 1326507024 }
  0xad   : > { %13802 = vst [vmem:[#allocation33_spill] sm:$0xff] %v8344_v44  ;;  %v857_v1 = vor.u32 %v856_v56, %v855_v9  ;;  %vm861_vm5 = vcmp.lt.s32.totalorder %v8360_v28, 1  ;;  %vm864_vm9 = vcmp.lt.s32.totalorder %v8360_v28, 4  ;;  %v8381_v48 = vor.u32 %v847_v0, %v846_v8 }
  0xae   : > { %13803 = vst [vmem:[#allocation34_spill] sm:$0xff] %v8346_v59  ;;  %v860_v27 = vor.u32 %v859_v61, %v858_v53  ;;  %vm863_vm10 = vcmp.lt.s32.totalorder %v8360_v28, 3  ;;  %v8384_v9 = vshll.u32 %v527_v60, 8  ;;  %v8386_v12 = vor.u32 %v850_v26, %v849_v18 }
  0xaf   : > { %13804 = vst [vmem:[#allocation35_spill] sm:$0xff] %v8351_v41  ;;  %v2265_v41 = vsel %vm13612_vm14, %v2252_v2, 920167782  ;;  %v8388_v56 = vor.u32 %v853_v45, %v852_v58  ;;  %vm2700_vm1 = vcmp.gt.s32.totalorder %v2699_v46, 0  ;;  %v870_v50 = vsel %vm864_vm9, %v857_v1, 920167782 }
  0xb0   : > { %13805 = vst [vmem:[#allocation36_spill] sm:$0xff] %v8357_v40  ;;  %v413_v40 = vpop.permute.xlu0 %412  ;;  %v8393_v32 = vsub.s32 32, %v533_v43  ;;  %v13813_v8 = vand.u32 2147483647, %v8266_v5  ;;  %v7011_v53 = vadd.s32 4294967169, %v988_v52  ;;  %v8401_v26 = vsel %vm13611_vm15, %v8342_v11, %v8344_v44 }
  0xb1   : > { %13806 = vst [vmem:[#allocation37_spill] sm:$0xff] %v8360_v28  ;;  %v487_v51 = vmul.f32 %v8066_v19, %v413_v40  ;;  %v8406_v45 = vsel %vm13609_vm0, %v8346_v59, %v2265_v41  ;;  %v8412_v40 = vsel %vm13611_vm15, %v8344_v44, %v8346_v59  ;;  %v8416_v52 = vsel %vm13609_vm0, %v2252_v2, %v2269_v25 }
  0xb2   : > { %13808 = vst [vmem:[#allocation38_spill] sm:$0xff] %v8381_v48  ;;  %v2696_v0 = vand.u32 8388607, %v13813_v8  ;;  %v874_v60 = vsel %vm864_vm9, %v860_v27, 1326507024  ;;  %v8421_v18 = vand.u32 65535, %v8384_v9  ;;  %v8430_v58 = vsel %vm861_vm5, %v8381_v48, %v8386_v12 }
  0xb3   : > { %13809 = vst [vmem:[#allocation39_spill] sm:$0xff] %v8384_v9  ;;  %v8424_v61 = vshrl.u32 %v8384_v9, 16  ;;  %v2701_v41 = vsel %vm2700_vm1, %v2699_v46, 0  ;;  %v8435_v25 = vsel %vm863_vm10, %v8388_v56, %v870_v50  ;;  %v8441_v27 = vsel %vm861_vm5, %v8386_v12, %v8388_v56  ;;  %v443_v46 = vpop.permute.xlu1 %442 }
  0xb4   : > { %13810 = vst [vmem:[#allocation40_spill] sm:$0xff] %v8386_v12  ;;  %v8444_v2 = vadd.f32 %v8068_v20, %v487_v51  ;;  %v537_v8 = vshrl.u32 %v13788_v36, %v8393_v32  ;;  %v540_v5 = vshrl.u32 %v13789_v55, %v8393_v32  ;;  %v2697_v44 = vor.u32 8388608, %v2696_v0 }
  0xb5   : > { %13811 = vst [vmem:[#allocation41_spill] sm:$0xff] %v8388_v56  ;;  %v994_v11 = vadd.s32 1, %v7011_v53  ;;  %v8452_v50 = vsel %vm863_vm10, %v857_v1, %v874_v60  ;;  %v8454_v59 = vshrl.u32 %v531_v7, 5  ;;  %v536_v51 = vshll.u32 %v13807_v57, %v533_v43 }
  0xb6   : > { %13812 = vst [vmem:[#allocation42_spill] sm:$0xff] %v8393_v32  ;;  %v493_v31 = vmul.f32 %v8066_v19, %v443_v46  ;;  %v543_v0 = vshrl.u32 %v13790_v34, %v8393_v32  ;;  %v545_v1 = vshll.u32 %v13790_v34, %v533_v43  ;;  %v549_v7 = vshrl.u32 %v13792_v54, %v8393_v32 }
  0xb7   : > { %13814 = vst [vmem:[#allocation43_spill] sm:$0xff] %v8401_v26  ;;  %v2703_v26 = vand.u32 31, %v2701_v41  ;;  %v677_v53 = vand.u32 2139095040, %v8444_v2  ;;  %v8468_v60 = vor.u32 %v537_v8, %v536_v51  ;;  %v8472_v9 = vshll.u32 %v2697_v44, 8 }
  0xb8   : > { %13815 = vst [vmem:[#allocation44_spill] sm:$0xff] %v8406_v45  ;;  %vm995_vm1 = vcmp.gt.s32.totalorder %v994_v11, 0  ;;  %v548_v46 = vshll.u32 %v13791_v24, %v533_v43  ;;  %vm13623_vm13 = vcmp.lt.s32.totalorder %v8454_v59, 1  ;;  %vm13617_vm12 = vcmp.lt.s32.totalorder %v8454_v59, 3 }
  0xb9   : > { %13816 = vst [vmem:[#allocation45_spill] sm:$0xff] %v8412_v40  ;;  %v539_v40 = vshll.u32 %v13788_v36, %v533_v43  ;;  %vm13645_vm11 = vcmp.lt.s32.totalorder %v8454_v59, 4  ;;  %v8482_v8 = vadd.f32 %v8068_v20, %v493_v31  ;;  %v678_v51 = vshrl.u32 %v677_v53, 23 }
  0xba   : > { %13817 = vst [vmem:[#allocation46_spill] sm:$0xff] %v8416_v52  ;;  %v546_v52 = vshrl.u32 %v13791_v24, %v8393_v32  ;;  %v550_v44 = vor.u32 %v549_v7, %v548_v46  ;;  %v8497_v32 = vshrl.u32 %v8472_v9, 16  ;;  %v8508_v46 = vshrl.u32 %v2701_v41, 5 }
  0xbb   : > { %13818 = vst [vmem:[#allocation47_spill] sm:$0xff] %v8421_v18  ;;  %v8470_v45 = vor.u32 %v540_v5, %v539_v40  ;;  %v8477_v18 = vsub.s32 32, %v2703_v26  ;;  %v996_v40 = vsel %vm995_vm1, %v994_v11, 0  ;;  %v2709_v11 = vshll.u32 %v13788_v36, %v2703_v26 }
  0xbc   : > { %13819 = vst [vmem:[#allocation48_spill] sm:$0xff] %v8424_v61  ;;  %v542_v61 = vshll.u32 %v13789_v55, %v533_v43  ;;  %v547_v12 = vor.u32 %v546_v52, %v545_v1  ;;  %v2706_v52 = vshll.u32 %v13807_v57, %v2703_v26  ;;  %v8494_v1 = vand.u32 65535, %v8472_v9 }
  0xbd   : > { %13820 = vst [vmem:[#allocation49_spill] sm:$0xff] %v8430_v58  ;;  %v8490_v43 = vsel %vm13623_vm13, %v8468_v60, %v8470_v45  ;;  %v2707_v31 = vshrl.u32 %v13788_v36, %v8477_v18  ;;  %v2715_v48 = vshll.u32 %v13790_v34, %v2703_v26  ;;  %v7005_v56 = vadd.s32 4294967169, %v678_v51 }
  0xbe   : > { %13821 = vst [vmem:[#allocation50_spill] sm:$0xff] %v8435_v25  ;;  %v8484_v5 = vor.u32 %v543_v0, %v542_v61  ;;  %v2710_v61 = vshrl.u32 %v13789_v55, %v8477_v18  ;;  %v13835_v0 = vand.u32 2147483647, %v8328_v22  ;;  %v560_v53 = vsel %vm13645_vm11, %v547_v12, 920167782 }
  0xbf   : > { %13822 = vst [vmem:[#allocation51_spill] sm:$0xff] %v8441_v27  ;;  %v2716_v22 = vshrl.u32 %v13791_v24, %v8477_v18  ;;  %v2718_v41 = vshll.u32 %v13791_v24, %v2703_v26  ;;  %v2719_v27 = vshrl.u32 %v13792_v54, %v8477_v18  ;;  %vm13624_vm1 = vcmp.lt.s32.totalorder %v8508_v46, 1 }
  0xc0   : > { %13823 = vst [vmem:[#allocation52_spill] sm:$0xff] %v8444_v2  ;;  %v991_v7 = vand.u32 8388607, %v13835_v0  ;;  %v2713_v0 = vshrl.u32 %v13790_v34, %v8477_v18  ;;  %v8524_v58 = vor.u32 %v2710_v61, %v2709_v11  ;;  %v8531_v51 = vsel %vm13623_vm13, %v8470_v45, %v8484_v5 }
  0xc1   : > { %13824 = vst [vmem:[#allocation53_spill] sm:$0xff] %v8452_v50  ;;  %v8522_v50 = vor.u32 %v2707_v31, %v2706_v52  ;;  %v8539_v52 = vsel %vm13617_vm12, %v8484_v5, %v560_v53  ;;  %v684_v11 = vadd.s32 1, %v7005_v56  ;;  %vm13641_vm0 = vcmp.lt.s32.totalorder %v8508_v46, 4 }
  0xc2   : > { %13825 = vst [vmem:[#allocation54_spill] sm:$0xff] %v8454_v59  ;;  %vm13640_vm15 = vcmp.lt.s32.totalorder %v8508_v46, 3 }
  0xc3   : > { %13826 = vst [vmem:[#allocation55_spill] sm:$0xff] %v8468_v60  ;;  %v564_v60 = vsel %vm13645_vm11, %v550_v44, 1326507024  ;;  %v992_v44 = vor.u32 8388608, %v991_v7  ;;  %v2717_v7 = vor.u32 %v2716_v22, %v2715_v48  ;;  %vm685_vm14 = vcmp.gt.s32.totalorder %v684_v11, 0 }
  0xc4   : > { %13827 = vst [vmem:[#allocation56_spill] sm:$0xff] %v8470_v45  ;;  %v8543_v31 = vsel %vm13617_vm12, %v547_v12, %v564_v60  ;;  %v458_v45 = vpop.permute.xlu1 %457  ;;  %v8556_v12 = vshrl.u32 %v996_v40, 5 }
  0xc5   : > { %13828 = vst [vmem:[#allocation57_spill] sm:$0xff] %v8472_v9  ;;  %v1607_v9 = vand.u32 2139095040, %v8482_v8  ;;  %v8558_v60 = vshll.u32 %v992_v44, 8 }
  0xc6   : > { %13829 = vst [vmem:[#allocation58_spill] sm:$0xff] %v8477_v18  ;;  %v2720_v18 = vor.u32 %v2719_v27, %v2718_v41  ;;  %vm1019_vm12 = vcmp.lt.s32.totalorder %v8556_v12, 4  ;;  %vm13678_vm13 = vcmp.lt.s32.totalorder %v8556_v12, 1 }
  0xc7   : > { %13830 = vst [vmem:[#allocation59_spill] sm:$0xff] %v8482_v8 }
  0xc8   : > { %13831 = vst [vmem:[#allocation60_spill] sm:$0xff] %v8484_v5  ;;  %v686_v5 = vsel %vm685_vm14, %v684_v11, 0  ;;  %vm13652_vm14 = vcmp.lt.s32.totalorder %v8556_v12, 3 }
  0xc9   : > { %13832 = vst [vmem:[#allocation61_spill] sm:$0xff] %v8490_v43  ;;  %v2712_v43 = vshll.u32 %v13789_v55, %v2703_v26  ;;  %v1608_v26 = vshrl.u32 %v1607_v9, 23  ;;  %v8554_v9 = vsel %vm13624_vm1, %v8522_v50, %v8524_v58 }
  0xca   : > { %13833 = vst [vmem:[#allocation62_spill] sm:$0xff] %v8494_v1  ;;  %v998_v1 = vand.u32 31, %v996_v40 }
  0xcb   : > { %13834 = vst [vmem:[#allocation63_spill] sm:$0xff] %v8497_v32  ;;  %v438_v32 = vpop.permute.xlu0 %437  ;;  %v8546_v61 = vor.u32 %v2713_v0, %v2712_v43  ;;  %v7023_v43 = vadd.s32 4294967169, %v1608_v26  ;;  %v496_v0 = vmul.f32 %v8066_v19, %v458_v45 }
  0xcc   : > { %13836 = vst [vmem:[#allocation64_spill] sm:$0xff] %v8508_v46  ;;  %v492_v25 = vmul.f32 %v8066_v19, %v438_v32  ;;  %v8534_v4 = vsub.s32 32, %v998_v1  ;;  %v13614_v32 = vand.u32 2147483647, %v8444_v2  ;;  %v1010_v22 = vshll.u32 %v13790_v34, %v998_v1 }
  0xcd   : > { %13837 = vst [vmem:[#allocation65_spill] sm:$0xff] %v8522_v50  ;;  %v1013_v27 = vshll.u32 %v13791_v24, %v998_v1  ;;  %v1001_v41 = vshll.u32 %v13807_v57, %v998_v1  ;;  %v1004_v44 = vshll.u32 %v13788_v36, %v998_v1  ;;  %v1007_v50 = vshll.u32 %v13789_v55, %v998_v1 }
  0xce   : > { %13838 = vst [vmem:[#allocation66_spill] sm:$0xff] %v8524_v58  ;;  %v8561_v56 = vadd.f32 %v8068_v20, %v492_v25  ;;  %v1011_v48 = vshrl.u32 %v13791_v24, %v8534_v4  ;;  %v1014_v53 = vshrl.u32 %v13792_v54, %v8534_v4  ;;  %v681_v40 = vand.u32 8388607, %v13614_v32 }
  0xcf   : > { %13839 = vst [vmem:[#allocation67_spill] sm:$0xff] %v8531_v51  ;;  %v2730_v25 = vsel %vm13641_vm0, %v2717_v7, 920167782  ;;  %v1002_v26 = vshrl.u32 %v13788_v36, %v8534_v4  ;;  %v1008_v32 = vshrl.u32 %v13790_v34, %v8534_v4  ;;  %v1614_v51 = vadd.s32 1, %v7023_v43 }
  0xd0   : > { %13840 = vst [vmem:[#allocation68_spill] sm:$0xff] %v8534_v4  ;;  %v1452_v45 = vand.u32 2139095040, %v8561_v56  ;;  %v1012_v2 = vor.u32 %v1011_v48, %v1010_v22  ;;  %v8587_v59 = vadd.f32 %v8068_v20, %v496_v0  ;;  %v8593_v28 = vsel %vm13624_vm1, %v8524_v58, %v8546_v61 }
  0xd1   : > { %13841 = vst [vmem:[#allocation69_spill] sm:$0xff] %v8539_v52  ;;  %v682_v52 = vor.u32 8388608, %v681_v40  ;;  %v2734_v22 = vsel %vm13641_vm0, %v2720_v18, 1326507024  ;;  %v8599_v11 = vor.u32 %v1002_v26, %v1001_v41  ;;  %v688_v48 = vand.u32 31, %v686_v5 }
  0xd2   : > { %13842 = vst [vmem:[#allocation70_spill] sm:$0xff] %v8543_v31  ;;  %v1015_v31 = vor.u32 %v1014_v53, %v1013_v27  ;;  %v13626_v27 = vand.u32 2147483647, %v8561_v56  ;;  %v1453_v43 = vshrl.u32 %v1452_v45, 23  ;;  %v8604_v40 = vor.u32 %v1008_v32, %v1007_v50 }
  0xd3   : > { %13843 = vst [vmem:[#allocation71_spill] sm:$0xff] %v8546_v61  ;;  %v1025_v0 = vsel %vm1019_vm12, %v1012_v2, 920167782  ;;  %vm1615_vm1 = vcmp.gt.s32.totalorder %v1614_v51, 0  ;;  %v8610_v1 = vshll.u32 %v682_v52, 8  ;;  %v2072_v58 = vand.u32 2139095040, %v8587_v59 }
  0xd4   : > { %13844 = vst [vmem:[#allocation72_spill] sm:$0xff] %v8554_v9  ;;  %v1005_v9 = vshrl.u32 %v13789_v55, %v8534_v4  ;;  %v1029_v18 = vsel %vm1019_vm12, %v1015_v31, 1326507024  ;;  %v13854_v41 = vand.u32 2147483647, %v8482_v8  ;;  %v8622_v50 = vsel %vm13640_vm15, %v2717_v7, %v2734_v22 }
  0xd5   : > { %13845 = vst [vmem:[#allocation73_spill] sm:$0xff] %v8556_v12  ;;  %v8625_v32 = vand.u32 65535, %v8558_v60  ;;  %v8628_v52 = vshrl.u32 %v8558_v60, 16  ;;  %v8630_v31 = vsub.s32 32, %v688_v48  ;;  %v7020_v45 = vadd.s32 4294967169, %v1453_v43 }
  0xd6   : > { %13846 = vst [vmem:[#allocation74_spill] sm:$0xff] %v8558_v60  ;;  %v8602_v53 = vor.u32 %v1005_v9, %v1004_v44  ;;  %v1611_v26 = vand.u32 8388607, %v13854_v41  ;;  %v8618_v9 = vsel %vm13640_vm15, %v8546_v61, %v2730_v25  ;;  %v1616_v44 = vsel %vm1615_vm1, %v1614_v51, 0  ;;  %v453_v25 = vpop.permute.xlu0 %452 }
  0xd7   : > { %13847 = vst [vmem:[#allocation75_spill] sm:$0xff] %v8561_v56  ;;  %v8634_v41 = vand.u32 8388607, %v13626_v27  ;;  %v8645_v22 = vsel %vm13652_vm14, %v8604_v40, %v1025_v0  ;;  %v8655_v43 = vsel %vm13652_vm14, %v1012_v2, %v1029_v18  ;;  %v8658_v27 = vand.u32 65535, %v8610_v1 }
  0xd8   : > { %13848 = vst [vmem:[#allocation76_spill] sm:$0xff] %v8587_v59  ;;  %v8640_v7 = vsel %vm13678_vm13, %v8599_v11, %v8602_v53  ;;  %v8651_v51 = vsel %vm13678_vm13, %v8602_v53, %v8604_v40  ;;  %v8661_v61 = vshrl.u32 %v8610_v1, 16  ;;  %v8663_v0 = vshrl.u32 %v686_v5, 5 }
  0xd9   : > { %13849 = vst [vmem:[#allocation77_spill] sm:$0xff] %v8593_v28  ;;  %v2073_v28 = vshrl.u32 %v2072_v58, 23  ;;  %v495_v8 = vmul.f32 %v8066_v19, %v453_v25  ;;  %v691_v56 = vshll.u32 %v13807_v57, %v688_v48  ;;  %v692_v2 = vshrl.u32 %v13788_v36, %v8630_v31 }
  0xda   : > { %13850 = vst [vmem:[#allocation78_spill] sm:$0xff] %v8599_v11  ;;  %v1457_v18 = vor.u32 8388608, %v8634_v41  ;;  %v698_v58 = vshrl.u32 %v13790_v34, %v8630_v31  ;;  %v701_v5 = vshrl.u32 %v13791_v24, %v8630_v31  ;;  %v694_v25 = vshll.u32 %v13788_v36, %v688_v48 }
  0xdb   : > { %13851 = vst [vmem:[#allocation79_spill] sm:$0xff] %v8602_v53  ;;  %v697_v46 = vshll.u32 %v13789_v55, %v688_v48  ;;  %v7032_v41 = vadd.s32 4294967169, %v2073_v28  ;;  %v703_v60 = vshll.u32 %v13791_v24, %v688_v48  ;;  %vm13675_vm1 = vcmp.lt.s32.totalorder %v8663_v0, 1 }
  0xdc   : > { %13852 = vst [vmem:[#allocation80_spill] sm:$0xff] %v8604_v40  ;;  %v8688_v11 = vor.u32 %v692_v2, %v691_v56  ;;  %vm13657_vm15 = vcmp.lt.s32.totalorder %v8663_v0, 4  ;;  %vm13671_vm11 = vcmp.lt.s32.totalorder %v8663_v0, 3  ;;  %v8737_v12 = vshll.u32 %v1457_v18, 8 }
  0xdd   : > { %13853 = vst [vmem:[#allocation81_spill] sm:$0xff] %v8610_v1  ;;  %v695_v1 = vshrl.u32 %v13789_v55, %v8630_v31  ;;  %v2079_v2 = vadd.s32 1, %v7032_v41 }
  0xde   : > { %13855 = vst [vmem:[#allocation82_spill] sm:$0xff] %v8618_v9  ;;  %v1612_v9 = vor.u32 8388608, %v1611_v26  ;;  %v704_v26 = vshrl.u32 %v13792_v54, %v8630_v31 }
  0xdf   : > { %13856 = vst [vmem:[#allocation83_spill] sm:$0xff] %v8622_v50  ;;  %v1618_v50 = vand.u32 31, %v1616_v44  ;;  %v8694_v40 = vor.u32 %v695_v1, %v694_v25 }
  0xe0   : > { %13857 = vst [vmem:[#allocation84_spill] sm:$0xff] %v8625_v32  ;;  %v705_v4 = vor.u32 %v704_v26, %v703_v60 }
  0xe1   : > { %13858 = vst [vmem:[#allocation85_spill] sm:$0xff] %v8628_v52  ;;  %v8686_v53 = vsub.s32 32, %v1618_v50  ;;  %v1633_v1 = vshll.u32 %v13791_v24, %v1618_v50  ;;  %v1621_v26 = vshll.u32 %v13807_v57, %v1618_v50  ;;  %v1624_v41 = vshll.u32 %v13788_v36, %v1618_v50 }
  0xe2   : > { %13859 = vst [vmem:[#allocation86_spill] sm:$0xff] %v8630_v31  ;;  %v8692_v31 = vadd.f32 %v8068_v20, %v495_v8 }
  0xe3   : > { %13860 = vst [vmem:[#allocation87_spill] sm:$0xff] %v8640_v7  ;;  %v1631_v8 = vshrl.u32 %v13791_v24, %v8686_v53  ;;  %v1622_v25 = vshrl.u32 %v13788_v36, %v8686_v53 }
  0xe4   : > { %13861 = vst [vmem:[#allocation88_spill] sm:$0xff] %v8645_v22 }
  0xe5   : > { %13862 = vst [vmem:[#allocation89_spill] sm:$0xff] %v8651_v51 }
  0xe6   : > { %13863 = vst [vmem:[#allocation90_spill] sm:$0xff] %v8655_v43 }
  0xe7   : > { %13864 = vst [vmem:[#allocation91_spill] sm:$0xff] %v8658_v27  ;;  %v1459_v27 = vadd.s32 1, %v7020_v45  ;;  %v700_v45 = vshll.u32 %v13790_v34, %v688_v48  ;;  %v1630_v48 = vshll.u32 %v13790_v34, %v1618_v50 }
  0xe8   : > { %13865 = vst [vmem:[#allocation92_spill] sm:$0xff] %v8661_v61  ;;  %v8681_v61 = vshll.u32 %v1612_v9, 8  ;;  %v8696_v9 = vor.u32 %v698_v58, %v697_v46  ;;  %v1634_v46 = vshrl.u32 %v13792_v54, %v8686_v53  ;;  %v473_v58 = vpop.permute.xlu1 %472 }
  0xe9   : > { %13867 = vst [vmem:[#allocation94_spill] sm:$0xff] %v8686_v53  ;;  %vm1460_vm0 = vcmp.gt.s32.totalorder %v1459_v27, 0  ;;  %v702_v28 = vor.u32 %v701_v5, %v700_v45  ;;  %v8711_v5 = vshrl.u32 %v1616_v44, 5  ;;  %v1917_v45 = vand.u32 2139095040, %v8692_v31 }
  0xea   : > { %13866 = vst [vmem:[#allocation93_spill] sm:$0xff] %v8681_v61  ;;  %v8701_v7 = vand.u32 65535, %v8681_v61  ;;  %v8704_v56 = vshrl.u32 %v8681_v61, 16  ;;  %v1461_v60 = vsel %vm1460_vm0, %v1459_v27, 0  ;;  %v1625_v61 = vshrl.u32 %v13789_v55, %v8686_v53 }
  0xeb   : > { %13868 = vst [vmem:[#allocation95_spill] sm:$0xff] %v8688_v11  ;;  %v1628_v27 = vshrl.u32 %v13790_v34, %v8686_v53  ;;  %v8727_v44 = vsel %vm13675_vm1, %v8688_v11, %v8694_v40  ;;  %vm2080_vm0 = vcmp.gt.s32.totalorder %v2079_v2, 0  ;;  %v499_v22 = vmul.f32 %v8066_v19, %v473_v58 }
  0xec   : > { %13869 = vst [vmem:[#allocation96_spill] sm:$0xff] %v8692_v31  ;;  %v715_v52 = vsel %vm13657_vm15, %v702_v28, 920167782  ;;  %v1632_v32 = vor.u32 %v1631_v8, %v1630_v48  ;;  %v1635_v51 = vor.u32 %v1634_v46, %v1633_v1  ;;  %v1918_v43 = vshrl.u32 %v1917_v45, 23 }
  0xed   : > { %13870 = vst [vmem:[#allocation97_spill] sm:$0xff] %v8694_v40  ;;  %v8734_v53 = vor.u32 %v1622_v25, %v1621_v26  ;;  %vm13669_vm14 = vcmp.lt.s32.totalorder %v8711_v5, 4  ;;  %v8739_v11 = vor.u32 %v1625_v61, %v1624_v41  ;;  %v2081_v58 = vsel %vm2080_vm0, %v2079_v2, 0 }
  0xee   : > { %13871 = vst [vmem:[#allocation98_spill] sm:$0xff] %v8696_v9  ;;  %v8744_v3 = vadd.f32 %v8068_v20, %v499_v22  ;;  %v8749_v48 = vsel %vm13671_vm11, %v8696_v9, %v715_v52  ;;  %vm13664_vm0 = vcmp.lt.s32.totalorder %v8711_v5, 3  ;;  %v1645_v22 = vsel %vm13669_vm14, %v1632_v32, 920167782 }
  0xef   : > { %13872 = vst [vmem:[#allocation99_spill] sm:$0xff] %v8701_v7  ;;  %v1463_v7 = vand.u32 31, %v1461_v60  ;;  %v1649_v18 = vsel %vm13669_vm14, %v1635_v51, 1326507024  ;;  %v7029_v52 = vadd.s32 4294967169, %v1918_v43  ;;  %v8770_v2 = vand.u32 65535, %v8737_v12 }
  0xf0   : > { %13873 = vst [vmem:[#allocation100_spill] sm:$0xff] %v8704_v56  ;;  %v1627_v56 = vshll.u32 %v13789_v55, %v1618_v50  ;;  %v719_v50 = vsel %vm13657_vm15, %v705_v4, 1326507024  ;;  %v8755_v4 = vsel %vm13675_vm1, %v8694_v40, %v8696_v9  ;;  %vm13665_vm15 = vcmp.lt.s32.totalorder %v8711_v5, 1 }
  0xf1   : > { %13874 = vst [vmem:[#allocation101_spill] sm:$0xff] %v8711_v5  ;;  %v8758_v61 = vsub.s32 32, %v1463_v7  ;;  %v8773_v8 = vshrl.u32 %v8737_v12, 16  ;;  %v2083_v1 = vand.u32 31, %v2081_v58  ;;  %v8779_v46 = vsel %vm13665_vm15, %v8734_v53, %v8739_v11 }
  0xf2   : > { %13875 = vst [vmem:[#allocation102_spill] sm:$0xff] %v8727_v44  ;;  %v8741_v44 = vor.u32 %v1628_v27, %v1627_v56  ;;  %v8767_v56 = vsel %vm13671_vm11, %v702_v28, %v719_v50  ;;  %v13888_v43 = vand.u32 2147483647, %v8587_v59  ;;  %v2537_v26 = vand.u32 2139095040, %v8744_v3 }
  0xf3   : > { %13876 = vst [vmem:[#allocation103_spill] sm:$0xff] %v8734_v53  ;;  %v8797_v45 = vsel %vm13664_vm0, %v1632_v32, %v1649_v18  ;;  %v8799_v41 = vshrl.u32 %v1461_v60, 5  ;;  %v1467_v27 = vshrl.u32 %v13788_v36, %v8758_v61  ;;  %v1470_v50 = vshrl.u32 %v13789_v55, %v8758_v61 }
  0xf4   : > { %13877 = vst [vmem:[#allocation104_spill] sm:$0xff] %v8737_v12  ;;  %v8785_v51 = vsel %vm13665_vm15, %v8739_v11, %v8741_v44  ;;  %v2076_v28 = vand.u32 8388607, %v13888_v43  ;;  %v8793_v25 = vsel %vm13664_vm0, %v8741_v44, %v1645_v22  ;;  %v1473_v43 = vshrl.u32 %v13790_v34, %v8758_v61 }
  0xf5   : > { %13878 = vst [vmem:[#allocation105_spill] sm:$0xff] %v8739_v11  ;;  %v1476_v59 = vshrl.u32 %v13791_v24, %v8758_v61  ;;  %v1924_v22 = vadd.s32 1, %v7029_v52  ;;  %v1466_v11 = vshll.u32 %v13807_v57, %v1463_v7  ;;  %v1469_v32 = vshll.u32 %v13788_v36, %v1463_v7 }
  0xf6   : > { %13879 = vst [vmem:[#allocation106_spill] sm:$0xff] %v8741_v44  ;;  %v1479_v60 = vshrl.u32 %v13792_v54, %v8758_v61  ;;  %v8813_v18 = vsub.s32 32, %v2083_v1  ;;  %v1472_v53 = vshll.u32 %v13789_v55, %v1463_v7  ;;  %v1475_v44 = vshll.u32 %v13790_v34, %v1463_v7 }
  0xf7   : > { %13880 = vst [vmem:[#allocation107_spill] sm:$0xff] %v8744_v3  ;;  %v2077_v12 = vor.u32 8388608, %v2076_v28  ;;  %v1478_v52 = vshll.u32 %v13791_v24, %v1463_v7  ;;  %vm13718_vm0 = vcmp.lt.s32.totalorder %v8799_v41, 1  ;;  %vm13681_vm15 = vcmp.lt.s32.totalorder %v8799_v41, 4 }
  0xf8   : > { %13881 = vst [vmem:[#allocation108_spill] sm:$0xff] %v8755_v4  ;;  %v8824_v5 = vor.u32 %v1473_v43, %v1472_v53  ;;  %vm1925_vm14 = vcmp.gt.s32.totalorder %v1924_v22, 0  ;;  %vm13710_vm11 = vcmp.lt.s32.totalorder %v8799_v41, 3  ;;  %v2095_v28 = vshll.u32 %v13790_v34, %v2083_v1 }
  0xf9   : > { %13882 = vst [vmem:[#allocation109_spill] sm:$0xff] %v8758_v61  ;;  %v1477_v61 = vor.u32 %v1476_v59, %v1475_v44  ;;  %v2089_v59 = vshll.u32 %v13788_v36, %v2083_v1  ;;  %v2092_v44 = vshll.u32 %v13789_v55, %v2083_v1  ;;  %v1926_v43 = vsel %vm1925_vm14, %v1924_v22, 0 }
  0xfa   : > { %13883 = vst [vmem:[#allocation110_spill] sm:$0xff] %v8767_v56  ;;  %v1928_v9 = vand.u32 31, %v1926_v43 }
  0xfb   : > { %13884 = vst [vmem:[#allocation111_spill] sm:$0xff] %v8770_v2  ;;  %v13896_v2 = vand.u32 2147483647, %v8692_v31 }
  0xfc   : > { %13885 = vst [vmem:[#allocation112_spill] sm:$0xff] %v8773_v8  ;;  %v1480_v8 = vor.u32 %v1479_v60, %v1478_v52  ;;  %v2087_v60 = vshrl.u32 %v13788_v36, %v8813_v18  ;;  %v2090_v52 = vshrl.u32 %v13789_v55, %v8813_v18 }
  0xfd   : > { %13886 = vst [vmem:[#allocation113_spill] sm:$0xff] %v8779_v46  ;;  %v8817_v46 = vor.u32 %v1467_v27, %v1466_v11  ;;  %v2096_v11 = vshrl.u32 %v13791_v24, %v8813_v18  ;;  %v2086_v27 = vshll.u32 %v13807_v57, %v2083_v1  ;;  %v1921_v22 = vand.u32 8388607, %v13896_v2 }
  0xfe   : > { %13887 = vst [vmem:[#allocation114_spill] sm:$0xff] %v8785_v51  ;;  %v2538_v51 = vshrl.u32 %v2537_v26, 23  ;;  %v8831_v26 = vshrl.u32 %v2081_v58, 5  ;;  %v2093_v58 = vshrl.u32 %v13790_v34, %v8813_v18 }
  0xff   : > { %13889 = vst [vmem:[#allocation115_spill] sm:$0xff] %v8793_v25  ;;  %v8822_v25 = vor.u32 %v1470_v50, %v1469_v32  ;;  %v8834_v50 = vshll.u32 %v2077_v12, 8  ;;  %v2098_v12 = vshll.u32 %v13791_v24, %v2083_v1  ;;  %v2097_v7 = vor.u32 %v2096_v11, %v2095_v28 }
 0x100   : > { %13890 = vst [vmem:[#allocation116_spill] sm:$0xff] %v8797_v45  ;;  %v468_v45 = vpop.permute.xlu0 %467  ;;  %v7041_v53 = vadd.s32 4294967169, %v2538_v51  ;;  %v2099_v51 = vshrl.u32 %v13792_v54, %v8813_v18  ;;  %vm13708_vm14 = vcmp.lt.s32.totalorder %v8831_v26, 4  ;;  %v1490_v1 = vsel %vm13681_vm15, %v1477_v61, 920167782 }
 0x101   : > { %13891 = vst [vmem:[#allocation117_spill] sm:$0xff] %v8813_v18  ;;  %v498_v32 = vmul.f32 %v8066_v19, %v468_v45  ;;  %v8855_v40 = vsel %vm13718_vm0, %v8817_v46, %v8822_v25  ;;  %v1494_v28 = vsel %vm13681_vm15, %v1480_v8, 1326507024  ;;  %vm13696_vm1 = vcmp.lt.s32.totalorder %v8831_v26, 1 }
 0x102   : > { %13892 = vst [vmem:[#allocation118_spill] sm:$0xff] %v8817_v46  ;;  %v2544_v4 = vadd.s32 1, %v7041_v53  ;;  %v8866_v11 = vor.u32 %v2087_v60, %v2086_v27  ;;  %v8868_v45 = vor.u32 %v2090_v52, %v2089_v59  ;;  %v8870_v31 = vor.u32 %v2093_v58, %v2092_v44 }
 0x103   : > { %13893 = vst [vmem:[#allocation119_spill] sm:$0xff] %v8822_v25  ;;  %v8864_v2 = vadd.f32 %v8068_v20, %v498_v32  ;;  %vm13695_vm13 = vcmp.lt.s32.totalorder %v8831_v26, 3  ;;  %v2100_v18 = vor.u32 %v2099_v51, %v2098_v12  ;;  %v2110_v46 = vsel %vm13708_vm14, %v2097_v7, 920167782 }
 0x104   : > { %13894 = vst [vmem:[#allocation120_spill] sm:$0xff] %v8831_v26  ;;  %v13902_v8 = vand.u32 2147483647, %v8744_v3  ;;  %v8880_v27 = vsel %vm13710_vm11, %v8824_v5, %v1490_v1  ;;  %v8886_v59 = vsel %vm13718_vm0, %v8822_v25, %v8824_v5  ;;  %v8888_v44 = vsub.s32 32, %v1928_v9 }
 0x105   : > { %13895 = vst [vmem:[#allocation121_spill] sm:$0xff] %v8834_v50  ;;  %vm2545_vm15 = vcmp.gt.s32.totalorder %v2544_v4, 0  ;;  %v8892_v32 = vsel %vm13710_vm11, %v1477_v61, %v1494_v28  ;;  %v8895_v60 = vand.u32 65535, %v8834_v50  ;;  %v8903_v12 = vsel %vm13696_vm1, %v8866_v11, %v8868_v45 }
 0x106   : > { %13897 = vst [vmem:[#allocation122_spill] sm:$0xff] %v8855_v40  ;;  %v1922_v40 = vor.u32 8388608, %v1921_v22  ;;  %v2541_v56 = vand.u32 8388607, %v13902_v8  ;;  %v8908_v51 = vsel %vm13695_vm13, %v8870_v31, %v2110_v46  ;;  %v8914_v61 = vsel %vm13696_vm1, %v8868_v45, %v8870_v31 }
 0x107   : > { %13898 = vst [vmem:[#allocation123_spill] sm:$0xff] %v8864_v2  ;;  %v8917_v22 = vshrl.u32 %v8834_v50, 16  ;;  %v1932_v46 = vshrl.u32 %v13788_v36, %v8888_v44  ;;  %v1935_v8 = vshrl.u32 %v13789_v55, %v8888_v44  ;;  %v1941_v52 = vshrl.u32 %v13791_v24, %v8888_v44 }
 0x108   : > { %13899 = vst [vmem:[#allocation124_spill] sm:$0xff] %v8866_v11  ;;  %v483_v53 = vpop.permute.xlu0 %482  ;;  %v8921_v1 = vshll.u32 %v1922_v40, 8  ;;  %v2542_v28 = vor.u32 8388608, %v2541_v56  ;;  %v2382_v3 = vand.u32 2139095040, %v8864_v2  ;;  %v8930_v50 = vshrl.u32 %v1926_v43, 5 }
 0x109   : > { %13900 = vst [vmem:[#allocation125_spill] sm:$0xff] %v8868_v45  ;;  %v501_v58 = vmul.f32 %v8066_v19, %v483_v53  ;;  %v2114_v19 = vsel %vm13708_vm14, %v2100_v18, 1326507024  ;;  %v2546_v53 = vsel %vm2545_vm15, %v2544_v4, 0  ;;  %v1944_v18 = vshrl.u32 %v13792_v54, %v8888_v44 }
 0x10a   : > { %13901 = vst [vmem:[#allocation126_spill] sm:$0xff] %v8870_v31  ;;  %v13911_v40 = vand.u32 2147483647, %v8864_v2  ;;  %v1931_v45 = vshll.u32 %v13807_v57, %v1928_v9  ;;  %v1934_v11 = vshll.u32 %v13788_v36, %v1928_v9  ;;  %v1940_v31 = vshll.u32 %v13790_v34, %v1928_v9 }
 0x10b   : > { %13903 = vst [vmem:[#allocation127_spill] sm:$0xff] %v8888_v44  ;;  %v8937_v4 = vadd.f32 %v8068_v20, %v501_v58  ;;  %v8944_v43 = vsel %vm13695_vm13, %v2097_v7, %v2114_v19  ;;  %v1943_v2 = vshll.u32 %v13791_v24, %v1928_v9  ;;  %v8957_v26 = vand.u32 65535, %v8921_v1 }
 0x10c   : > { %13904 = vst [vmem:[#allocation128_spill] sm:$0xff] %v8895_v60  ;;  %v2386_v56 = vand.u32 8388607, %v13911_v40  ;;  %v2548_v60 = vand.u32 31, %v2546_v53  ;;  %v8949_v40 = vshll.u32 %v2542_v28, 8  ;;  %v8951_v20 = vor.u32 %v1932_v46, %v1931_v45 }
 0x10d   : > { %13905 = vst [vmem:[#allocation129_spill] sm:$0xff] %v8903_v12  ;;  %v8953_v58 = vor.u32 %v1935_v8, %v1934_v11  ;;  %v2383_v12 = vshrl.u32 %v2382_v3, 23  ;;  %v1945_v25 = vor.u32 %v1944_v18, %v1943_v2  ;;  %v8960_v7 = vshrl.u32 %v8921_v1, 16 }
 0x10e   : > { %13906 = vst [vmem:[#allocation130_spill] sm:$0xff] %v8908_v51  ;;  %v1937_v51 = vshll.u32 %v13789_v55, %v1928_v9  ;;  %vm13704_vm15 = vcmp.lt.s32.totalorder %v8930_v50, 1  ;;  %v8963_v19 = vsub.s32 32, %v2548_v60  ;;  %v2387_v28 = vor.u32 8388608, %v2386_v56 }
 0x10f   : > { %13907 = vst [vmem:[#allocation131_spill] sm:$0xff] %v8914_v61  ;;  %v1942_v61 = vor.u32 %v1941_v52, %v1940_v31  ;;  %vm13709_vm13 = vcmp.lt.s32.totalorder %v8930_v50, 3  ;;  %vm13698_vm1 = vcmp.lt.s32.totalorder %v8930_v50, 4  ;;  %v8971_v3 = vand.u32 65535, %v8949_v40 }
 0x110   : > { %13908 = vst [vmem:[#allocation132_spill] sm:$0xff] %v8917_v22  ;;  %v1938_v22 = vshrl.u32 %v13790_v34, %v8888_v44  ;;  %v8977_v31 = vsel %vm13704_vm15, %v8951_v20, %v8953_v58  ;;  %v8982_v2 = vshrl.u32 %v8949_v40, 16  ;;  %v7038_v52 = vadd.s32 4294967169, %v2383_v12 }
 0x111   : > { %13909 = vst [vmem:[#allocation133_spill] sm:$0xff] %v8921_v1  ;;  %v1955_v9 = vsel %vm13698_vm1, %v1942_v61, 920167782  ;;  %v2551_v46 = vshll.u32 %v13807_v57, %v2548_v60  ;;  %v2554_v8 = vshll.u32 %v13788_v36, %v2548_v60  ;;  %v2552_v18 = vshrl.u32 %v13788_v36, %v8963_v19 }
 0x112   : > { %13910 = vst [vmem:[#allocation134_spill] sm:$0xff] %v8930_v50  ;;  %v8966_v11 = vor.u32 %v1938_v22, %v1937_v51  ;;  %v1959_v51 = vsel %vm13698_vm1, %v1945_v25, 1326507024  ;;  %v8986_v22 = vshrl.u32 %v2546_v53, 5  ;;  %v2555_v56 = vshrl.u32 %v13789_v55, %v8963_v19 }
 0x113   : > { %13912 = vst [vmem:[#allocation135_spill] sm:$0xff] %v8937_v4  ;;  %v2560_v45 = vshll.u32 %v13790_v34, %v2548_v60  ;;  %v2561_v12 = vshrl.u32 %v13791_v24, %v8963_v19  ;;  %v2557_v53 = vshll.u32 %v13789_v55, %v2548_v60  ;;  %vm1172_vm1 = vcmp.lt.s32.totalorder %v8105_v62, 2 }
 0x114   : > { %13913 = vst [vmem:[#allocation136_spill] sm:$0xff] %v8949_v40  ;;  %v9001_v25 = vsel %vm13704_vm15, %v8953_v58, %v8966_v11  ;;  %v9004_v40 = vshll.u32 %v2387_v28, 8  ;;  %v9014_v1 = vshrl.u32 %v13792_v54, %v8963_v19  ;;  %v9023_v28 = vsel %vm13709_vm13, %v1942_v61, %v1959_v51 }
 0x115   : > { %13914 = vst [vmem:[#allocation137_spill] sm:$0xff] %v8951_v20  ;;  %v2389_v20 = vadd.s32 1, %v7038_v52  ;;  %vm13717_vm15 = vcmp.lt.s32.totalorder %v8986_v22, 1  ;;  %v2847_v44 = vand.u32 2139095040, %v8937_v4  ;;  %vm2568_vm14 = vcmp.lt.s32.totalorder %v8986_v22, 3 }
 0x116   : > { %13915 = vst [vmem:[#allocation138_spill] sm:$0xff] %v8953_v58  ;;  %v9019_v58 = vsel %vm13709_vm13, %v8966_v11, %v1955_v9  ;;  %v1182_v9 = vsel %vm1172_vm1, %v8145_v29, %v8190_v10  ;;  %vm2569_vm13 = vcmp.lt.s32.totalorder %v8986_v22, 4  ;;  %v1186_v61 = vsel %vm1172_vm1, %v8176_v63, %v8206_v33 }
 0x117   : > { %13916 = vst [vmem:[#allocation139_spill] sm:$0xff] %v8957_v26  ;;  %v1212_v52 = vand.u32 65535, %v1182_v9  ;;  %vm2390_vm11 = vcmp.gt.s32.totalorder %v2389_v20, 0  ;;  %v9051_v29 = vshrl.u32 %v9004_v40, 16  ;;  %v9053_v10 = vshrl.u32 %v2847_v44, 23 }
 0x118   : > { %13917 = vst [vmem:[#allocation140_spill] sm:$0xff] %v8960_v7  ;;  %v9029_v7 = vor.u32 %v2555_v56, %v2554_v8  ;;  %v1190_v8 = vand.u32 65535, %v1186_v61 }
 0x119   : > { %13918 = vst [vmem:[#allocation141_spill] sm:$0xff] %v8963_v19 }
 0x11a   : > { %13919 = vst [vmem:[#allocation142_spill] sm:$0xff] %v8966_v11  ;;  %v1192_v44 = vmul.u32 %v1190_v8, %v8123_v15 }
 0x11b   : > { %13920 = vst [vmem:[#allocation143_spill] sm:$0xff] %v8971_v3  ;;  %v9010_v3 = vshll.u32 %v13791_v24, %v2548_v60  ;;  %v9027_v60 = vor.u32 %v2552_v18, %v2551_v46  ;;  %v9048_v46 = vand.u32 65535, %v9004_v40  ;;  %v1191_v18 = vshrl.u32 %v1186_v61, 16 }
 0x11c   : > { %13921 = vst [vmem:[#allocation144_spill] sm:$0xff] %v8977_v31  ;;  %v1214_v61 = vmul.u32 %v1212_v52, %v8123_v15 }
 0x11d   : > { %13922 = vst [vmem:[#allocation145_spill] sm:$0xff] %v8982_v2  ;;  %v2558_v2 = vshrl.u32 %v13790_v34, %v8963_v19  ;;  %v9031_v19 = vor.u32 %v2561_v12, %v2560_v45  ;;  %v2565_v45 = vor.u32 %v9014_v1, %v9010_v3  ;;  %v9059_v63 = vsel %vm13717_vm15, %v9027_v60, %v9029_v7 }
 0x11e   : > { %13923 = vst [vmem:[#allocation146_spill] sm:$0xff] %v8986_v22  ;;  %v1213_v1 = vshrl.u32 %v1182_v9, 16  ;;  %v1216_v3 = vmul.u32 %v1212_v52, %v8130_v17  ;;  %v1193_v56 = vmul.u32 %v1191_v18, %v8123_v15  ;;  %v1194_v12 = vmul.u32 %v1190_v8, %v8130_v17 }
 0x11f   : > { %13924 = vst [vmem:[#allocation147_spill] sm:$0xff] %v9001_v25  ;;  %v9043_v51 = vor.u32 %v2558_v2, %v2557_v53  ;;  %v2575_v33 = vsel %vm2569_vm13, %v9031_v19, 920167782  ;;  %v1155_v2 = vshrl.u32 %v13807_v57, %v8090_v47  ;;  %v1176_v9 = vsel %vm1174_vm4, %v8135_v21, 2102212464 }
 0x120   : > { %13925 = vst [vmem:[#allocation148_spill] sm:$0xff] %v9004_v40  ;;  %v1215_v47 = vmul.u32 %v1213_v1, %v8123_v15  ;;  %v1195_v40 = vmul.u32 %v1191_v18, %v8130_v17  ;;  %v1196_v8 = vshll.u32 %v1193_v56, 16  ;;  %v1220_v21 = vshll.u32 %v1216_v3, 16 }
 0x121   : > { %13926 = vst [vmem:[#allocation149_spill] sm:$0xff] %v9019_v58  ;;  %v9074_v53 = vsel %vm13717_vm15, %v9029_v7, %v9043_v51  ;;  %v1175_v15 = vsel %vm1171_vm2, %v1155_v2, %v8118_v13  ;;  %v13936_v18 = vmov 0   ;;  %vm1327_vm15 = vcmp.lt.s32.totalorder %v8147_v30, 2 }
 0x122   : > { %13927 = vst [vmem:[#allocation150_spill] sm:$0xff] %v9023_v28  ;;  %vm1200_vm4 = vc.u32 %v1192_v44, %v1196_v8  ;;  %v1202_v52 = vadd.s32 %v1196_v8, %v1192_v44  ;;  %v1219_v13 = vshrl.u32 %v1215_v47, 16 }
 0x123   : > { %13928 = vst [vmem:[#allocation151_spill] sm:$0xff] %v9027_v60  ;;  %v9082_v60 = vsel %vm2390_vm11, %v2389_v20, 0  ;;  %v1177_v20 = vsel %vm1173_vm3, %v8120_v14, %v1176_v9  ;;  %v1221_v9 = vshrl.u32 %v1216_v3, 16 }
 0x124   : > { %13929 = vst [vmem:[#allocation152_spill] sm:$0xff] %v9029_v7  ;;  %v9088_v7 = vsel %vm2568_vm14, %v9043_v51, %v2575_v33  ;;  %v1197_v33 = vshrl.u32 %v1193_v56, 16 }
 0x125   : > { %13930 = vst [vmem:[#allocation153_spill] sm:$0xff] %v9043_v51 }
 0x126   : > { %13931 = vst [vmem:[#allocation154_spill] sm:$0xff] %v9048_v46  ;;  %v1201_v46 = vsel %vm1200_vm4, 1, %v13936_v18 }
 0x127   : > { %13932 = vst [vmem:[#allocation155_spill] sm:$0xff] %v9051_v29  ;;  %v1218_v29 = vshll.u32 %v1215_v47, 16  ;;  %v1178_v47 = vsel %vm1172_vm1, %v1175_v15, %v1177_v20 }
 0x128   : > { %13933 = vst [vmem:[#allocation156_spill] sm:$0xff] %v9059_v63  ;;  %v1198_v63 = vshll.u32 %v1194_v12, 16  ;;  %v1232_v62 = vmul.u32 %v8092_v49, %v1178_v47 }
 0x129   : > { %13934 = vst [vmem:[#allocation157_spill] sm:$0xff] %v9074_v53  ;;  %v1217_v53 = vmul.u32 %v1213_v1, %v8130_v17  ;;  %vm1222_vm11 = vc.u32 %v1214_v61, %v1218_v29  ;;  %v1224_v11 = vadd.s32 %v1218_v29, %v1214_v61  ;;  %v1203_v17 = vadd.s32 %v1201_v46, %v1195_v40 }
 0x12a   : > { %13935 = vst [vmem:[#allocation158_spill] sm:$0xff] %v9088_v7  ;;  %vm1204_vm0 = vc.u32 %v1202_v52, %v1198_v63  ;;  %v1223_v1 = vsel %vm1222_vm11, 1, %v13936_v18  ;;  %v1199_v7 = vshrl.u32 %v1194_v12, 16  ;;  %v1337_v29 = vsel %vm1327_vm15, %v8212_v35, %v8223_v39 }
 0x12b   : > { %v1205_v51 = vsel %vm1204_vm0, 1, %v13936_v18  ;;  %v1225_v2 = vadd.s32 %v1223_v1, %v1217_v53  ;;  %vm1226_vm2 = vc.u32 %v1224_v11, %v1220_v21  ;;  %v1341_v40 = vsel %vm1327_vm15, %v8229_v23, %v8235_v42 }
 0x12c   : > { %v1207_v14 = vadd.s32 %v1205_v51, %v1203_v17  ;;  %v1227_v44 = vsel %vm1226_vm2, 1, %v13936_v18  ;;  %v1367_v46 = vand.u32 65535, %v1337_v29  ;;  %v9110_v53 = vadd.s32 %v1224_v11, %v1220_v21 }
 0x12d   : > { %v1229_v56 = vadd.s32 %v1227_v44, %v1225_v2  ;;  %v1345_v12 = vand.u32 65535, %v1341_v40  ;;  %v1346_v51 = vshrl.u32 %v1341_v40, 16  ;;  %v2579_v61 = vsel %vm2569_vm13, %v2565_v45, 1326507024 }
 0x12e   : > { %v1208_v63 = vadd.s32 %v1207_v14, %v1197_v33  ;;  %v1368_v39 = vshrl.u32 %v1337_v29, 16  ;;  %v1369_v21 = vmul.u32 %v1367_v46, %v8215_v37  ;;  %v1371_v45 = vmul.u32 %v1367_v46, %v8218_v38 }
 0x12f   : > { %v1230_v35 = vadd.s32 %v1229_v56, %v1219_v13  ;;  %v1347_v8 = vmul.u32 %v1345_v12, %v8215_v37  ;;  %v1348_v23 = vmul.u32 %v1346_v51, %v8215_v37  ;;  %v1349_v42 = vmul.u32 %v1345_v12, %v8218_v38 }
 0x130   : > { %v9116_v3 = vadd.s32 %v1208_v63, %v1199_v7  ;;  %v1370_v52 = vmul.u32 %v1368_v39, %v8215_v37  ;;  %v1350_v7 = vmul.u32 %v1346_v51, %v8218_v38  ;;  %v1372_v17 = vmul.u32 %v1368_v39, %v8218_v38 }
 0x131   : > { %v1231_v11 = vadd.s32 %v1230_v35, %v1221_v9  ;;  %v1351_v15 = vshll.u32 %v1348_v23, 16  ;;  %v1353_v33 = vshll.u32 %v1349_v42, 16  ;;  %v1310_v13 = vshrl.u32 %v13807_v57, %v8125_v16  ;;  %v13937_v35 = vld [vmem:[#allocation8_spill] sm:$0xff] }
 0x132   : > { %vm1234_vm3 = vc.u32 %v9116_v3, %v9110_v53  ;;  %v1373_v1 = vshll.u32 %v1370_v52, 16  ;;  %v1352_v2 = vshrl.u32 %v1348_v23, 16  ;;  %v1375_v44 = vshll.u32 %v1371_v45, 16  ;;  %v13938_v23 = vld [vmem:[#allocation37_spill] sm:$0xff] }
 0x133   : > { %v1235_v20 = vadd.s32 1, %v1231_v11  ;;  %vm1355_vm1 = vc.u32 %v1347_v8, %v1351_v15  ;;  %v1357_v37 = vadd.s32 %v1351_v15, %v1347_v8  ;;  %v1331_v38 = vsel %vm1329_vm6, %v8184_v6, 2102212464  ;;  %v13939_v6 = vld [vmem:[#allocation9_spill] sm:$0xff] }
 0x134   : > { %v1356_v49 = vsel %vm1355_vm1, 1, %v13936_v18  ;;  %vm1377_vm0 = vc.u32 %v1369_v21, %v1373_v1  ;;  %v1379_v16 = vadd.s32 %v1373_v1, %v1369_v21  ;;  %v9138_v63 = vand.u32 31, %v9082_v60 }
 0x135   : > { %v1236_v14 = vsel %vm1234_vm3, %v1235_v20, %v1231_v11  ;;  %v1358_v9 = vadd.s32 %v1356_v49, %v1350_v7  ;;  %vm1359_vm4 = vc.u32 %v1357_v37, %v1353_v33  ;;  %v1378_v56 = vsel %vm1377_vm0, 1, %v13936_v18 }
 0x136   : > { %v1237_v29 = vadd.s32 %v1236_v14, %v1232_v62  ;;  %v1360_v40 = vsel %vm1359_vm4, 1, %v13936_v18  ;;  %v1380_v46 = vadd.s32 %v1378_v56, %v1372_v17  ;;  %v1354_v51 = vshrl.u32 %v1349_v42, 16 }
 0x137   : > { %v1362_v47 = vadd.s32 %v1360_v40, %v1358_v9  ;;  %v1330_v39 = vsel %vm1326_vm7, %v1310_v13, %v13937_v35  ;;  %v1374_v8 = vshrl.u32 %v1370_v52, 16  ;;  %vm1381_vm11 = vc.u32 %v1379_v16, %v1375_v44  ;;  %v13941_v13 = vld [vmem:[#allocation50_spill] sm:$0xff] }
 0x138   : > { %v1238_v12 = vadd.s32 536870912, %v1237_v29  ;;  %vm862_vm2 = vcmp.lt.s32.totalorder %v13938_v23, 2  ;;  %v1332_v21 = vsel %vm1328_vm8, %v13939_v6, %v1331_v38  ;;  %v1382_v7 = vsel %vm1381_vm11, 1, %v13936_v18 }
 0x139   : > { %v1363_v62 = vadd.s32 %v1362_v47, %v1352_v2  ;;  %v9153_v42 = vsel %vm2568_vm14, %v9031_v19, %v2579_v61  ;;  %v9156_v15 = vshrl.u32 %v9082_v60, 5  ;;  %v1376_v52 = vshrl.u32 %v1371_v45, 16  ;;  %v13942_v2 = vld [vmem:[#allocation49_spill] sm:$0xff]  ;;  %v13944_v45 = vld [vmem:[#allocation51_spill] sm:$0xff] }
 0x13a   : > { %v9144_v11 = vshrl.u32 %v1238_v12, 30  ;;  %13940 = vst [vmem:[#allocation8_spill] sm:$0xff] %v9153_v42  ;;  %v1384_v20 = vadd.s32 %v1382_v7, %v1380_v46  ;;  %v9161_v1 = vadd.s32 %v1379_v16, %v1375_v44  ;;  %v872_v37 = vsel %vm862_vm2, %v13942_v2, %v13941_v13  ;;  %v13943_v61 = vld [vmem:[#allocation53_spill] sm:$0xff] }
 0x13b   : > { %v9159_v17 = vadd.s32 %v1363_v62, %v1354_v51  ;;  %v9168_v14 = vadd.s32 4294967169, %v9053_v10  ;;  %v1333_v19 = vsel %vm1327_vm15, %v1330_v39, %v1332_v21  ;;  %v876_v49 = vsel %vm862_vm2, %v13944_v45, %v13943_v61  ;;  %v13946_v51 = vld [vmem:[#allocation7_spill] sm:$0xff]  ;;  %v13948_v21 = vld [vmem:[#allocation36_spill] sm:$0xff]  ;;  %v13954_v42 = vld [vmem:[#allocation41_spill] sm:$0xff] }
 0x13c   : > { %v1240_v33 = vshll.u32 %v9144_v11, 30  ;;  %v1385_v60 = vadd.s32 %v1384_v20, %v1374_v8  ;;  %v9177_v44 = vsub.s32 32, %v9138_v63  ;;  %v9181_v9 = vshll.u32 %v13807_v57, %v9138_v63  ;;  %v13947_v39 = vld [vmem:[#allocation35_spill] sm:$0xff] }
 0x13d   : > { %v13945_v56 = vand.u32 2147483647, %v8937_v4  ;;  %v880_v40 = vand.u32 65535, %v876_v49  ;;  %v881_v16 = vshrl.u32 %v876_v49, 16  ;;  %v903_v46 = vshrl.u32 %v872_v37, 16 }
 0x13e   : > { %v1241_v38 = vsub.s32 %v1237_v29, %v1240_v33  ;;  %v1386_v30 = vadd.s32 %v1385_v60, %v1376_v52  ;;  %v1387_v47 = vmul.u32 %v13946_v51, %v1333_v19  ;;  %vm1389_vm7 = vc.u32 %v9159_v17, %v9161_v1 }
 0x13f   : > { %v9185_v10 = vand.u32 8388607, %v13945_v56  ;;  %v882_v8 = vmul.u32 %v880_v40, %v13947_v39  ;;  %v883_v6 = vmul.u32 %v881_v16, %v13947_v39  ;;  %v9193_v62 = vmul.u32 %v880_v40, %v13948_v21  ;;  %v13949_v56 = vld [vmem:[#allocation2_spill] sm:$0xff] }
 0x140   : > { %vm1242_vm6 = vcmp.lt.s32.totalorder %v1241_v38, 0  ;;  %v1243_v12 = vsub.s32 0, %v1241_v38  ;;  %v1390_v35 = vadd.s32 1, %v1386_v30  ;;  %v9197_v29 = vshll.u32 %v13788_v36, %v9138_v63 }
 0x141   : > { %v885_v52 = vmul.u32 %v881_v16, %v13948_v21  ;;  %v902_v20 = vand.u32 65535, %v872_v37  ;;  %v886_v2 = vshll.u32 %v883_v6, 16  ;;  %v9201_v19 = vmul.u32 %v903_v46, %v13947_v39 }
 0x142   : > { %v1244_v7 = vsel %vm1242_vm6, %v1243_v12, %v1241_v38  ;;  %v1391_v13 = vsel %vm1389_vm7, %v1390_v35, %v1386_v30  ;;  %v9205_v60 = vshll.u32 %v13789_v55, %v9138_v63  ;;  %v9209_v61 = vshll.u32 %v13790_v34, %v9138_v63  ;;  %v13950_v30 = vld [vmem:[#allocation28_spill] sm:$0xff] }
 0x143   : > { %v1245_v33 = vclz %v1244_v7  ;;  %v1233_v45 = vadd.s32 %v9110_v53, %v9116_v3  ;;  %v1392_v49 = vadd.s32 %v1391_v13, %v1387_v47  ;;  %vm1141_vm8 = vcmp.lt.s32.totalorder %v13949_v56, 0 }
 0x144   : > { %v845_v40 = vshrl.u32 %v13807_v57, %v13950_v30  ;;  %v888_v16 = vshll.u32 %v9193_v62, 16  ;;  %vm890_vm15 = vc.u32 %v882_v8, %v886_v2  ;;  %v892_v35 = vadd.s32 %v886_v2, %v882_v8 }
 0x145   : > { %v7015_v37 = vadd.s32 4294967294, %v1245_v33  ;;  %v1393_v12 = vadd.s32 536870912, %v1392_v49  ;;  %v891_v51 = vsel %vm890_vm15, 1, %v13936_v18  ;;  %v904_v7 = vmul.u32 %v902_v20, %v13947_v39 }
 0x146   : > { %v893_v4 = vadd.s32 %v891_v51, %v885_v52  ;;  %v906_v53 = vmul.u32 %v902_v20, %v13948_v21  ;;  %v908_v3 = vshll.u32 %v9201_v19, 16  ;;  %v13951_v47 = vand.u32 2147483647, %v13949_v56 }
 0x147   : > { %vm7016_vm3 = vcmp.lt.s32.totalorder %v7015_v37, 0  ;;  %v9227_v30 = vshrl.u32 %v1393_v12, 30  ;;  %v866_v8 = vsel %vm864_vm9, %v13954_v42, 2102212464  ;;  %vm894_vm0 = vc.u32 %v892_v35, %v888_v16  ;;  %v13955_v42 = vld [vmem:[#allocation38_spill] sm:$0xff] }
 0x148   : > { %vm9223_vm1 = vcmp.le.f32.partialorder %v13951_v47, 0.7853982  ;;  %v1248_v13 = vsel %vm7016_vm3, 0, %v7015_v37  ;;  %v895_v20 = vsel %vm894_vm0, 1, %v13936_v18  ;;  %v887_v22 = vshrl.u32 %v883_v6, 16 }
 0x149   : > { %v1249_v39 = vsub.s32 32, %v1248_v13  ;;  %v1250_v52 = vshll.u32 %v1241_v38, %v1248_v13  ;;  %v1253_v2 = vsub.s32 4294967266, %v1248_v13  ;;  %v1395_v51 = vshll.u32 %v9227_v30, 30 }
 0x14a   : > { %v897_v47 = vadd.s32 %v895_v20, %v893_v4  ;;  %v907_v26 = vmul.u32 %v903_v46, %v13948_v21  ;;  %v910_v12 = vshll.u32 %v906_v53, 16  ;;  %vm912_vm4 = vc.u32 %v904_v7, %v908_v3 }
 0x14b   : > { %v1251_v31 = vshrl.u32 %v1233_v45, %v1249_v39  ;;  %v1254_v37 = vadd.s32 127, %v1253_v2  ;;  %v1263_v58 = vsub.s32 4, %v9144_v11  ;;  %v9236_v25 = vsub.s32 %v1392_v49, %v1395_v51  ;;  %v13956_v49 = vld [vmem:[#allocation3_spill] sm:$0xff] }
 0x14c   : > { %v865_v38 = vsel %vm861_vm5, %v845_v40, %v13955_v42  ;;  %v913_v16 = vsel %vm912_vm4, 1, %v13936_v18  ;;  %v889_v4 = vshrl.u32 %v9193_v62, 16  ;;  %v914_v6 = vadd.s32 %v908_v3, %v904_v7  ;;  %v13957_v40 = vld [vmem:[#allocation40_spill] sm:$0xff] }
 0x14d   : > { %v1252_v35 = vor.u32 %v1251_v31, %v1250_v52  ;;  %v1255_v13 = vshll.u32 %v1254_v37, 23  ;;  %vm1397_vm9 = vcmp.lt.s32.totalorder %v9236_v25, 0  ;;  %v1398_v46 = vsub.s32 0, %v9236_v25 }
 0x14e   : > { %v898_v21 = vadd.s32 %v897_v47, %v887_v22  ;;  %v909_v45 = vshrl.u32 %v9201_v19, 16  ;;  %vm1296_vm11 = vcmp.lt.s32.totalorder %v13956_v49, 0  ;;  %v915_v20 = vadd.s32 %v913_v16, %v907_v26 }
 0x14f   : > { %v1256_v39 = vor.u32 4788187, %v1255_v13  ;;  %v1259_v2 = vcvt.s32.f32 %v1252_v35  ;;  %vm916_vm5 = vc.u32 %v914_v6, %v910_v12  ;;  %v1264_v31 = vsel %vm1141_vm8, %v1263_v58, %v9144_v11 }
 0x150   : > { %v1399_v62 = vsel %vm1397_vm9, %v1398_v46, %v9236_v25  ;;  %v867_v7 = vsel %vm863_vm10, %v13957_v40, %v866_v8  ;;  %v917_v22 = vsel %vm916_vm5, 1, %v13936_v18  ;;  %v911_v52 = vshrl.u32 %v906_v53, 16  ;;  %v13961_v46 = vld [vmem:[#allocation73_spill] sm:$0xff]  ;;  %v13963_v40 = vld [vmem:[#allocation90_spill] sm:$0xff] }
 0x151   : > { %v1257_v3 = vand.u32 2147483647, %v1256_v39  ;;  %v1400_v19 = vclz %v1399_v62  ;;  %v919_v51 = vadd.s32 %v917_v22, %v915_v20  ;;  %v9257_v26 = vshrl.u32 %v13788_v36, %v9177_v44 }
 0x152   : > { %v9261_v47 = vshll.u32 %v13791_v24, %v9138_v63  ;;  %v9263_v58 = vadd.s32 %v898_v21, %v889_v4  ;;  %v9265_v11 = vadd.s32 %v914_v6, %v910_v12  ;;  %v1266_v8 = vsel %vm9223_vm1, 0, %v1264_v31 }
 0x153   : > { %v1260_v37 = vmul.f32 %v1259_v2, %v1257_v3  ;;  %v7018_v42 = vadd.s32 4294967294, %v1400_v19  ;;  %v920_v16 = vadd.s32 %v919_v51, %v909_v45  ;;  %v9271_v53 = vshrl.u32 %v13789_v55, %v9177_v44 }
 0x154   : > { %v13958_v35 = vand.u32 2147483647, %v13956_v49  ;;  %v1388_v63 = vadd.s32 %v9161_v1, %v9159_v17  ;;  %v868_v12 = vsel %vm862_vm2, %v865_v38, %v867_v7  ;;  %vm1017_vm7 = vcmp.lt.s32.totalorder %v13961_v46, 2  ;;  %v13962_v38 = vld [vmem:[#allocation25_spill] sm:$0xff] }
 0x155   : > { %v1261_v4 = vxor.u32 2147483648, %v1260_v37  ;;  %vm7019_vm6 = vcmp.lt.s32.totalorder %v7018_v42, 0  ;;  %v921_v6 = vadd.s32 %v920_v16, %v911_v52  ;;  %v1283_v21 = vadd.s32 3, %v1266_v8  ;;  %v13964_v7 = vld [vmem:[#allocation89_spill] sm:$0xff] }
 0x156   : > { %vm9275_vm10 = vcmp.le.f32.partialorder %v13958_v35, 0.7853982  ;;  %v1403_v45 = vsel %vm7019_vm6, 0, %v7018_v42  ;;  %v1418_v39 = vsub.s32 4, %v9227_v30  ;;  %vm924_vm15 = vc.u32 %v9263_v58, %v9265_v11 }
 0x157   : > { %v1262_v2 = vsel %vm1141_vm8, %v1261_v4, %v1260_v37  ;;  %v1404_v20 = vsub.s32 32, %v1403_v45  ;;  %v1405_v17 = vshll.u32 %v9236_v25, %v1403_v45  ;;  %v1408_v23 = vsub.s32 4294967266, %v1403_v45  ;;  %v13965_v45 = vld [vmem:[#allocation84_spill] sm:$0xff] }
 0x158   : > { %v1265_v1 = vsel %vm9223_vm1, %v13949_v56, %v1262_v2  ;;  %v922_v31 = vmul.u32 %v13962_v38, %v868_v12  ;;  %v925_v62 = vadd.s32 1, %v921_v6  ;;  %v1031_v22 = vsel %vm1017_vm7, %v13964_v7, %v13963_v40 }
 0x159   : > { %v1267_v3 = vmul.f32 %v1265_v1, %v1265_v1  ;;  %v1406_v19 = vshrl.u32 %v1388_v63, %v1404_v20  ;;  %v1409_v52 = vadd.s32 127, %v1408_v23  ;;  %v1035_v51 = vand.u32 65535, %v1031_v22  ;;  %v13966_v63 = vld [vmem:[#allocation85_spill] sm:$0xff] }
 0x15a   : > { %v9298_v37 = vand.u32 3, %v1283_v21  ;;  %v1419_v25 = vsel %vm1296_vm11, %v1418_v39, %v9227_v30  ;;  %v926_v33 = vsel %vm924_vm15, %v925_v62, %v921_v6  ;;  %v1036_v8 = vshrl.u32 %v1031_v22, 16  ;;  %v13967_v39 = vld [vmem:[#allocation88_spill] sm:$0xff] }
 0x15b   : > { %v1268_v42 = vmul.f32 -0.001358992, %v1267_v3  ;;  %v1275_v16 = vmul.f32 -0.00019511016, %v1267_v3  ;;  %v1407_v35 = vor.u32 %v1406_v19, %v1405_v17  ;;  %v1410_v12 = vshll.u32 %v1409_v52, 23  ;;  %v13968_v17 = vld [vmem:[#allocation87_spill] sm:$0xff] }
 0x15c   : > { %v927_v4 = vadd.s32 %v926_v33, %v922_v31  ;;  %v1037_v2 = vmul.u32 %v1035_v51, %v13965_v45  ;;  %v9305_v38 = vmul.u32 %v1036_v8, %v13965_v45  ;;  %v9308_v20 = vmul.u32 %v1035_v51, %v13966_v63 }
 0x15d   : > { %v1269_v21 = vadd.f32 0.041655596, %v1268_v42  ;;  %v1276_v23 = vadd.f32 0.008332121, %v1275_v16  ;;  %v1411_v40 = vor.u32 4788187, %v1410_v12  ;;  %v1414_v7 = vcvt.s32.f32 %v1407_v35 }
 0x15e   : > { %v1421_v30 = vsel %vm9275_vm10, 0, %v1419_v25  ;;  %v928_v6 = vadd.s32 536870912, %v927_v4  ;;  %v9316_v31 = vsel %vm1017_vm7, %v13968_v17, %v13967_v39  ;;  %v1041_v62 = vshll.u32 %v9305_v38, 16 }
 0x15f   : > { %v1270_v22 = vmul.f32 %v1269_v21, %v1267_v3  ;;  %v1277_v19 = vmul.f32 %v1276_v23, %v1267_v3  ;;  %v1412_v52 = vand.u32 2147483647, %v1411_v40  ;;  %v1043_v51 = vshll.u32 %v9308_v20, 16 }
 0x160   : > { %v9320_v33 = vshrl.u32 %v928_v6, 30  ;;  %v1040_v42 = vmul.u32 %v1036_v8, %v13966_v63  ;;  %vm1045_vm2 = vc.u32 %v1037_v2, %v1041_v62  ;;  %v1047_v25 = vadd.s32 %v1041_v62, %v1037_v2  ;;  %v13969_v2 = vld [vmem:[#allocation68_spill] sm:$0xff] }
 0x161   : > { %v1271_v16 = vadd.f32 -0.4999988, %v1270_v22  ;;  %v1278_v35 = vadd.f32 -0.16666654, %v1277_v19  ;;  %v1415_v12 = vmul.f32 %v1414_v7, %v1412_v52  ;;  %v1046_v28 = vsel %vm1045_vm2, 1, %v13936_v18  ;;  %v13970_v62 = vld [vmem:[#allocation80_spill] sm:$0xff] }
 0x162   : > { %v9326_v39 = vshrl.u32 %v13790_v34, %v9177_v44  ;;  %v9330_v21 = vshrl.u32 %v13791_v24, %v9177_v44  ;;  %v930_v23 = vshll.u32 %v9320_v33, 30  ;;  %vm1049_vm8 = vc.u32 %v1047_v25, %v1043_v51 }
 0x163   : > { %v1279_v40 = vmul.f32 %v1278_v35, %v1267_v3  ;;  %v1416_v8 = vxor.u32 2147483648, %v1415_v12  ;;  %v1438_v6 = vadd.s32 3, %v1421_v30  ;;  %v1000_v17 = vshrl.u32 %v13807_v57, %v13969_v2 }
 0x164   : > { %v9335_v7 = vsub.s32 %v927_v4, %v930_v23  ;;  %v1021_v22 = vsel %vm1019_vm12, %v13970_v62, 2102212464  ;;  %v1048_v19 = vadd.s32 %v1046_v28, %v1040_v42  ;;  %v1058_v52 = vshrl.u32 %v9316_v31, 16 }
 0x165   : > { %v1272_v50 = vmul.f32 %v1271_v16, %v1267_v3  ;;  %v1280_v24 = vadd.f32 1.0, %v1279_v40  ;;  %vm1286_vm3 = vcmp.eq.s32.totalorder %v9298_v37, 0  ;;  %v1417_v51 = vsel %vm1296_vm11, %v1416_v8, %v1415_v12  ;;  %v13971_v16 = vld [vmem:[#allocation78_spill] sm:$0xff]  ;;  %v13973_v12 = vld [vmem:[#allocation79_spill] sm:$0xff] }
 0x166   : > { %v1050_v30 = vsel %vm1049_vm8, 1, %v13936_v18  ;;  %v9348_v4 = vsel %vm9275_vm10, %v13956_v49, %v1417_v51  ;;  %vm932_vm1 = vcmp.lt.s32.totalorder %v9335_v7, 0  ;;  %v933_v28 = vsub.s32 0, %v9335_v7 }
 0x167   : > { %v1057_v42 = vand.u32 65535, %v9316_v31  ;;  %v9353_v3 = vmul.f32 %v1280_v24, %v1265_v1  ;;  %v1422_v25 = vmul.f32 %v9348_v4, %v9348_v4  ;;  %vm13972_vm12 = vcmp.lt.s32.totalorder %v13961_v46, 1 }
 0x168   : > { %v1020_v35 = vsel %vm13972_vm12, %v1000_v17, %v13971_v16  ;;  %vm13974_vm0 = vcmp.lt.s32.totalorder %v13961_v46, 3  ;;  %v934_v23 = vsel %vm932_vm1, %v933_v28, %v9335_v7  ;;  %v1042_v40 = vshrl.u32 %v9305_v38, 16 }
 0x169   : > { %v1022_v13 = vsel %vm13974_vm0, %v13973_v12, %v1021_v22  ;;  %v1052_v8 = vadd.s32 %v1050_v30, %v1048_v19  ;;  %v1060_v31 = vmul.u32 %v1058_v52, %v13965_v45  ;;  %v1273_v24 = vadd.f32 1.0, %v1272_v50 }
 0x16a   : > { %v1423_v1 = vmul.f32 -0.001358992, %v1422_v25  ;;  %v1430_v2 = vmul.f32 -0.00019511016, %v1422_v25  ;;  %v9366_v62 = vand.u32 3, %v1438_v6  ;;  %v1287_v51 = vxor.u32 2147483648, %v9353_v3 }
 0x16b   : > { %v935_v34 = vclz %v934_v23  ;;  %v1059_v17 = vmul.u32 %v1057_v42, %v13965_v45  ;;  %v1061_v16 = vmul.u32 %v1057_v42, %v13966_v63  ;;  %v923_v38 = vadd.s32 %v9265_v11, %v9263_v58 }
 0x16c   : > { %v1424_v22 = vadd.f32 0.041655596, %v1423_v1  ;;  %v1431_v12 = vadd.f32 0.008332121, %v1430_v2  ;;  %v9375_v19 = vsel %vm1017_vm7, %v1020_v35, %v1022_v13  ;;  %v1044_v6 = vshrl.u32 %v9308_v20, 16 }
 0x16d   : > { %v7009_v50 = vadd.s32 4294967294, %v935_v34  ;;  %v1053_v30 = vadd.s32 %v1052_v8, %v1042_v40  ;;  %v1063_v28 = vshll.u32 %v1060_v31, 16  ;;  %vm1289_vm4 = vcmp.eq.s32.totalorder %v9298_v37, 2 }
 0x16e   : > { %v1290_v23 = vxor.u32 2147483648, %v1273_v24  ;;  %v1425_v45 = vmul.f32 %v1424_v22, %v1422_v25  ;;  %v1432_v55 = vmul.f32 %v1431_v12, %v1422_v25  ;;  %v1062_v42 = vmul.u32 %v1058_v52, %v13966_v63 }
 0x16f   : > { %vm1285_vm9 = vcmp.lt.s32.totalorder %v9298_v37, 2  ;;  %v1288_v58 = vsel %vm1286_vm3, %v1273_v24, %v1287_v51  ;;  %vm7010_vm11 = vcmp.lt.s32.totalorder %v7009_v50, 0  ;;  %v1065_v11 = vshll.u32 %v1061_v16, 16 }
 0x170   : > { %vm1067_vm5 = vc.u32 %v1059_v17, %v1063_v28  ;;  %v1426_v34 = vadd.f32 -0.4999988, %v1425_v45  ;;  %v1433_v46 = vadd.f32 -0.16666654, %v1432_v55  ;;  %v938_v20 = vsel %vm7010_vm11, 0, %v7009_v50 }
 0x171   : > { %v1068_v35 = vsel %vm1067_vm5, 1, %v13936_v18  ;;  %v939_v13 = vsub.s32 32, %v938_v20  ;;  %v943_v40 = vsub.s32 4294967266, %v938_v20  ;;  %v9384_v8 = vadd.s32 %v1053_v30, %v1044_v6 }
 0x172   : > { %v1069_v1 = vadd.s32 %v1063_v28, %v1059_v17  ;;  %v1427_v2 = vmul.f32 %v1426_v34, %v1422_v25  ;;  %v1434_v63 = vmul.f32 %v1433_v46, %v1422_v25  ;;  %v1064_v52 = vshrl.u32 %v1060_v31, 16  ;;  %v13975_v28 = vld [vmem:[#allocation6_spill] sm:$0xff] }
 0x173   : > { %v1070_v22 = vadd.s32 %v1068_v35, %v1062_v42  ;;  %vm1282_vm10 = vweird.f32 %v13949_v56  ;;  %vm1437_vm6 = vweird.f32 %v13956_v49  ;;  %v940_v24 = vshll.u32 %v9335_v7, %v938_v20  ;;  %v13976_v20 = vld [vmem:[#allocation74_spill] sm:$0xff] }
 0x174   : > { %v941_v51 = vshrl.u32 %v923_v38, %v939_v13  ;;  %v944_v55 = vadd.s32 127, %v943_v40  ;;  %vm1071_vm7 = vc.u32 %v1069_v1, %v1065_v11  ;;  %v1428_v12 = vadd.f32 1.0, %v1427_v2  ;;  %v13978_v2 = vld [vmem:[#allocation69_spill] sm:$0xff] }
 0x175   : > { %v1435_v50 = vadd.f32 1.0, %v1434_v63  ;;  %v1072_v45 = vsel %vm1071_vm7, 1, %v13936_v18  ;;  %v9390_v6 = vadd.s32 %v1069_v1, %v1065_v11  ;;  %v1066_v25 = vshrl.u32 %v1061_v16, 16  ;;  %v13977_v1 = vld [vmem:[#allocation54_spill] sm:$0xff]  ;;  %v13979_v63 = vld [vmem:[#allocation61_spill] sm:$0xff] }
 0x176   : > { %v942_v17 = vor.u32 %v941_v51, %v940_v24  ;;  %v945_v30 = vshll.u32 %v944_v55, 23  ;;  %v1074_v31 = vadd.s32 %v1072_v45, %v1070_v22  ;;  %vm831_vm15 = vcmp.lt.s32.totalorder %v13975_v28, 0 }
 0x177   : > { %v1436_v42 = vmul.f32 %v1435_v50, %v9348_v4  ;;  %vm1440_vm2 = vcmp.lt.s32.totalorder %v9366_v62, 2  ;;  %vm1441_vm8 = vcmp.eq.s32.totalorder %v9366_v62, 0  ;;  %v1445_v7 = vxor.u32 2147483648, %v1428_v12 }
 0x178   : > { %v1291_v38 = vsel %vm1289_vm4, %v1290_v23, %v9353_v3  ;;  %vm1444_vm3 = vcmp.eq.s32.totalorder %v9366_v62, 2  ;;  %v946_v11 = vor.u32 4788187, %v945_v30  ;;  %v1075_v34 = vadd.s32 %v1074_v31, %v1064_v52  ;;  %v13981_v52 = vld [vmem:[#allocation67_spill] sm:$0xff] }
 0x179   : > { %v1292_v16 = vsel %vm1285_vm9, %v1288_v58, %v1291_v38  ;;  %v1442_v46 = vxor.u32 2147483648, %v1436_v42  ;;  %v1077_v4 = vmul.u32 %v13976_v20, %v9375_v19  ;;  %vm1079_vm1 = vc.u32 %v9384_v8, %v9390_v6  ;;  %v13980_v58 = vld [vmem:[#allocation70_spill] sm:$0xff]  ;;  %v13983_v38 = vld [vmem:[#allocation48_spill] sm:$0xff] }
 0x17a   : > { %v947_v35 = vand.u32 2147483647, %v946_v11  ;;  %v949_v13 = vcvt.s32.f32 %v942_v17  ;;  %v1076_v40 = vadd.s32 %v1075_v34, %v1066_v25  ;;  %vm552_vm12 = vcmp.lt.s32.totalorder %v13977_v1, 2 }
 0x17b   : > { %v1443_v3 = vsel %vm1441_vm8, %v1428_v12, %v1442_v46  ;;  %v1446_v23 = vsel %vm1444_vm3, %v1445_v7, %v1436_v42  ;;  %v9411_v37 = vsel %vm552_vm12, %v13979_v63, %v13978_v2  ;;  %v566_v19 = vsel %vm552_vm12, %v13981_v52, %v13980_v58  ;;  %v13982_v42 = vld [vmem:[#allocation47_spill] sm:$0xff] }
 0x17c   : > { %v1447_v22 = vsel %vm1440_vm2, %v1443_v3, %v1446_v23  ;;  %v950_v24 = vmul.f32 %v949_v13, %v947_v35  ;;  %v1080_v51 = vadd.s32 1, %v1076_v40  ;;  %v570_v55 = vand.u32 65535, %v566_v19 }
 0x17d   : > { %v1293_v12 = vsel %vm1282_vm10, nan, %v1292_v16  ;;  %v1448_v50 = vsel %vm1437_vm6, nan, %v1447_v22  ;;  %v571_v45 = vshrl.u32 %v566_v19, 16  ;;  %v593_v17 = vshrl.u32 %v9411_v37, 16 }
 0x17e   : > { %v9426_v30 = vshrl.u32 %v13792_v54, %v9177_v44  ;;  %vm2411_vm0 = vcmp.lt.s32.totalorder %v9156_v15, 1  ;;  %v7701_v62 = vpack.i.bf16 %v1448_v50, %v1293_v12  ;;  %v951_v25 = vxor.u32 2147483648, %v950_v24 }
 0x17f   : > { %v1081_v31 = vsel %vm1079_vm1, %v1080_v51, %v1076_v40  ;;  %vm2414_vm4 = vcmp.lt.s32.totalorder %v9156_v15, 4  ;;  %v2852_v56 = vor.u32 8388608, %v9185_v10  ;;  %v573_v7 = vmul.u32 %v571_v45, %v13982_v42 }
 0x180   : > { %v1082_v49 = vadd.s32 %v1081_v31, %v1077_v4  ;;  %v9436_v11 = vmul.u32 %v570_v55, %v13983_v38  ;;  %v9440_v34 = vor.u32 %v9257_v26, %v9181_v9  ;;  %7702 = vrot.lane.b32.xlu0 %v7701_v62, %s7977_s14  ;;  %v13984_v16 = vand.u32 2147483647, %v13975_v28 }
 0x181   : > { %v952_v10 = vsel %vm831_vm15, %v951_v25, %v950_v24  ;;  %v9452_v20 = vmul.u32 %v593_v17, %v13982_v42  ;;  %v572_v4 = vmul.u32 %v570_v55, %v13982_v42  ;;  %v576_v35 = vshll.u32 %v573_v7, 16  ;;  %v13987_v25 = vld [vmem:[#allocation29_spill] sm:$0xff] }
 0x182   : > { %vm9445_vm9 = vcmp.le.f32.partialorder %v13984_v16, 0.7853982  ;;  %v1083_v26 = vadd.s32 536870912, %v1082_v49  ;;  %v9462_v13 = vor.u32 %v9271_v53, %v9197_v29  ;;  %v575_v3 = vmul.u32 %v571_v45, %v13983_v38 }
 0x183   : > { %v9457_v9 = vsel %vm9445_vm9, %v13975_v28, %v952_v10  ;;  %v592_v23 = vand.u32 65535, %v9411_v37  ;;  %v578_v63 = vshll.u32 %v9436_v11, 16  ;;  %vm580_vm11 = vc.u32 %v572_v4, %v576_v35 }
 0x184   : > { %v9466_v40 = vmul.f32 %v9457_v9, %v9457_v9  ;;  %v9470_v2 = vshrl.u32 %v1083_v26, 30  ;;  %v582_v58 = vadd.s32 %v576_v35, %v572_v4  ;;  %v9475_v52 = vor.u32 %v9330_v21, %v9209_v61 }
 0x185   : > { %v9478_v29 = vadd.s32 1, %v9168_v14  ;;  %v581_v53 = vsel %vm580_vm11, 1, %v13936_v18  ;;  %v598_v19 = vshll.u32 %v9452_v20, 16  ;;  %v9484_v37 = vor.u32 %v9326_v39, %v9205_v60 }
 0x186   : > { %v1085_v22 = vshll.u32 %v9470_v2, 30  ;;  %v583_v24 = vadd.s32 %v581_v53, %v575_v3  ;;  %vm584_vm5 = vc.u32 %v582_v58, %v578_v63  ;;  %v2410_v51 = vor.u32 %v9426_v30, %v9261_v47  ;;  %v13991_v53 = vld [vmem:[#allocation42_spill] sm:$0xff]  ;;  %v14036_v47 = vld [vmem:[#allocation100_spill] sm:$0xff] }
 0x187   : > { %v585_v61 = vsel %vm584_vm5, 1, %v13936_v18  ;;  %v594_v14 = vmul.u32 %v592_v23, %v13982_v42  ;;  %v596_v21 = vmul.u32 %v592_v23, %v13983_v38  ;;  %v9496_v55 = vsel %vm2411_vm0, %v9440_v34, %v9462_v13 }
 0x188   : > { %v9498_v60 = vshll.u32 %v2852_v56, 8  ;;  %v965_v39 = vmul.f32 -0.00019511016, %v9466_v40  ;;  %v1086_v12 = vsub.s32 %v1082_v49, %v1085_v22  ;;  %v9504_v50 = vsel %vm2414_vm4, %v9475_v52, 920167782  ;;  %v13992_v22 = vld [vmem:[#allocation60_spill] sm:$0xff] }
 0x189   : > { %v953_v45 = vsub.s32 4, %v9320_v33  ;;  %v587_v62 = vadd.s32 %v585_v61, %v583_v24  ;;  %vm602_vm10 = vc.u32 %v594_v14, %v598_v19  ;;  %vm986_vm6 = vcmp.lt.s32.totalorder %v13987_v25, 0 }
 0x18a   : > { %vm1087_vm7 = vcmp.lt.s32.totalorder %v1086_v12, 0  ;;  %v1088_v31 = vsub.s32 0, %v1086_v12  ;;  %v577_v42 = vshrl.u32 %v573_v7, 16  ;;  %v597_v56 = vmul.u32 %v593_v17, %v13983_v38 }
 0x18b   : > { %v958_v16 = vmul.f32 -0.001358992, %v9466_v40  ;;  %v600_v10 = vshll.u32 %v596_v21, 16  ;;  %v603_v49 = vsel %vm602_vm10, 1, %v13936_v18  ;;  %v604_v26 = vadd.s32 %v598_v19, %v594_v14 }
 0x18c   : > { %v9515_v4 = vsel %vm2411_vm0, %v9462_v13, %v9484_v37  ;;  %v966_v35 = vadd.f32 0.008332121, %v965_v39  ;;  %v1089_v3 = vsel %vm1087_vm7, %v1088_v31, %v1086_v12  ;;  %v605_v23 = vadd.s32 %v603_v49, %v597_v56  ;;  %v13994_v49 = vld [vmem:[#allocation55_spill] sm:$0xff] }
 0x18d   : > { %v954_v7 = vsel %vm831_vm15, %v953_v45, %v9320_v33  ;;  %v1090_v17 = vclz %v1089_v3  ;;  %v588_v38 = vadd.s32 %v587_v62, %v577_v42  ;;  %vm606_vm2 = vc.u32 %v604_v26, %v600_v10 }
 0x18e   : > { %v13988_v63 = vand.u32 2147483647, %v13987_v25  ;;  %v535_v19 = vshrl.u32 %v13807_v57, %v13991_v53  ;;  %vm13993_vm3 = vcmp.lt.s32.totalorder %v13977_v1, 4  ;;  %v607_v61 = vsel %vm606_vm2, 1, %v13936_v18 }
 0x18f   : > { %v556_v24 = vsel %vm13993_vm3, %v13992_v22, 2102212464  ;;  %v959_v14 = vadd.f32 0.041655596, %v958_v16  ;;  %v7012_v33 = vadd.s32 4294967294, %v1090_v17  ;;  %v1108_v39 = vsub.s32 4, %v9470_v2 }
 0x190   : > { %vm9522_vm8 = vcmp.le.f32.partialorder %v13988_v63, 0.7853982  ;;  %v579_v45 = vshrl.u32 %v9436_v11, 16  ;;  %v956_v62 = vsel %vm9445_vm9, 0, %v954_v7  ;;  %v967_v31 = vmul.f32 %v966_v35, %v9466_v40  ;;  %v13996_v63 = vld [vmem:[#allocation56_spill] sm:$0xff] }
 0x191   : > { %v599_v42 = vshrl.u32 %v9452_v20, 16  ;;  %v609_v56 = vadd.s32 %v607_v61, %v605_v23  ;;  %vm7013_vm15 = vcmp.lt.s32.totalorder %v7012_v33, 0  ;;  %vm13995_vm1 = vcmp.lt.s32.totalorder %v13977_v1, 1 }
 0x192   : > { %v555_v3 = vsel %vm13995_vm1, %v535_v19, %v13994_v49  ;;  %vm13997_vm11 = vcmp.lt.s32.totalorder %v13977_v1, 3  ;;  %v9544_v17 = vadd.s32 %v588_v38, %v579_v45  ;;  %v1078_v11 = vadd.s32 %v9390_v6, %v9384_v8 }
 0x193   : > { %v557_v16 = vsel %vm13997_vm11, %v13996_v63, %v556_v24  ;;  %v1093_v46 = vsel %vm7013_vm15, 0, %v7012_v33  ;;  %v601_v7 = vshrl.u32 %v596_v21, 16  ;;  %v610_v35 = vadd.s32 %v609_v56, %v599_v42  ;;  %v13999_v33 = vld [vmem:[#allocation39_spill] sm:$0xff] }
 0x194   : > { %v960_v20 = vmul.f32 %v959_v14, %v9466_v40  ;;  %v1094_v23 = vsub.s32 32, %v1093_v46  ;;  %v1109_v53 = vsel %vm986_vm6, %v1108_v39, %v9470_v2  ;;  %v9552_v19 = vadd.s32 %v604_v26, %v600_v10  ;;  %v13998_v10 = vld [vmem:[#allocation102_spill] sm:$0xff] }
 0x195   : > { %v968_v22 = vadd.f32 -0.16666654, %v967_v31  ;;  %v1098_v61 = vsub.s32 4294967266, %v1093_v46  ;;  %v558_v38 = vsel %vm552_vm12, %v555_v3, %v557_v16  ;;  %v611_v24 = vadd.s32 %v610_v35, %v601_v7  ;;  %v14000_v39 = vld [vmem:[#allocation110_spill] sm:$0xff]  ;;  %v14001_v31 = vld [vmem:[#allocation108_spill] sm:$0xff] }
 0x196   : > { %v1095_v45 = vshll.u32 %v1086_v12, %v1093_v46  ;;  %v1096_v8 = vshrl.u32 %v1078_v11, %v1094_v23  ;;  %vm614_vm9 = vc.u32 %v9544_v17, %v9552_v19  ;;  %vm707_vm5 = vcmp.lt.s32.totalorder %v8663_v0, 2 }
 0x197   : > { %v1099_v6 = vadd.s32 127, %v1098_v61  ;;  %v1111_v21 = vsel %vm9522_vm8, 0, %v1109_v53  ;;  %v615_v2 = vadd.s32 1, %v611_v24  ;;  %v717_v26 = vsel %vm707_vm5, %v13998_v10, %v8749_v48  ;;  %v14003_v53 = vld [vmem:[#allocation92_spill] sm:$0xff] }
 0x198   : > { %v961_v1 = vadd.f32 -0.4999988, %v960_v20  ;;  %v1097_v14 = vor.u32 %v1096_v8, %v1095_v45  ;;  %v612_v12 = vmul.u32 %v13999_v33, %v558_v38  ;;  %v721_v42 = vsel %vm707_vm5, %v14001_v31, %v14000_v39  ;;  %v14002_v20 = vld [vmem:[#allocation91_spill] sm:$0xff] }
 0x199   : > { %v1100_v56 = vshll.u32 %v1099_v6, 23  ;;  %v616_v49 = vsel %vm614_vm9, %v615_v2, %v611_v24  ;;  %v725_v3 = vand.u32 65535, %v721_v42  ;;  %v726_v63 = vshrl.u32 %v721_v42, 16 }
 0x19a   : > { %v969_v16 = vmul.f32 %v968_v22, %v9466_v40  ;;  %v973_v11 = vadd.s32 3, %v956_v62  ;;  %v617_v46 = vadd.s32 %v616_v49, %v612_v12  ;;  %v748_v7 = vshrl.u32 %v717_v26, 16 }
 0x19b   : > { %v1101_v35 = vor.u32 4788187, %v1100_v56  ;;  %v1128_v48 = vadd.s32 3, %v1111_v21  ;;  %v728_v23 = vmul.u32 %v726_v63, %v14002_v20  ;;  %v9573_v61 = vmul.u32 %v725_v3, %v14003_v53 }
 0x19c   : > { %v962_v38 = vmul.f32 %v961_v1, %v9466_v40  ;;  %v1104_v45 = vcvt.s32.f32 %v1097_v14  ;;  %v618_v8 = vadd.s32 536870912, %v617_v46  ;;  %v9577_v24 = vmul.u32 %v748_v7, %v14002_v20 }
 0x19d   : > { %v1102_v6 = vand.u32 2147483647, %v1101_v35  ;;  %v727_v22 = vmul.u32 %v725_v3, %v14002_v20  ;;  %v731_v62 = vshll.u32 %v728_v23, 16  ;;  %v747_v2 = vand.u32 65535, %v717_v26 }
 0x19e   : > { %v970_v10 = vadd.f32 1.0, %v969_v16  ;;  %v9580_v33 = vshrl.u32 %v618_v8, 30  ;;  %v730_v21 = vmul.u32 %v726_v63, %v14003_v53  ;;  %v733_v12 = vshll.u32 %v9573_v61, 16 }
 0x19f   : > { %v1105_v39 = vmul.f32 %v1104_v45, %v1102_v6  ;;  %vm735_vm12 = vc.u32 %v727_v22, %v731_v62  ;;  %v737_v40 = vadd.s32 %v731_v62, %v727_v22  ;;  %v753_v1 = vshll.u32 %v9577_v24, 16 }
 0x1a0   : > { %v9585_v14 = vand.u32 3, %v973_v11  ;;  %v9587_v31 = vand.u32 3, %v1128_v48  ;;  %v620_v42 = vshll.u32 %v9580_v33, 30  ;;  %v736_v26 = vsel %vm735_vm12, 1, %v13936_v18 }
 0x1a1   : > { %v1106_v56 = vxor.u32 2147483648, %v1105_v39  ;;  %v738_v49 = vadd.s32 %v736_v26, %v730_v21  ;;  %vm739_vm10 = vc.u32 %v737_v40, %v733_v12  ;;  %v749_v3 = vmul.u32 %v747_v2, %v14002_v20 }
 0x1a2   : > { %v9592_v63 = vadd.f32 1.0, %v962_v38  ;;  %v9594_v16 = vsub.s32 %v617_v46, %v620_v42  ;;  %v740_v35 = vsel %vm739_vm10, 1, %v13936_v18  ;;  %v751_v11 = vmul.u32 %v747_v2, %v14003_v53  ;;  %v14006_v42 = vld [vmem:[#allocation86_spill] sm:$0xff] }
 0x1a3   : > { %v9599_v48 = vmul.f32 %v970_v10, %v9457_v9  ;;  %v1107_v45 = vsel %vm986_vm6, %v1106_v56, %v1105_v39  ;;  %v742_v8 = vadd.s32 %v740_v35, %v738_v49  ;;  %vm757_vm7 = vc.u32 %v749_v3, %v753_v1  ;;  %v14004_v10 = vld [vmem:[#allocation98_spill] sm:$0xff] }
 0x1a4   : > { %v9606_v20 = vsel %vm9522_vm8, %v13987_v25, %v1107_v45  ;;  %vm622_vm2 = vcmp.lt.s32.totalorder %v9594_v16, 0  ;;  %v623_v46 = vsub.s32 0, %v9594_v16  ;;  %v752_v38 = vmul.u32 %v748_v7, %v14003_v53  ;;  %v14007_v45 = vld [vmem:[#allocation95_spill] sm:$0xff] }
 0x1a5   : > { %v1112_v9 = vmul.f32 %v9606_v20, %v9606_v20  ;;  %v732_v6 = vshrl.u32 %v728_v23, 16  ;;  %v758_v22 = vsel %vm757_vm7, 1, %v13936_v18  ;;  %v759_v62 = vadd.s32 %v753_v1, %v749_v3 }
 0x1a6   : > { %v624_v2 = vsel %vm622_vm2, %v623_v46, %v9594_v16  ;;  %vm14005_vm6 = vcmp.lt.s32.totalorder %v8663_v0, 4  ;;  %v755_v21 = vshll.u32 %v751_v11, 16  ;;  %v760_v12 = vadd.s32 %v758_v22, %v752_v38  ;;  %v14009_v38 = vld [vmem:[#allocation97_spill] sm:$0xff] }
 0x1a7   : > { %v711_v58 = vsel %vm14005_vm6, %v14004_v10, 2102212464  ;;  %vm976_vm8 = vcmp.eq.s32.totalorder %v9585_v14, 0  ;;  %v1113_v39 = vmul.f32 -0.001358992, %v1112_v9  ;;  %v625_v7 = vclz %v624_v2 }
 0x1a8   : > { %v1120_v40 = vmul.f32 -0.00019511016, %v1112_v9  ;;  %v743_v53 = vadd.s32 %v742_v8, %v732_v6  ;;  %v613_v23 = vadd.s32 %v9552_v19, %v9544_v17  ;;  %v690_v1 = vshrl.u32 %v13807_v57, %v14006_v42 }
 0x1a9   : > { %v734_v26 = vshrl.u32 %v9573_v61, 16  ;;  %vm761_vm3 = vc.u32 %v759_v62, %v755_v21  ;;  %v1114_v56 = vadd.f32 0.041655596, %v1113_v39  ;;  %v7003_v3 = vadd.s32 4294967294, %v625_v7 }
 0x1aa   : > { %v1121_v49 = vadd.f32 0.008332121, %v1120_v40  ;;  %v762_v35 = vsel %vm761_vm3, 1, %v13936_v18  ;;  %vm14008_vm15 = vcmp.lt.s32.totalorder %v8663_v0, 1  ;;  %vm14010_vm1 = vcmp.lt.s32.totalorder %v8663_v0, 3 }
 0x1ab   : > { %v710_v46 = vsel %vm14008_vm15, %v690_v1, %v14007_v45  ;;  %v712_v8 = vsel %vm14010_vm1, %v14009_v38, %v711_v58  ;;  %v754_v17 = vshrl.u32 %v9577_v24, 16  ;;  %v764_v19 = vadd.s32 %v762_v35, %v760_v12  ;;  %v14011_v45 = vld [vmem:[#allocation81_spill] sm:$0xff] }
 0x1ac   : > { %vm979_vm11 = vcmp.eq.s32.totalorder %v9585_v14, 2  ;;  %v1115_v61 = vmul.f32 %v1114_v56, %v1112_v9  ;;  %v1122_v6 = vmul.f32 %v1121_v49, %v1112_v9  ;;  %vm7004_vm9 = vcmp.lt.s32.totalorder %v7003_v3, 0 }
 0x1ad   : > { %v9633_v22 = vadd.s32 %v743_v53, %v734_v26  ;;  %vm975_vm12 = vcmp.lt.s32.totalorder %v9585_v14, 2  ;;  %v977_v2 = vxor.u32 2147483648, %v9599_v48  ;;  %v628_v10 = vsel %vm7004_vm9, 0, %v7003_v3 }
 0x1ae   : > { %v756_v39 = vshrl.u32 %v751_v11, 16  ;;  %v765_v40 = vadd.s32 %v764_v19, %v754_v17  ;;  %v1116_v7 = vadd.f32 -0.4999988, %v1115_v61  ;;  %v1123_v42 = vadd.f32 -0.16666654, %v1122_v6  ;;  %v14012_v17 = vld [vmem:[#allocation11_spill] sm:$0xff] }
 0x1af   : > { %v629_v58 = vsub.s32 32, %v628_v10  ;;  %v9637_v1 = vadd.s32 %v759_v62, %v755_v21  ;;  %v980_v24 = vxor.u32 2147483648, %v9592_v63  ;;  %vm1131_vm10 = vcmp.eq.s32.totalorder %v9587_v31, 0  ;;  %v14013_v6 = vld [vmem:[#allocation122_spill] sm:$0xff] }
 0x1b0   : > { %v633_v12 = vsub.s32 4294967266, %v628_v10  ;;  %v713_v53 = vsel %vm707_vm5, %v710_v46, %v712_v8  ;;  %v766_v26 = vadd.s32 %v765_v40, %v756_v39  ;;  %v1117_v56 = vmul.f32 %v1116_v7, %v1112_v9 }
 0x1b1   : > { %v1124_v49 = vmul.f32 %v1123_v42, %v1112_v9  ;;  %vm1130_vm7 = vcmp.lt.s32.totalorder %v9587_v31, 2  ;;  %v631_v11 = vshrl.u32 %v613_v23, %v629_v58  ;;  %vm769_vm2 = vc.u32 %v9633_v22, %v9637_v1 }
 0x1b2   : > { %vm972_vm6 = vweird.f32 %v13975_v28  ;;  %v978_v62 = vsel %vm976_vm8, %v9592_v63, %v977_v2  ;;  %vm1127_vm3 = vweird.f32 %v13987_v25  ;;  %v630_v0 = vshll.u32 %v9594_v16, %v628_v10 }
 0x1b3   : > { %v634_v21 = vadd.s32 127, %v633_v12  ;;  %v770_v3 = vadd.s32 1, %v766_v26  ;;  %v1118_v35 = vadd.f32 1.0, %v1117_v56  ;;  %v1125_v9 = vadd.f32 1.0, %v1124_v49  ;;  %v14014_v12 = vld [vmem:[#allocation111_spill] sm:$0xff] }
 0x1b4   : > { %v767_v46 = vmul.u32 %v14011_v45, %v713_v53  ;;  %vm1482_vm5 = vcmp.lt.s32.totalorder %v8799_v41, 2  ;;  %vm2855_vm15 = vcmp.gt.s32.totalorder %v9478_v29, 0  ;;  %v632_v23 = vor.u32 %v631_v11, %v630_v0  ;;  %v14015_v11 = vld [vmem:[#allocation112_spill] sm:$0xff] }
 0x1b5   : > { %v635_v38 = vshll.u32 %v634_v21, 23  ;;  %v771_v8 = vsel %vm769_vm2, %v770_v3, %v766_v26  ;;  %v1496_v63 = vsel %vm1482_vm5, %v8886_v59, %v8892_v32  ;;  %vm521_vm8 = vcmp.lt.s32.totalorder %v14012_v17, 0 }
 0x1b6   : > { %v1126_v16 = vmul.f32 %v1125_v9, %v9606_v20  ;;  %v1135_v19 = vxor.u32 2147483648, %v1118_v35  ;;  %v772_v61 = vadd.s32 %v771_v8, %v767_v46  ;;  %v9665_v2 = vsel %vm1482_vm5, %v14013_v6, %v8880_v27 }
 0x1b7   : > { %v981_v10 = vsel %vm979_vm11, %v980_v24, %v9599_v48  ;;  %v636_v39 = vor.u32 4788187, %v635_v38  ;;  %v1500_v40 = vand.u32 65535, %v1496_v63  ;;  %v1501_v7 = vshrl.u32 %v1496_v63, 16 }
 0x1b8   : > { %v982_v59 = vsel %vm975_vm12, %v978_v62, %v981_v10  ;;  %v1132_v32 = vxor.u32 2147483648, %v1126_v16  ;;  %vm1134_vm1 = vcmp.eq.s32.totalorder %v9587_v31, 2  ;;  %v773_v20 = vadd.s32 536870912, %v772_v61 }
 0x1b9   : > { %v637_v42 = vand.u32 2147483647, %v636_v39  ;;  %v639_v58 = vcvt.s32.f32 %v632_v23  ;;  %v9674_v53 = vmul.u32 %v1501_v7, %v14014_v12  ;;  %v1523_v27 = vshrl.u32 %v9665_v2, 16  ;;  %v14016_v23 = vld [vmem:[#allocation52_spill] sm:$0xff] }
 0x1ba   : > { %v1133_v48 = vsel %vm1131_vm10, %v1118_v35, %v1132_v32  ;;  %v1136_v24 = vsel %vm1134_vm1, %v1135_v19, %v1126_v16  ;;  %v774_v26 = vshrl.u32 %v773_v20, 30  ;;  %v1502_v56 = vmul.u32 %v1500_v40, %v14014_v12 }
 0x1bb   : > { %v1137_v14 = vsel %vm1130_vm7, %v1133_v48, %v1136_v24  ;;  %v640_v49 = vmul.f32 %v639_v58, %v637_v42  ;;  %v9683_v62 = vmul.u32 %v1500_v40, %v14015_v11  ;;  %v1506_v0 = vshll.u32 %v9674_v53, 16 }
 0x1bc   : > { %v983_v21 = vsel %vm972_vm6, nan, %v982_v59  ;;  %v1138_v3 = vsel %vm1127_vm3, nan, %v1137_v14  ;;  %v643_v35 = vsub.s32 4, %v9580_v33  ;;  %v775_v9 = vshll.u32 %v774_v26, 30 }
 0x1bd   : > { %v7696_v45 = vpack.i.bf16 %v1138_v3, %v983_v21  ;;  %v641_v46 = vxor.u32 2147483648, %v640_v49  ;;  %vm1510_vm11 = vc.u32 %v1502_v56, %v1506_v0  ;;  %v1522_v31 = vand.u32 65535, %v9665_v2 }
 0x1be   : > { %vm676_vm9 = vcmp.lt.s32.totalorder %v14016_v23, 0  ;;  %v9693_v38 = vsub.s32 %v772_v61, %v775_v9  ;;  %v1511_v8 = vsel %vm1510_vm11, 1, %v13936_v18  ;;  %v1512_v63 = vadd.s32 %v1506_v0, %v1502_v56  ;;  %v14023_v0 = vld [vmem:[#allocation109_spill] sm:$0xff] }
 0x1bf   : > { %v9697_v28 = vmul.u32 %v1523_v27, %v14014_v12  ;;  %7697 = vrot.lane.b32.xlu2 %v7696_v45, %s7977_s14  ;;  %v14017_v25 = vand.u32 2147483647, %v14012_v17  ;;  %v642_v19 = vsel %vm521_vm8, %v641_v46, %v640_v49  ;;  %v1505_v61 = vmul.u32 %v1501_v7, %v14015_v11 }
 0x1c0   : > { %v1508_v6 = vshll.u32 %v9683_v62, 16  ;;  %v9713_v2 = vsel %vm2855_vm15, %v9478_v29, 0  ;;  %vm777_vm10 = vcmp.lt.s32.totalorder %v9693_v38, 0  ;;  %v778_v39 = vsub.s32 0, %v9693_v38 }
 0x1c1   : > { %vm9702_vm12 = vcmp.le.f32.partialorder %v14017_v25, 0.7853982  ;;  %v644_v40 = vsel %vm521_vm8, %v643_v35, %v9580_v33  ;;  %v1513_v59 = vadd.s32 %v1511_v8, %v1505_v61  ;;  %v1526_v20 = vmul.u32 %v1522_v31, %v14015_v11 }
 0x1c2   : > { %v9718_v10 = vsel %vm9702_vm12, %v14012_v17, %v642_v19  ;;  %vm1514_vm7 = vc.u32 %v1512_v63, %v1508_v6  ;;  %v779_v29 = vsel %vm777_vm10, %v778_v39, %v9693_v38  ;;  %v1528_v42 = vshll.u32 %v9697_v28, 16 }
 0x1c3   : > { %v9727_v7 = vmul.f32 %v9718_v10, %v9718_v10  ;;  %v1515_v32 = vsel %vm1514_vm7, 1, %v13936_v18  ;;  %v14020_v48 = vand.u32 2147483647, %v14016_v23  ;;  %v780_v24 = vclz %v779_v29  ;;  %v14027_v29 = vld [vmem:[#allocation119_spill] sm:$0xff] }
 0x1c4   : > { %v798_v56 = vsub.s32 4, %v774_v26  ;;  %vm2413_vm6 = vcmp.lt.s32.totalorder %v9156_v15, 3  ;;  %v646_v14 = vsel %vm9702_vm12, 0, %v644_v40  ;;  %v1465_v21 = vshrl.u32 %v13807_v57, %v14023_v0 }
 0x1c5   : > { %v648_v58 = vmul.f32 -0.001358992, %v9727_v7  ;;  %vm9736_vm2 = vcmp.le.f32.partialorder %v14020_v48, 0.7853982  ;;  %v655_v49 = vmul.f32 -0.00019511016, %v9727_v7  ;;  %v1524_v3 = vmul.u32 %v1522_v31, %v14014_v12 }
 0x1c6   : > { %v768_v9 = vadd.s32 %v9637_v1, %v9633_v22  ;;  %v7006_v45 = vadd.s32 4294967294, %v780_v24  ;;  %v1517_v46 = vadd.s32 %v1515_v32, %v1513_v59  ;;  %vm14024_vm3 = vcmp.lt.s32.totalorder %v8799_v41, 4 }
 0x1c7   : > { %v649_v35 = vadd.f32 0.041655596, %v648_v58  ;;  %v1486_v8 = vsel %vm14024_vm3, %v8824_v5, 2102212464  ;;  %v1530_v63 = vshll.u32 %v1526_v20, 16  ;;  %vm1532_vm15 = vc.u32 %v1524_v3, %v1528_v42  ;;  %v14025_v5 = vld [vmem:[#allocation118_spill] sm:$0xff] }
 0x1c8   : > { %v1534_v25 = vadd.s32 %v1528_v42, %v1524_v3  ;;  %vm7007_vm8 = vcmp.lt.s32.totalorder %v7006_v45, 0  ;;  %v799_v16 = vsel %vm676_vm9, %v798_v56, %v774_v26  ;;  %v1507_v19 = vshrl.u32 %v9674_v53, 16 }
 0x1c9   : > { %v1527_v12 = vmul.u32 %v1523_v27, %v14015_v11  ;;  %v656_v31 = vadd.f32 0.008332121, %v655_v49  ;;  %v783_v61 = vsel %vm7007_vm8, 0, %v7006_v45  ;;  %v1533_v22 = vsel %vm1532_vm15, 1, %v13936_v18 }
 0x1ca   : > { %vm1536_vm1 = vc.u32 %v1534_v25, %v1530_v63  ;;  %v650_v1 = vmul.f32 %v649_v35, %v9727_v7  ;;  %v784_v6 = vsub.s32 32, %v783_v61  ;;  %vm14026_vm11 = vcmp.lt.s32.totalorder %v8799_v41, 1 }
 0x1cb   : > { %v1485_v39 = vsel %vm14026_vm11, %v1465_v21, %v14025_v5  ;;  %v1518_v40 = vadd.s32 %v1517_v46, %v1507_v19  ;;  %v788_v59 = vsub.s32 4294967266, %v783_v61  ;;  %vm14028_vm12 = vcmp.lt.s32.totalorder %v8799_v41, 3 }
 0x1cc   : > { %v1487_v53 = vsel %vm14028_vm12, %v14027_v29, %v1486_v8  ;;  %v1535_v26 = vadd.s32 %v1533_v22, %v1527_v12  ;;  %v1537_v27 = vsel %vm1536_vm1, 1, %v13936_v18  ;;  %v785_v11 = vshll.u32 %v9693_v38, %v783_v61  ;;  %v14031_v61 = vld [vmem:[#allocation113_spill] sm:$0xff]  ;;  %v14034_v29 = vld [vmem:[#allocation104_spill] sm:$0xff] }
 0x1cd   : > { %v786_v32 = vshrl.u32 %v768_v9, %v784_v6  ;;  %v801_v42 = vsel %vm9736_vm2, 0, %v799_v16  ;;  %v1509_v58 = vshrl.u32 %v9683_v62, 16  ;;  %v657_v48 = vmul.f32 %v656_v31, %v9727_v7  ;;  %v14029_v62 = vld [vmem:[#allocation101_spill] sm:$0xff]  ;;  %v14030_v31 = vld [vmem:[#allocation115_spill] sm:$0xff]  ;;  %v14033_v6 = vld [vmem:[#allocation114_spill] sm:$0xff] }
 0x1ce   : > { %v789_v24 = vadd.s32 127, %v788_v59  ;;  %v1529_v56 = vshrl.u32 %v9697_v28, 16  ;;  %v1539_v49 = vadd.s32 %v1537_v27, %v1535_v26  ;;  %v9775_v0 = vsel %vm2413_vm6, %v9484_v37, %v9504_v50 }
 0x1cf   : > { %v651_v21 = vadd.f32 -0.4999988, %v650_v1  ;;  %v787_v38 = vor.u32 %v786_v32, %v785_v11  ;;  %v9777_v3 = vadd.s32 %v1518_v40, %v1509_v58  ;;  %v1531_v9 = vshrl.u32 %v1526_v20, 16 }
 0x1d0   : > { %v790_v35 = vshll.u32 %v789_v24, 23  ;;  %v1540_v45 = vadd.s32 %v1539_v49, %v1529_v56  ;;  %vm1637_vm10 = vcmp.lt.s32.totalorder %v14029_v62, 2  ;;  %v663_v46 = vadd.s32 3, %v646_v14  ;;  %v14032_v14 = vld [vmem:[#allocation116_spill] sm:$0xff] }
 0x1d1   : > { %v818_v8 = vadd.s32 3, %v801_v42  ;;  %v1488_v28 = vsel %vm1482_vm5, %v1485_v39, %v1487_v53  ;;  %v9782_v16 = vadd.s32 %v1534_v25, %v1530_v63  ;;  %v658_v19 = vadd.f32 -0.16666654, %v657_v48  ;;  %v14035_v48 = vld [vmem:[#allocation99_spill] sm:$0xff] }
 0x1d2   : > { %v791_v12 = vor.u32 4788187, %v790_v35  ;;  %v1541_v50 = vadd.s32 %v1540_v45, %v1531_v9  ;;  %v1647_v22 = vsel %vm1637_vm10, %v14031_v61, %v14030_v31  ;;  %v652_v20 = vmul.f32 %v651_v21, %v9727_v7 }
 0x1d3   : > { %v794_v1 = vcvt.s32.f32 %v787_v38  ;;  %vm1544_vm7 = vc.u32 %v9777_v3, %v9782_v16  ;;  %v1651_v41 = vsel %vm1637_vm10, %v14033_v6, %v14032_v14  ;;  %v9800_v40 = vsel %vm2414_vm4, %v2410_v51, 1326507024 }
 0x1d4   : > { %v792_v63 = vand.u32 2147483647, %v791_v12  ;;  %v1545_v25 = vadd.s32 1, %v1541_v50  ;;  %v1655_v5 = vand.u32 65535, %v1651_v41  ;;  %v1656_v39 = vshrl.u32 %v1651_v41, 16  ;;  %v14038_v41 = vld [vmem:[#allocation106_spill] sm:$0xff] }
 0x1d5   : > { %v9802_v59 = vand.u32 3, %v663_v46  ;;  %v1542_v53 = vmul.u32 %v14034_v29, %v1488_v28  ;;  %v1678_v26 = vshrl.u32 %v1647_v22, 16  ;;  %v659_v27 = vmul.f32 %v658_v19, %v9727_v7  ;;  %v14037_v19 = vld [vmem:[#allocation94_spill] sm:$0xff] }
 0x1d6   : > { %v795_v11 = vmul.f32 %v794_v1, %v792_v63  ;;  %v1546_v32 = vsel %vm1544_vm7, %v1545_v25, %v1541_v50  ;;  %v1677_v42 = vand.u32 65535, %v1647_v22  ;;  %v1657_v24 = vmul.u32 %v1655_v5, %v14035_v48 }
 0x1d7   : > { %v1547_v58 = vadd.s32 %v1546_v32, %v1542_v53  ;;  %v1658_v56 = vmul.u32 %v1656_v39, %v14035_v48  ;;  %v9809_v30 = vmul.u32 %v1655_v5, %v14036_v47  ;;  %v9811_v51 = vadd.f32 1.0, %v652_v20 }
 0x1d8   : > { %v796_v49 = vxor.u32 2147483648, %v795_v11  ;;  %v9813_v21 = vand.u32 3, %v818_v8  ;;  %v9816_v38 = vmul.u32 %v1678_v26, %v14035_v48  ;;  %v1660_v35 = vmul.u32 %v1656_v39, %v14036_v47 }
 0x1d9   : > { %v1548_v7 = vadd.s32 536870912, %v1547_v58  ;;  %v1661_v9 = vshll.u32 %v1658_v56, 16  ;;  %v1663_v45 = vshll.u32 %v9809_v30, 16  ;;  %v660_v46 = vadd.f32 1.0, %v659_v27 }
 0x1da   : > { %v797_v28 = vsel %vm676_vm9, %v796_v49, %v795_v11  ;;  %v1620_v12 = vshrl.u32 %v13807_v57, %v14037_v19  ;;  %v1679_v50 = vmul.u32 %v1677_v42, %v14035_v48  ;;  %v9836_v1 = vmul.u32 %v1677_v42, %v14036_v47  ;;  %v14040_v49 = vld [vmem:[#allocation103_spill] sm:$0xff] }
 0x1db   : > { %v9828_v8 = vsel %vm9736_vm2, %v14016_v23, %v797_v28  ;;  %v9830_v31 = vshrl.u32 %v1548_v7, 30  ;;  %vm1665_vm5 = vc.u32 %v1657_v24, %v1661_v9  ;;  %v1667_v61 = vadd.s32 %v1661_v9, %v1657_v24 }
 0x1dc   : > { %v802_v22 = vmul.f32 %v9828_v8, %v9828_v8  ;;  %v1666_v20 = vsel %vm1665_vm5, 1, %v13936_v18  ;;  %v1683_v14 = vshll.u32 %v9816_v38, 16  ;;  %vm14039_vm9 = vcmp.lt.s32.totalorder %v14029_v62, 4 }
 0x1dd   : > { %v1550_v6 = vshll.u32 %v9830_v31, 30  ;;  %v1641_v33 = vsel %vm14039_vm9, %v14038_v41, 2102212464  ;;  %v1668_v63 = vadd.s32 %v1666_v20, %v1660_v35  ;;  %vm1669_vm2 = vc.u32 %v1667_v61, %v1663_v45 }
 0x1de   : > { %v661_v25 = vmul.f32 %v660_v46, %v9718_v10  ;;  %v803_v5 = vmul.f32 -0.001358992, %v802_v22  ;;  %v810_v39 = vmul.f32 -0.00019511016, %v802_v22  ;;  %v1670_v29 = vsel %vm1669_vm2, 1, %v13936_v18 }
 0x1df   : > { %v9845_v53 = vsub.s32 %v1547_v58, %v1550_v6  ;;  %v1662_v27 = vshrl.u32 %v1658_v56, 16  ;;  %v1672_v11 = vadd.s32 %v1670_v29, %v1668_v63  ;;  %v1682_v32 = vmul.u32 %v1678_v26, %v14036_v47  ;;  %v14042_v56 = vld [vmem:[#allocation105_spill] sm:$0xff] }
 0x1e0   : > { %vm669_vm3 = vcmp.eq.s32.totalorder %v9802_v59, 2  ;;  %v804_v42 = vadd.f32 0.041655596, %v803_v5  ;;  %v811_v48 = vadd.f32 0.008332121, %v810_v39  ;;  %v1685_v24 = vshll.u32 %v9836_v1, 16 }
 0x1e1   : > { %vm1687_vm15 = vc.u32 %v1679_v50, %v1683_v14  ;;  %vm666_vm8 = vcmp.eq.s32.totalorder %v9802_v59, 0  ;;  %vm1552_vm1 = vcmp.lt.s32.totalorder %v9845_v53, 0  ;;  %v1553_v10 = vsub.s32 0, %v9845_v53 }
 0x1e2   : > { %vm14041_vm11 = vcmp.lt.s32.totalorder %v14029_v62, 1  ;;  %vm14043_vm12 = vcmp.lt.s32.totalorder %v14029_v62, 3  ;;  %v805_v47 = vmul.f32 %v804_v42, %v802_v22  ;;  %v812_v7 = vmul.f32 %v811_v48, %v802_v22 }
 0x1e3   : > { %v1640_v58 = vsel %vm14041_vm11, %v1620_v12, %v14040_v49  ;;  %v1642_v26 = vsel %vm14043_vm12, %v14042_v56, %v1641_v33  ;;  %v1688_v35 = vsel %vm1687_vm15, 1, %v13936_v18  ;;  %v1689_v9 = vadd.s32 %v1683_v14, %v1679_v50 }
 0x1e4   : > { %v1554_v45 = vsel %vm1552_vm1, %v1553_v10, %v9845_v53  ;;  %v1664_v46 = vshrl.u32 %v9809_v30, 16  ;;  %v1673_v28 = vadd.s32 %v1672_v11, %v1662_v27  ;;  %v1690_v19 = vadd.s32 %v1688_v35, %v1682_v32 }
 0x1e5   : > { %vm665_vm7 = vcmp.lt.s32.totalorder %v9802_v59, 2  ;;  %v806_v61 = vadd.f32 -0.4999988, %v805_v47  ;;  %v813_v20 = vadd.f32 -0.16666654, %v812_v7  ;;  %v1555_v12 = vclz %v1554_v45  ;;  %v14045_v7 = vld [vmem:[#allocation120_spill] sm:$0xff] }
 0x1e6   : > { %vm1691_vm5 = vc.u32 %v1689_v9, %v1685_v24  ;;  %v670_v6 = vxor.u32 2147483648, %v9811_v51  ;;  %vm821_vm9 = vcmp.eq.s32.totalorder %v9813_v21, 0  ;;  %vm824_vm2 = vcmp.eq.s32.totalorder %v9813_v21, 2 }
 0x1e7   : > { %v1684_v50 = vshrl.u32 %v9816_v38, 16  ;;  %v1692_v14 = vsel %vm1691_vm5, 1, %v13936_v18  ;;  %v667_v41 = vxor.u32 2147483648, %v661_v25  ;;  %v807_v30 = vmul.f32 %v806_v61, %v802_v22 }
 0x1e8   : > { %v814_v33 = vmul.f32 %v813_v20, %v802_v22  ;;  %vm820_vm15 = vcmp.lt.s32.totalorder %v9813_v21, 2  ;;  %v7021_v63 = vadd.s32 4294967294, %v1555_v12  ;;  %vm662_vm1 = vweird.f32 %v14012_v17  ;;  %v14049_v20 = vld [vmem:[#allocation131_spill] sm:$0xff] }
 0x1e9   : > { %vm817_vm11 = vweird.f32 %v14016_v23  ;;  %v1643_v5 = vsel %vm1637_vm10, %v1640_v58, %v1642_v26  ;;  %v9873_v39 = vadd.s32 %v1673_v28, %v1664_v46  ;;  %v1686_v29 = vshrl.u32 %v9836_v1, 16 }
 0x1ea   : > { %v1694_v38 = vadd.s32 %v1692_v14, %v1690_v19  ;;  %v808_v27 = vadd.f32 1.0, %v807_v30  ;;  %v815_v11 = vadd.f32 1.0, %v814_v33  ;;  %vm7022_vm12 = vcmp.lt.s32.totalorder %v7021_v63, 0  ;;  %v14047_v19 = vld [vmem:[#allocation130_spill] sm:$0xff] }
 0x1eb   : > { %v9876_v32 = vadd.s32 %v1689_v9, %v1685_v24  ;;  %v671_v22 = vsel %vm669_vm3, %v670_v6, %v661_v25  ;;  %v1543_v42 = vadd.s32 %v9782_v16, %v9777_v3  ;;  %v1558_v48 = vsel %vm7022_vm12, 0, %v7021_v63  ;;  %v14044_v24 = vld [vmem:[#allocation93_spill] sm:$0xff]  ;;  %v14046_v16 = vld [vmem:[#allocation75_spill] sm:$0xff] }
 0x1ec   : > { %v1695_v10 = vadd.s32 %v1694_v38, %v1684_v50  ;;  %v668_v62 = vsel %vm666_vm8, %v9811_v51, %v667_v41  ;;  %v816_v1 = vmul.f32 %v815_v11, %v9828_v8  ;;  %v825_v49 = vxor.u32 2147483648, %v808_v27  ;;  %v14051_v11 = vld [vmem:[#allocation128_spill] sm:$0xff] }
 0x1ed   : > { %v1559_v58 = vsub.s32 32, %v1558_v48  ;;  %v1563_v56 = vsub.s32 4294967266, %v1558_v48  ;;  %v1697_v47 = vmul.u32 %v14044_v24, %v1643_v5  ;;  %vm2102_vm10 = vcmp.lt.s32.totalorder %v14045_v7, 2 }
 0x1ee   : > { %v1696_v26 = vadd.s32 %v1695_v10, %v1686_v29  ;;  %v822_v25 = vxor.u32 2147483648, %v816_v1  ;;  %v1560_v35 = vshll.u32 %v9845_v53, %v1558_v48  ;;  %vm1699_vm3 = vc.u32 %v9873_v39, %v9876_v32  ;;  %v14048_v53 = vld [vmem:[#allocation129_spill] sm:$0xff] }
 0x1ef   : > { %v1561_v3 = vshrl.u32 %v1543_v42, %v1559_v58  ;;  %vm1451_vm5 = vcmp.lt.s32.totalorder %v14046_v16, 0  ;;  %v672_v51 = vsel %vm665_vm7, %v668_v62, %v671_v22  ;;  %v826_v8 = vsel %vm824_vm2, %v825_v49, %v816_v1 }
 0x1f0   : > { %v1564_v9 = vadd.s32 127, %v1563_v56  ;;  %v1700_v45 = vadd.s32 1, %v1696_v26  ;;  %v823_v46 = vsel %vm821_vm9, %v808_v27, %v822_v25  ;;  %v2112_v61 = vsel %vm2102_vm10, %v14048_v53, %v14047_v19  ;;  %v14050_v27 = vld [vmem:[#allocation132_spill] sm:$0xff] }
 0x1f1   : > { %v1562_v28 = vor.u32 %v1561_v3, %v1560_v35  ;;  %v2116_v59 = vsel %vm2102_vm10, %v14049_v20, %v8944_v43  ;;  %v827_v12 = vsel %vm820_vm15, %v823_v46, %v826_v8  ;;  %v673_v41 = vsel %vm662_vm1, nan, %v672_v51 }
 0x1f2   : > { %v1565_v6 = vshll.u32 %v1564_v9, 23  ;;  %v1701_v50 = vsel %vm1699_vm3, %v1700_v45, %v1696_v26  ;;  %v2120_v14 = vand.u32 65535, %v2116_v59  ;;  %v828_v30 = vsel %vm817_vm11, nan, %v827_v12 }
 0x1f3   : > { %v1702_v33 = vadd.s32 %v1701_v50, %v1697_v47  ;;  %v2121_v63 = vshrl.u32 %v2116_v59, 16  ;;  %v7691_v5 = vpack.i.bf16 %v828_v30, %v673_v41  ;;  %v1573_v38 = vsub.s32 4, %v9830_v31  ;;  %v14056_v59 = vld [vmem:[#allocation117_spill] sm:$0xff] }
 0x1f4   : > { %v1566_v29 = vor.u32 4788187, %v1565_v6  ;;  %v9914_v43 = vmul.u32 %v2120_v14, %v14050_v27  ;;  %v2122_v22 = vmul.u32 %v2120_v14, %v14051_v11  ;;  %v2143_v48 = vshrl.u32 %v2112_v61, 16 }
 0x1f5   : > { %v1703_v21 = vadd.s32 536870912, %v1702_v33  ;;  %v2123_v42 = vmul.u32 %v2121_v63, %v14051_v11  ;;  %7692 = vrot.lane.b32.xlu1 %v7691_v5, %s7977_s14  ;;  %v1569_v23 = vcvt.s32.f32 %v1562_v28  ;;  %v2125_v10 = vmul.u32 %v2121_v63, %v14050_v27 }
 0x1f6   : > { %v1567_v17 = vand.u32 2147483647, %v1566_v29  ;;  %v2142_v62 = vand.u32 65535, %v2112_v61  ;;  %v2128_v58 = vshll.u32 %v9914_v43, 16  ;;  %v9922_v56 = vmul.u32 %v2143_v48, %v14051_v11  ;;  %v14055_v61 = vld [vmem:[#allocation59_spill] sm:$0xff] }
 0x1f7   : > { %v1704_v1 = vshrl.u32 %v1703_v21, 30  ;;  %v2126_v49 = vshll.u32 %v2123_v42, 16  ;;  %v9925_v26 = vshrl.u32 %v9713_v2, 5  ;;  %v9928_v24 = vand.u32 31, %v9713_v2 }
 0x1f8   : > { %v14052_v47 = vand.u32 2147483647, %v14046_v16  ;;  %v1570_v35 = vmul.f32 %v1569_v23, %v1567_v17  ;;  %v1574_v3 = vsel %vm1451_vm5, %v1573_v38, %v9830_v31  ;;  %v2144_v2 = vmul.u32 %v2142_v62, %v14051_v11 }
 0x1f9   : > { %v1705_v51 = vshll.u32 %v1704_v1, 30  ;;  %vm2130_vm7 = vc.u32 %v2122_v22, %v2126_v49  ;;  %v2132_v8 = vadd.s32 %v2126_v49, %v2122_v22  ;;  %v2148_v46 = vshll.u32 %v9922_v56, 16 }
 0x1fa   : > { %vm9932_vm8 = vcmp.le.f32.partialorder %v14052_v47, 0.7853982  ;;  %v1571_v9 = vxor.u32 2147483648, %v1570_v35  ;;  %v2131_v45 = vsel %vm2130_vm7, 1, %v13936_v18  ;;  %v2146_v53 = vmul.u32 %v2142_v62, %v14050_v27 }
 0x1fb   : > { %v9942_v28 = vsub.s32 %v1702_v33, %v1705_v51  ;;  %v2133_v19 = vadd.s32 %v2131_v45, %v2125_v10  ;;  %vm2134_vm9 = vc.u32 %v2132_v8, %v2128_v58  ;;  %vm1606_vm2 = vcmp.lt.s32.totalorder %v14055_v61, 0  ;;  %v14057_v33 = vld [vmem:[#allocation126_spill] sm:$0xff]  ;;  %v14062_v8 = vld [vmem:[#allocation124_spill] sm:$0xff] }
 0x1fc   : > { %v1572_v31 = vsel %vm1451_vm5, %v1571_v9, %v1570_v35  ;;  %v1576_v20 = vsel %vm9932_vm8, 0, %v1574_v3  ;;  %v2085_v12 = vshrl.u32 %v13807_v57, %v14056_v59  ;;  %v2135_v6 = vsel %vm2134_vm9, 1, %v13936_v18  ;;  %v14064_v9 = vld [vmem:[#allocation125_spill] sm:$0xff] }
 0x1fd   : > { %v9956_v50 = vsel %vm9932_vm8, %v14046_v16, %v1572_v31  ;;  %vm1707_vm15 = vcmp.lt.s32.totalorder %v9942_v28, 0  ;;  %v1708_v14 = vsub.s32 0, %v9942_v28  ;;  %v2147_v41 = vmul.u32 %v2143_v48, %v14050_v27 }
 0x1fe   : > { %v9963_v30 = vmul.f32 %v9956_v50, %v9956_v50  ;;  %vm14058_vm1 = vcmp.lt.s32.totalorder %v14045_v7, 4  ;;  %v2137_v5 = vadd.s32 %v2135_v6, %v2133_v19  ;;  %vm2152_vm11 = vc.u32 %v2144_v2, %v2148_v46 }
 0x1ff   : > { %v2106_v63 = vsel %vm14058_vm1, %v14057_v33, 2102212464  ;;  %v1709_v29 = vsel %vm1707_vm15, %v1708_v14, %v9942_v28  ;;  %v2150_v38 = vshll.u32 %v2146_v53, 16  ;;  %v2153_v21 = vsel %vm2152_vm11, 1, %v13936_v18 }
 0x200   : > { %v2154_v11 = vadd.s32 %v2148_v46, %v2144_v2  ;;  %v1578_v22 = vmul.f32 -0.001358992, %v9963_v30  ;;  %v1585_v27 = vmul.f32 -0.00019511016, %v9963_v30  ;;  %v1710_v48 = vclz %v1709_v29 }
 0x201   : > { %v2127_v17 = vshrl.u32 %v2123_v42, 16  ;;  %v1593_v23 = vadd.s32 3, %v1576_v20  ;;  %v14059_v10 = vand.u32 2147483647, %v14055_v61  ;;  %v1728_v49 = vsub.s32 4, %v1704_v1 }
 0x202   : > { %v2155_v58 = vadd.s32 %v2153_v21, %v2147_v41  ;;  %v1579_v47 = vadd.f32 0.041655596, %v1578_v22  ;;  %v1586_v25 = vadd.f32 0.008332121, %v1585_v27  ;;  %v7024_v35 = vadd.s32 4294967294, %v1710_v48 }
 0x203   : > { %vm9974_vm12 = vcmp.le.f32.partialorder %v14059_v10, 0.7853982  ;;  %v2138_v3 = vadd.s32 %v2137_v5, %v2127_v17  ;;  %v1698_v51 = vadd.s32 %v9876_v32, %v9873_v39  ;;  %vm14063_vm3 = vcmp.lt.s32.totalorder %v14045_v7, 1 }
 0x204   : > { %v2105_v42 = vsel %vm14063_vm3, %v2085_v12, %v14062_v8  ;;  %vm14065_vm5 = vcmp.lt.s32.totalorder %v14045_v7, 3  ;;  %vm2156_vm8 = vc.u32 %v2154_v11, %v2150_v38  ;;  %v1587_v2 = vmul.f32 %v1586_v25, %v9963_v30  ;;  %v14070_v8 = vld [vmem:[#allocation44_spill] sm:$0xff] }
 0x205   : > { %v2107_v45 = vsel %vm14065_vm5, %v14064_v9, %v2106_v63  ;;  %vm7025_vm7 = vcmp.lt.s32.totalorder %v7024_v35, 0  ;;  %v2129_v46 = vshrl.u32 %v9914_v43, 16  ;;  %v2157_v19 = vsel %vm2156_vm8, 1, %v13936_v18 }
 0x206   : > { %v1713_v31 = vsel %vm7025_vm7, 0, %v7024_v35  ;;  %v1729_v39 = vsel %vm1606_vm2, %v1728_v49, %v1704_v1  ;;  %v2149_v32 = vshrl.u32 %v9922_v56, 16  ;;  %v2159_v20 = vadd.s32 %v2157_v19, %v2155_v58  ;;  %v14066_v1 = vld [vmem:[#allocation24_spill] sm:$0xff]  ;;  %v14067_v49 = vld [vmem:[#allocation46_spill] sm:$0xff]  ;;  %v14068_v58 = vld [vmem:[#allocation45_spill] sm:$0xff] }
 0x207   : > { %v1580_v59 = vmul.f32 %v1579_v47, %v9963_v30  ;;  %v1588_v12 = vadd.f32 -0.16666654, %v1587_v2  ;;  %v1714_v6 = vsub.s32 32, %v1713_v31  ;;  %v9993_v14 = vadd.s32 %v2138_v3, %v2129_v46  ;;  %v14069_v35 = vld [vmem:[#allocation121_spill] sm:$0xff] }
 0x208   : > { %v1718_v41 = vsub.s32 4294967266, %v1713_v31  ;;  %v2151_v33 = vshrl.u32 %v2146_v53, 16  ;;  %v9995_v63 = vadd.s32 %v2154_v11, %v2150_v38  ;;  %v2160_v43 = vadd.s32 %v2159_v20, %v2149_v32 }
 0x209   : > { %v1589_v5 = vmul.f32 %v1588_v12, %v9963_v30  ;;  %v1715_v29 = vshll.u32 %v9942_v28, %v1713_v31  ;;  %v1716_v21 = vshrl.u32 %v1698_v51, %v1714_v6  ;;  %vm2257_vm9 = vcmp.lt.s32.totalorder %v14066_v1, 2 }
 0x20a   : > { %v1719_v56 = vadd.s32 127, %v1718_v41  ;;  %v1731_v22 = vsel %vm9974_vm12, 0, %v1729_v39  ;;  %v2108_v27 = vsel %vm2102_vm10, %v2105_v42, %v2107_v45  ;;  %v2161_v48 = vadd.s32 %v2160_v43, %v2151_v33  ;;  %v14071_v42 = vld [vmem:[#allocation43_spill] sm:$0xff]  ;;  %v14072_v39 = vld [vmem:[#allocation21_spill] sm:$0xff] }
 0x20b   : > { %v10008_v53 = vsel %vm2413_vm6, %v9475_v52, %v9800_v40  ;;  %v1581_v38 = vadd.f32 -0.4999988, %v1580_v59  ;;  %v1717_v11 = vor.u32 %v1716_v21, %v1715_v29  ;;  %vm2164_vm15 = vc.u32 %v9993_v14, %v9995_v63  ;;  %v14073_v59 = vld [vmem:[#allocation23_spill] sm:$0xff] }
 0x20c   : > { %v10012_v28 = vand.u32 3, %v1593_v23  ;;  %v1720_v17 = vshll.u32 %v1719_v56, 23  ;;  %v2165_v10 = vadd.s32 1, %v2161_v48  ;;  %v2271_v7 = vsel %vm2257_vm9, %v14068_v58, %v14067_v49  ;;  %v14075_v58 = vld [vmem:[#allocation34_spill] sm:$0xff] }
 0x20d   : > { %v1590_v47 = vadd.f32 1.0, %v1589_v5  ;;  %v1748_v25 = vadd.s32 3, %v1731_v22  ;;  %v2162_v3 = vmul.u32 %v14069_v35, %v2108_v27  ;;  %v2275_v52 = vand.u32 65535, %v2271_v7 }
 0x20e   : > { %v1721_v40 = vor.u32 4788187, %v1720_v17  ;;  %v2166_v51 = vsel %vm2164_vm15, %v2165_v10, %v2161_v48  ;;  %v2267_v23 = vsel %vm2257_vm9, %v14071_v42, %v14070_v8  ;;  %v2276_v9 = vshrl.u32 %v2271_v7, 16  ;;  %v14074_v10 = vld [vmem:[#allocation22_spill] sm:$0xff] }
 0x20f   : > { %v10024_v45 = vsub.s32 32, %v9928_v24  ;;  %v1582_v2 = vmul.f32 %v1581_v38, %v9963_v30  ;;  %v1724_v46 = vcvt.s32.f32 %v1717_v11  ;;  %v2167_v19 = vadd.s32 %v2166_v51, %v2162_v3 }
 0x210   : > { %v1722_v31 = vand.u32 2147483647, %v1721_v40  ;;  %v2277_v32 = vmul.u32 %v2275_v52, %v14072_v39  ;;  %v2278_v20 = vmul.u32 %v2276_v9, %v14072_v39  ;;  %v10030_v12 = vmul.u32 %v2275_v52, %v14073_v59 }
 0x211   : > { %v10034_v6 = vshll.u32 %v13807_v57, %v9928_v24  ;;  %v10036_v41 = vand.u32 3, %v1748_v25  ;;  %v2168_v33 = vadd.s32 536870912, %v2167_v19  ;;  %v2298_v43 = vshrl.u32 %v2267_v23, 16 }
 0x212   : > { %v1591_v30 = vmul.f32 %v1590_v47, %v9956_v50  ;;  %vm1596_vm10 = vcmp.eq.s32.totalorder %v10012_v28, 0  ;;  %v1725_v5 = vmul.f32 %v1724_v46, %v1722_v31  ;;  %v2280_v29 = vmul.u32 %v2276_v9, %v14073_v59 }
 0x213   : > { %v2281_v21 = vshll.u32 %v2278_v20, 16  ;;  %v1583_v56 = vadd.f32 1.0, %v1582_v2  ;;  %v10041_v22 = vshrl.u32 %v2168_v33, 30  ;;  %v2283_v27 = vshll.u32 %v10030_v12, 16  ;;  %v14077_v33 = vld [vmem:[#allocation32_spill] sm:$0xff] }
 0x214   : > { %v2297_v48 = vand.u32 65535, %v2267_v23  ;;  %vm1599_vm1 = vcmp.eq.s32.totalorder %v10012_v28, 2  ;;  %v1726_v38 = vxor.u32 2147483648, %v1725_v5  ;;  %v10046_v17 = vmul.u32 %v2298_v43, %v14072_v39 }
 0x215   : > { %vm2285_vm11 = vc.u32 %v2277_v32, %v2281_v21  ;;  %v2287_v11 = vadd.s32 %v2281_v21, %v2277_v32  ;;  %v2170_v50 = vshll.u32 %v10041_v22, 30  ;;  %v2240_v49 = vshrl.u32 %v13807_v57, %v14074_v10 }
 0x216   : > { %vm14076_vm3 = vcmp.lt.s32.totalorder %v14066_v1, 4  ;;  %v2286_v47 = vsel %vm2285_vm11, 1, %v13936_v18  ;;  %vm1595_vm5 = vcmp.lt.s32.totalorder %v10012_v28, 2  ;;  %v1597_v25 = vxor.u32 2147483648, %v1591_v30 }
 0x217   : > { %v2261_v7 = vsel %vm14076_vm3, %v14075_v58, 2102212464  ;;  %v1727_v35 = vsel %vm1606_vm2, %v1726_v38, %v1725_v5  ;;  %v2288_v3 = vadd.s32 %v2286_v47, %v2280_v29  ;;  %vm2289_vm8 = vc.u32 %v2287_v11, %v2283_v27  ;;  %v14079_v5 = vld [vmem:[#allocation33_spill] sm:$0xff] }
 0x218   : > { %v10061_v52 = vsel %vm9974_vm12, %v14055_v61, %v1727_v35  ;;  %v10063_v40 = vsub.s32 %v2167_v19, %v2170_v50  ;;  %v2290_v51 = vsel %vm2289_vm8, 1, %v13936_v18  ;;  %v2299_v8 = vmul.u32 %v2297_v48, %v14072_v39 }
 0x219   : > { %v1600_v42 = vxor.u32 2147483648, %v1583_v56  ;;  %v1732_v23 = vmul.f32 %v10061_v52, %v10061_v52  ;;  %v10070_v9 = vmul.u32 %v2297_v48, %v14073_v59  ;;  %v2303_v2 = vshll.u32 %v10046_v17, 16 }
 0x21a   : > { %vm2172_vm2 = vcmp.lt.s32.totalorder %v10063_v40, 0  ;;  %v2173_v62 = vsub.s32 0, %v10063_v40  ;;  %v2282_v46 = vshrl.u32 %v2278_v20, 16  ;;  %v2292_v19 = vadd.s32 %v2290_v51, %v2288_v3 }
 0x21b   : > { %v1733_v31 = vmul.f32 -0.001358992, %v1732_v23  ;;  %v1740_v32 = vmul.f32 -0.00019511016, %v1732_v23  ;;  %vm14078_vm12 = vcmp.lt.s32.totalorder %v14066_v1, 1  ;;  %vm14080_vm7 = vcmp.lt.s32.totalorder %v14066_v1, 3 }
 0x21c   : > { %v2260_v39 = vsel %vm14078_vm12, %v2240_v49, %v14077_v33  ;;  %v2262_v29 = vsel %vm14080_vm7, %v14079_v5, %v2261_v7  ;;  %v1598_v21 = vsel %vm1596_vm10, %v1583_v56, %v1597_v25  ;;  %v2174_v27 = vsel %vm2172_vm2, %v2173_v62, %v10063_v40 }
 0x21d   : > { %v2302_v48 = vmul.u32 %v2298_v43, %v14073_v59  ;;  %vm2307_vm15 = vc.u32 %v2299_v8, %v2303_v2  ;;  %v1734_v20 = vadd.f32 0.041655596, %v1733_v31  ;;  %v1741_v38 = vadd.f32 0.008332121, %v1740_v32 }
 0x21e   : > { %v2175_v11 = vclz %v2174_v27  ;;  %v2305_v50 = vshll.u32 %v10070_v9, 16  ;;  %vm1592_vm11 = vweird.f32 %v14046_v16  ;;  %v1601_v10 = vsel %vm1599_vm1, %v1600_v42, %v1591_v30  ;;  %v14086_v16 = vld [vmem:[#allocation31_spill] sm:$0xff] }
 0x21f   : > { %v2284_v49 = vshrl.u32 %v10030_v12, 16  ;;  %v2293_v58 = vadd.s32 %v2292_v19, %v2282_v46  ;;  %v2308_v56 = vsel %vm2307_vm15, 1, %v13936_v18  ;;  %v1735_v7 = vmul.f32 %v1734_v20, %v1732_v23 }
 0x220   : > { %v1742_v47 = vmul.f32 %v1741_v38, %v1732_v23  ;;  %v7033_v25 = vadd.s32 4294967294, %v2175_v11  ;;  %v2309_v59 = vadd.s32 %v2303_v2, %v2299_v8  ;;  %v1602_v43 = vsel %vm1595_vm5, %v1598_v21, %v1601_v10  ;;  %v14082_v38 = vld [vmem:[#allocation15_spill] sm:$0xff]  ;;  %v14084_v10 = vld [vmem:[#allocation26_spill] sm:$0xff] }
 0x221   : > { %v2163_v35 = vadd.s32 %v9995_v63, %v9993_v14  ;;  %v2263_v3 = vsel %vm2257_vm9, %v2260_v39, %v2262_v29  ;;  %v2310_v51 = vadd.s32 %v2308_v56, %v2302_v48  ;;  %v1736_v30 = vadd.f32 -0.4999988, %v1735_v7  ;;  %v14081_v39 = vld [vmem:[#allocation13_spill] sm:$0xff] }
 0x222   : > { %v1743_v42 = vadd.f32 -0.16666654, %v1742_v47  ;;  %vm7034_vm10 = vcmp.lt.s32.totalorder %v7033_v25, 0  ;;  %vm2311_vm1 = vc.u32 %v2309_v59, %v2305_v50  ;;  %v2304_v62 = vshrl.u32 %v10046_v17, 16 }
 0x223   : > { %v2178_v12 = vsel %vm7034_vm10, 0, %v7033_v25  ;;  %v2306_v46 = vshrl.u32 %v10070_v9, 16  ;;  %v2312_v8 = vsel %vm2311_vm1, 1, %v13936_v18  ;;  %v1737_v28 = vmul.f32 %v1736_v30, %v1732_v23 }
 0x224   : > { %v1744_v2 = vmul.f32 %v1743_v42, %v1732_v23  ;;  %vm1750_vm3 = vcmp.lt.s32.totalorder %v10036_v41, 2  ;;  %v2179_v14 = vsub.s32 32, %v2178_v12  ;;  %v10101_v63 = vadd.s32 %v2293_v58, %v2284_v49  ;;  %v14085_v58 = vld [vmem:[#allocation76_spill] sm:$0xff] }
 0x225   : > { %vm1747_vm9 = vweird.f32 %v14055_v61  ;;  %v2180_v1 = vshll.u32 %v10063_v40, %v2178_v12  ;;  %v2183_v19 = vsub.s32 4294967266, %v2178_v12  ;;  %v10105_v31 = vadd.s32 %v2309_v59, %v2305_v50  ;;  %v14083_v50 = vld [vmem:[#allocation30_spill] sm:$0xff] }
 0x226   : > { %v2314_v32 = vadd.s32 %v2312_v8, %v2310_v51  ;;  %v1738_v17 = vadd.f32 1.0, %v1737_v28  ;;  %v1745_v33 = vadd.f32 1.0, %v1744_v2  ;;  %v2181_v9 = vshrl.u32 %v2163_v35, %v2179_v14  ;;  %v14088_v8 = vld [vmem:[#allocation14_spill] sm:$0xff] }
 0x227   : > { %vm1792_vm5 = vcmp.lt.s32.totalorder %v14081_v39, 2  ;;  %vm1751_vm8 = vcmp.eq.s32.totalorder %v10036_v41, 0  ;;  %vm1754_vm2 = vcmp.eq.s32.totalorder %v10036_v41, 2  ;;  %v2184_v23 = vadd.s32 127, %v2183_v19  ;;  %v14089_v19 = vld [vmem:[#allocation18_spill] sm:$0xff] }
 0x228   : > { %v2315_v5 = vadd.s32 %v2314_v32, %v2304_v62  ;;  %v1603_v29 = vsel %vm1592_vm11, nan, %v1602_v43  ;;  %v1746_v40 = vmul.f32 %v1745_v33, %v10061_v52  ;;  %v1755_v21 = vxor.u32 2147483648, %v1738_v17  ;;  %v14087_v52 = vld [vmem:[#allocation27_spill] sm:$0xff] }
 0x229   : > { %v2182_v27 = vor.u32 %v2181_v9, %v2180_v1  ;;  %v2185_v48 = vshll.u32 %v2184_v23, 23  ;;  %v2317_v11 = vmul.u32 %v14082_v38, %v2263_v3  ;;  %v1802_v49 = vsel %vm1792_vm5, %v14084_v10, %v14083_v50 }
 0x22a   : > { %v2316_v20 = vadd.s32 %v2315_v5, %v2306_v46  ;;  %vm2071_vm12 = vcmp.lt.s32.totalorder %v14085_v58, 0  ;;  %v1752_v56 = vxor.u32 2147483648, %v1746_v40  ;;  %v1756_v7 = vsel %vm1754_vm2, %v1755_v21, %v1746_v40 }
 0x22b   : > { %vm2319_vm7 = vc.u32 %v10101_v63, %v10105_v31  ;;  %v1806_v47 = vsel %vm1792_vm5, %v14087_v52, %v14086_v16  ;;  %v2186_v25 = vor.u32 4788187, %v2185_v48  ;;  %v2189_v51 = vcvt.s32.f32 %v2182_v27 }
 0x22c   : > { %v2320_v59 = vadd.s32 1, %v2316_v20  ;;  %v1810_v43 = vand.u32 65535, %v1806_v47  ;;  %v1811_v35 = vshrl.u32 %v1806_v47, 16  ;;  %v1753_v3 = vsel %vm1751_vm8, %v1738_v17, %v1752_v56 }
 0x22d   : > { %v1832_v30 = vand.u32 65535, %v1802_v49  ;;  %v1833_v42 = vshrl.u32 %v1802_v49, 16  ;;  %v1757_v12 = vsel %vm1750_vm3, %v1753_v3, %v1756_v7  ;;  %v2187_v62 = vand.u32 2147483647, %v2186_v25 }
 0x22e   : > { %v2321_v46 = vsel %vm2319_vm7, %v2320_v59, %v2316_v20  ;;  %v1812_v28 = vmul.u32 %v1810_v43, %v14088_v8  ;;  %v1758_v2 = vsel %vm1747_vm9, nan, %v1757_v12  ;;  %v1813_v1 = vmul.u32 %v1811_v35, %v14088_v8 }
 0x22f   : > { %v2322_v14 = vadd.s32 %v2321_v46, %v2317_v11  ;;  %v10134_v32 = vmul.u32 %v1810_v43, %v14089_v19  ;;  %v10138_v17 = vshll.u32 %v13788_v36, %v9928_v24  ;;  %v14090_v41 = vmov 2131351028   ;;  %v14096_v46 = vld [vmem:[#allocation10_spill] sm:$0xff] }
 0x230   : > { %v10142_v33 = vshll.u32 %v14090_v41, %v9928_v24  ;;  %v7706_v9 = vpack.i.bf16 %v1758_v2, %v1603_v29  ;;  %v2190_v23 = vmul.f32 %v2189_v51, %v2187_v62  ;;  %v14091_v5 = vmov 2102212464  }
 0x231   : > { %v10146_v61 = vshll.u32 %v14091_v5, %v9928_v24  ;;  %v2323_v40 = vadd.s32 536870912, %v2322_v14  ;;  %v1815_v21 = vmul.u32 %v1811_v35, %v14089_v19  ;;  %v1816_v27 = vshll.u32 %v1813_v1, 16 }
 0x232   : > { %7707 = vrot.lane.b32.xlu1 %v7706_v9, %s7977_s14  ;;  %v14092_v48 = vand.u32 2147483647, %v14085_v58  ;;  %v2191_v38 = vxor.u32 2147483648, %v2190_v23  ;;  %v1818_v29 = vshll.u32 %v10134_v32, 16  ;;  %v1835_v11 = vmul.u32 %v1833_v42, %v14088_v8 }
 0x233   : > { %v10158_v50 = vshrl.u32 %v2323_v40, 30  ;;  %vm1820_vm11 = vc.u32 %v1812_v28, %v1816_v27  ;;  %v1822_v10 = vadd.s32 %v1816_v27, %v1812_v28  ;;  %v1834_v49 = vmul.u32 %v1832_v30, %v14088_v8  ;;  %v14097_v40 = vld [vmem:[#allocation5_spill] sm:$0xff] }
 0x234   : > { %vm10152_vm15 = vcmp.le.f32.partialorder %v14092_v48, 0.7853982  ;;  %v2192_v56 = vsel %vm2071_vm12, %v2191_v38, %v2190_v23  ;;  %v1821_v7 = vsel %vm1820_vm11, 1, %v13936_v18  ;;  %v10165_v16 = vmul.u32 %v1832_v30, %v14089_v19  ;;  %v14098_v38 = vld [vmem:[#allocation20_spill] sm:$0xff] }
 0x235   : > { %v1838_v52 = vshll.u32 %v1835_v11, 16  ;;  %v14095_v47 = vmov 920167782   ;;  %v10174_v59 = vsel %vm10152_vm15, %v14085_v58, %v2192_v56  ;;  %v2325_v43 = vshll.u32 %v10158_v50, 30 }
 0x236   : > { %v10169_v25 = vshll.u32 %v14095_v47, %v9928_v24  ;;  %v1823_v35 = vadd.s32 %v1821_v7, %v1815_v21  ;;  %v10179_v3 = vshrl.u32 %v13788_v36, %v10024_v45  ;;  %v2193_v51 = vsub.s32 4, %v10041_v22 }
 0x237   : > { %v10184_v30 = vmul.f32 %v10174_v59, %v10174_v59  ;;  %vm1824_vm10 = vc.u32 %v1822_v10, %v1818_v29  ;;  %v10186_v24 = vsub.s32 %v2322_v14, %v2325_v43  ;;  %v1837_v62 = vmul.u32 %v1833_v42, %v14089_v19 }
 0x238   : > { %v1825_v12 = vsel %vm1824_vm10, 1, %v13936_v18  ;;  %vm1842_vm1 = vc.u32 %v1834_v49, %v1838_v52  ;;  %v1775_v8 = vshrl.u32 %v13807_v57, %v14096_v46  ;;  %v1817_v28 = vshrl.u32 %v1813_v1, 16  ;;  %v14102_v46 = vld [vmem:[#allocation19_spill] sm:$0xff] }
 0x239   : > { %v1827_v36 = vadd.s32 %v1825_v12, %v1823_v35  ;;  %v1840_v2 = vshll.u32 %v10165_v16, 16  ;;  %v2198_v9 = vmul.f32 -0.001358992, %v10184_v30  ;;  %vm2327_vm3 = vcmp.lt.s32.totalorder %v10186_v24, 0 }
 0x23a   : > { %v2328_v23 = vsub.s32 0, %v10186_v24  ;;  %v1843_v14 = vsel %vm1842_vm1, 1, %v13936_v18  ;;  %vm2226_vm9 = vcmp.lt.s32.totalorder %v14097_v40, 0  ;;  %v10200_v42 = vshrl.u32 %v14090_v41, %v10024_v45 }
 0x23b   : > { %v10204_v1 = vshrl.u32 %v14091_v5, %v10024_v45  ;;  %v2205_v19 = vmul.f32 -0.00019511016, %v10184_v30  ;;  %v1844_v21 = vadd.s32 %v1838_v52, %v1834_v49  ;;  %v10209_v27 = vshrl.u32 %v14095_v47, %v10024_v45  ;;  %v14100_v52 = vld [vmem:[#allocation17_spill] sm:$0xff] }
 0x23c   : > { %v2329_v48 = vsel %vm2327_vm3, %v2328_v23, %v10186_v24  ;;  %vm14099_vm8 = vcmp.lt.s32.totalorder %v14081_v39, 4  ;;  %v1845_v10 = vadd.s32 %v1843_v14, %v1837_v62  ;;  %v2194_v41 = vsel %vm2071_vm12, %v2193_v51, %v10041_v22 }
 0x23d   : > { %v1796_v29 = vsel %vm14099_vm8, %v14098_v38, 2102212464  ;;  %v2330_v5 = vclz %v2329_v48  ;;  %v1819_v56 = vshrl.u32 %v10134_v32, 16  ;;  %v1828_v7 = vadd.s32 %v1827_v36, %v1817_v28 }
 0x23e   : > { %v2199_v49 = vadd.f32 0.041655596, %v2198_v9  ;;  %vm14101_vm2 = vcmp.lt.s32.totalorder %v14081_v39, 1  ;;  %v1839_v43 = vshrl.u32 %v1835_v11, 16  ;;  %vm1846_vm7 = vc.u32 %v1844_v21, %v1840_v2 }
 0x23f   : > { %v1795_v47 = vsel %vm14101_vm2, %v1775_v8, %v14100_v52  ;;  %v2206_v35 = vadd.f32 0.008332121, %v2205_v19  ;;  %v7036_v12 = vadd.s32 4294967294, %v2330_v5  ;;  %vm14103_vm11 = vcmp.lt.s32.totalorder %v14081_v39, 3 }
 0x240   : > { %v1797_v62 = vsel %vm14103_vm11, %v14102_v46, %v1796_v29  ;;  %v1847_v23 = vsel %vm1846_vm7, 1, %v13936_v18  ;;  %v10228_v22 = vshrl.u32 %v13792_v54, %v10024_v45  ;;  %v2348_v32 = vsub.s32 4, %v10158_v50  ;;  %v14110_v46 = vld [vmem:[#allocation147_spill] sm:$0xff] }
 0x241   : > { %v1841_v51 = vshrl.u32 %v10165_v16, 16  ;;  %v1849_v28 = vadd.s32 %v1847_v23, %v1845_v10  ;;  %v2196_v11 = vsel %vm10152_vm15, 0, %v2194_v41  ;;  %vm7037_vm12 = vcmp.lt.s32.totalorder %v7036_v12, 0 }
 0x242   : > { %v1829_v8 = vadd.s32 %v1828_v7, %v1819_v56  ;;  %v1848_v36 = vadd.s32 %v1844_v21, %v1840_v2  ;;  %v2200_v9 = vmul.f32 %v2199_v49, %v10184_v30  ;;  %v2333_v14 = vsel %vm7037_vm12, 0, %v7036_v12  ;;  %v14107_v56 = vld [vmem:[#allocation12_spill] sm:$0xff]  ;;  %v14109_v12 = vld [vmem:[#allocation150_spill] sm:$0xff] }
 0x243   : > { %v1798_v19 = vsel %vm1792_vm5, %v1795_v47, %v1797_v62  ;;  %v1850_v48 = vadd.s32 %v1849_v28, %v1839_v43  ;;  %v2207_v54 = vmul.f32 %v2206_v35, %v10184_v30  ;;  %v14104_v38 = vand.u32 2147483647, %v14097_v40  ;;  %v14108_v43 = vld [vmem:[#allocation134_spill] sm:$0xff] }
 0x244   : > { %v2318_v20 = vadd.s32 %v10105_v31, %v10101_v63  ;;  %v2334_v29 = vsub.s32 32, %v2333_v14  ;;  %v2213_v2 = vadd.s32 3, %v2196_v11  ;;  %v2338_v21 = vsub.s32 4294967266, %v2333_v14 }
 0x245   : > { %vm10240_vm10 = vcmp.le.f32.partialorder %v14104_v38, 0.7853982  ;;  %v2349_v39 = vsel %vm2226_vm9, %v2348_v32, %v10158_v50  ;;  %v1851_v10 = vadd.s32 %v1850_v48, %v1841_v51  ;;  %v2335_v41 = vshll.u32 %v10186_v24, %v2333_v14  ;;  %v14112_v14 = vld [vmem:[#allocation144_spill] sm:$0xff] }
 0x246   : > { %v2336_v5 = vshrl.u32 %v2318_v20, %v2334_v29  ;;  %v1852_v7 = vmul.u32 %v14107_v56, %v1798_v19  ;;  %vm1854_vm5 = vc.u32 %v1829_v8, %v1848_v36  ;;  %v2201_v49 = vadd.f32 -0.4999988, %v2200_v9  ;;  %v14111_v9 = vld [vmem:[#allocation149_spill] sm:$0xff]  ;;  %v14113_v20 = vld [vmem:[#allocation139_spill] sm:$0xff] }
 0x247   : > { %v2339_v52 = vadd.s32 127, %v2338_v21  ;;  %v1855_v47 = vadd.s32 1, %v1851_v10  ;;  %vm1947_vm15 = vcmp.lt.s32.totalorder %v14108_v43, 2  ;;  %v2208_v63 = vadd.f32 -0.16666654, %v2207_v54 }
 0x248   : > { %v2337_v31 = vor.u32 %v2336_v5, %v2335_v41  ;;  %v2351_v35 = vsel %vm10240_vm10, 0, %v2349_v39  ;;  %v1961_v50 = vsel %vm1947_vm15, %v14110_v46, %v14109_v12  ;;  %v10260_v51 = vor.u32 %v10179_v3, %v10034_v6  ;;  %v14114_v6 = vld [vmem:[#allocation140_spill] sm:$0xff]  ;;  %v14115_v46 = vld [vmem:[#allocation127_spill] sm:$0xff] }
 0x249   : > { %v2340_v24 = vshll.u32 %v2339_v52, 23  ;;  %v1856_v62 = vsel %vm1854_vm5, %v1855_v47, %v1851_v10  ;;  %v1965_v23 = vand.u32 65535, %v1961_v50  ;;  %v1966_v32 = vshrl.u32 %v1961_v50, 16 }
 0x24a   : > { %v10262_v28 = vand.u32 3, %v2213_v2  ;;  %v1857_v11 = vadd.s32 %v1856_v62, %v1852_v7  ;;  %v1957_v19 = vsel %vm1947_vm15, %v14112_v14, %v14111_v9  ;;  %v2202_v48 = vmul.f32 %v2201_v49, %v10184_v30 }
 0x24b   : > { %v2341_v54 = vor.u32 4788187, %v2340_v24  ;;  %v2368_v38 = vadd.s32 3, %v2351_v35  ;;  %v1968_v29 = vmul.u32 %v1966_v32, %v14113_v20  ;;  %v2209_v21 = vmul.f32 %v2208_v63, %v10184_v30 }
 0x24c   : > { %v2344_v39 = vcvt.s32.f32 %v2337_v31  ;;  %v1858_v10 = vadd.s32 536870912, %v1857_v11  ;;  %v10272_v3 = vmul.u32 %v1965_v23, %v14114_v6  ;;  %v1967_v41 = vmul.u32 %v1965_v23, %v14113_v20 }
 0x24d   : > { %v2342_v2 = vand.u32 2147483647, %v2341_v54  ;;  %v1971_v5 = vshll.u32 %v1968_v29, 16  ;;  %v1988_v56 = vshrl.u32 %v1957_v19, 16  ;;  %v1970_v49 = vmul.u32 %v1966_v32, %v14114_v6 }
 0x24e   : > { %v10275_v7 = vshrl.u32 %v1858_v10, 30  ;;  %v1973_v52 = vshll.u32 %v10272_v3, 16  ;;  %v1987_v47 = vand.u32 65535, %v1957_v19  ;;  %v10282_v31 = vand.u32 3, %v2368_v38 }
 0x24f   : > { %v2345_v35 = vmul.f32 %v2344_v39, %v2342_v2  ;;  %vm1975_vm1 = vc.u32 %v1967_v41, %v1971_v5  ;;  %v1977_v30 = vadd.s32 %v1971_v5, %v1967_v41  ;;  %v10280_v63 = vmul.u32 %v1988_v56, %v14113_v20  ;;  %v14118_v5 = vld [vmem:[#allocation142_spill] sm:$0xff] }
 0x250   : > { %v1860_v12 = vshll.u32 %v10275_v7, 30  ;;  %v1930_v50 = vshrl.u32 %v13807_v57, %v14115_v46  ;;  %v1976_v24 = vsel %vm1975_vm1, 1, %v13936_v18  ;;  %v2210_v62 = vadd.f32 1.0, %v2209_v21  ;;  %v14120_v46 = vld [vmem:[#allocation138_spill] sm:$0xff] }
 0x251   : > { %v2346_v23 = vxor.u32 2147483648, %v2345_v35  ;;  %v1978_v32 = vadd.s32 %v1976_v24, %v1970_v49  ;;  %vm1979_vm3 = vc.u32 %v1977_v30, %v1973_v52  ;;  %v1853_v9 = vadd.s32 %v1848_v36, %v1829_v8 }
 0x252   : > { %v10288_v14 = vsub.s32 %v1857_v11, %v1860_v12  ;;  %v1980_v19 = vsel %vm1979_vm3, 1, %v13936_v18  ;;  %v1993_v54 = vshll.u32 %v10280_v63, 16  ;;  %v2203_v38 = vadd.f32 1.0, %v2202_v48 }
 0x253   : > { %v2347_v39 = vsel %vm2226_vm9, %v2346_v23, %v2345_v35  ;;  %v1989_v10 = vmul.u32 %v1987_v47, %v14113_v20  ;;  %v1991_v2 = vmul.u32 %v1987_v47, %v14114_v6  ;;  %v1982_v36 = vadd.s32 %v1980_v19, %v1978_v32  ;;  %v14116_v20 = vld [vmem:[#allocation137_spill] sm:$0xff] }
 0x254   : > { %v10299_v21 = vsel %vm10240_vm10, %v14097_v40, %v2347_v39  ;;  %vm1862_vm8 = vcmp.lt.s32.totalorder %v10288_v14, 0  ;;  %v1863_v8 = vsub.s32 0, %v10288_v14  ;;  %v2211_v11 = vmul.f32 %v2210_v62, %v10174_v59 }
 0x255   : > { %vm2216_vm2 = vcmp.eq.s32.totalorder %v10262_v28, 0  ;;  %v2352_v48 = vmul.f32 %v10299_v21, %v10299_v21  ;;  %vm14117_vm9 = vcmp.lt.s32.totalorder %v14108_v43, 1  ;;  %vm14119_vm7 = vcmp.lt.s32.totalorder %v14108_v43, 4 }
 0x256   : > { %v1950_v41 = vsel %vm14117_vm9, %v1930_v50, %v14116_v20  ;;  %v1951_v16 = vsel %vm14119_vm7, %v14118_v5, 2102212464  ;;  %v1864_v49 = vsel %vm1862_vm8, %v1863_v8, %v10288_v14  ;;  %v1972_v52 = vshrl.u32 %v1968_v29, 16 }
 0x257   : > { %vm1997_vm11 = vc.u32 %v1989_v10, %v1993_v54  ;;  %v1999_v47 = vadd.s32 %v1993_v54, %v1989_v10  ;;  %vm2219_vm12 = vcmp.eq.s32.totalorder %v10262_v28, 2  ;;  %v2353_v59 = vmul.f32 -0.001358992, %v2352_v48 }
 0x258   : > { %v2360_v35 = vmul.f32 -0.00019511016, %v2352_v48  ;;  %v1865_v30 = vclz %v1864_v49  ;;  %v1992_v12 = vmul.u32 %v1988_v56, %v14114_v6  ;;  %vm2215_vm10 = vcmp.lt.s32.totalorder %v10262_v28, 2 }
 0x259   : > { %vm14121_vm5 = vcmp.lt.s32.totalorder %v14108_v43, 3  ;;  %v1983_v24 = vadd.s32 %v1982_v36, %v1972_v52  ;;  %v1995_v62 = vshll.u32 %v1991_v2, 16  ;;  %v1998_v23 = vsel %vm1997_vm11, 1, %v13936_v18 }
 0x25a   : > { %v1952_v50 = vsel %vm14121_vm5, %v14120_v46, %v1951_v16  ;;  %v2354_v29 = vadd.f32 0.041655596, %v2353_v59  ;;  %v2361_v32 = vadd.f32 0.008332121, %v2360_v35  ;;  %v7027_v19 = vadd.s32 4294967294, %v1865_v30 }
 0x25b   : > { %v2000_v54 = vadd.s32 %v1998_v23, %v1992_v12  ;;  %v2217_v39 = vxor.u32 2147483648, %v2211_v11  ;;  %v2220_v10 = vxor.u32 2147483648, %v2203_v38  ;;  %v1974_v8 = vshrl.u32 %v10272_v3, 16 }
 0x25c   : > { %vm2001_vm1 = vc.u32 %v1999_v47, %v1995_v62  ;;  %v2355_v6 = vmul.f32 %v2354_v29, %v2352_v48  ;;  %v2362_v56 = vmul.f32 %v2361_v32, %v2352_v48  ;;  %vm7028_vm3 = vcmp.lt.s32.totalorder %v7027_v19, 0 }
 0x25d   : > { %v2002_v20 = vsel %vm2001_vm1, 1, %v13936_v18  ;;  %vm2212_vm8 = vweird.f32 %v14085_v58  ;;  %v1868_v36 = vsel %vm7028_vm3, 0, %v7027_v19  ;;  %v1953_v5 = vsel %vm1947_vm15, %v1950_v41, %v1952_v50 }
 0x25e   : > { %v1994_v16 = vshrl.u32 %v10280_v63, 16  ;;  %v2004_v49 = vadd.s32 %v2002_v20, %v2000_v54  ;;  %v2356_v52 = vadd.f32 -0.4999988, %v2355_v6  ;;  %v2363_v59 = vadd.f32 -0.16666654, %v2362_v56 }
 0x25f   : > { %v1869_v35 = vsub.s32 32, %v1868_v36  ;;  %v10327_v30 = vadd.s32 %v1983_v24, %v1974_v8  ;;  %v2218_v3 = vsel %vm2216_vm2, %v2203_v38, %v2217_v39  ;;  %vm2371_vm9 = vcmp.eq.s32.totalorder %v10282_v31, 0  ;;  %v14123_v39 = vld [vmem:[#allocation133_spill] sm:$0xff] }
 0x260   : > { %vm2374_vm7 = vcmp.eq.s32.totalorder %v10282_v31, 2  ;;  %v1873_v12 = vsub.s32 4294967266, %v1868_v36  ;;  %v1996_v46 = vshrl.u32 %v1991_v2, 16  ;;  %v2005_v23 = vadd.s32 %v2004_v49, %v1994_v16 }
 0x261   : > { %v2357_v43 = vmul.f32 %v2356_v52, %v2352_v48  ;;  %v2364_v41 = vmul.f32 %v2363_v59, %v2352_v48  ;;  %vm2370_vm15 = vcmp.lt.s32.totalorder %v10282_v31, 2  ;;  %v1871_v63 = vshrl.u32 %v1853_v9, %v1869_v35  ;;  %v14124_v59 = vld [vmem:[#allocation154_spill] sm:$0xff] }
 0x262   : > { %v10334_v50 = vadd.s32 %v1999_v47, %v1995_v62  ;;  %v2221_v24 = vsel %vm2219_vm12, %v2220_v10, %v2211_v11  ;;  %vm2367_vm11 = vweird.f32 %v14097_v40  ;;  %v1870_v38 = vshll.u32 %v10288_v14, %v1868_v36  ;;  %v14122_v11 = vld [vmem:[#allocation4_spill] sm:$0xff] }
 0x263   : > { %v1874_v29 = vadd.s32 127, %v1873_v12  ;;  %v2006_v32 = vadd.s32 %v2005_v23, %v1996_v46  ;;  %v2222_v2 = vsel %vm2215_vm10, %v2218_v3, %v2221_v24  ;;  %v2358_v19 = vadd.f32 1.0, %v2357_v43 }
 0x264   : > { %v2365_v54 = vadd.f32 1.0, %v2364_v41  ;;  %vm2009_vm2 = vc.u32 %v10327_v30, %v10334_v50  ;;  %v1872_v9 = vor.u32 %v1871_v63, %v1870_v38  ;;  %vm2412_vm5 = vcmp.lt.s32.totalorder %v9156_v15, 2  ;;  %v14126_v41 = vld [vmem:[#allocation96_spill] sm:$0xff] }
 0x265   : > { %v1875_v48 = vshll.u32 %v1874_v29, 23  ;;  %v2010_v47 = vadd.s32 1, %v2006_v32  ;;  %vm1761_vm12 = vcmp.lt.s32.totalorder %v14122_v11, 0  ;;  %v2375_v14 = vxor.u32 2147483648, %v2358_v19 }
 0x266   : > { %v2366_v62 = vmul.f32 %v2365_v54, %v10299_v21  ;;  %v2007_v10 = vmul.u32 %v14123_v39, %v1953_v5  ;;  %v2426_v28 = vsel %vm2412_vm5, %v9515_v4, %v10008_v53  ;;  %v2223_v36 = vsel %vm2212_vm8, nan, %v2222_v2  ;;  %v14125_v4 = vld [vmem:[#allocation155_spill] sm:$0xff] }
 0x267   : > { %v1876_v8 = vor.u32 4788187, %v1875_v48  ;;  %v2011_v6 = vsel %vm2009_vm2, %v2010_v47, %v2006_v32  ;;  %v2430_v56 = vand.u32 65535, %v2426_v28  ;;  %v2431_v20 = vshrl.u32 %v2426_v28, 16 }
 0x268   : > { %v2372_v16 = vxor.u32 2147483648, %v2366_v62  ;;  %v2012_v49 = vadd.s32 %v2011_v6, %v2007_v10  ;;  %v2422_v21 = vsel %vm2412_vm5, %v9496_v55, %v9775_v0  ;;  %v1879_v52 = vcvt.s32.f32 %v1872_v9 }
 0x269   : > { %v1877_v5 = vand.u32 2147483647, %v1876_v8  ;;  %v10359_v35 = vmul.u32 %v2431_v20, %v14124_v59  ;;  %v10362_v53 = vmul.u32 %v2430_v56, %v14125_v4  ;;  %v2376_v58 = vsel %vm2374_vm7, %v2375_v14, %v2366_v62 }
 0x26a   : > { %v2373_v3 = vsel %vm2371_vm9, %v2358_v19, %v2372_v16  ;;  %v2013_v12 = vadd.s32 536870912, %v2012_v49  ;;  %v2432_v46 = vmul.u32 %v2430_v56, %v14124_v59  ;;  %v2453_v43 = vshrl.u32 %v2422_v21, 16 }
 0x26b   : > { %v2377_v55 = vsel %vm2370_vm15, %v2373_v3, %v2376_v58  ;;  %v1880_v0 = vmul.f32 %v1879_v52, %v1877_v5  ;;  %v2436_v23 = vshll.u32 %v10359_v35, 16  ;;  %vm1916_vm10 = vcmp.lt.s32.totalorder %v14126_v41, 0 }
 0x26c   : > { %v2378_v63 = vsel %vm2367_vm11, nan, %v2377_v55  ;;  %v1883_v24 = vsub.s32 4, %v10275_v7  ;;  %v2014_v38 = vshrl.u32 %v2013_v12, 30  ;;  %v2438_v29 = vshll.u32 %v10362_v53, 16 }
 0x26d   : > { %v7716_v32 = vpack.i.bf16 %v2378_v63, %v2223_v36  ;;  %v1881_v2 = vxor.u32 2147483648, %v1880_v0  ;;  %vm2440_vm1 = vc.u32 %v2432_v46, %v2436_v23  ;;  %v2442_v19 = vadd.s32 %v2436_v23, %v2432_v46 }
 0x26e   : > { %v10379_v31 = vor.u32 %v10200_v42, %v10138_v17  ;;  %v14127_v54 = vand.u32 2147483647, %v14122_v11  ;;  %v2015_v40 = vshll.u32 %v2014_v38, 30  ;;  %v2441_v48 = vsel %vm2440_vm1, 1, %v13936_v18 }
 0x26f   : > { %7717 = vrot.lane.b32.xlu0 %v7716_v32, %s7977_s14  ;;  %v1882_v47 = vsel %vm1761_vm12, %v1881_v2, %v1880_v0  ;;  %v2435_v62 = vmul.u32 %v2431_v20, %v14125_v4  ;;  %vm2444_vm8 = vc.u32 %v2442_v19, %v2438_v29  ;;  %v10393_v17 = vmul.u32 %v2453_v43, %v14124_v59 }
 0x270   : > { %vm10383_vm3 = vcmp.le.f32.partialorder %v14127_v54, 0.7853982  ;;  %v1884_v42 = vsel %vm1761_vm12, %v1883_v24, %v10275_v7  ;;  %v10403_v39 = vsub.s32 %v2012_v49, %v2015_v40  ;;  %v2452_v10 = vand.u32 65535, %v2422_v21 }
 0x271   : > { %v10401_v14 = vsel %vm10383_vm3, %v14122_v11, %v1882_v47  ;;  %v10407_v28 = vor.u32 %v10204_v1, %v10142_v33  ;;  %v2038_v6 = vsub.s32 4, %v2014_v38  ;;  %v2443_v56 = vadd.s32 %v2441_v48, %v2435_v62 }
 0x272   : > { %v10411_v8 = vmul.f32 %v10401_v14, %v10401_v14  ;;  %v10415_v7 = vor.u32 %v10209_v27, %v10146_v61  ;;  %vm2017_vm9 = vcmp.lt.s32.totalorder %v10403_v39, 0  ;;  %v2018_v20 = vsub.s32 0, %v10403_v39 }
 0x273   : > { %v2445_v36 = vsel %vm2444_vm8, 1, %v13936_v18  ;;  %v1886_v33 = vsel %vm10383_vm3, 0, %v1884_v42  ;;  %v2458_v49 = vshll.u32 %v10393_v17, 16  ;;  %v14130_v21 = vand.u32 2147483647, %v14126_v41 }
 0x274   : > { %v1888_v1 = vmul.f32 -0.001358992, %v10411_v8  ;;  %v1895_v16 = vmul.f32 -0.00019511016, %v10411_v8  ;;  %v2019_v27 = vsel %vm2017_vm9, %v2018_v20, %v10403_v39  ;;  %v2454_v5 = vmul.u32 %v2452_v10, %v14124_v59 }
 0x275   : > { %vm10427_vm7 = vcmp.le.f32.partialorder %v14130_v21, 0.7853982  ;;  %v2456_v52 = vmul.u32 %v2452_v10, %v14125_v4  ;;  %v2020_v58 = vclz %v2019_v27  ;;  %v2039_v12 = vsel %vm1916_vm10, %v2038_v6, %v2014_v38 }
 0x276   : > { %v1889_v3 = vadd.f32 0.041655596, %v1888_v1  ;;  %v2447_v46 = vadd.s32 %v2445_v36, %v2443_v56  ;;  %v1896_v55 = vadd.f32 0.008332121, %v1895_v16  ;;  %v1903_v0 = vadd.s32 3, %v1886_v33  ;;  %v14133_v1 = vld [vmem:[#allocation146_spill] sm:$0xff] }
 0x277   : > { %v2395_v23 = vshrl.u32 %v13807_v57, %v9177_v44  ;;  %v2416_v63 = vsel %vm2414_vm4, %v9484_v37, 2102212464  ;;  %v7030_v24 = vadd.s32 4294967294, %v2020_v58  ;;  %v2437_v59 = vshrl.u32 %v10359_v35, 16 }
 0x278   : > { %v2457_v29 = vmul.u32 %v2453_v43, %v14125_v4  ;;  %vm2462_vm15 = vc.u32 %v2454_v5, %v2458_v49  ;;  %v2041_v32 = vsel %vm10427_vm7, 0, %v2039_v12  ;;  %v2460_v38 = vshll.u32 %v2456_v52, 16  ;;  %v14134_v12 = vld [vmem:[#allocation158_spill] sm:$0xff] }
 0x279   : > { %v2463_v2 = vsel %vm2462_vm15, 1, %v13936_v18  ;;  %v2464_v19 = vadd.s32 %v2458_v49, %v2454_v5  ;;  %v1890_v54 = vmul.f32 %v1889_v3, %v10411_v8  ;;  %vm7031_vm11 = vcmp.lt.s32.totalorder %v7030_v24, 0 }
 0x27a   : > { %v2448_v44 = vadd.s32 %v2447_v46, %v2437_v59  ;;  %v2465_v9 = vadd.s32 %v2463_v2, %v2457_v29  ;;  %v1897_v37 = vmul.f32 %v1896_v55, %v10411_v8  ;;  %v2008_v35 = vadd.s32 %v10334_v50, %v10327_v30  ;;  %v14135_v46 = vld [vmem:[#allocation156_spill] sm:$0xff] }
 0x27b   : > { %v2023_v40 = vsel %vm7031_vm11, 0, %v7030_v24  ;;  %vm2466_vm4 = vc.u32 %v2464_v19, %v2460_v38  ;;  %v2415_v43 = vsel %vm2411_vm0, %v2395_v23, %v9440_v34  ;;  %v2417_v48 = vsel %vm2413_vm6, %v9462_v13, %v2416_v63  ;;  %v14136_v23 = vld [vmem:[#allocation8_spill] sm:$0xff]  ;;  %v14137_v63 = vld [vmem:[#allocation157_spill] sm:$0xff] }
 0x27c   : > { %v2024_v4 = vsub.s32 32, %v2023_v40  ;;  %v2439_v47 = vshrl.u32 %v10362_v53, 16  ;;  %v2028_v62 = vsub.s32 4294967266, %v2023_v40  ;;  %v2058_v42 = vadd.s32 3, %v2041_v32  ;;  %v14138_v24 = vld [vmem:[#allocation148_spill] sm:$0xff] }
 0x27d   : > { %v2459_v10 = vshrl.u32 %v10393_v17, 16  ;;  %v2467_v6 = vsel %vm2466_vm4, 1, %v13936_v18  ;;  %v1891_v30 = vadd.f32 -0.4999988, %v1890_v54  ;;  %v1898_v36 = vadd.f32 -0.16666654, %v1897_v37 }
 0x27e   : > { %v2026_v50 = vshrl.u32 %v2008_v35, %v2024_v4  ;;  %v2449_v56 = vadd.s32 %v2448_v44, %v2439_v47  ;;  %v2469_v20 = vadd.s32 %v2467_v6, %v2465_v9  ;;  %v2025_v33 = vshll.u32 %v10403_v39, %v2023_v40  ;;  %v14139_v35 = vld [vmem:[#allocation143_spill] sm:$0xff]  ;;  %v14140_v47 = vld [vmem:[#allocation145_spill] sm:$0xff] }
 0x27f   : > { %v2029_v34 = vadd.s32 127, %v2028_v62  ;;  %vm2567_vm0 = vcmp.lt.s32.totalorder %v14133_v1, 2  ;;  %v2875_v13 = vor.u32 %v10228_v22, %v10169_v25  ;;  %v10463_v53 = vand.u32 3, %v1903_v0 }
 0x280   : > { %v2461_v16 = vshrl.u32 %v2456_v52, 16  ;;  %v2470_v49 = vadd.s32 %v2469_v20, %v2459_v10  ;;  %v2027_v17 = vor.u32 %v2026_v50, %v2025_v33  ;;  %v2418_v27 = vsel %vm2412_vm5, %v2415_v43, %v2417_v48 }
 0x281   : > { %v2030_v21 = vshll.u32 %v2029_v34, 23  ;;  %v2468_v5 = vadd.s32 %v2464_v19, %v2460_v38  ;;  %v1892_v3 = vmul.f32 %v1891_v30, %v10411_v8  ;;  %v10468_v58 = vand.u32 3, %v2058_v42  ;;  %v14141_v42 = vld [vmem:[#allocation141_spill] sm:$0xff] }
 0x282   : > { %v2471_v39 = vadd.s32 %v2470_v49, %v2461_v16  ;;  %v2577_v55 = vsel %vm2567_vm0, %v14135_v46, %v14134_v12  ;;  %v1899_v0 = vmul.f32 %v1898_v36, %v10411_v8  ;;  %v2581_v15 = vsel %vm2567_vm0, %v14137_v63, %v14136_v23 }
 0x283   : > { %v2031_v52 = vor.u32 4788187, %v2030_v21  ;;  %vm2474_vm6 = vc.u32 %v2449_v56, %v2468_v5  ;;  %v2472_v59 = vmul.u32 %v14138_v24, %v2418_v27  ;;  %v2585_v32 = vand.u32 65535, %v2581_v15 }
 0x284   : > { %v2475_v29 = vadd.s32 1, %v2471_v39  ;;  %v2586_v38 = vshrl.u32 %v2581_v15, 16  ;;  %v2034_v19 = vcvt.s32.f32 %v2027_v17  ;;  %v2607_v54 = vand.u32 65535, %v2577_v55 }
 0x285   : > { %v2032_v2 = vand.u32 2147483647, %v2031_v52  ;;  %v2608_v44 = vshrl.u32 %v2577_v55, 16  ;;  %v10480_v9 = vadd.f32 1.0, %v1892_v3  ;;  %v10482_v37 = vadd.s32 %v2468_v5, %v2449_v56  ;;  %v14142_v55 = vld [vmem:[#allocation153_spill] sm:$0xff] }
 0x286   : > { %v2476_v8 = vsel %vm2474_vm6, %v2475_v29, %v2471_v39  ;;  %v2588_v40 = vmul.u32 %v2586_v38, %v14139_v35  ;;  %v1900_v4 = vadd.f32 1.0, %v1899_v0  ;;  %v10486_v62 = vmul.u32 %v2585_v32, %v14140_v47 }
 0x287   : > { %v2035_v43 = vmul.f32 %v2034_v19, %v2032_v2  ;;  %v2477_v48 = vadd.s32 %v2476_v8, %v2472_v59  ;;  %v2550_v10 = vshrl.u32 %v13807_v57, %v14141_v42  ;;  %v2587_v6 = vmul.u32 %v2585_v32, %v14139_v35  ;;  %v14143_v19 = vld [vmem:[#allocation123_spill] sm:$0xff] }
 0x288   : > { %v2591_v30 = vshll.u32 %v2588_v40, 16  ;;  %v10492_v50 = vmul.u32 %v2608_v44, %v14139_v35  ;;  %v2590_v36 = vmul.u32 %v2586_v38, %v14140_v47  ;;  %v10496_v33 = vmul.u32 %v2607_v54, %v14140_v47 }
 0x289   : > { %v2036_v56 = vxor.u32 2147483648, %v2035_v43  ;;  %v2478_v20 = vadd.s32 536870912, %v2477_v48  ;;  %v2593_v34 = vshll.u32 %v10486_v62, 16  ;;  %v1901_v17 = vmul.f32 %v1900_v4, %v10401_v14 }
 0x28a   : > { %vm2595_vm2 = vc.u32 %v2587_v6, %v2591_v30  ;;  %v2597_v16 = vadd.s32 %v2591_v30, %v2587_v6  ;;  %v2613_v49 = vshll.u32 %v10492_v50, 16  ;;  %vm1906_vm5 = vcmp.eq.s32.totalorder %v10463_v53, 0 }
 0x28b   : > { %v2037_v21 = vsel %vm1916_vm10, %v2036_v56, %v2035_v43  ;;  %v10503_v27 = vshrl.u32 %v2478_v20, 30  ;;  %v2596_v5 = vsel %vm2595_vm2, 1, %v13936_v18  ;;  %v2609_v12 = vmul.u32 %v2607_v54, %v14139_v35 }
 0x28c   : > { %v10510_v3 = vsel %vm10427_vm7, %v14126_v41, %v2037_v21  ;;  %v2598_v39 = vadd.s32 %v2596_v5, %v2590_v36  ;;  %vm2599_vm12 = vc.u32 %v2597_v16, %v2593_v34  ;;  %vm1909_vm1 = vcmp.eq.s32.totalorder %v10463_v53, 2  ;;  %v14149_v34 = vld [vmem:[#allocation152_spill] sm:$0xff] }
 0x28d   : > { %v2042_v14 = vmul.f32 %v10510_v3, %v10510_v3  ;;  %v2480_v46 = vshll.u32 %v10503_v27, 30  ;;  %v2571_v0 = vsel %vm2569_vm13, %v14142_v55, 2102212464  ;;  %v2600_v52 = vsel %vm2599_vm12, 1, %v13936_v18 }
 0x28e   : > { %v2602_v61 = vadd.s32 %v2600_v52, %v2598_v39  ;;  %v2615_v23 = vshll.u32 %v10496_v33, 16  ;;  %vm2617_vm10 = vc.u32 %v2609_v12, %v2613_v49  ;;  %v2619_v63 = vadd.s32 %v2613_v49, %v2609_v12 }
 0x28f   : > { %vm1905_vm3 = vcmp.lt.s32.totalorder %v10463_v53, 2  ;;  %v1907_v15 = vxor.u32 2147483648, %v1901_v17  ;;  %v2043_v24 = vmul.f32 -0.001358992, %v2042_v14  ;;  %v2050_v59 = vmul.f32 -0.00019511016, %v2042_v14 }
 0x290   : > { %v10523_v29 = vsub.s32 %v2477_v48, %v2480_v46  ;;  %v2592_v32 = vshrl.u32 %v2588_v40, 16  ;;  %v2612_v38 = vmul.u32 %v2608_v44, %v14140_v47  ;;  %v2618_v2 = vsel %vm2617_vm10, 1, %v13936_v18  ;;  %v14144_v47 = vld [vmem:[#allocation151_spill] sm:$0xff] }
 0x291   : > { %vm2621_vm13 = vc.u32 %v2619_v63, %v2615_v23  ;;  %vm2381_vm8 = vcmp.lt.s32.totalorder %v14143_v19, 0  ;;  %v2044_v54 = vadd.f32 0.041655596, %v2043_v24  ;;  %v2051_v8 = vadd.f32 0.008332121, %v2050_v59 }
 0x292   : > { %vm2482_vm9 = vcmp.lt.s32.totalorder %v10523_v29, 0  ;;  %v2483_v35 = vsub.s32 0, %v10523_v29  ;;  %v1910_v4 = vxor.u32 2147483648, %v10480_v9  ;;  %v2603_v43 = vadd.s32 %v2602_v61, %v2592_v32 }
 0x293   : > { %v2620_v42 = vadd.s32 %v2618_v2, %v2612_v38  ;;  %v2622_v48 = vsel %vm2621_vm13, 1, %v13936_v18  ;;  %v2045_v40 = vmul.f32 %v2044_v54, %v2042_v14  ;;  %v2052_v6 = vmul.f32 %v2051_v8, %v2042_v14 }
 0x294   : > { %v2484_v44 = vsel %vm2482_vm9, %v2483_v35, %v10523_v29  ;;  %vm14145_vm7 = vcmp.lt.s32.totalorder %v14133_v1, 1  ;;  %vm1902_vm15 = vweird.f32 %v14122_v11  ;;  %v14146_v56 = vand.u32 2147483647, %v14143_v19 }
 0x295   : > { %v2570_v30 = vsel %vm14145_vm7, %v2550_v10, %v14144_v47  ;;  %v2485_v36 = vclz %v2484_v44  ;;  %v2572_v16 = vsel %vm2568_vm14, %v14149_v34, %v2571_v0  ;;  %v2594_v49 = vshrl.u32 %v10486_v62, 16 }
 0x296   : > { %vm10539_vm11 = vcmp.le.f32.partialorder %v14146_v56, 0.7853982  ;;  %v2624_v21 = vadd.s32 %v2622_v48, %v2620_v42  ;;  %v1908_v10 = vsel %vm1906_vm5, %v10480_v9, %v1907_v15  ;;  %v2046_v5 = vadd.f32 -0.4999988, %v2045_v40  ;;  %v14153_v56 = vld [vmem:[#allocation77_spill] sm:$0xff] }
 0x297   : > { %v2053_v39 = vadd.f32 -0.16666654, %v2052_v6  ;;  %v2614_v12 = vshrl.u32 %v10492_v50, 16  ;;  %v1911_v46 = vsel %vm1909_vm1, %v1910_v4, %v1901_v17  ;;  %vm2061_vm4 = vcmp.eq.s32.totalorder %v10468_v58, 0 }
 0x298   : > { %vm2064_vm6 = vcmp.eq.s32.totalorder %v10468_v58, 2  ;;  %v7039_v55 = vadd.s32 4294967294, %v2485_v36  ;;  %v2503_v0 = vsub.s32 4, %v10503_v27  ;;  %v10556_v62 = vadd.s32 %v2603_v43, %v2594_v49  ;;  %v14151_v43 = vld [vmem:[#allocation136_spill] sm:$0xff] }
 0x299   : > { %v2047_v52 = vmul.f32 %v2046_v5, %v2042_v14  ;;  %v2054_v61 = vmul.f32 %v2053_v39, %v2042_v14  ;;  %vm2060_vm14 = vcmp.lt.s32.totalorder %v10468_v58, 2  ;;  %v2616_v9 = vshrl.u32 %v10496_v33, 16  ;;  %v14155_v5 = vld [vmem:[#allocation72_spill] sm:$0xff] }
 0x29a   : > { %v2625_v15 = vadd.s32 %v2624_v21, %v2614_v12  ;;  %v1912_v50 = vsel %vm1905_vm3, %v1908_v10, %v1911_v46  ;;  %vm2057_vm2 = vweird.f32 %v14126_v41  ;;  %vm7040_vm5 = vcmp.lt.s32.totalorder %v7039_v55, 0  ;;  %v14154_v10 = vld [vmem:[#allocation82_spill] sm:$0xff] }
 0x29b   : > { %v2573_v17 = vsel %vm2567_vm0, %v2570_v30, %v2572_v16  ;;  %v10565_v24 = vadd.s32 %v2619_v63, %v2615_v23  ;;  %v2048_v59 = vadd.f32 1.0, %v2047_v52  ;;  %v2055_v32 = vadd.f32 1.0, %v2054_v61  ;;  %v14150_v63 = vld [vmem:[#allocation64_spill] sm:$0xff]  ;;  %v14152_v30 = vld [vmem:[#allocation83_spill] sm:$0xff]  ;;  %v14156_v46 = vld [vmem:[#allocation62_spill] sm:$0xff] }
 0x29c   : > { %v2488_v38 = vsel %vm7040_vm5, 0, %v7039_v55  ;;  %v2626_v14 = vadd.s32 %v2625_v15, %v2616_v9  ;;  %vm2879_vm12 = vcmp.lt.s32.totalorder %v9925_v26, 4  ;;  %v2504_v53 = vsel %vm2381_vm8, %v2503_v0, %v10503_v27  ;;  %v14157_v52 = vld [vmem:[#allocation63_spill] sm:$0xff] }
 0x29d   : > { %v2489_v2 = vsub.s32 32, %v2488_v38  ;;  %v2493_v33 = vsub.s32 4294967266, %v2488_v38  ;;  %vm2629_vm1 = vc.u32 %v10556_v62, %v10565_v24  ;;  %v2056_v1 = vmul.f32 %v2055_v32, %v10510_v3 }
 0x29e   : > { %v2065_v54 = vxor.u32 2147483648, %v2048_v59  ;;  %v2630_v23 = vadd.s32 1, %v2626_v14  ;;  %vm2722_vm0 = vcmp.lt.s32.totalorder %v14150_v63, 2  ;;  %v2490_v8 = vshll.u32 %v10523_v29, %v2488_v38 }
 0x29f   : > { %v2491_v35 = vshrl.u32 %v10482_v37, %v2489_v2  ;;  %v2494_v4 = vadd.s32 127, %v2493_v33  ;;  %v2627_v42 = vmul.u32 %v14151_v43, %v2573_v17  ;;  %v1913_v48 = vsel %vm1902_vm15, nan, %v1912_v50 }
 0x2a0   : > { %v2062_v27 = vxor.u32 2147483648, %v2056_v1  ;;  %v2506_v40 = vsel %vm10539_vm11, 0, %v2504_v53  ;;  %v2631_v6 = vsel %vm2629_vm1, %v2630_v23, %v2626_v14  ;;  %v2736_v29 = vsel %vm2722_vm0, %v14153_v56, %v14152_v30  ;;  %v14158_v23 = vld [vmem:[#allocation107_spill] sm:$0xff] }
 0x2a1   : > { %v2492_v3 = vor.u32 %v2491_v35, %v2490_v8  ;;  %v2495_v44 = vshll.u32 %v2494_v4, 23  ;;  %v2632_v47 = vadd.s32 %v2631_v6, %v2627_v42  ;;  %v2066_v11 = vsel %vm2064_vm6, %v2065_v54, %v2056_v1  ;;  %v14159_v4 = vld [vmem:[#allocation58_spill] sm:$0xff] }
 0x2a2   : > { %v2063_v37 = vsel %vm2061_vm4, %v2048_v59, %v2062_v27  ;;  %v2740_v36 = vand.u32 65535, %v2736_v29  ;;  %v2741_v34 = vshrl.u32 %v2736_v29, 16  ;;  %v2732_v39 = vsel %vm2722_vm0, %v14155_v5, %v14154_v10  ;;  %v14165_v10 = vld [vmem:[#allocation65_spill] sm:$0xff] }
 0x2a3   : > { %v2067_v16 = vsel %vm2060_vm14, %v2063_v37, %v2066_v11  ;;  %v2496_v49 = vor.u32 4788187, %v2495_v44  ;;  %v2633_v21 = vadd.s32 536870912, %v2632_v47  ;;  %v2499_v15 = vcvt.s32.f32 %v2492_v3 }
 0x2a4   : > { %v2068_v12 = vsel %vm2057_vm2, nan, %v2067_v16  ;;  %v2742_v55 = vmul.u32 %v2740_v36, %v14156_v46  ;;  %v2743_v0 = vmul.u32 %v2741_v34, %v14156_v46  ;;  %v10601_v61 = vmul.u32 %v2740_v36, %v14157_v52  ;;  %v14163_v16 = vld [vmem:[#allocation71_spill] sm:$0xff] }
 0x2a5   : > { %v7711_v9 = vpack.i.bf16 %v2068_v12, %v1913_v48  ;;  %v2497_v58 = vand.u32 2147483647, %v2496_v49  ;;  %v2634_v50 = vshrl.u32 %v2633_v21, 30  ;;  %v10606_v17 = vsel %vm2879_vm12, %v10415_v7, 920167782 }
 0x2a6   : > { %v2745_v59 = vmul.u32 %v2741_v34, %v14157_v52  ;;  %v2746_v41 = vshll.u32 %v2743_v0, 16  ;;  %v2748_v32 = vshll.u32 %v10601_v61, 16  ;;  %v2762_v2 = vand.u32 65535, %v2732_v39 }
 0x2a7   : > { %7712 = vrot.lane.b32.xlu2 %v7711_v9, %s7977_s14  ;;  %v2500_v38 = vmul.f32 %v2499_v15, %v2497_v58  ;;  %v2635_v14 = vshll.u32 %v2634_v50, 30  ;;  %v2763_v33 = vshrl.u32 %v2732_v39, 16  ;;  %v10616_v53 = vsel %vm2879_vm12, %v2875_v13, 1326507024 }
 0x2a8   : > { %v10618_v1 = vadd.s32 3, %v2506_v40  ;;  %vm2750_vm10 = vc.u32 %v2742_v55, %v2746_v41  ;;  %v2752_v54 = vadd.s32 %v2746_v41, %v2742_v55  ;;  %vm2536_vm3 = vcmp.lt.s32.totalorder %v14158_v23, 0 }
 0x2a9   : > { %v2501_v8 = vxor.u32 2147483648, %v2500_v38  ;;  %v10621_v35 = vsub.s32 %v2632_v47, %v2635_v14  ;;  %v2705_v43 = vshrl.u32 %v13807_v57, %v14159_v4  ;;  %v2751_v42 = vsel %vm2750_vm10, 1, %v13936_v18 }
 0x2aa   : > { %v2747_v48 = vshrl.u32 %v2743_v0, 16  ;;  %v2753_v25 = vadd.s32 %v2751_v42, %v2745_v59  ;;  %vm2754_vm13 = vc.u32 %v2752_v54, %v2748_v32  ;;  %v2765_v22 = vmul.u32 %v2763_v33, %v14156_v46  ;;  %v14167_v59 = vld [vmem:[#allocation66_spill] sm:$0xff] }
 0x2ab   : > { %v2502_v13 = vsel %vm2381_vm8, %v2501_v8, %v2500_v38  ;;  %vm2637_vm9 = vcmp.lt.s32.totalorder %v10621_v35, 0  ;;  %v2638_v27 = vsub.s32 0, %v10621_v35  ;;  %v2766_v40 = vmul.u32 %v2762_v2, %v14157_v52 }
 0x2ac   : > { %v10635_v6 = vsel %vm10539_vm11, %v14143_v19, %v2502_v13  ;;  %v2755_v3 = vsel %vm2754_vm13, 1, %v13936_v18  ;;  %v2764_v44 = vmul.u32 %v2762_v2, %v14156_v46  ;;  %v2768_v47 = vshll.u32 %v2765_v22, 16 }
 0x2ad   : > { %v10641_v30 = vmul.f32 %v10635_v6, %v10635_v6  ;;  %v2628_v56 = vadd.s32 %v10565_v24, %v10556_v62  ;;  %v2639_v29 = vsel %vm2637_vm9, %v2638_v27, %v10621_v35  ;;  %v2757_v37 = vadd.s32 %v2755_v3, %v2753_v25 }
 0x2ae   : > { %vm2876_vm8 = vcmp.lt.s32.totalorder %v9925_v26, 1  ;;  %v14160_v20 = vand.u32 2147483647, %v14158_v23  ;;  %v2640_v36 = vclz %v2639_v29  ;;  %v2658_v34 = vsub.s32 4, %v2634_v50 }
 0x2af   : > { %vm14164_vm15 = vcmp.lt.s32.totalorder %v14150_v63, 4  ;;  %v2767_v21 = vmul.u32 %v2763_v33, %v14157_v52  ;;  %v2508_v62 = vmul.f32 -0.001358992, %v10641_v30  ;;  %v2515_v24 = vmul.f32 -0.00019511016, %v10641_v30 }
 0x2b0   : > { %vm10649_vm7 = vcmp.le.f32.partialorder %v14160_v20, 0.7853982  ;;  %v2726_v49 = vsel %vm14164_vm15, %v14163_v16, 2102212464  ;;  %vm14166_vm11 = vcmp.lt.s32.totalorder %v14150_v63, 1  ;;  %v2770_v39 = vshll.u32 %v2766_v40, 16 }
 0x2b1   : > { %v2725_v5 = vsel %vm14166_vm11, %v2705_v43, %v14165_v10  ;;  %vm2878_vm4 = vcmp.lt.s32.totalorder %v9925_v26, 3  ;;  %v7042_v12 = vadd.s32 4294967294, %v2640_v36  ;;  %v2749_v46 = vshrl.u32 %v10601_v61, 16 }
 0x2b2   : > { %v2758_v55 = vadd.s32 %v2757_v37, %v2747_v48  ;;  %vm2772_vm6 = vc.u32 %v2764_v44, %v2768_v47  ;;  %v2509_v0 = vadd.f32 0.041655596, %v2508_v62  ;;  %v2516_v9 = vadd.f32 0.008332121, %v2515_v24  ;;  %v10705_v62 = vld [vmem:[%s10689_s17] sm:$0xff]  ;;  %v14169_v24 = vld [vmem:[#allocation57_spill] sm:$0xff] }
 0x2b3   : > { %v2773_v52 = vsel %vm2772_vm6, 1, %v13936_v18  ;;  %v2774_v58 = vadd.s32 %v2768_v47, %v2764_v44  ;;  %vm7043_vm14 = vcmp.lt.s32.totalorder %v7042_v12, 0  ;;  %v2659_v15 = vsel %vm2536_vm3, %v2658_v34, %v2634_v50  ;;  %5169 = vperm.xlu0 %7688, %v10705_v62  }
 0x2b4   : > { %vm14168_vm2 = vcmp.lt.s32.totalorder %v14150_v63, 3  ;;  %v2775_v32 = vadd.s32 %v2773_v52, %v2767_v21  ;;  %v2517_v38 = vmul.f32 %v2516_v9, %v10641_v30  ;;  %v2643_v14 = vsel %vm7043_vm14, 0, %v7042_v12 }
 0x2b5   : > { %v2727_v41 = vsel %vm14168_vm2, %v14167_v59, %v2726_v49  ;;  %v2769_v61 = vshrl.u32 %v2765_v22, 16  ;;  %vm2776_vm5 = vc.u32 %v2774_v58, %v2770_v39  ;;  %v2644_v2 = vsub.s32 32, %v2643_v14 }
 0x2b6   : > { %v2648_v33 = vsub.s32 4294967266, %v2643_v14  ;;  %v2771_v54 = vshrl.u32 %v2766_v40, 16  ;;  %v2777_v8 = vsel %vm2776_vm5, 1, %v13936_v18  ;;  %v2510_v4 = vmul.f32 %v2509_v0, %v10641_v30 }
 0x2b7   : > { %v2518_v43 = vadd.f32 -0.16666654, %v2517_v38  ;;  %v2759_v50 = vadd.s32 %v2758_v55, %v2749_v46  ;;  %v2779_v42 = vadd.s32 %v2777_v8, %v2775_v32  ;;  %v2645_v48 = vshll.u32 %v10621_v35, %v2643_v14 }
 0x2b8   : > { %v2646_v25 = vshrl.u32 %v2628_v56, %v2644_v2  ;;  %v2649_v13 = vadd.s32 127, %v2648_v33  ;;  %v2778_v27 = vadd.s32 %v2774_v58, %v2770_v39  ;;  %v2884_v22 = vsel %vm2876_vm8, %v10260_v51, %v10379_v31 }
 0x2b9   : > { %v2519_v40 = vmul.f32 %v2518_v43, %v10641_v30  ;;  %v2661_v3 = vsel %vm10649_vm7, 0, %v2659_v15  ;;  %v2780_v44 = vadd.s32 %v2779_v42, %v2769_v61  ;;  %v2888_v47 = vsel %vm2876_vm8, %v10379_v31, %v10407_v28 }
 0x2ba   : > { %v2647_v35 = vor.u32 %v2646_v25, %v2645_v48  ;;  %v2650_v56 = vshll.u32 %v2649_v13, 23  ;;  %v2728_v29 = vsel %vm2722_vm0, %v2725_v5, %v2727_v41  ;;  %v2886_v37 = vsel %vm2878_vm4, %v10407_v28, %v10606_v17 }
 0x2bb   : > { %v2890_v20 = vsel %vm2878_vm4, %v10415_v7, %v10616_v53  ;;  %v2511_v36 = vadd.f32 -0.4999988, %v2510_v4  ;;  %v2781_v34 = vadd.s32 %v2780_v44, %v2771_v54  ;;  %v10702_v16 = vand.u32 3, %v10618_v1 }
 0x2bc   : > { %v2651_v49 = vor.u32 4788187, %v2650_v56  ;;  %v2678_v21 = vadd.s32 3, %v2661_v3  ;;  %vm2784_vm1 = vc.u32 %v2759_v50, %v2778_v27  ;;  %v2520_v63 = vadd.f32 1.0, %v2519_v40 }
 0x2bd   : > { %v2782_v10 = vmul.u32 %v14169_v24, %v2728_v29  ;;  %v2785_v5 = vadd.s32 1, %v2781_v34  ;;  %vm2877_vm0 = vcmp.lt.s32.totalorder %v9925_v26, 2  ;;  %v2654_v39 = vcvt.s32.f32 %v2647_v35 }
 0x2be   : > { %v2652_v17 = vand.u32 2147483647, %v2651_v49  ;;  %v10712_v7 = vsel %vm2877_vm0, %v2884_v22, %v2886_v37  ;;  %v2891_v53 = vsel %vm2877_vm0, %v2888_v47, %v2890_v20  ;;  %v2512_v1 = vmul.f32 %v2511_v36, %v10641_v30 }
 0x2bf   : > { %v2786_v12 = vsel %vm2784_vm1, %v2785_v5, %v2781_v34  ;;  %v2895_v46 = vand.u32 65535, %v2891_v53  ;;  %v2893_v55 = vand.u32 65535, %v9498_v60  ;;  %v2896_v52 = vshrl.u32 %v2891_v53, 16 }
 0x2c0   : > { %v2655_v0 = vmul.f32 %v2654_v39, %v2652_v17  ;;  %v2787_v9 = vadd.s32 %v2786_v12, %v2782_v10  ;;  %v2894_v58 = vshrl.u32 %v9498_v60, 16  ;;  %v2521_v15 = vmul.f32 %v2520_v63, %v10635_v6 }
 0x2c1   : > { %v2918_v59 = vshrl.u32 %v10712_v7, 16  ;;  %vm2526_vm10 = vcmp.eq.s32.totalorder %v10702_v16, 0  ;;  %v10722_v32 = vand.u32 3, %v2678_v21  ;;  %v2898_v30 = vmul.u32 %v2896_v52, %v2893_v55 }
 0x2c2   : > { %v2656_v41 = vxor.u32 2147483648, %v2655_v0  ;;  %v2788_v38 = vadd.s32 536870912, %v2787_v9  ;;  %v2513_v14 = vadd.f32 1.0, %v2512_v1  ;;  %v10724_v61 = vadd.s32 %v2778_v27, %v2759_v50 }
 0x2c3   : > { %v2860_v2 = vshrl.u32 %v13807_v57, %v10024_v45  ;;  %v10728_v33 = vmul.u32 %v2895_v46, %v2894_v58  ;;  %v2897_v8 = vmul.u32 %v2895_v46, %v2893_v55  ;;  %v2901_v4 = vshll.u32 %v2898_v30, 16 }
 0x2c4   : > { %v2657_v6 = vsel %vm2536_vm3, %v2656_v41, %v2655_v0  ;;  %v10732_v54 = vshrl.u32 %v2788_v38, 30  ;;  %v2527_v43 = vxor.u32 2147483648, %v2521_v15  ;;  %v10744_v57 = vmul.u32 %v2918_v59, %v2893_v55 }
 0x2c5   : > { %v10737_v42 = vsel %vm10649_vm7, %v14158_v23, %v2657_v6  ;;  %v10742_v50 = vsel %vm2876_vm8, %v2860_v2, %v10260_v51  ;;  %vm2529_vm13 = vcmp.eq.s32.totalorder %v10702_v16, 2  ;;  %vm2905_vm3 = vc.u32 %v2897_v8, %v2901_v4 }
 0x2c6   : > { %v2662_v45 = vmul.f32 %v10737_v42, %v10737_v42  ;;  %v2790_v48 = vshll.u32 %v10732_v54, 30  ;;  %v2917_v25 = vand.u32 65535, %v10712_v7  ;;  %v2900_v11 = vmul.u32 %v2896_v52, %v2894_v58 }
 0x2c7   : > { %v2903_v13 = vshll.u32 %v10728_v33, 16  ;;  %v2906_v27 = vsel %vm2905_vm3, 1, %v13936_v18  ;;  %v2907_v22 = vadd.s32 %v2901_v4, %v2897_v8  ;;  %vm2525_vm9 = vcmp.lt.s32.totalorder %v10702_v16, 2 }
 0x2c8   : > { %v2663_v51 = vmul.f32 -0.001358992, %v2662_v45  ;;  %v2670_v40 = vmul.f32 -0.00019511016, %v2662_v45  ;;  %v2791_v3 = vsub.s32 %v2787_v9, %v2790_v48  ;;  %v2881_v44 = vsel %vm2879_vm12, %v10407_v28, 2102212464 }
 0x2c9   : > { %v2530_v47 = vxor.u32 2147483648, %v2513_v14  ;;  %v2908_v35 = vadd.s32 %v2906_v27, %v2900_v11  ;;  %vm2909_vm8 = vc.u32 %v2907_v22, %v2903_v13  ;;  %v2923_v56 = vshll.u32 %v10744_v57, 16 }
 0x2ca   : > { %v2664_v29 = vadd.f32 0.041655596, %v2663_v51  ;;  %v2671_v37 = vadd.f32 0.008332121, %v2670_v40  ;;  %vm2792_vm7 = vcmp.lt.s32.totalorder %v2791_v3, 0  ;;  %v2793_v20 = vsub.s32 0, %v2791_v3 }
 0x2cb   : > { %v2528_v36 = vsel %vm2526_vm10, %v2513_v14, %v2527_v43  ;;  %v2910_v34 = vsel %vm2909_vm8, 1, %v13936_v18  ;;  %v2919_v49 = vmul.u32 %v2917_v25, %v2893_v55  ;;  %v2921_v21 = vmul.u32 %v2917_v25, %v2894_v58 }
 0x2cc   : > { %v2665_v63 = vmul.f32 %v2664_v29, %v2662_v45  ;;  %v2672_v24 = vmul.f32 %v2671_v37, %v2662_v45  ;;  %v2794_v10 = vsel %vm2792_vm7, %v2793_v20, %v2791_v3  ;;  %v2912_v28 = vadd.s32 %v2910_v34, %v2908_v35 }
 0x2cd   : > { %v2795_v5 = vclz %v2794_v10  ;;  %v2902_v17 = vshrl.u32 %v2898_v30, 16  ;;  %vm2927_vm12 = vc.u32 %v2919_v49, %v2923_v56  ;;  %v2929_v39 = vadd.s32 %v2923_v56, %v2919_v49  ;;  %v14170_v10 = vld [vmem:[#allocation16_spill] sm:$0xff] }
 0x2ce   : > { %v2666_v7 = vadd.f32 -0.4999988, %v2665_v63  ;;  %v2673_v53 = vadd.f32 -0.16666654, %v2672_v24  ;;  %v2922_v1 = vmul.u32 %v2918_v59, %v2894_v58  ;;  %v2928_v12 = vsel %vm2927_vm12, 1, %v13936_v18 }
 0x2cf   : > { %vm2522_vm15 = vweird.f32 %v14143_v19  ;;  %v2531_v46 = vsel %vm2529_vm13, %v2530_v47, %v2521_v15  ;;  %v7045_v55 = vadd.s32 4294967294, %v2795_v5  ;;  %v2882_v0 = vsel %vm2878_vm4, %v10379_v31, %v2881_v44 }
 0x2d0   : > { %v2925_v9 = vshll.u32 %v2921_v21, 16  ;;  %v2667_v52 = vmul.f32 %v2666_v7, %v2662_v45  ;;  %v2674_v41 = vmul.f32 %v2673_v53, %v2662_v45  ;;  %vm2680_vm11 = vcmp.lt.s32.totalorder %v10722_v32, 2 }
 0x2d1   : > { %v2913_v38 = vadd.s32 %v2912_v28, %v2902_v17  ;;  %v2930_v30 = vadd.s32 %v2928_v12, %v2922_v1  ;;  %v2532_v58 = vsel %vm2525_vm9, %v2528_v36, %v2531_v46  ;;  %vm7046_vm6 = vcmp.lt.s32.totalorder %v7045_v55, 0 }
 0x2d2   : > { %v2904_v59 = vshrl.u32 %v10728_v33, 16  ;;  %vm2931_vm14 = vc.u32 %v2929_v39, %v2925_v9  ;;  %v2668_v15 = vadd.f32 1.0, %v2667_v52  ;;  %v2675_v14 = vadd.f32 1.0, %v2674_v41 }
 0x2d3   : > { %v2798_v2 = vsel %vm7046_vm6, 0, %v7045_v55  ;;  %v2932_v6 = vsel %vm2931_vm14, 1, %v13936_v18  ;;  %v2924_v4 = vshrl.u32 %v10744_v57, 16  ;;  %v2926_v16 = vshrl.u32 %v2921_v21, 16 }
 0x2d4   : > { %v2799_v31 = vsub.s32 32, %v2798_v2  ;;  %v2803_v8 = vsub.s32 4294967266, %v2798_v2  ;;  %v2934_v43 = vadd.s32 %v2932_v6, %v2930_v30  ;;  %v2676_v45 = vmul.f32 %v2675_v14, %v10737_v42 }
 0x2d5   : > { %v2685_v48 = vxor.u32 2147483648, %v2668_v15  ;;  %v2914_v25 = vadd.s32 %v2913_v38, %v2904_v59  ;;  %v2800_v11 = vshll.u32 %v2791_v3, %v2798_v2  ;;  %vm2681_vm4 = vcmp.eq.s32.totalorder %v10722_v32, 0 }
 0x2d6   : > { %v2801_v13 = vshrl.u32 %v10724_v61, %v2799_v31  ;;  %v2804_v33 = vadd.s32 127, %v2803_v8  ;;  %v2935_v27 = vadd.s32 %v2934_v43, %v2924_v4  ;;  %v2682_v22 = vxor.u32 2147483648, %v2676_v45  ;;  %v10801_v31 = vld [vmem:[%s10689_s17 + $0x8] sm:$0xff]  ;;  %v10804_v8 = vld [vmem:[%s10689_s17 + $0x10] sm:$0xff] }
 0x2d7   : > { %vm2684_vm2 = vcmp.eq.s32.totalorder %v10722_v32, 2  ;;  %v2933_v51 = vadd.s32 %v2929_v39, %v2925_v9  ;;  %v2883_v42 = vsel %vm2877_vm0, %v10742_v50, %v2882_v0  ;;  %v2533_v3 = vsel %vm2522_vm15, nan, %v2532_v58  ;;  %5179 = vperm.xlu0 %7688, %v10804_v8  }
 0x2d8   : > { %v2802_v40 = vor.u32 %v2801_v13, %v2800_v11  ;;  %v2805_v44 = vshll.u32 %v2804_v33, 23  ;;  %v2936_v57 = vadd.s32 %v2935_v27, %v2926_v16  ;;  %v2683_v47 = vsel %vm2681_vm4, %v2668_v15, %v2682_v22  ;;  %v14174_v27 = vld [vmem:[#allocation135_spill] sm:$0xff] }
 0x2d9   : > { %v2686_v61 = vsel %vm2684_vm2, %v2685_v48, %v2676_v45  ;;  %vm2939_vm5 = vc.u32 %v2914_v25, %v2933_v51  ;;  %vm2677_vm1 = vweird.f32 %v14158_v23  ;;  %v2937_v20 = vmul.u32 %v9498_v60, %v2883_v42 }
 0x2da   : > { %v2687_v35 = vsel %vm2680_vm11, %v2683_v47, %v2686_v61  ;;  %v2806_v56 = vor.u32 4788187, %v2805_v44  ;;  %v2940_v29 = vadd.s32 1, %v2936_v57  ;;  %v2809_v50 = vcvt.s32.f32 %v2802_v40  ;;  %v393_v40 = vld [vmem:[%s10852_s26 + $0x20] sm:$0xff] }
 0x2db   : > { %v2688_v37 = vsel %vm2677_vm1, nan, %v2687_v35  ;;  %vm2691_vm0 = vcmp.lt.s32.totalorder %v14170_v10, 0  ;;  %v14171_v60 = vand.u32 2147483647, %v14170_v10  ;;  %v2938_v0 = vadd.s32 %v2933_v51, %v2914_v25 }
 0x2dc   : > { %v7721_v36 = vpack.i.bf16 %v2688_v37, %v2533_v3  ;;  %v2807_v26 = vand.u32 2147483647, %v2806_v56  ;;  %v2941_v34 = vsel %vm2939_vm5, %v2940_v29, %v2936_v57  ;;  %v13732_v48 = vmov 1  }
 0x2dd   : > { %v2942_v49 = vadd.s32 %v2941_v34, %v2937_v20  ;;  %vm10793_vm10 = vcmp.le.f32.partialorder %v14171_v60, 0.7853982  ;;  %7731 = vset.pattern.permute.xlu2 %v13732_v48  ;;  %v2813_v11 = vsub.s32 4, %v10732_v54  ;;  %vm2846_vm9 = vcmp.lt.s32.totalorder %v14174_v27, 0 }
 0x2de   : > { %7722 = vrot.lane.b32.xlu1 %v7721_v36, %s7977_s14  ;;  %v2810_v19 = vmul.f32 %v2809_v50, %v2807_v26  ;;  %v14175_v51 = vand.u32 2147483647, %v14174_v27  ;;  %v13730_v35 = vmov 2   ;;  %vm2832_vm4 = vweird.f32 %v14170_v10 }
 0x2df   : > { %v2943_v21 = vadd.s32 536870912, %v2942_v49  ;;  %v2814_v42 = vsel %vm2691_vm0, %v2813_v11, %v10732_v54  ;;  %7734 = vset.pattern.permute.xlu0 %v13732_v48  ;;  %vm2987_vm2 = vweird.f32 %v14174_v27  ;;  %v7563_v11 = vld [vmem:[%s13529_s3 + $0x18] sm:$0xff]  ;;  %vm3063_vm5 = vcmask 195584  }
 0x2e0   : > { %v2811_v63 = vxor.u32 2147483648, %v2810_v19  ;;  %vm10813_vm8 = vcmp.le.f32.partialorder %v14175_v51, 0.7853982  ;;  %5269 = vperm.xlu0 %7734, %v10801_v31   ;;  %v2816_v56 = vsel %vm10793_vm10, 0, %v2814_v42  ;;  %vm3080_vm1 = vcmask 719872  }
 0x2e1   : > { %v2944_v24 = vshrl.u32 %v2943_v21, 30  ;;  %v2833_v34 = vadd.s32 3, %v2816_v56 }
 0x2e2   : > { %v2812_v32 = vsel %vm2691_vm0, %v2811_v63, %v2810_v19  ;;  %vm10890_vm0 = vmpackc.low %vm3080_vm1, %vm3080_vm1 }
 0x2e3   : > { %v2945_v23 = vshll.u32 %v2944_v24, 30  ;;  %v2815_v39 = vsel %vm10793_vm10, %v14170_v10, %v2812_v32  ;;  %v2968_v57 = vsub.s32 4, %v2944_v24  ;;  %v2834_v60 = vand.u32 3, %v2833_v34  ;;  %v7565_v10 = vld [vmem:[%s13529_s3 + $0x28] sm:$0xff] }
 0x2e4   : > { %v2817_v1 = vmul.f32 %v2815_v39, %v2815_v39 }
 0x2e5   : > { %v2946_v28 = vsub.s32 %v2942_v49, %v2945_v23  ;;  %v2969_v20 = vsel %vm2846_vm9, %v2968_v57, %v2944_v24  ;;  %vm2836_vm7 = vcmp.eq.s32.totalorder %v2834_v60, 0  ;;  %vm2839_vm12 = vcmp.eq.s32.totalorder %v2834_v60, 2 }
 0x2e6   : > { %v2825_v46 = vmul.f32 -0.00019511016, %v2817_v1  ;;  %v2818_v59 = vmul.f32 -0.001358992, %v2817_v1  ;;  %5174 = vperm.xlu1 %7689, %v10801_v31   ;;  %v2971_v19 = vsel %vm10813_vm8, 0, %v2969_v20  ;;  %vm2835_vm15 = vcmp.lt.s32.totalorder %v2834_v60, 2 }
 0x2e7   : > { %vm2947_vm13 = vcmp.lt.s32.totalorder %v2946_v28, 0  ;;  %v2948_v17 = vsub.s32 0, %v2946_v28  ;;  %v2988_v5 = vadd.s32 3, %v2971_v19 }
 0x2e8   : > { %v2826_v38 = vadd.f32 0.008332121, %v2825_v46  ;;  %v2819_v4 = vadd.f32 0.041655596, %v2818_v59 }
 0x2e9   : > { %v2949_v7 = vsel %vm2947_vm13, %v2948_v17, %v2946_v28 }
 0x2ea   : > { %v2950_v53 = vclz %v2949_v7  ;;  %v2827_v2 = vmul.f32 %v2826_v38, %v2817_v1  ;;  %v2820_v13 = vmul.f32 %v2819_v4, %v2817_v1  ;;  %v7567_v38 = vld [vmem:[%s13529_s3 + $0x38] sm:$0xff]  ;;  %v389_v4 = vld [vmem:[%s10852_s26] sm:$0xff] }
 0x2eb   : > { %7643 = vmatpush.bf16.msra.mxu1 %v7567_v38  ;;  %7644 = vmatpush.bf16.msra.mxu2 %v7567_v38 }
 0x2ec   : > { %v7048_v12 = vadd.s32 4294967294, %v2950_v53  ;;  %v2828_v25 = vadd.f32 -0.16666654, %v2827_v2  ;;  %v2821_v47 = vadd.f32 -0.4999988, %v2820_v13  ;;  %3170 = vmatpush.bf16.msra.mxu0 %v7567_v38  ;;  %7645 = vmatpush.bf16.msra.mxu3 %v7567_v38  ;;  %v7703_v13 = vpop.permute.xlu0 %7702 }
 0x2ed   : > { %v7705_v51 = vunpack.i.h.bf16 %v7703_v13 }
 0x2ee   : > { %vm7049_vm3 = vcmp.lt.s32.totalorder %v7048_v12, 0  ;;  %v2829_v22 = vmul.f32 %v2828_v25, %v2817_v1  ;;  %7732 = vset.pattern.permute.xlu1 %v13730_v35  ;;  %v2822_v36 = vmul.f32 %v2821_v47, %v2817_v1  ;;  %v7564_v25 = vld [vmem:[%s13529_s3 + $0x20] sm:$0xff]  ;;  %v398_v47 = vld [vmem:[%s10852_s26 + $0x48] sm:$0xff] }
 0x2ef   : > { %v2953_v55 = vsel %vm7049_vm3, 0, %v7048_v12  ;;  %5362 = vperm.xlu1 %7732, %v10705_v62  }
 0x2f0   : > { %v2954_v9 = vsub.s32 32, %v2953_v55  ;;  %v2958_v52 = vsub.s32 4294967266, %v2953_v55  ;;  %v2955_v30 = vshll.u32 %v2946_v28, %v2953_v55  ;;  %v2830_v54 = vadd.f32 1.0, %v2829_v22  ;;  %v7561_v22 = vld [vmem:[%s13529_s3 + $0x8] sm:$0xff] }
 0x2f1   : > { %v2823_v23 = vadd.f32 1.0, %v2822_v36 }
 0x2f2   : > { %v2956_v41 = vshrl.u32 %v2938_v0, %v2954_v9  ;;  %v2959_v58 = vadd.s32 127, %v2958_v52  ;;  %v2831_v49 = vmul.f32 %v2830_v54, %v2815_v39  ;;  %v2989_v39 = vand.u32 3, %v2988_v5  ;;  %v7560_v54 = vld [vmem:[%s13529_s3] sm:$0xff]  ;;  %v395_v5 = vld [vmem:[%s10852_s26 + $0x30] sm:$0xff] }
 0x2f3   : > { %v2840_v53 = vxor.u32 2147483648, %v2823_v23 }
 0x2f4   : > { %v2957_v15 = vor.u32 %v2956_v41, %v2955_v30  ;;  %v2960_v14 = vshll.u32 %v2959_v58, 23  ;;  %v2837_v17 = vxor.u32 2147483648, %v2831_v49  ;;  %vm2991_vm11 = vcmp.eq.s32.totalorder %v2989_v39, 0 }
 0x2f5   : > { %v2841_v9 = vsel %vm2839_vm12, %v2840_v53, %v2831_v49  ;;  %vm2994_vm6 = vcmp.eq.s32.totalorder %v2989_v39, 2  ;;  %vm2990_vm14 = vcmp.lt.s32.totalorder %v2989_v39, 2  ;;  %v391_v53 = vld [vmem:[%s10852_s26 + $0x10] sm:$0xff] }
 0x2f6   : > { %v2961_v6 = vor.u32 4788187, %v2960_v14  ;;  %v2964_v45 = vcvt.s32.f32 %v2957_v15  ;;  %v2838_v46 = vsel %vm2836_vm7, %v2823_v23, %v2837_v17  ;;  %v396_v17 = vld [vmem:[%s10852_s26 + $0x38] sm:$0xff] }
 0x2f7   : > { %7735 = vset.pattern.permute.xlu1 %v13936_v18  ;;  %v2842_v41 = vsel %vm2835_vm15, %v2838_v46, %v2841_v9 }
 0x2f8   : > { %v2962_v43 = vand.u32 2147483647, %v2961_v6  ;;  %v2843_v15 = vsel %vm2832_vm4, nan, %v2842_v41  ;;  %v7566_v6 = vld [vmem:[%s13529_s3 + $0x30] sm:$0xff]  ;;  %v400_v41 = vld [vmem:[%s10852_s26 + $0x58] sm:$0xff] }
 0x2f9   : > { %7646 = vmatpush.bf16.msra.mxu1 %v7566_v6  ;;  %7647 = vmatpush.bf16.msra.mxu2 %v7566_v6 }
 0x2fa   : > { %v2965_v16 = vmul.f32 %v2964_v45, %v2962_v43  ;;  %3171 = vmatpush.bf16.msra.mxu0 %v7566_v6  ;;  %7648 = vmatpush.bf16.msra.mxu3 %v7566_v6  ;;  %v390_v43 = vld [vmem:[%s10852_s26 + $0x8] sm:$0xff] }
 0x2fb   : > { %v10857_v45 = vpack.c.bf16 %v390_v43, %v389_v4  ;;  %v402_v6 = vld [vmem:[%s10852_s26 + $0x68] sm:$0xff] }
 0x2fc   : > { %v2966_v33 = vxor.u32 2147483648, %v2965_v16 }
 0x2fd   : > { %14178 = vst [vmem:[#allocation37_spill] sm:$0xff] %v10857_v45  ;;  %7649 = vmatpush.bf16.msra.mxu1 %v7565_v10  ;;  %7650 = vmatpush.bf16.msra.mxu2 %v7565_v10 }
 0x2fe   : > { %v2967_v44 = vsel %vm2846_vm9, %v2966_v33, %v2965_v16  ;;  %3172 = vmatpush.bf16.msra.mxu0 %v7565_v10  ;;  %7651 = vmatpush.bf16.msra.mxu3 %v7565_v10  ;;  %v10862_v16 = vpop.permute.xlu2 %7697 }
 0x2ff   : > { %v2970_v3 = vsel %vm10813_vm8, %v14174_v27, %v2967_v44  ;;  %v7693_v27 = vpop.permute.xlu1 %7692  ;;  %v394_v44 = vld [vmem:[%s10852_s26 + $0x28] sm:$0xff]  ;;  %v7699_v60 = vunpack.i.l.bf16 %v10862_v16 }
 0x300   : > { %v2972_v61 = vmul.f32 %v2970_v3, %v2970_v3  ;;  %v7694_v56 = vunpack.i.l.bf16 %v7693_v27 }
 0x301   : > { %7652 = vmatpush.bf16.msra.mxu1 %v7564_v25  ;;  %7653 = vmatpush.bf16.msra.mxu2 %v7564_v25  ;;  %v3066_v39 = vsel %vm3063_vm5, %v391_v53, %v7699_v60 }
 0x302   : > { %v2973_v29 = vmul.f32 -0.001358992, %v2972_v61  ;;  %v2980_v37 = vmul.f32 -0.00019511016, %v2972_v61  ;;  %3173 = vmatpush.bf16.msra.mxu0 %v7564_v25  ;;  %7654 = vmatpush.bf16.msra.mxu3 %v7564_v25 }
 0x304   : > { %v2974_v26 = vadd.f32 0.041655596, %v2973_v29  ;;  %v2981_v50 = vadd.f32 0.008332121, %v2980_v37  ;;  %v3069_v37 = vsel %vm3063_vm5, %v394_v44, %v7705_v51 }
 0x305   : > { %7655 = vmatpush.bf16.msra.mxu1 %v7563_v11  ;;  %7656 = vmatpush.bf16.msra.mxu2 %v7563_v11 }
 0x306   : > { %v2975_v21 = vmul.f32 %v2974_v26, %v2972_v61  ;;  %v2982_v63 = vmul.f32 %v2981_v50, %v2972_v61  ;;  %3174 = vmatpush.bf16.msra.mxu0 %v7563_v11  ;;  %v7713_v33 = vpop.permute.xlu2 %7712  ;;  %7657 = vmatpush.bf16.msra.mxu3 %v7563_v11  ;;  %v3064_v26 = vsel %vm3063_vm5, %v389_v4, %v7694_v56 }
 0x307   : > { %v7715_v42 = vunpack.i.h.bf16 %v7713_v33  ;;  %v7714_v57 = vunpack.i.l.bf16 %v7713_v33 }
 0x308   : > { %v2976_v32 = vadd.f32 -0.4999988, %v2975_v21  ;;  %v2983_v28 = vadd.f32 -0.16666654, %v2982_v63  ;;  %v7708_v63 = vpop.permute.xlu1 %7707 }
 0x309   : > { %v3073_v36 = vsel %vm3063_vm5, %v398_v47, %v7715_v42  ;;  %v7710_v23 = vunpack.i.h.bf16 %v7708_v63 }
 0x30a   : > { %v2977_v7 = vmul.f32 %v2976_v32, %v2972_v61  ;;  %v2984_v24 = vmul.f32 %v2983_v28, %v2972_v61  ;;  %v7695_v61 = vunpack.i.h.bf16 %v7693_v27  ;;  %v7709_v32 = vunpack.i.l.bf16 %v7708_v63 }
 0x30b   : > { %v7700_v28 = vunpack.i.h.bf16 %v10862_v16 }
 0x30c   : > { %v2978_v1 = vadd.f32 1.0, %v2977_v7  ;;  %v2985_v12 = vadd.f32 1.0, %v2984_v24  ;;  %v3065_v50 = vsel %vm3063_vm5, %v390_v43, %v7695_v61  ;;  %v3070_v7 = vsel %vm3063_vm5, %v395_v5, %v7709_v32 }
 0x30d   : > { %v7083_v21 = vpack.c.bf16 %v3065_v50, %v3064_v26  ;;  %v3071_v24 = vsel %vm3063_vm5, %v396_v17, %v7710_v23 }
 0x30e   : > { %v2986_v55 = vmul.f32 %v2985_v12, %v2970_v3  ;;  %v2995_v0 = vxor.u32 2147483648, %v2978_v1  ;;  %v397_v3 = vld [vmem:[%s10852_s26 + $0x40] sm:$0xff]  ;;  %v7718_v12 = vpop.permute.xlu0 %7717 }
 0x30f   : > { %v3072_v20 = vsel %vm3063_vm5, %v397_v3, %v7714_v57  ;;  %v7719_v9 = vunpack.i.l.bf16 %v7718_v12 }
 0x310   : > { %v2992_v52 = vxor.u32 2147483648, %v2986_v55  ;;  %v2996_v58 = vsel %vm2994_vm6, %v2995_v0, %v2986_v55  ;;  %v7095_v19 = vpack.c.bf16 %v3073_v36, %v3072_v20  ;;  %v7720_v0 = vunpack.i.h.bf16 %v7718_v12 }
 0x312   : > { %v2993_v30 = vsel %vm2991_vm11, %v2978_v1, %v2992_v52  ;;  %v392_v1 = vld [vmem:[%s10852_s26 + $0x18] sm:$0xff]  ;;  %v399_v52 = vld [vmem:[%s10852_s26 + $0x50] sm:$0xff] }
 0x313   : > { %v2997_v59 = vsel %vm2990_vm14, %v2993_v30, %v2996_v58  ;;  %v3067_v46 = vsel %vm3063_vm5, %v392_v1, %v7700_v28  ;;  %v3074_v38 = vsel %vm3063_vm5, %v399_v52, %v7719_v9  ;;  %v3075_v30 = vsel %vm3063_vm5, %v400_v41, %v7720_v0 }
 0x314   : > { %v2998_v14 = vsel %vm2987_vm2, nan, %v2997_v59  ;;  %v7086_v55 = vpack.c.bf16 %v3067_v46, %v3066_v39  ;;  %v7098_v58 = vpack.c.bf16 %v3075_v30, %v3074_v38 }
 0x315   : > { %v7726_v2 = vpack.i.bf16 %v2998_v14, %v2843_v15 }
 0x317   : > { %7727 = vrot.lane.b32.xlu2 %v7726_v2, %s7977_s14  ;;  %v401_v2 = vld [vmem:[%s10852_s26 + $0x60] sm:$0xff] }
 0x31f   : > { %5265 = vperm.xlu2 %7731, %v10705_v62   ;;  %v7562_v62 = vld [vmem:[%s13529_s3 + $0x10] sm:$0xff] }
 0x320   : > { %7658 = vmatpush.bf16.msra.mxu1 %v7562_v62  ;;  %7659 = vmatpush.bf16.msra.mxu2 %v7562_v62 }
 0x321   : > { %3175 = vmatpush.bf16.msra.mxu0 %v7562_v62  ;;  %7660 = vmatpush.bf16.msra.mxu3 %v7562_v62  ;;  %v403_v62 = vld [vmem:[%s10852_s26 + $0x70] sm:$0xff] }
 0x324   : > { %7661 = vmatpush.bf16.msra.mxu1 %v7561_v22  ;;  %7662 = vmatpush.bf16.msra.mxu2 %v7561_v22 }
 0x325   : > { %3176 = vmatpush.bf16.msra.mxu0 %v7561_v22  ;;  %7663 = vmatpush.bf16.msra.mxu3 %v7561_v22 }
 0x327   : > { %7733 = vset.pattern.permute.xlu2 %v13730_v35 }
 0x328   : > { %5366 = vperm.xlu2 %7733, %v10801_v31   ;;  %v7704_v31 = vunpack.i.l.bf16 %v7703_v13  ;;  %7664 = vmatpush.bf16.msra.mxu1 %v7560_v54  ;;  %v404_v13 = vld [vmem:[%s10852_s26 + $0x78] sm:$0xff] }
 0x329   : > { %7665 = vmatpush.bf16.msra.mxu2 %v7560_v54  ;;  %3177 = vmatpush.bf16.msra.mxu0 %v7560_v54 }
 0x32a   : > { %v3068_v29 = vsel %vm3063_vm5, %v393_v40, %v7704_v31  ;;  %7666 = vmatpush.bf16.msra.mxu3 %v7560_v54  ;;  %v7943_v31 = vld [vmem:[%s13533_s7] sm:$0xff] }
 0x32b   : > { %v7089_v34 = vpack.c.bf16 %v3069_v37, %v3068_v29  ;;  %v10938_v40 = vperm.slane %v7943_v31, 2 }
 0x32c   : > { %7096 = vmatmul.msk.bf16.vlgmr.msra.gmra.mxu2 %vm10890_vm0, %v7095_v19  ;;  %7084 = vmatmul.msk.bf16.vlgmr.msra.gmra.mxu0 %vm10890_vm0, %v7083_v21 }
 0x32d   : > { %7090 = vmatmul.msk.bf16.vlgmr.msra.gmra.mxu1 %vm10890_vm0, %v7089_v34 }
 0x330   : > { %7736 = vset.pattern.permute.xlu2 %v13732_v48 }
 0x331   : > { %5273 = vperm.xlu2 %7736, %v10804_v8  }
 0x339   : > { %7738 = vset.pattern.permute.xlu2 %v13730_v35 }
 0x33a   : > { %5370 = vperm.xlu2 %7738, %v10804_v8   ;;  %v7092_v8 = vpack.c.bf16 %v3071_v24, %v3070_v7 }
 0x33c   : > { %7087 = vmatmul.msk.bf16.gmra.mxu0 %vm10890_vm0, %v7086_v55  ;;  %7099 = vmatmul.msk.bf16.gmra.mxu2 %vm10890_vm0, %v7098_v58 }
 0x33d   : > { %7093 = vmatmul.msk.bf16.gmra.mxu1 %vm10890_vm0, %v7092_v8 }
 0x342   : > { %7740 = vset.pattern.permute.xlu2 %v13936_v18 }
 0x350   : > { %v7723_v59 = vpop.permute.xlu1 %7722 }
 0x351   : > { %v7725_v15 = vunpack.i.h.bf16 %v7723_v59  ;;  %v7724_v14 = vunpack.i.l.bf16 %v7723_v59 }
 0x353   : > { %v3076_v10 = vsel %vm3063_vm5, %v401_v2, %v7724_v14  ;;  %v3077_v4 = vsel %vm3063_vm5, %v402_v6, %v7725_v15 }
 0x354   : > { %v7101_v43 = vpack.c.bf16 %v3077_v4, %v3076_v10 }
 0x356   : > { %7102 = vmatmul.msk.bf16.vlgmr.msra.gmra.mxu3 %vm10890_vm0, %v7101_v43 }
 0x371   : > { %v7728_v25 = vpop.permute.xlu2 %7727 }
 0x372   : > { %v7730_v16 = vunpack.i.h.bf16 %v7728_v25  ;;  %v7729_v11 = vunpack.i.l.bf16 %v7728_v25 }
 0x374   : > { %v3078_v33 = vsel %vm3063_vm5, %v403_v62, %v7729_v11  ;;  %v3079_v27 = vsel %vm3063_vm5, %v404_v13, %v7730_v16 }
 0x375   : > { %v7104_v22 = vpack.c.bf16 %v3079_v27, %v3078_v33 }
 0x377   : > { %7105 = vmatmul.msk.bf16.gmra.mxu3 %vm10890_vm0, %v7104_v22 }
 0x3a9   : > { %v3179_v51 = vpop.f32.mrf.mxu0 }
 0x3aa   : > { %v10941_v44 = vadd.f32 %v3179_v51, %v10938_v40  ;;  %v3189_v42 = vpop.f32.mrf.mxu1  ;;  %v7575_v51 = vld [vmem:[%s13529_s3 + $0x78] sm:$0xff] }
 0x3ab   : > { %v10947_v3 = vadd.f32 %v3189_v42, %v10938_v40  ;;  %4034 = vmatpush.bf16.msrb.mxu1 %v7575_v51 }
 0x3ac   : > { %v10944_v57 = vmul.f32 0.70710677, %v10941_v44 }
 0x3ad   : > { %v10952_v61 = vmul.f32 0.70710677, %v10947_v3 }
 0x3ae   : > { %v3254_v47 = vmul.f32 %v10944_v57, %v10944_v57 }
 0x3af   : > { %v3414_v37 = vmul.f32 %v10952_v61, %v10952_v61  ;;  %v3199_v63 = vpop.f32.mrf.mxu2 }
 0x3b0   : > { %v10957_v29 = vmin.f32 %v3254_v47, 16.0  ;;  %v10976_v17 = vadd.f32 %v3199_v63, %v10938_v40  ;;  %v7574_v63 = vld [vmem:[%s13529_s3 + $0x70] sm:$0xff] }
 0x3b1   : > { %v3181_v56 = vpop.f32.mrf.mxu0  ;;  %v10967_v50 = vmin.f32 %v3414_v37, 16.0  ;;  %4035 = vmatpush.bf16.msrb.mxu1 %v7574_v63 }
 0x3b2   : > { %v10955_v54 = vadd.f32 %v3181_v56, %v10938_v40  ;;  %v3267_v36 = vmul.f32 3.8918573e-05, %v10957_v29  ;;  %v3191_v5 = vpop.f32.mrf.mxu1  ;;  %14181 = vst [vmem:[#allocation9_spill] sm:$0xff] %v10976_v17  ;;  %v10983_v8 = vmul.f32 0.70710677, %v10976_v17 }
 0x3b3   : > { %v3427_v19 = vmul.f32 3.8918573e-05, %v10967_v50  ;;  %v10980_v1 = vadd.f32 %v3191_v5, %v10938_v40  ;;  %v3416_v55 = vmul.f32 2.1237322e-06, %v10967_v50  ;;  %v3256_v43 = vmul.f32 2.1237322e-06, %v10957_v29 }
 0x3b4   : > { %v10962_v20 = vmul.f32 0.70710677, %v10955_v54  ;;  %v3268_v34 = vadd.f32 0.001143296, %v3267_v36  ;;  %v3574_v9 = vmul.f32 %v10983_v8, %v10983_v8 }
 0x3b5   : > { %v3428_v28 = vadd.f32 0.001143296, %v3427_v19  ;;  %v10989_v0 = vmul.f32 0.70710677, %v10980_v1  ;;  %v3417_v30 = vadd.f32 0.00028619796, %v3416_v55 }
 0x3b6   : > { %v3294_v26 = vmul.f32 %v10962_v20, %v10962_v20  ;;  %v3269_v23 = vmul.f32 %v3268_v34, %v10957_v29  ;;  %v10996_v59 = vmin.f32 %v3574_v9, 16.0  ;;  %v3257_v47 = vadd.f32 0.00028619796, %v3256_v43 }
 0x3b7   : > { %v3429_v53 = vmul.f32 %v3428_v28, %v10967_v50  ;;  %v3454_v58 = vmul.f32 %v10989_v0, %v10989_v0  ;;  %v3418_v6 = vmul.f32 %v3417_v30, %v10967_v50 }
 0x3b8   : > { %v10969_v49 = vmin.f32 %v3294_v26, 16.0  ;;  %v3270_v7 = vadd.f32 0.014752088, %v3269_v23  ;;  %v3587_v4 = vmul.f32 3.8918573e-05, %v10996_v59  ;;  %v3258_v28 = vmul.f32 %v3257_v47, %v10957_v29 }
 0x3b9   : > { %v3430_v46 = vadd.f32 0.014752088, %v3429_v53  ;;  %v11001_v10 = vmin.f32 %v3454_v58, 16.0  ;;  %v3184_v16 = vpop.f32.mrf.mxu0  ;;  %v3419_v33 = vadd.f32 0.0036580483, %v3418_v6 }
 0x3ba   : > { %v3307_v21 = vmul.f32 3.8918573e-05, %v10969_v49  ;;  %v3271_v39 = vmul.f32 %v3270_v7, %v10957_v29  ;;  %v3296_v62 = vmul.f32 2.1237322e-06, %v10969_v49  ;;  %v11009_v22 = vadd.f32 %v3184_v16, %v10938_v40 }
 0x3bb   : > { %v3431_v38 = vmul.f32 %v3430_v46, %v10967_v50  ;;  %v3456_v27 = vmul.f32 2.1237322e-06, %v11001_v10  ;;  %v3576_v31 = vmul.f32 2.1237322e-06, %v10996_v59  ;;  %v3588_v42 = vadd.f32 0.001143296, %v3587_v4 }
 0x3bc   : > { %v3308_v32 = vadd.f32 0.001143296, %v3307_v21  ;;  %v3272_v41 = vadd.f32 0.112945676, %v3271_v39  ;;  %v3297_v36 = vadd.f32 0.00028619796, %v3296_v62  ;;  %v3420_v34 = vmul.f32 %v3419_v33, %v10967_v50 }
 0x3bd   : > { %v3432_v2 = vadd.f32 0.112945676, %v3431_v38  ;;  %v3457_v19 = vadd.f32 0.00028619796, %v3456_v27  ;;  %v11019_v21 = vmul.f32 0.70710677, %v11009_v22  ;;  %v3194_v38 = vpop.f32.mrf.mxu1  ;;  %v3201_v27 = vpop.f32.mrf.mxu2 }
 0x3be   : > { %v3309_v60 = vmul.f32 %v3308_v32, %v10969_v49  ;;  %v3273_v14 = vmul.f32 %v3272_v41, %v10957_v29  ;;  %v3577_v23 = vadd.f32 0.00028619796, %v3576_v31  ;;  %v3589_v32 = vmul.f32 %v3588_v42, %v10996_v59  ;;  %v7573_v46 = vld [vmem:[%s13529_s3 + $0x68] sm:$0xff]  ;;  %v7571_v31 = vld [vmem:[%s13529_s3 + $0x58] sm:$0xff] }
 0x3bf   : > { %v3433_v13 = vmul.f32 %v3432_v2, %v10967_v50  ;;  %v3298_v7 = vmul.f32 %v3297_v36, %v10969_v49  ;;  %v3421_v53 = vadd.f32 0.05243302, %v3420_v34  ;;  %v3334_v39 = vmul.f32 %v11019_v21, %v11019_v21  ;;  %4036 = vmatpush.bf16.msrb.mxu1 %v7573_v46  ;;  %v7572_v2 = vld [vmem:[%s13529_s3 + $0x60] sm:$0xff] }
 0x3c0   : > { %v3310_v24 = vadd.f32 0.014752088, %v3309_v60  ;;  %v3274_v11 = vadd.f32 0.4994258, %v3273_v14  ;;  %v3578_v55 = vmul.f32 %v3577_v23, %v10996_v59  ;;  %v3590_v9 = vadd.f32 0.014752088, %v3589_v32 }
 0x3c1   : > { %v3434_v26 = vadd.f32 0.4994258, %v3433_v13  ;;  %v3299_v41 = vadd.f32 0.0036580483, %v3298_v7  ;;  %v3422_v58 = vmul.f32 %v3421_v53, %v10967_v50  ;;  %v11044_v14 = vmin.f32 %v3334_v39, 16.0 }
 0x3c2   : > { %v3311_v12 = vmul.f32 %v3310_v24, %v10969_v49  ;;  %v3275_v37 = vmul.f32 %v3274_v11, %v10957_v29  ;;  %v3579_v6 = vadd.f32 0.0036580483, %v3578_v55  ;;  %v3591_v4 = vmul.f32 %v3590_v9, %v10996_v59 }
 0x3c3   : > { %v3435_v24 = vmul.f32 %v3434_v26, %v10967_v50  ;;  %v3300_v16 = vmul.f32 %v3299_v41, %v10969_v49  ;;  %4037 = vmatpush.bf16.msrb.mxu1 %v7572_v2  ;;  %v3423_v13 = vadd.f32 0.18741608, %v3422_v58  ;;  %v3347_v51 = vmul.f32 3.8918573e-05, %v11044_v14  ;;  %v7569_v2 = vld [vmem:[%s13529_s3 + $0x48] sm:$0xff] }
 0x3c4   : > { %v3312_v52 = vadd.f32 0.112945676, %v3311_v12  ;;  %v11028_v5 = vadd.f32 1.0, %v3275_v37  ;;  %v3458_v12 = vmul.f32 %v3457_v19, %v11001_v10  ;;  %v3580_v42 = vmul.f32 %v3579_v6, %v10996_v59 }
 0x3c5   : > { %v11041_v30 = vadd.f32 1.0, %v3435_v24  ;;  %v3592_v47 = vadd.f32 0.112945676, %v3591_v4  ;;  %v3301_v36 = vadd.f32 0.05243302, %v3300_v16  ;;  %v11074_v19 = vadd.f32 %v3201_v27, %v10938_v40 }
 0x3c6   : > { %v3313_v15 = vmul.f32 %v3312_v52, %v10969_v49  ;;  %v3259_v52 = vadd.f32 0.0036580483, %v3258_v28  ;;  %v3424_v63 = vmul.f32 %v3423_v13, %v10967_v50  ;;  %v3348_v32 = vadd.f32 0.001143296, %v3347_v51  ;;  %v7570_v28 = vld [vmem:[%s13529_s3 + $0x50] sm:$0xff] }
 0x3c7   : > { %4038 = vmatpush.bf16.msrb.mxu1 %v7571_v31  ;;  %14182 = vst [vmem:[#allocation50_spill] sm:$0xff] %v11074_v19  ;;  %v3581_v24 = vadd.f32 0.05243302, %v3580_v42  ;;  %v3593_v53 = vmul.f32 %v3592_v47, %v10996_v59  ;;  %v3302_v46 = vmul.f32 %v3301_v36, %v10969_v49  ;;  %v11088_v50 = vmul.f32 0.5, %v10947_v3 }
 0x3c8   : > { %v3314_v25 = vadd.f32 0.4994258, %v3313_v15  ;;  %v3459_v15 = vadd.f32 0.0036580483, %v3458_v12  ;;  %v3260_v43 = vmul.f32 %v3259_v52, %v10957_v29  ;;  %v11091_v52 = vmul.f32 0.70710677, %v11074_v19 }
 0x3c9   : > { %v3425_v41 = vadd.f32 1.1283791, %v3424_v63  ;;  %v3582_v6 = vmul.f32 %v3581_v24, %v10996_v59  ;;  %v3594_v4 = vadd.f32 0.4994258, %v3593_v53  ;;  %v3303_v27 = vadd.f32 0.18741608, %v3302_v46 }
 0x3ca   : > { %v3315_v56 = vmul.f32 %v3314_v25, %v10969_v49  ;;  %v11052_v25 = vadd.f32 %v3194_v38, %v10938_v40  ;;  %v3460_v33 = vmul.f32 %v3459_v15, %v11001_v10  ;;  %v3349_v15 = vmul.f32 %v3348_v32, %v11044_v14 }
 0x3cb   : > { %4039 = vmatpush.bf16.msrb.mxu1 %v7570_v28  ;;  %v11110_v42 = vmul.f32 0.5, %v10976_v17  ;;  %v11116_v36 = vmul.f32 %v3425_v41, %v10952_v61  ;;  %v3583_v32 = vadd.f32 0.18741608, %v3582_v6  ;;  %v3595_v28 = vmul.f32 %v3594_v4, %v10996_v59 }
 0x3cc   : > { %v11026_v60 = vadd.f32 1.0, %v3315_v56  ;;  %v3261_v56 = vadd.f32 0.05243302, %v3260_v43  ;;  %v11067_v37 = vmul.f32 0.70710677, %v11052_v25  ;;  %v3288_v41 = vand.u32 2147483648, %v11028_v5 }
 0x3cd   : > { %v3461_v23 = vadd.f32 0.05243302, %v3460_v33  ;;  %v11105_v33 = vmul.f32 0.5, %v10980_v1  ;;  %14183 = vst [vmem:[#allocation49_spill] sm:$0xff] %v11110_v42  ;;  %v3350_v63 = vadd.f32 0.014752088, %v3349_v15  ;;  %vm3282_vm9 = vweird.f32 %v11028_v5 }
 0x3ce   : > { %7847 = vrcp.f32 %v11026_v60  ;;  %v3262_v12 = vmul.f32 %v3261_v56, %v10957_v29  ;;  %v3494_v39 = vmul.f32 %v11067_v37, %v11067_v37  ;;  %v3614_v56 = vmul.f32 %v11091_v52, %v11091_v52 }
 0x3cf   : > { %7849 = vrcp.f32 %v11028_v5  ;;  %v3462_v58 = vmul.f32 %v3461_v23, %v11001_v10  ;;  %4040 = vmatpush.bf16.msrb.mxu1 %v7569_v2  ;;  %v7568_v23 = vld [vmem:[%s13529_s3 + $0x40] sm:$0xff]  ;;  %vm3322_vm3 = vweird.f32 %v11026_v60  ;;  %v3286_v15 = vand.u32 2147483647, %v11028_v5 }
 0x3d0   : > { %7851 = vrcp.f32 %v11041_v30  ;;  %v3263_v43 = vadd.f32 0.18741608, %v3262_v12  ;;  %v11101_v16 = vmin.f32 %v3494_v39, 16.0  ;;  %v3304_v12 = vmul.f32 %v3303_v27, %v10969_v49 }
 0x3d1   : > { %v3326_v49 = vand.u32 2147483647, %v11026_v60  ;;  %vm3287_vm15 = vcmp.eq.f32.partialorder %v3286_v15, 8.507059e+37  ;;  %v3336_v15 = vmul.f32 2.1237322e-06, %v11044_v14  ;;  %vm3442_vm6 = vweird.f32 %v11041_v30 }
 0x3d2   : > { %v3264_v24 = vmul.f32 %v3263_v43, %v10957_v29  ;;  %v3507_v53 = vmul.f32 3.8918573e-05, %v11101_v16  ;;  %v3496_v61 = vmul.f32 2.1237322e-06, %v11101_v16  ;;  %v3186_v29 = vpop.f32.mrf.mxu0 }
 0x3d3   : > { %4041 = vmatpush.bf16.msrb.mxu1 %v7568_v23  ;;  %vm3327_vm12 = vcmp.eq.f32.partialorder %v3326_v49, 8.507059e+37  ;;  %v3448_v49 = vand.u32 2147483648, %v11041_v30 }
 0x3d4   : > { %v11055_v11 = vpop.eup %7847  ;;  %v3508_v6 = vadd.f32 0.001143296, %v3507_v53  ;;  %v3497_v27 = vadd.f32 0.00028619796, %v3496_v61 }
 0x3d5   : > { %v11058_v62 = vpop.eup %7849  ;;  %v3318_v26 = vmul.f32 %v11055_v11, %v11026_v60  ;;  %vm3323_vm10 = vweird.f32 %v11055_v11 }
 0x3d6   : > { %v3278_v34 = vmul.f32 %v11058_v62, %v11028_v5  ;;  %v11080_v7 = vpop.eup %7851  ;;  %vm3283_vm13 = vweird.f32 %v11058_v62  ;;  %vm11143_vm8 = vmor %vm3322_vm3, %vm3323_vm10  ;;  %v3265_v5 = vadd.f32 1.1283791, %v3264_v24 }
 0x3d7   : > { %v3319_v55 = vsub.f32 1.0, %v3318_v26  ;;  %v3438_v38 = vmul.f32 %v11080_v7, %v11041_v30  ;;  %vm11147_vm7 = vmor %vm3282_vm9, %vm3283_vm13  ;;  %vm3443_vm11 = vweird.f32 %v11080_v7 }
 0x3d8   : > { %v3279_v9 = vsub.f32 1.0, %v3278_v34  ;;  %v3463_v34 = vadd.f32 0.18741608, %v3462_v58  ;;  %v11137_v58 = vadd.f32 1.0, %v3595_v28  ;;  %v3289_v28 = vor.u32 1.1754944e-38, %v3288_v41  ;;  %vm11194_vm4 = vmor %vm3442_vm6, %vm3443_vm11 }
 0x3d9   : > { %v3320_v51 = vmul.f32 %v11055_v11, %v3319_v55  ;;  %v3439_v26 = vsub.f32 1.0, %v3438_v38  ;;  %v11130_v55 = vmin.f32 %v3614_v56, 16.0  ;;  %v3351_v38 = vmul.f32 %v3350_v63, %v11044_v14 }
 0x3da   : > { %v3280_v47 = vmul.f32 %v11058_v62, %v3279_v9  ;;  %v3328_v9 = vand.u32 2147483648, %v11026_v60  ;;  %v3305_v60 = vadd.f32 1.1283791, %v3304_v12  ;;  %v3196_v12 = vpop.f32.mrf.mxu1  ;;  %7853 = vrcp.f32 %v11137_v58 }
 0x3db   : > { %v3321_v39 = vadd.f32 %v11055_v11, %v3320_v51  ;;  %v11155_v51 = vadd.f32 %v3186_v29, %v10938_v40  ;;  %v3616_v56 = vmul.f32 2.1237322e-06, %v11130_v55  ;;  %v3440_v23 = vmul.f32 %v11080_v7, %v3439_v26 }
 0x3dc   : > { %v3281_v46 = vadd.f32 %v11058_v62, %v3280_v47  ;;  %v3329_v63 = vor.u32 1.1754944e-38, %v3328_v9  ;;  %v3352_v53 = vadd.f32 0.112945676, %v3351_v38  ;;  %v3306_v61 = vmul.f32 %v3305_v60, %v10962_v20 }
 0x3dd   : > { %v3325_v43 = vsel %vm11143_vm8, %v11055_v11, %v3321_v39  ;;  %v3509_v39 = vmul.f32 %v3508_v6, %v11101_v16  ;;  %v3446_v26 = vand.u32 2147483647, %v11041_v30  ;;  %v3266_v9 = vmul.f32 %v3265_v5, %v10944_v57 }
 0x3de   : > { %v3285_v47 = vsel %vm11147_vm7, %v11058_v62, %v3281_v46  ;;  %v3330_v11 = vsel %vm3327_vm12, %v3329_v63, %v3325_v43  ;;  %v3498_v62 = vmul.f32 %v3497_v27, %v11101_v16  ;;  %v11167_v46 = vmul.f32 0.70710677, %v11155_v51 }
 0x3df   : > { %v3290_v24 = vsel %vm3287_vm15, %v3289_v28, %v3285_v47  ;;  %v3617_v29 = vadd.f32 0.00028619796, %v3616_v56  ;;  %v11172_v41 = vadd.f32 %v3196_v12, %v10938_v40  ;;  %v3331_v38 = vmul.f32 %v3330_v11, %v3306_v61 }
 0x3e0   : > { %v3353_v20 = vmul.f32 %v3352_v53, %v11044_v14  ;;  %v3464_v2 = vmul.f32 %v3463_v34, %v11001_v10  ;;  %v3584_v6 = vmul.f32 %v3583_v32, %v10996_v59  ;;  %v3291_v4 = vmul.f32 %v3290_v24, %v3266_v9  ;;  %v11183_v5 = vpop.eup %7853 }
 0x3e1   : > { %v3510_v60 = vadd.f32 0.014752088, %v3509_v39  ;;  %v3441_v43 = vadd.f32 %v11080_v7, %v3440_v23  ;;  %v3499_v57 = vadd.f32 0.0036580483, %v3498_v62  ;;  %v3374_v27 = vmul.f32 %v11167_v46, %v11167_v46  ;;  %v3204_v39 = vpop.f32.mrf.mxu2 }
 0x3e2   : > { %vm11186_vm14 = vcmp.eq.f32.partialorder %v3446_v26, 8.507059e+37  ;;  %v3618_v59 = vmul.f32 %v3617_v29, %v11130_v55  ;;  %v11192_v34 = vmul.f32 0.70710677, %v11172_v41  ;;  %v3449_v32 = vor.u32 1.1754944e-38, %v3448_v49 }
 0x3e3   : > { %v7107_v56 = vclamps-f32 %v3331_v38, 1.0  ;;  %v3337_v63 = vadd.f32 0.00028619796, %v3336_v15  ;;  %v3354_v23 = vadd.f32 0.4994258, %v3353_v20  ;;  %v7106_v30 = vclamps-f32 %v3291_v4, 1.0 }
 0x3e4   : > { %v3465_v53 = vadd.f32 1.1283791, %v3464_v2  ;;  %v3585_v12 = vadd.f32 1.1283791, %v3584_v6  ;;  %v3511_v11 = vmul.f32 %v3510_v60, %v11101_v16  ;;  %v3445_v24 = vsel %vm11194_vm4, %v11080_v7, %v3441_v43 }
 0x3e5   : > { %v3222_v61 = vmul.f32 0.5, %v10941_v44  ;;  %v3500_v62 = vmul.f32 %v3499_v57, %v11101_v16  ;;  %v11204_v26 = vmin.f32 %v3374_v27, 16.0  ;;  %v3598_v9 = vmul.f32 %v11183_v5, %v11137_v58 }
 0x3e6   : > { %v3619_v29 = vadd.f32 0.0036580483, %v3618_v59  ;;  %v3534_v49 = vmul.f32 %v11192_v34, %v11192_v34  ;;  %v3219_v38 = vlaneseq  ;;  %v3895_v15 = vadd.f32 1.0, %v7107_v56 }
 0x3e7   : > { %v3338_v20 = vmul.f32 %v3337_v63, %v11044_v14  ;;  %v3355_v2 = vmul.f32 %v3354_v23, %v11044_v14  ;;  %v11213_v7 = vadd.f32 %v3204_v39, %v10938_v40  ;;  %v11216_v6 = vmul.f32 %v3465_v53, %v10989_v0 }
 0x3e8   : > { %v11219_v4 = vmul.f32 %v3585_v12, %v10983_v8  ;;  %v3894_v60 = vadd.f32 1.0, %v7106_v30  ;;  %v3512_v43 = vadd.f32 0.112945676, %v3511_v11  ;;  %v11223_v57 = vsel %vm11186_vm14, %v3449_v32, %v3445_v24 }
 0x3e9   : > { %14192 = vst [vmem:[#allocation53_spill] sm:$0xff] %v11213_v7  ;;  %v3223_v27 = vmul.f32 0.5, %v10955_v54  ;;  %v3501_v59 = vadd.f32 0.05243302, %v3500_v62  ;;  %v3376_v56 = vmul.f32 2.1237322e-06, %v11204_v26  ;;  %v3620_v23 = vmul.f32 %v3619_v29, %v11130_v55 }
 0x3ea   : > { %v3599_v63 = vsub.f32 1.0, %v3598_v9  ;;  %v11228_v28 = vmin.f32 %v3534_v49, 16.0  ;;  %v11230_v0 = vand.u32 127, %v3219_v38  ;;  %v3339_v53 = vadd.f32 0.0036580483, %v3338_v20 }
 0x3eb   : > { %v3911_v8 = vmul.f32 %v3895_v15, %v3223_v27  ;;  %v11232_v12 = vadd.f32 1.0, %v3355_v2  ;;  %v11235_v47 = vmul.f32 0.70710677, %v11213_v7  ;;  %vm3602_vm2 = vweird.f32 %v11137_v58 }
 0x3ec   : > { %v3606_v32 = vand.u32 2147483647, %v11137_v58  ;;  %v3910_v30 = vmul.f32 %v3894_v60, %v3222_v61  ;;  %v3513_v11 = vmul.f32 %v3512_v43, %v11101_v16  ;;  %v3926_v39 = vmax.f32 %v10941_v44, 0.0  ;;  %v11250_v44 = vpop.f32.mrf.mxu3 }
 0x3ed   : > { %14193 = vst [vmem:[#allocation51_spill] sm:$0xff] %v11235_v47  ;;  %v3927_v24 = vmax.f32 %v10955_v54, 0.0  ;;  %v3502_v62 = vmul.f32 %v3501_v59, %v11101_v16  ;;  %v3377_v9 = vadd.f32 0.00028619796, %v3376_v56  ;;  %v3600_v29 = vmul.f32 %v11183_v5, %v3599_v63  ;;  %v3206_v59 = vpop.f32.mrf.mxu2 }
 0x3ee   : > { %v3621_v49 = vadd.f32 0.05243302, %v3620_v23  ;;  %v3536_v38 = vmul.f32 2.1237322e-06, %v11228_v28  ;;  %vm3221_vm1 = vcmp.lt.s32.totalorder %v11230_v0, 64  ;;  %v3340_v15 = vmul.f32 %v3339_v53, %v11044_v14 }
 0x3ef   : > { %7855 = vrcp.f32 %v11232_v12  ;;  %v3654_v61 = vmul.f32 %v11235_v47, %v11235_v47  ;;  %v3945_v54 = vsel %vm3221_vm1, %v3927_v24, %v3911_v8  ;;  %vm3603_vm0 = vweird.f32 %v11183_v5 }
 0x3f0   : > { %v3608_v20 = vand.u32 2147483648, %v11137_v58  ;;  %v3514_v2 = vadd.f32 0.4994258, %v3513_v11  ;;  %v3944_v60 = vsel %vm3221_vm1, %v3926_v39, %v3910_v30  ;;  %v3503_v43 = vadd.f32 0.18741608, %v3502_v62  ;;  %vm11282_vm13 = vmor %vm3602_vm2, %vm3603_vm0 }
 0x3f1   : > { %v3378_v27 = vmul.f32 %v3377_v9, %v11204_v26  ;;  %v3960_v56 = vpack.c.bf16 %v3945_v54, %v3944_v60  ;;  %v3387_v63 = vmul.f32 3.8918573e-05, %v11204_v26  ;;  %v3601_v23 = vadd.f32 %v11183_v5, %v3600_v29 }
 0x3f2   : > { %v3622_v53 = vmul.f32 %v3621_v49, %v11130_v55  ;;  %v3537_v8 = vadd.f32 0.00028619796, %v3536_v38  ;;  %v3467_v24 = vmul.f32 3.8918573e-05, %v11001_v10  ;;  %vm11263_vm10 = vcmp.eq.f32.partialorder %v3606_v32, 8.507059e+37 }
 0x3f3   : > { %v3341_v11 = vadd.f32 0.05243302, %v3340_v15  ;;  %v11267_v30 = vmin.f32 %v3654_v61, 16.0  ;;  %4042 = vmatmul.bf16.vlgmr.msrb.gmra.mxu1 %v3960_v56  ;;  %v3388_v39 = vadd.f32 0.001143296, %v3387_v63  ;;  %v3609_v62 = vor.u32 1.1754944e-38, %v3608_v20 }
 0x3f4   : > { %v11270_v9 = vmul.f32 0.5, %v11074_v19  ;;  %v3515_v29 = vmul.f32 %v3514_v2, %v11101_v16  ;;  %v11274_v49 = vadd.f32 %v3206_v59, %v10938_v40  ;;  %v3504_v15 = vmul.f32 %v3503_v43, %v11101_v16 }
 0x3f5   : > { %v11276_v38 = vpop.eup %7855  ;;  %v3379_v61 = vadd.f32 0.0036580483, %v3378_v27  ;;  %v3389_v54 = vmul.f32 %v3388_v39, %v11204_v26  ;;  %v3468_v20 = vadd.f32 0.001143296, %v3467_v24  ;;  %v3605_v2 = vsel %vm11282_vm13, %v11183_v5, %v3601_v23 }
 0x3f6   : > { %14196 = vst [vmem:[#allocation7_spill] sm:$0xff] %v11274_v49  ;;  %v11291_v60 = vadd.f32 0.18741608, %v3622_v53  ;;  %v3538_v58 = vmul.f32 %v3537_v8, %v11228_v28  ;;  %v3342_v56 = vmul.f32 %v3341_v11, %v11044_v14  ;;  %v3667_v63 = vmul.f32 3.8918573e-05, %v11267_v30  ;;  %v3211_v11 = vpop.f32.mrf.mxu3 }
 0x3f7   : > { %v3390_v48 = vadd.f32 0.014752088, %v3389_v54  ;;  %v3469_v16 = vmul.f32 %v3468_v20, %v11001_v10  ;;  %v11298_v43 = vadd.f32 1.0, %v3515_v29  ;;  %v11301_v27 = vmul.f32 0.5, %v11009_v22 }
 0x3f8   : > { %v3358_v5 = vmul.f32 %v11276_v38, %v11232_v12  ;;  %v11306_v53 = vadd.f32 1.1283791, %v3504_v15  ;;  %v3380_v8 = vmul.f32 %v3379_v61, %v11204_v26  ;;  %v11310_v24 = vmul.f32 0.70710677, %v11274_v49 }
 0x3f9   : > { %v3391_v39 = vmul.f32 %v3390_v48, %v11204_v26  ;;  %v11315_v29 = vmul.f32 %v11223_v57, %v11116_v36  ;;  %v3539_v32 = vadd.f32 0.0036580483, %v3538_v58  ;;  %v3470_v54 = vadd.f32 0.014752088, %v3469_v16 }
 0x3fa   : > { %v3547_v20 = vmul.f32 3.8918573e-05, %v11228_v28  ;;  %v11320_v15 = vsel %vm11263_vm10, %v3609_v62, %v3605_v2  ;;  %v3343_v59 = vadd.f32 0.18741608, %v3342_v56  ;;  %v3668_v61 = vadd.f32 0.001143296, %v3667_v63 }
 0x3fb   : > { %v3392_v13 = vadd.f32 0.112945676, %v3391_v39  ;;  %7857 = vrcp.f32 %v11298_v43  ;;  %v3359_v31 = vsub.f32 1.0, %v3358_v5  ;;  %v3471_v48 = vmul.f32 %v3470_v54, %v11001_v10 }
 0x3fc   : > { %v3548_v23 = vadd.f32 0.001143296, %v3547_v20  ;;  %v3381_v45 = vadd.f32 0.05243302, %v3380_v8  ;;  %v3694_v36 = vmul.f32 %v11310_v24, %v11310_v24  ;;  %v3627_v58 = vmul.f32 3.8918573e-05, %v11130_v55 }
 0x3fd   : > { %v3393_v57 = vmul.f32 %v3392_v13, %v11204_v26  ;;  %v3528_v62 = vand.u32 2147483648, %v11298_v43  ;;  %v3472_v2 = vadd.f32 0.112945676, %v3471_v48  ;;  %v3344_v63 = vmul.f32 %v3343_v59, %v11044_v14 }
 0x3fe   : > { %v3549_v56 = vmul.f32 %v3548_v23, %v11228_v28  ;;  %v3540_v16 = vmul.f32 %v3539_v32, %v11228_v28  ;;  %v3669_v5 = vmul.f32 %v3668_v61, %v11267_v30  ;;  %v3360_v39 = vmul.f32 %v11276_v38, %v3359_v31 }
 0x3ff   : > { %v3394_v8 = vadd.f32 0.4994258, %v3393_v57  ;;  %v3473_v13 = vmul.f32 %v3472_v2, %v11001_v10  ;;  %v3628_v20 = vadd.f32 0.001143296, %v3627_v58  ;;  %vm3362_vm3 = vweird.f32 %v11232_v12 }
 0x400   : > { %v3550_v54 = vadd.f32 0.014752088, %v3549_v56  ;;  %v3382_v35 = vmul.f32 %v3381_v45, %v11204_v26  ;;  %v11338_v48 = vmin.f32 %v3694_v36, 16.0  ;;  %v3366_v59 = vand.u32 2147483647, %v11232_v12  ;;  %v11354_v36 = vpop.f32.mrf.mxu3 }
 0x401   : > { %v3395_v23 = vmul.f32 %v3394_v8, %v11204_v26  ;;  %v11341_v14 = vpop.eup %7857  ;;  %v3474_v32 = vadd.f32 0.4994258, %v3473_v13  ;;  %v3629_v31 = vmul.f32 %v3628_v20, %v11130_v55  ;;  %vm3363_vm9 = vweird.f32 %v11276_v38 }
 0x402   : > { %v3551_v61 = vmul.f32 %v3550_v54, %v11228_v28  ;;  %v11349_v57 = vadd.f32 %v11250_v44, %v10938_v40  ;;  %v11352_v45 = vadd.f32 %v3211_v11, %v10938_v40  ;;  %v3361_v2 = vadd.f32 %v11276_v38, %v3360_v39  ;;  %vm11373_vm8 = vmor %vm3362_vm3, %vm3363_vm9 }
 0x403   : > { %v11356_v58 = vadd.f32 1.0, %v3395_v23  ;;  %v3475_v56 = vmul.f32 %v3474_v32, %v11001_v10  ;;  %v3630_v13 = vadd.f32 0.014752088, %v3629_v31  ;;  %v3368_v54 = vand.u32 2147483648, %v11232_v12 }
 0x404   : > { %14199 = vst [vmem:[#allocation35_spill] sm:$0xff] %v11349_v57  ;;  %v3552_v8 = vadd.f32 0.112945676, %v3551_v61  ;;  %v3383_v20 = vadd.f32 0.18741608, %v3382_v35  ;;  %v11367_v19 = vor.u32 1.1754944e-38, %v3528_v62  ;;  %v3365_v62 = vsel %vm11373_vm8, %v11276_v38, %v3361_v2 }
 0x405   : > { %14200 = vst [vmem:[#allocation36_spill] sm:$0xff] %v11352_v45  ;;  %7859 = vrcp.f32 %v11356_v58  ;;  %v3707_v44 = vmul.f32 3.8918573e-05, %v11338_v48  ;;  %v3670_v7 = vadd.f32 0.014752088, %v3669_v5  ;;  %v11363_v11 = vadd.f32 1.0, %v3475_v56 }
 0x406   : > { %v3553_v49 = vmul.f32 %v3552_v8, %v11228_v28  ;;  %v3631_v23 = vmul.f32 %v3630_v13, %v11130_v55  ;;  %v3656_v35 = vmul.f32 2.1237322e-06, %v11267_v30  ;;  %v11379_v5 = vmul.f32 0.5, %v11155_v51 }
 0x407   : > { %v11382_v39 = vmul.f32 0.70710677, %v11349_v57  ;;  %v3345_v32 = vadd.f32 1.1283791, %v3344_v63  ;;  %v11388_v61 = vmul.f32 0.70710677, %v11352_v45  ;;  %7861 = vrcp.f32 %v11363_v11 }
 0x408   : > { %v3369_v12 = vor.u32 1.1754944e-38, %v3368_v54  ;;  %v3384_v31 = vmul.f32 %v3383_v20, %v11204_v26  ;;  %v3554_v56 = vadd.f32 0.4994258, %v3553_v49  ;;  %v3708_v8 = vadd.f32 0.001143296, %v3707_v44 }
 0x409   : > { %14203 = vst [vmem:[#allocation2_spill] sm:$0xff] %v11382_v39  ;;  %vm3367_vm7 = vcmp.eq.f32.partialorder %v3366_v59, 8.507059e+37  ;;  %v3541_v13 = vadd.f32 0.05243302, %v3540_v16  ;;  %v3671_v57 = vmul.f32 %v3670_v7, %v11267_v30  ;;  %v3632_v17 = vadd.f32 0.112945676, %v3631_v23  ;;  %v3216_v59 = vpop.f32.mrf.mxu3 }
 0x40a   : > { %14204 = vst [vmem:[#allocation28_spill] sm:$0xff] %v11388_v61  ;;  %v3370_v47 = vsel %vm3367_vm7, %v3369_v12, %v3365_v62  ;;  %v11393_v42 = vadd.f32 0.00028619796, %v3656_v35  ;;  %v3734_v38 = vmul.f32 %v11382_v39, %v11382_v39  ;;  %v3555_v2 = vmul.f32 %v3554_v56, %v11228_v28 }
 0x40b   : > { %v7860_v63 = vpop.eup %7859  ;;  %v11400_v54 = vmul.f32 %v11341_v14, %v11298_v43  ;;  %v3346_v26 = vmul.f32 %v3345_v32, %v11019_v21  ;;  %v3774_v49 = vmul.f32 %v11388_v61, %v11388_v61  ;;  %v3385_v16 = vadd.f32 1.1283791, %v3384_v31 }
 0x40c   : > { %v3398_v7 = vmul.f32 %v7860_v63, %v11356_v58  ;;  %v11406_v20 = vadd.f32 1.0, %v3555_v2  ;;  %v3633_v44 = vmul.f32 %v3632_v17, %v11130_v55  ;;  %v3709_v23 = vmul.f32 %v3708_v8, %v11338_v48 }
 0x40d   : > { %v7862_v10 = vpop.eup %7861  ;;  %v3371_v35 = vmul.f32 %v3370_v47, %v3346_v26  ;;  %v3672_v62 = vadd.f32 0.112945676, %v3671_v57  ;;  %v3406_v56 = vand.u32 2147483647, %v11356_v58  ;;  %v11411_v21 = vmin.f32 %v3734_v38, 16.0 }
 0x40e   : > { %v3399_v12 = vsub.f32 1.0, %v3398_v7  ;;  %v3408_v32 = vand.u32 2147483648, %v11356_v58  ;;  %v3478_v45 = vmul.f32 %v7862_v10, %v11363_v11  ;;  %7863 = vrcp.f32 %v11406_v20 }
 0x40f   : > { %v11416_v31 = vmin.f32 %v3774_v49, 16.0  ;;  %v11419_v17 = vadd.f32 %v3216_v59, %v10938_v40  ;;  %vm3403_vm12 = vweird.f32 %v7860_v63  ;;  %v3386_v47 = vmul.f32 %v3385_v16, %v11167_v46 }
 0x410   : > { %v3400_v8 = vmul.f32 %v7860_v63, %v3399_v12  ;;  %v3479_v57 = vsub.f32 1.0, %v3478_v45  ;;  %v3634_v2 = vadd.f32 0.4994258, %v3633_v44  ;;  %v3710_v26 = vadd.f32 0.014752088, %v3709_v23 }
 0x411   : > { %v7108_v38 = vclamps-f32 %v3371_v35, 1.0  ;;  %vm3402_vm15 = vweird.f32 %v11356_v58  ;;  %vm3407_vm11 = vcmp.eq.f32.partialorder %v3406_v56, 8.507059e+37  ;;  %v3409_v39 = vor.u32 1.1754944e-38, %v3408_v32 }
 0x412   : > { %v3401_v7 = vadd.f32 %v7860_v63, %v3400_v8  ;;  %vm3404_vm6 = vmor %vm3402_vm15, %vm3403_vm12  ;;  %v3480_v61 = vmul.f32 %v7862_v10, %v3479_v57  ;;  %vm3483_vm14 = vweird.f32 %v7862_v10  ;;  %v3488_v49 = vand.u32 2147483648, %v11363_v11 }
 0x413   : > { %vm3482_vm4 = vweird.f32 %v11363_v11  ;;  %v3486_v12 = vand.u32 2147483647, %v11363_v11  ;;  %v3787_v46 = vmul.f32 3.8918573e-05, %v11416_v31  ;;  %v3635_v58 = vmul.f32 %v3634_v2, %v11130_v55 }
 0x414   : > { %v3405_v59 = vsel %vm3404_vm6, %v7860_v63, %v3401_v7  ;;  %v11427_v45 = vpop.eup %7863  ;;  %v3481_v44 = vadd.f32 %v7862_v10, %v3480_v61  ;;  %v3711_v23 = vmul.f32 %v3710_v26, %v11338_v48  ;;  %v11433_v35 = vadd.f32 %v11354_v36, %v10938_v40  ;;  %vm3484_vm2 = vmor %vm3482_vm4, %vm3483_vm14 }
 0x415   : > { %v3410_v16 = vsel %vm3407_vm11, %v3409_v39, %v3405_v59  ;;  %v3896_v63 = vadd.f32 1.0, %v7108_v38  ;;  %v3558_v11 = vmul.f32 %v11427_v45, %v11406_v20  ;;  %v3542_v32 = vmul.f32 %v3541_v13, %v11228_v28 }
 0x416   : > { %v3411_v56 = vmul.f32 %v3410_v16, %v3386_v47  ;;  %v3747_v8 = vmul.f32 3.8918573e-05, %v11411_v21  ;;  %v3485_v39 = vsel %vm3484_vm2, %v7862_v10, %v3481_v44  ;;  %v3489_v61 = vor.u32 1.1754944e-38, %v3488_v49 }
 0x417   : > { %v3673_v57 = vmul.f32 %v3672_v62, %v11267_v30  ;;  %v11441_v2 = vmul.f32 0.70710677, %v11419_v17  ;;  %vm3487_vm0 = vcmp.eq.f32.partialorder %v3486_v12, 8.507059e+37  ;;  %v11443_v36 = vadd.f32 1.0, %v3635_v58 }
 0x418   : > { %v7109_v26 = vclamps-f32 %v3411_v56, 1.0  ;;  %v3490_v40 = vsel %vm3487_vm0, %v3489_v61, %v3485_v39  ;;  %v3712_v47 = vadd.f32 0.112945676, %v3711_v23  ;;  %v3788_v38 = vadd.f32 0.001143296, %v3787_v46 }
 0x419   : > { %v11446_v7 = vmul.f32 0.70710677, %v11433_v35  ;;  %v3912_v59 = vmul.f32 %v3896_v63, %v11301_v27  ;;  %v3559_v10 = vsub.f32 1.0, %v3558_v11  ;;  %v3519_v49 = vsub.f32 1.0, %v11400_v54 }
 0x41a   : > { %v3897_v13 = vadd.f32 1.0, %v7109_v26  ;;  %v3543_v62 = vadd.f32 0.18741608, %v3542_v32  ;;  %v3658_v16 = vmul.f32 %v11393_v42, %v11267_v30  ;;  %v3748_v44 = vadd.f32 0.001143296, %v3747_v8 }
 0x41b   : > { %v3674_v12 = vadd.f32 0.4994258, %v3673_v57  ;;  %v3929_v58 = vmax.f32 %v11155_v51, 0.0  ;;  %v3491_v46 = vmul.f32 %v3490_v40, %v11216_v6  ;;  %vm3522_vm10 = vweird.f32 %v11298_v43 }
 0x41c   : > { %v3913_v23 = vmul.f32 %v3897_v13, %v11379_v5  ;;  %v3854_v27 = vmul.f32 %v11441_v2, %v11441_v2  ;;  %7865 = vrcp.f32 %v11443_v36  ;;  %v3713_v54 = vmul.f32 %v3712_v47, %v11338_v48 }
 0x41d   : > { %v3789_v56 = vmul.f32 %v3788_v38, %v11416_v31  ;;  %v3814_v42 = vmul.f32 %v11446_v7, %v11446_v7  ;;  %v14205_v51 = vmax.f32 %v11009_v22, 0.0  ;;  %v3560_v63 = vmul.f32 %v11427_v45, %v3559_v10 }
 0x41e   : > { %v3947_v6 = vsel %vm3221_vm1, %v3929_v58, %v3913_v23  ;;  %v3520_v11 = vmul.f32 %v11341_v14, %v3519_v49  ;;  %v3544_v32 = vmul.f32 %v3543_v62, %v11228_v28  ;;  %v3749_v8 = vmul.f32 %v3748_v44, %v11411_v21 }
 0x41f   : > { %v3946_v5 = vsel %vm3221_vm1, %v14205_v51, %v3912_v59  ;;  %vm3523_vm13 = vweird.f32 %v11341_v14  ;;  %v3659_v61 = vadd.f32 0.0036580483, %v3658_v16  ;;  %v3696_v22 = vmul.f32 2.1237322e-06, %v11338_v48 }
 0x420   : > { %v3961_v39 = vpack.c.bf16 %v3947_v6, %v3946_v5  ;;  %v7111_v57 = vclamps-f32 %v3491_v46, 1.0  ;;  %v3675_v26 = vmul.f32 %v3674_v12, %v11267_v30  ;;  %v11476_v40 = vmin.f32 %v3854_v27, 16.0  ;;  %vm11508_vm12 = vmor %vm3522_vm10, %vm3523_vm13 }
 0x421   : > { %v3714_v47 = vadd.f32 0.4994258, %v3713_v54  ;;  %v3790_v38 = vadd.f32 0.014752088, %v3789_v56  ;;  %v14206_v13 = vand.u32 2147483647, %v11298_v43  ;;  %v3561_v49 = vadd.f32 %v11427_v45, %v3560_v63 }
 0x422   : > { %4047 = vmatmul.bf16.gmra.mxu1 %v3961_v39  ;;  %v11484_v59 = vmin.f32 %v3814_v42, 16.0  ;;  %v7110_v10 = vclamps-f32 %v11315_v29, 1.0  ;;  %vm3563_vm9 = vweird.f32 %v11427_v45  ;;  %v11489_v62 = vpop.eup %7865  ;;  %v3521_v16 = vadd.f32 %v11341_v14, %v3520_v11 }
 0x423   : > { %vm11480_vm3 = vcmp.eq.f32.partialorder %v14206_v13, 8.507059e+37  ;;  %v3545_v44 = vadd.f32 1.1283791, %v3544_v32  ;;  %v3750_v12 = vadd.f32 0.014752088, %v3749_v8  ;;  %v3568_v58 = vand.u32 2147483648, %v11406_v20 }
 0x424   : > { %v3697_v23 = vadd.f32 0.00028619796, %v3696_v22  ;;  %v3899_v46 = vadd.f32 1.0, %v7111_v57  ;;  %vm3562_vm8 = vweird.f32 %v11406_v20  ;;  %v3566_v27 = vand.u32 2147483647, %v11406_v20 }
 0x425   : > { %v11495_v54 = vadd.f32 1.0, %v3675_v26  ;;  %vm11497_vm7 = vmor %vm3562_vm8, %vm3563_vm9  ;;  %v3715_v56 = vmul.f32 %v3714_v47, %v11338_v48  ;;  %v3791_v42 = vmul.f32 %v3790_v38, %v11416_v31  ;;  %v3867_v51 = vmul.f32 3.8918573e-05, %v11476_v40 }
 0x426   : > { %v3827_v20 = vmul.f32 3.8918573e-05, %v11484_v59  ;;  %v3898_v6 = vadd.f32 1.0, %v7110_v10  ;;  %v3565_v63 = vsel %vm11497_vm7, %v11427_v45, %v3561_v49  ;;  %v3638_v11 = vmul.f32 %v11489_v62, %v11443_v36 }
 0x427   : > { %v3525_v32 = vsel %vm11508_vm12, %v11341_v14, %v3521_v16  ;;  %v3660_v43 = vmul.f32 %v3659_v61, %v11267_v30  ;;  %v3751_v8 = vmul.f32 %v3750_v12, %v11411_v21  ;;  %v3569_v39 = vor.u32 1.1754944e-38, %v3568_v58 }
 0x428   : > { %v3546_v22 = vmul.f32 %v3545_v44, %v11192_v34  ;;  %v3698_v57 = vmul.f32 %v3697_v23, %v11338_v48  ;;  %v3915_v26 = vmul.f32 %v3899_v46, %v11105_v33  ;;  %vm3567_vm15 = vcmp.eq.f32.partialorder %v3566_v27, 8.507059e+37 }
 0x429   : > { %v3570_v45 = vsel %vm3567_vm15, %v3569_v39, %v3565_v63  ;;  %v11526_v47 = vadd.f32 1.0, %v3715_v56  ;;  %v3792_v38 = vadd.f32 0.112945676, %v3791_v42  ;;  %v3868_v13 = vadd.f32 0.001143296, %v3867_v51  ;;  %v11564_v63 = vld [vmem:[%s10689_s17 + $0x18] sm:$0xff] }
 0x42a   : > { %7867 = vrcp.f32 %v11495_v54  ;;  %v3828_v14 = vadd.f32 0.001143296, %v3827_v20  ;;  %v3914_v61 = vmul.f32 %v3898_v6, %v11088_v50  ;;  %v3639_v10 = vsub.f32 1.0, %v3638_v11  ;;  %5184 = vperm.xlu1 %7735, %v11564_v63  }
 0x42b   : > { %v11532_v49 = vmul.f32 %v11320_v15, %v11219_v4  ;;  %v3624_v34 = vmul.f32 %v11291_v60, %v11130_v55  ;;  %v3530_v33 = vsel %vm11480_vm3, %v11367_v19, %v3525_v32  ;;  %v3752_v16 = vadd.f32 0.112945676, %v3751_v8 }
 0x42c   : > { %v3506_v44 = vmul.f32 %v11306_v53, %v11067_v37  ;;  %v3699_v12 = vadd.f32 0.0036580483, %v3698_v57  ;;  %v14213_v58 = vmax.f32 %v10980_v1, 0.0  ;;  %v3571_v23 = vmul.f32 %v3570_v45, %v3546_v22 }
 0x42d   : > { %v3661_v4 = vadd.f32 0.05243302, %v3660_v43  ;;  %7869 = vrcp.f32 %v11526_v47  ;;  %v3793_v55 = vmul.f32 %v3792_v38, %v11416_v31  ;;  %v3869_v60 = vmul.f32 %v3868_v13, %v11476_v40 }
 0x42e   : > { %v3949_v50 = vsel %vm3221_vm1, %v14213_v58, %v3915_v26  ;;  %v3531_v15 = vmul.f32 %v3530_v33, %v3506_v44  ;;  %v3829_v19 = vmul.f32 %v3828_v14, %v11484_v59  ;;  %v14214_v37 = vmax.f32 %v10947_v3, 0.0 }
 0x42f   : > { %v3640_v53 = vmul.f32 %v11489_v62, %v3639_v10  ;;  %v3228_v28 = vmul.f32 0.5, %v11052_v25  ;;  %v3932_v46 = vmax.f32 %v11052_v25, 0.0  ;;  %v3753_v27 = vmul.f32 %v3752_v16, %v11411_v21 }
 0x430   : > { %v3948_v1 = vsel %vm3221_vm1, %v14214_v37, %v3914_v61  ;;  %v11557_v56 = vpop.eup %7867  ;;  %v3625_v42 = vadd.f32 1.1283791, %v3624_v34  ;;  %v3700_v51 = vmul.f32 %v3699_v12, %v11338_v48  ;;  %v3776_v5 = vmul.f32 2.1237322e-06, %v11416_v31 }
 0x431   : > { %v3962_v29 = vpack.c.bf16 %v3949_v50, %v3948_v1  ;;  %v7113_v3 = vclamps-f32 %v3571_v23, 1.0  ;;  %v3229_v20 = vmul.f32 0.5, %v11172_v41  ;;  %v3662_v6 = vmul.f32 %v3661_v4, %v11267_v30 }
 0x432   : > { %v3794_v11 = vadd.f32 0.4994258, %v3793_v55  ;;  %v3870_v32 = vadd.f32 0.014752088, %v3869_v60  ;;  %v3830_v43 = vadd.f32 0.014752088, %v3829_v19  ;;  %v3641_v39 = vadd.f32 %v11489_v62, %v3640_v53 }
 0x433   : > { %4052 = vmatmul.bf16.gmra.mxu1 %v3962_v29  ;;  %v7112_v8 = vclamps-f32 %v3531_v15, 1.0  ;;  %vm3643_vm11 = vweird.f32 %v11489_v62  ;;  %v11569_v22 = vpop.eup %7869  ;;  %v3678_v57 = vmul.f32 %v11557_v56, %v11495_v54  ;;  %v3736_v26 = vmul.f32 2.1237322e-06, %v11411_v21 }
 0x434   : > { %v3754_v45 = vadd.f32 0.4994258, %v3753_v27  ;;  %v3648_v38 = vand.u32 2147483648, %v11443_v36  ;;  %v3701_v13 = vadd.f32 0.05243302, %v3700_v51  ;;  %v3901_v14 = vadd.f32 1.0, %v7113_v3 }
 0x435   : > { %vm3642_vm6 = vweird.f32 %v11443_v36  ;;  %v3646_v61 = vand.u32 2147483647, %v11443_v36  ;;  %v3663_v10 = vadd.f32 0.18741608, %v3662_v6  ;;  %v3777_v34 = vadd.f32 0.00028619796, %v3776_v5 }
 0x436   : > { %vm11577_vm14 = vmor %vm3642_vm6, %vm3643_vm11  ;;  %v3795_v16 = vmul.f32 %v3794_v11, %v11416_v31  ;;  %v3871_v44 = vmul.f32 %v3870_v32, %v11476_v40  ;;  %v3831_v12 = vmul.f32 %v3830_v43, %v11484_v59  ;;  %v3900_v58 = vadd.f32 1.0, %v7112_v8 }
 0x437   : > { %v3645_v50 = vsel %vm11577_vm14, %v11489_v62, %v3641_v39  ;;  %v3718_v36 = vmul.f32 %v11569_v22, %v11526_v47  ;;  %v3679_v23 = vsub.f32 1.0, %v3678_v57  ;;  %v3737_v4 = vadd.f32 0.00028619796, %v3736_v26 }
 0x438   : > { %v3755_v55 = vmul.f32 %v3754_v45, %v11411_v21  ;;  %v3649_v60 = vor.u32 1.1754944e-38, %v3648_v38  ;;  %v3626_v15 = vmul.f32 %v3625_v42, %v11091_v52  ;;  %v3702_v19 = vmul.f32 %v3701_v13, %v11338_v48 }
 0x439   : > { %v3917_v37 = vmul.f32 %v3901_v14, %v3229_v20  ;;  %vm3647_vm4 = vcmp.eq.f32.partialorder %v3646_v61, 8.507059e+37  ;;  %v3778_v1 = vmul.f32 %v3777_v34, %v11416_v31  ;;  %v11593_v27 = vadd.f32 1.0, %v3795_v16  ;;  %v361_v16 = vld [vmem:[%s10689_s17 + $0x20] sm:$0xff]  ;;  %v14226_v61 = vld [vmem:[#allocation51_spill] sm:$0xff] }
 0x43a   : > { %v3650_v53 = vsel %vm3647_vm4, %v3649_v60, %v3645_v50  ;;  %v3872_v62 = vadd.f32 0.112945676, %v3871_v44  ;;  %v3933_v29 = vmax.f32 %v11172_v41, 0.0  ;;  %v3832_v51 = vadd.f32 0.112945676, %v3831_v12  ;;  %v11629_v44 = vld [vmem:[%s10689_s17 + $0x28] sm:$0xff]  ;;  %5281 = vperm.xlu0 %7734, %v361_v16  }
 0x43b   : > { %v3916_v5 = vmul.f32 %v3900_v58, %v3228_v28  ;;  %v14217_v3 = vmov 1   ;;  %v3719_v6 = vsub.f32 1.0, %v3718_v36  ;;  %v3664_v11 = vmul.f32 %v3663_v10, %v11267_v30  ;;  %5194 = vperm.xlu2 %7740, %v11629_v44  }
 0x43c   : > { %7737 = vset.pattern.permute.xlu1 %v14217_v3  ;;  %v3680_v52 = vmul.f32 %v11557_v56, %v3679_v23  ;;  %v3738_v42 = vmul.f32 %v3737_v4, %v11411_v21  ;;  %v11600_v20 = vadd.f32 1.0, %v3755_v55  ;;  %v3686_v32 = vand.u32 2147483647, %v11495_v54 }
 0x43d   : > { %5277 = vperm.xlu1 %7737, %v11564_v63   ;;  %v3688_v43 = vand.u32 2147483648, %v11495_v54  ;;  %v3951_v41 = vsel %vm3221_vm1, %v3933_v29, %v3917_v37  ;;  %v3651_v28 = vmul.f32 %v3650_v53, %v3626_v15  ;;  %v3703_v8 = vadd.f32 0.18741608, %v3702_v19 }
 0x43e   : > { %v3779_v39 = vadd.f32 0.0036580483, %v3778_v1  ;;  %7871 = vrcp.f32 %v11593_v27  ;;  %v3873_v30 = vmul.f32 %v3872_v62, %v11476_v40  ;;  %vm3683_vm2 = vweird.f32 %v11557_v56 }
 0x43f   : > { %v3833_v57 = vmul.f32 %v3832_v51, %v11484_v59  ;;  %v3950_v26 = vsel %vm3221_vm1, %v3932_v46, %v3916_v5  ;;  %v3720_v45 = vmul.f32 %v11569_v22, %v3719_v6  ;;  %v3681_v38 = vadd.f32 %v11557_v56, %v3680_v52 }
 0x440   : > { %v3739_v13 = vadd.f32 0.0036580483, %v3738_v42  ;;  %7873 = vrcp.f32 %v11600_v20  ;;  %v3963_v14 = vpack.c.bf16 %v3951_v41, %v3950_v26  ;;  %vm3682_vm0 = vweird.f32 %v11495_v54 }
 0x441   : > { %vm11619_vm10 = vcmp.eq.f32.partialorder %v3686_v32, 8.507059e+37  ;;  %v3816_v25 = vmul.f32 2.1237322e-06, %v11484_v59  ;;  %v7115_v10 = vclamps-f32 %v3651_v28, 1.0  ;;  %v3704_v34 = vmul.f32 %v3703_v8, %v11338_v48  ;;  %vm11633_vm13 = vmor %vm3682_vm0, %vm3683_vm2 }
 0x442   : > { %v3780_v46 = vmul.f32 %v3779_v39, %v11416_v31  ;;  %v3856_v33 = vmul.f32 2.1237322e-06, %v11476_v40  ;;  %v3874_v12 = vadd.f32 0.4994258, %v3873_v30  ;;  %v3834_v58 = vadd.f32 0.4994258, %v3833_v57 }
 0x443   : > { %4057 = vmatmul.bf16.gmra.mxu1 %v3963_v14  ;;  %v7114_v50 = vclamps-f32 %v11532_v49, 1.0  ;;  %v3721_v48 = vadd.f32 %v11569_v22, %v3720_v45  ;;  %vm3723_vm3 = vweird.f32 %v11569_v22  ;;  %v3685_v23 = vsel %vm11633_vm13, %v11557_v56, %v3681_v38  ;;  %v14224_v45 = vld [vmem:[#allocation49_spill] sm:$0xff] }
 0x444   : > { %v11641_v36 = vpop.eup %7871  ;;  %v3689_v4 = vor.u32 1.1754944e-38, %v3688_v43  ;;  %v3740_v55 = vmul.f32 %v3739_v13, %v11411_v21  ;;  %v3728_v60 = vand.u32 2147483648, %v11526_v47  ;;  %v3817_v49 = vadd.f32 0.00028619796, %v3816_v25  ;;  %v7583_v56 = vld [vmem:[%s13529_s3 + $0xb8] sm:$0xff] }
 0x445   : > { %7739 = vset.pattern.permute.xlu1 %v13936_v18  ;;  %v3903_v15 = vadd.f32 1.0, %v7115_v10  ;;  %vm3722_vm9 = vweird.f32 %v11526_v47  ;;  %v3726_v19 = vand.u32 2147483647, %v11526_v47  ;;  %v3705_v1 = vadd.f32 1.1283791, %v3704_v34  ;;  %4157 = vmatpush.bf16.msrb.mxu2 %v7583_v56 }
 0x446   : > { %5189 = vperm.xlu1 %7739, %v361_v16   ;;  %v11651_v37 = vpop.eup %7873  ;;  %v3781_v53 = vadd.f32 0.05243302, %v3780_v46  ;;  %v3857_v62 = vadd.f32 0.00028619796, %v3856_v33  ;;  %vm11655_vm8 = vmor %vm3722_vm9, %vm3723_vm3  ;;  %v3875_v29 = vmul.f32 %v3874_v12, %v11476_v40  ;;  %v3835_v51 = vmul.f32 %v3834_v58, %v11484_v59  ;;  %v14228_v46 = vld [vmem:[#allocation50_spill] sm:$0xff] }
 0x447   : > { %v3902_v5 = vadd.f32 1.0, %v7114_v50  ;;  %v3725_v47 = vsel %vm11655_vm8, %v11569_v22, %v3721_v48  ;;  %v3798_v6 = vmul.f32 %v11641_v36, %v11593_v27  ;;  %v3665_v52 = vadd.f32 1.1283791, %v3664_v11 }
 0x448   : > { %v3690_v42 = vsel %vm11619_vm10, %v3689_v4, %v3685_v23  ;;  %v3741_v32 = vadd.f32 0.05243302, %v3740_v55  ;;  %v3729_v43 = vor.u32 1.1754944e-38, %v3728_v60  ;;  %v3758_v41 = vmul.f32 %v11651_v37, %v11600_v20 }
 0x449   : > { %v3818_v28 = vmul.f32 %v3817_v49, %v11484_v59  ;;  %v3919_v8 = vmul.f32 %v3903_v15, %v11270_v9  ;;  %vm3727_vm7 = vcmp.eq.f32.partialorder %v3726_v19, 8.507059e+37  ;;  %v3706_v39 = vmul.f32 %v3705_v1, %v11310_v24  ;;  %v14227_v24 = vld [vmem:[#allocation9_spill] sm:$0xff]  ;;  %v14230_v19 = vld [vmem:[#allocation7_spill] sm:$0xff] }
 0x44a   : > { %v3858_v22 = vmul.f32 %v3857_v62, %v11476_v40  ;;  %v3730_v30 = vsel %vm3727_vm7, %v3729_v43, %v3725_v47  ;;  %v11674_v57 = vadd.f32 1.0, %v3875_v29  ;;  %v3782_v11 = vmul.f32 %v3781_v53, %v11416_v31  ;;  %v11703_v29 = vld [vmem:[%s10689_s17 + $0x38] sm:$0xff]  ;;  %v363_v43 = vld [vmem:[%s10689_s17 + $0x30] sm:$0xff] }
 0x44b   : > { %v11677_v26 = vadd.f32 1.0, %v3835_v51  ;;  %v3918_v38 = vmul.f32 %v3902_v5, %v14224_v45  ;;  %v3799_v13 = vsub.f32 1.0, %v3798_v6  ;;  %v14225_v14 = vmov 2   ;;  %5289 = vperm.xlu0 %7734, %v363_v43  }
 0x44c   : > { %7742 = vset.pattern.permute.xlu2 %v14225_v14  ;;  %v3666_v25 = vmul.f32 %v3665_v52, %v14226_v61  ;;  %v3742_v9 = vmul.f32 %v3741_v32, %v11411_v21  ;;  %v3934_v10 = vmax.f32 %v14227_v24, 0.0  ;;  %v3759_v34 = vsub.f32 1.0, %v3758_v41 }
 0x44d   : > { %5378 = vperm.xlu2 %7742, %v361_v16   ;;  %v14229_v33 = vmax.f32 %v14228_v46, 0.0  ;;  %v3731_v54 = vmul.f32 %v3730_v30, %v3706_v39  ;;  %v3819_v50 = vadd.f32 0.0036580483, %v3818_v28  ;;  %v3859_v48 = vadd.f32 0.0036580483, %v3858_v22 }
 0x44e   : > { %7741 = vset.pattern.permute.xlu1 %v14217_v3  ;;  %v3691_v58 = vmul.f32 %v3690_v42, %v3666_v25  ;;  %7875 = vrcp.f32 %v11674_v57  ;;  %v3783_v16 = vadd.f32 0.18741608, %v3782_v11  ;;  %v3952_v23 = vsel %vm3221_vm1, %v3934_v10, %v3918_v38  ;;  %v14238_v11 = vld [vmem:[#allocation36_spill] sm:$0xff] }
 0x44f   : > { %v3953_v12 = vsel %vm3221_vm1, %v14229_v33, %v3919_v8  ;;  %5285 = vperm.xlu1 %7741, %v11629_v44   ;;  %7877 = vrcp.f32 %v11677_v26  ;;  %v3800_v4 = vmul.f32 %v11641_v36, %v3799_v13  ;;  %v3743_v55 = vadd.f32 0.18741608, %v3742_v9  ;;  %v14233_v13 = vld [vmem:[#allocation53_spill] sm:$0xff]  ;;  %v14241_v9 = vld [vmem:[#allocation35_spill] sm:$0xff] }
 0x450   : > { %v3964_v60 = vpack.c.bf16 %v3953_v12, %v3952_v23  ;;  %v3760_v49 = vmul.f32 %v11651_v37, %v3759_v34  ;;  %v7117_v15 = vclamps-f32 %v3731_v54, 1.0  ;;  %v3233_v1 = vmul.f32 0.5, %v14230_v19 }
 0x451   : > { %v3820_v53 = vmul.f32 %v3819_v50, %v11484_v59  ;;  %v3860_v62 = vmul.f32 %v3859_v48, %v11476_v40  ;;  %v3784_v51 = vmul.f32 %v3783_v16, %v11416_v31  ;;  %v7116_v5 = vclamps-f32 %v3691_v58, 1.0  ;;  %v7582_v31 = vld [vmem:[%s13529_s3 + $0xb0] sm:$0xff] }
 0x452   : > { %v3801_v47 = vadd.f32 %v11641_v36, %v3800_v4  ;;  %vm3803_vm12 = vweird.f32 %v11641_v36  ;;  %v3744_v52 = vmul.f32 %v3743_v55, %v11411_v21  ;;  %vm3763_vm15 = vweird.f32 %v11651_v37  ;;  %4158 = vmatpush.bf16.msrb.mxu2 %v7582_v31  ;;  %v14236_v58 = vld [vmem:[#allocation28_spill] sm:$0xff]  ;;  %v11777_v31 = vld [vmem:[%s13530_s4 + $0x18] sm:$0xff] }
 0x453   : > { %4062 = vmatmul.bf16.gmra.mxu1 %v3964_v60  ;;  %v3766_v42 = vand.u32 2147483647, %v11600_v20  ;;  %v3808_v32 = vand.u32 2147483648, %v11593_v27  ;;  %v3761_v28 = vadd.f32 %v11651_v37, %v3760_v49  ;;  %v3905_v8 = vadd.f32 1.0, %v7117_v15  ;;  %v14237_v60 = vld [vmem:[#allocation2_spill] sm:$0xff]  ;;  %7746 = vset.pattern.permute.xlu0 %v14225_v14 }
 0x454   : > { %v11708_v6 = vpop.eup %7875  ;;  %vm3802_vm11 = vweird.f32 %v11593_v27  ;;  %v3806_v21 = vand.u32 2147483647, %v11593_v27  ;;  %vm3762_vm6 = vweird.f32 %v11600_v20  ;;  %v3768_v39 = vand.u32 2147483648, %v11600_v20  ;;  %5374 = vperm.xlu0 %7746, %v11564_v63   ;;  %v7581_v63 = vld [vmem:[%s13529_s3 + $0xa8] sm:$0xff] }
 0x455   : > { %7745 = vset.pattern.permute.xlu2 %v13936_v18  ;;  %v11719_v41 = vpop.eup %7877  ;;  %v3821_v22 = vadd.f32 0.05243302, %v3820_v53  ;;  %v3861_v30 = vadd.f32 0.05243302, %v3860_v62  ;;  %vm11729_vm14 = vmor %vm3802_vm11, %vm3803_vm12  ;;  %v3785_v45 = vadd.f32 1.1283791, %v3784_v51  ;;  %v3878_v20 = vmul.f32 %v11708_v6, %v11674_v57 }
 0x456   : > { %5204 = vperm.xlu2 %7745, %v11703_v29   ;;  %v3904_v38 = vadd.f32 1.0, %v7116_v5  ;;  %v3805_v27 = vsel %vm11729_vm14, %v11641_v36, %v3801_v47  ;;  %v3232_v61 = vmul.f32 0.5, %v14233_v13  ;;  %v3937_v25 = vmax.f32 %v14230_v19, 0.0  ;;  %vm11744_vm4 = vmor %vm3762_vm6, %vm3763_vm15  ;;  %4159 = vmatpush.bf16.msrb.mxu2 %v7581_v63 }
 0x457   : > { %7743 = vset.pattern.permute.xlu1 %v14225_v14  ;;  %v3838_v24 = vmul.f32 %v11719_v41, %v11677_v26  ;;  %v3809_v10 = vor.u32 1.1754944e-38, %v3808_v32  ;;  %v3745_v36 = vadd.f32 1.1283791, %v3744_v52  ;;  %v3921_v34 = vmul.f32 %v3905_v8, %v3233_v1 }
 0x458   : > { %5382 = vperm.xlu1 %7743, %v11629_v44   ;;  %v3765_v44 = vsel %vm11744_vm4, %v11651_v37, %v3761_v28  ;;  %vm3807_vm2 = vcmp.eq.f32.partialorder %v3806_v21, 8.507059e+37  ;;  %v3769_v46 = vor.u32 1.1754944e-38, %v3768_v39  ;;  %v3822_v33 = vmul.f32 %v3821_v22, %v11484_v59  ;;  %v7580_v21 = vld [vmem:[%s13529_s3 + $0xa0] sm:$0xff] }
 0x459   : > { %v3862_v12 = vmul.f32 %v3861_v30, %v11476_v40  ;;  %v3810_v54 = vsel %vm3807_vm2, %v3809_v10, %v3805_v27  ;;  %vm3767_vm0 = vcmp.eq.f32.partialorder %v3766_v42, 8.507059e+37  ;;  %v3786_v50 = vmul.f32 %v3785_v45, %v14236_v58 }
 0x45a   : > { %v3920_v48 = vmul.f32 %v3904_v38, %v3232_v61  ;;  %v3879_v16 = vsub.f32 1.0, %v3878_v20  ;;  %v3770_v23 = vsel %vm3767_vm0, %v3769_v46, %v3765_v44  ;;  %v3839_v4 = vsub.f32 1.0, %v3838_v24  ;;  %v7300_v20 = vld [vmem:[%s13530_s4] sm:$0xf]  ;;  %4160 = vmatpush.bf16.msrb.mxu2 %v7580_v21 }
 0x45b   : > { %v3936_v55 = vmax.f32 %v14233_v13, 0.0  ;;  %v3746_v49 = vmul.f32 %v3745_v36, %v14237_v60  ;;  %v3955_v37 = vsel %vm3221_vm1, %v3937_v25, %v3921_v34  ;;  %v3811_v15 = vmul.f32 %v3810_v54, %v3786_v50  ;;  %v7579_v34 = vld [vmem:[%s13529_s3 + $0x98] sm:$0xff] }
 0x45c   : > { %v3823_v19 = vadd.f32 0.18741608, %v3822_v33  ;;  %v3863_v1 = vadd.f32 0.18741608, %v3862_v12  ;;  %v3880_v56 = vmul.f32 %v11708_v6, %v3879_v16  ;;  %v3840_v51 = vmul.f32 %v11719_v41, %v3839_v4  ;;  %5390 = vperm.xlu0 %7746, %v11703_v29  }
 0x45d   : > { %v3771_v53 = vmul.f32 %v3770_v23, %v3746_v49  ;;  %v3954_v62 = vsel %vm3221_vm1, %v3936_v55, %v3920_v48  ;;  %v7119_v47 = vclamps-f32 %v3811_v15, 1.0  ;;  %v3846_v42 = vand.u32 2147483647, %v11677_v26 }
 0x45e   : > { %7748 = vset.pattern.permute.xlu2 %v14225_v14  ;;  %v3965_v5 = vpack.c.bf16 %v3955_v37, %v3954_v62  ;;  %v3824_v52 = vmul.f32 %v3823_v19, %v11484_v59  ;;  %v3864_v32 = vmul.f32 %v3863_v1, %v11476_v40  ;;  %vm3883_vm10 = vweird.f32 %v11708_v6  ;;  %4161 = vmatpush.bf16.msrb.mxu2 %v7579_v34  ;;  %v7577_v62 = vld [vmem:[%s13529_s3 + $0x88] sm:$0xff] }
 0x45f   : > { %5386 = vperm.xlu2 %7748, %v363_v43   ;;  %v7118_v28 = vclamps-f32 %v3771_v53, 1.0  ;;  %v4893_v59 = vunpack.c.l.b16 %v11777_v31  ;;  %v3841_v8 = vadd.f32 %v11719_v41, %v3840_v51  ;;  %vm3843_vm13 = vweird.f32 %v11719_v41  ;;  %v366_v53 = vld [vmem:[%s10689_s17 + $0x48] sm:$0xff]  ;;  %v7576_v51 = vld [vmem:[%s13529_s3 + $0x80] sm:$0xff] }
 0x460   : > { %7744 = vset.pattern.permute.xlu1 %v13936_v18  ;;  %v3888_v40 = vand.u32 2147483648, %v11674_v57  ;;  %vm4929_vm3 = vcmask 1043456   ;;  %v3907_v39 = vadd.f32 1.0, %v7119_v47  ;;  %vm3882_vm9 = vweird.f32 %v11674_v57 }
 0x461   : > { %5199 = vperm.xlu1 %7744, %v363_v43   ;;  %v3881_v43 = vadd.f32 %v11708_v6, %v3880_v56  ;;  %v3886_v22 = vand.u32 2147483647, %v11674_v57  ;;  %v4899_v30 = vpack.c.b16 %v4893_v59, %v4893_v59  ;;  %v3235_v45 = vmul.f32 0.5, %v14238_v11  ;;  %vm11795_vm7 = vmor %vm3882_vm9, %vm3883_vm10  ;;  %v7601_v57 = vld [vmem:[%s13530_s4 + $0x8] sm:$0xf0] }
 0x462   : > { %vm3842_vm8 = vweird.f32 %v11677_v26  ;;  %v3848_v38 = vand.u32 2147483648, %v11677_v26  ;;  %v3865_v13 = vadd.f32 1.1283791, %v3864_v32  ;;  %v3906_v26 = vadd.f32 1.0, %v7118_v28  ;;  %v11861_v28 = vld [vmem:[%s10689_s17 + $0x40] sm:$0xff] }
 0x463   : > { %4067 = vmatmul.bf16.gmra.mxu1 %v3965_v5  ;;  %v3885_v61 = vsel %vm11795_vm7, %v11708_v6, %v3881_v43  ;;  %v4931_v25 = vsel %vm4929_vm3, %v4899_v30, 0  ;;  %v3234_v24 = vmul.f32 0.5, %v14241_v9  ;;  %v3825_v10 = vadd.f32 1.1283791, %v3824_v52  ;;  %vm11814_vm12 = vmor %vm3842_vm8, %vm3843_vm13  ;;  %v14244_v30 = vld [vmem:[#allocation37_spill] sm:$0xff] }
 0x464   : > { %v3889_v44 = vor.u32 1.1754944e-38, %v3888_v40  ;;  %v3845_v6 = vsel %vm11814_vm12, %v11719_v41, %v3841_v8  ;;  %v3923_v46 = vmul.f32 %v3907_v39, %v3235_v45  ;;  %vm3887_vm15 = vcmp.eq.f32.partialorder %v3886_v22, 8.507059e+37  ;;  %4945 = vmatpush.bf16.msra.mxu1 %v4931_v25  ;;  %v7578_v41 = vld [vmem:[%s13529_s3 + $0x90] sm:$0xff] }
 0x465   : > { %v7301_v33 = vor.u32 %v7601_v57, %v7300_v20  ;;  %v3849_v12 = vor.u32 1.1754944e-38, %v3848_v38  ;;  %v3939_v58 = vmax.f32 %v14238_v11, 0.0  ;;  %vm3847_vm11 = vcmp.eq.f32.partialorder %v3846_v42, 8.507059e+37  ;;  %4162 = vmatpush.bf16.msrb.mxu2 %v7578_v41  ;;  %v7946_v11 = vld [vmem:[%s10852_s26 + $0x18] sm:$0xff]  ;;  %v7952_v41 = vld [vmem:[%s10852_s26 + $0x48] sm:$0xff] }
 0x466   : > { %v3890_v54 = vsel %vm3887_vm15, %v3889_v44, %v3885_v61  ;;  %v3866_v50 = vmul.f32 %v3865_v13, %v11441_v2  ;;  %v3922_v48 = vmul.f32 %v3906_v26, %v3234_v24  ;;  %v3938_v23 = vmax.f32 %v14241_v9, 0.0  ;;  %v11838_v2 = vld [vmem:[%s13533_s7] sm:$0xff]  ;;  %v7948_v26 = vld [vmem:[%s10852_s26 + $0x28] sm:$0xff]  ;;  %v368_v9 = vld [vmem:[%s10689_s17 + $0x58] sm:$0xff] }
 0x467   : > { %7750 = vset.pattern.permute.xlu2 %v13936_v18  ;;  %v3850_v16 = vsel %vm3847_vm11, %v3849_v12, %v3845_v6  ;;  %v3957_v4 = vsel %vm3221_vm1, %v3939_v58, %v3923_v46  ;;  %v11841_v60 = vperm.slane %v11838_v2, 3  ;;  %v3237_v47 = vmul.f32 0.5, %v11419_v17  ;;  %v7947_v13 = vld [vmem:[%s10852_s26 + $0x20] sm:$0xff]  ;;  %v367_v44 = vld [vmem:[%s10689_s17 + $0x50] sm:$0xff]  ;;  %v7950_v46 = vld [vmem:[%s10852_s26 + $0x38] sm:$0xff] }
 0x468   : > { %v3891_v55 = vmul.f32 %v3890_v54, %v3866_v50  ;;  %4946 = vmatpush.bf16.msra.mxu1 %v7301_v33  ;;  %v3956_v37 = vsel %vm3221_vm1, %v3938_v23, %v3922_v48  ;;  %5214 = vperm.xlu2 %7750, %v366_v53   ;;  %v3236_v42 = vmul.f32 0.5, %v11433_v35  ;;  %v3941_v59 = vmax.f32 %v11419_v17, 0.0  ;;  %v7949_v6 = vld [vmem:[%s10852_s26 + $0x30] sm:$0xff] }
 0x469   : > { %7747 = vset.pattern.permute.xlu1 %v14217_v3  ;;  %v3966_v15 = vpack.c.bf16 %v3957_v4, %v3956_v37  ;;  %4163 = vmatpush.bf16.msrb.mxu2 %v7577_v62  ;;  %v3940_v21 = vmax.f32 %v11433_v35, 0.0  ;;  %v7945_v35 = vld [vmem:[%s10852_s26 + $0x10] sm:$0xff]  ;;  %v11903_v61 = vpack.c.bf16 %v7948_v26, %v7947_v13  ;;  %v11926_v33 = vpack.c.bf16 %v7950_v46, %v7949_v6  ;;  %v7587_v26 = vld [vmem:[%s13529_s3 + $0xd8] sm:$0xff]  ;;  %v7585_v46 = vld [vmem:[%s13529_s3 + $0xc8] sm:$0xff] }
 0x46a   : > { %5293 = vperm.xlu1 %7747, %v11703_v29   ;;  %v3826_v29 = vmul.f32 %v3825_v10, %v11446_v7  ;;  %v7121_v7 = vclamps-f32 %v3891_v55, 1.0  ;;  %v11885_v45 = vpack.c.bf16 %v7946_v11, %v7945_v35  ;;  %v369_v55 = vld [vmem:[%s10689_s17 + $0x60] sm:$0xff] }
 0x46b   : > { %14246 = vst [vmem:[#allocation38_spill] sm:$0xff] %v11903_v61 }
 0x46c   : > { %v3851_v49 = vmul.f32 %v3850_v16, %v3826_v29  ;;  %v3909_v5 = vadd.f32 1.0, %v7121_v7  ;;  %14245 = vst [vmem:[#allocation41_spill] sm:$0xff] %v11885_v45  ;;  %v7951_v16 = vld [vmem:[%s10852_s26 + $0x40] sm:$0xff] }
 0x46d   : > { %4164 = vmatpush.bf16.msrb.mxu2 %v7576_v51  ;;  %14247 = vst [vmem:[#allocation3_spill] sm:$0xff] %v11926_v33  ;;  %v11948_v23 = vpack.c.bf16 %v7952_v41, %v7951_v16  ;;  %v7584_v41 = vld [vmem:[%s13529_s3 + $0xc0] sm:$0xff] }
 0x46e   : > { %v7120_v56 = vclamps-f32 %v3851_v49, 1.0  ;;  %v3925_v32 = vmul.f32 %v3909_v5, %v3237_v47 }
 0x46f   : > { %14248 = vst [vmem:[#allocation40_spill] sm:$0xff] %v11948_v23 }
 0x470   : > { %v4043_v19 = vpop.f32.mrf.mxu1  ;;  %v3908_v52 = vadd.f32 1.0, %v7120_v56  ;;  %7752 = vset.pattern.permute.xlu2 %v14225_v14  ;;  %v3959_v39 = vsel %vm3221_vm1, %v3941_v59, %v3925_v32  ;;  %v7956_v32 = vld [vmem:[%s10852_s26 + $0x68] sm:$0xff] }
 0x471   : > { %v11847_v1 = vadd.f32 %v4043_v19, %v11841_v60  ;;  %v7953_v19 = vld [vmem:[%s10852_s26 + $0x50] sm:$0xff] }
 0x472   : > { %7749 = vset.pattern.permute.xlu1 %v13936_v18  ;;  %v3924_v8 = vmul.f32 %v3908_v52, %v3236_v42  ;;  %v7955_v42 = vld [vmem:[%s10852_s26 + $0x60] sm:$0xff] }
 0x473   : > { %4072 = vmatmul.bf16.gmra.mxu1 %v3966_v15  ;;  %5102 = vrot.lane.b32.xlu1 %v11847_v1, %s7980_s22  ;;  %v370_v15 = vld [vmem:[%s10689_s17 + $0x68] sm:$0xff] }
 0x474   : > { %v3958_v17 = vsel %vm3221_vm1, %v3940_v21, %v3924_v8  ;;  %v372_v8 = vld [vmem:[%s10689_s17 + $0x78] sm:$0xff]  ;;  %v7590_v21 = vld [vmem:[%s13529_s3 + $0xf0] sm:$0xff]  ;;  %vm5150_vm1 = vcmask 523264  }
 0x475   : > { %v3967_v22 = vpack.c.bf16 %v3959_v39, %v3958_v17  ;;  %v7589_v39 = vld [vmem:[%s13529_s3 + $0xe8] sm:$0xff] }
 0x478   : > { %v4045_v63 = vpop.f32.mrf.mxu1 }
 0x479   : > { %v11864_v43 = vadd.f32 %v4045_v63, %v11841_v60  ;;  %v11991_v63 = vpack.c.bf16 %v7956_v32, %v7955_v42 }
 0x47b   : > { %5209 = vperm.xlu1 %7749, %v11861_v28   ;;  %5104 = vrot.lane.b32.xlu2 %v11864_v43, %s7980_s22  ;;  %v4083_v40 = vpack.c.bf16 %v11864_v43, %v11847_v1 }
 0x47d   : > { %4165 = vmatmul.bf16.vlgmr.msrb.gmra.mxu2 %v4083_v40  ;;  %v371_v40 = vld [vmem:[%s10689_s17 + $0x70] sm:$0xff] }
 0x483   : > { %4077 = vmatmul.bf16.gmra.mxu1 %v3967_v22  ;;  %5394 = vperm.xlu2 %7752, %v11861_v28  }
 0x484   : > { %7751 = vset.pattern.permute.xlu1 %v14217_v3 }
 0x48b   : > { %7755 = vset.pattern.permute.xlu2 %v13936_v18 }
 0x493   : > { %7310 = vmatmul.msk.bf16.vlgmr.msra.gmra.mxu1 %vm3063_vm5, %v14244_v30 }
 0x49f   : > { %v4048_v0 = vpop.f32.mrf.mxu1 }
 0x4a0   : > { %v11888_v38 = vadd.f32 %v4048_v0, %v11841_v60  ;;  %v7958_v0 = vld [vmem:[%s10852_s26 + $0x78] sm:$0xff] }
 0x4a2   : > { %5106 = vrot.lane.b32.xlu1 %v11888_v38, %s7980_s22 }
 0x4a3   : > { %7311 = vmatmul.msk.bf16.gmra.mxu1 %vm3063_vm5, %v11885_v45 }
 0x4a7   : > { %v4050_v27 = vpop.f32.mrf.mxu1 }
 0x4a8   : > { %v11895_v20 = vadd.f32 %v4050_v27, %v11841_v60 }
 0x4aa   : > { %5301 = vperm.xlu1 %7751, %v366_v53   ;;  %5108 = vrot.lane.b32.xlu2 %v11895_v20, %s7980_s22  ;;  %v4084_v57 = vpack.c.bf16 %v11895_v20, %v11888_v38 }
 0x4ac   : > { %4170 = vmatmul.bf16.gmra.mxu2 %v4084_v57  ;;  %v7588_v57 = vld [vmem:[%s13529_s3 + $0xe0] sm:$0xff] }
 0x4b0   : > { %v4053_v25 = vpop.f32.mrf.mxu1 }
 0x4b1   : > { %v11910_v10 = vadd.f32 %v4053_v25, %v11841_v60 }
 0x4b2   : > { %7753 = vset.pattern.permute.xlu1 %v14225_v14  ;;  %5224 = vperm.xlu2 %7755, %v368_v9  }
 0x4b3   : > { %7312 = vmatmul.msk.bf16.gmra.mxu1 %vm3063_vm5, %v11903_v61  ;;  %5398 = vperm.xlu1 %7753, %v366_v53   ;;  %v7954_v53 = vld [vmem:[%s10852_s26 + $0x58] sm:$0xff] }
 0x4b4   : > { %v11970_v62 = vpack.c.bf16 %v7954_v53, %v7953_v19 }
 0x4b8   : > { %v4055_v24 = vpop.f32.mrf.mxu1 }
 0x4b9   : > { %v11913_v36 = vadd.f32 %v4055_v24, %v11841_v60 }
 0x4ba   : > { %5110 = vrot.lane.b32.xlu2 %v11910_v10, %s7980_s22 }
 0x4bb   : > { %5112 = vrot.lane.b32.xlu0 %v11913_v36, %s7980_s22  ;;  %v4085_v34 = vpack.c.bf16 %v11913_v36, %v11910_v10  ;;  %7754 = vset.pattern.permute.xlu1 %v13936_v18 }
 0x4bc   : > { %5219 = vperm.xlu1 %7754, %v367_v44   ;;  %7757 = vset.pattern.permute.xlu2 %v14225_v14 }
 0x4bd   : > { %4175 = vmatmul.bf16.gmra.mxu2 %v4085_v34 }
 0x4c0   : > { %v4058_v12 = vpop.f32.mrf.mxu1 }
 0x4c1   : > { %v11929_v54 = vadd.f32 %v4058_v12, %v11841_v60 }
 0x4c2   : > { %5402 = vperm.xlu2 %7757, %v367_v44  }
 0x4c3   : > { %7313 = vmatmul.msk.bf16.gmra.mxu1 %vm3063_vm5, %v11926_v33  ;;  %5406 = vperm.xlu0 %7746, %v368_v9  }
 0x4c4   : > { %5114 = vrot.lane.b32.xlu1 %v11929_v54, %s7980_s22 }
 0x4c5   : > { %7756 = vset.pattern.permute.xlu1 %v14217_v3 }
 0x4c8   : > { %v4060_v58 = vpop.f32.mrf.mxu1 }
 0x4c9   : > { %v11937_v50 = vadd.f32 %v4060_v58, %v11841_v60 }
 0x4ca   : > { %7760 = vset.pattern.permute.xlu2 %v13936_v18 }
 0x4cb   : > { %7758 = vset.pattern.permute.xlu0 %v14217_v3  ;;  %v4086_v48 = vpack.c.bf16 %v11937_v50, %v11929_v54  ;;  %5116 = vrot.lane.b32.xlu2 %v11937_v50, %s7980_s22 }
 0x4cc   : > { %5297 = vperm.xlu0 %7758, %v11861_v28   ;;  %5309 = vperm.xlu1 %7756, %v368_v9   ;;  %v7591_v28 = vld [vmem:[%s13529_s3 + $0xf8] sm:$0xff]  ;;  %v7586_v9 = vld [vmem:[%s13529_s3 + $0xd0] sm:$0xff] }
 0x4cd   : > { %4180 = vmatmul.bf16.gmra.mxu2 %v4086_v48  ;;  %4296 = vmatpush.bf16.msrb.mxu3 %v7591_v28 }
 0x4d0   : > { %v4063_v29 = vpop.f32.mrf.mxu1 }
 0x4d1   : > { %v11951_v4 = vadd.f32 %v4063_v29, %v11841_v60  ;;  %4297 = vmatpush.bf16.msrb.mxu3 %v7590_v21 }
 0x4d3   : > { %14249 = vst [vmem:[#allocation73_spill] sm:$0xff] %v11951_v4  ;;  %7314 = vmatmul.msk.bf16.gmra.mxu1 %vm3063_vm5, %v11948_v23  ;;  %5118 = vrot.lane.b32.xlu2 %v11951_v4, %s7980_s22 }
 0x4d4   : > { %7759 = vset.pattern.permute.xlu1 %v13936_v18 }
 0x4d5   : > { %5229 = vperm.xlu1 %7759, %v369_v55   ;;  %4298 = vmatpush.bf16.msrb.mxu3 %v7589_v39 }
 0x4d8   : > { %v4065_v49 = vpop.f32.mrf.mxu1 }
 0x4d9   : > { %v11960_v37 = vadd.f32 %v4065_v49, %v11841_v60  ;;  %4299 = vmatpush.bf16.msrb.mxu3 %v7588_v57 }
 0x4db   : > { %5120 = vrot.lane.b32.xlu0 %v11960_v37, %s7980_s22  ;;  %v4087_v7 = vpack.c.bf16 %v11960_v37, %v11951_v4  ;;  %5234 = vperm.xlu2 %7760, %v370_v15  }
 0x4dd   : > { %4185 = vmatmul.bf16.gmra.mxu2 %v4087_v7  ;;  %7761 = vset.pattern.permute.xlu1 %v14217_v3 }
 0x4de   : > { %5317 = vperm.xlu1 %7761, %v370_v15   ;;  %4300 = vmatpush.bf16.msrb.mxu3 %v7587_v26 }
 0x4e0   : > { %v4068_v56 = vpop.f32.mrf.mxu1 }
 0x4e1   : > { %v11976_v51 = vadd.f32 %v4068_v56, %v11841_v60 }
 0x4e2   : > { %4301 = vmatpush.bf16.msrb.mxu3 %v7586_v9 }
 0x4e3   : > { %7315 = vmatmul.msk.bf16.gmra.mxu1 %vm3063_vm5, %v11970_v62  ;;  %5305 = vperm.xlu0 %7758, %v367_v44   ;;  %14250 = vst [vmem:[#allocation25_spill] sm:$0xff] %v11976_v51  ;;  %v12040_v44 = vperm.slane %v11838_v2, 4 }
 0x4e4   : > { %7762 = vset.pattern.permute.xlu2 %v14225_v14 }
 0x4e5   : > { %5410 = vperm.xlu2 %7762, %v369_v55  }
 0x4e6   : > { %5122 = vrot.lane.b32.xlu1 %v11976_v51, %s7980_s22  ;;  %4302 = vmatpush.bf16.msrb.mxu3 %v7585_v46 }
 0x4e7   : > { %7763 = vset.pattern.permute.xlu1 %v14225_v14 }
 0x4e8   : > { %v4070_v5 = vpop.f32.mrf.mxu1 }
 0x4e9   : > { %v11982_v47 = vadd.f32 %v4070_v5, %v11841_v60 }
 0x4ea   : > { %4303 = vmatpush.bf16.msrb.mxu3 %v7584_v41 }
 0x4eb   : > { %14251 = vst [vmem:[#allocation90_spill] sm:$0xff] %v11982_v47  ;;  %5313 = vperm.xlu0 %7758, %v369_v55   ;;  %v4088_v52 = vpack.c.bf16 %v11982_v47, %v11976_v51 }
 0x4ed   : > { %5124 = vrot.lane.b32.xlu2 %v11982_v47, %s7980_s22  ;;  %4190 = vmatmul.bf16.gmra.mxu2 %v4088_v52 }
 0x4ee   : > { %7765 = vset.pattern.permute.xlu2 %v13936_v18  ;;  %5414 = vperm.xlu1 %7763, %v370_v15  }
 0x4f0   : > { %v4073_v59 = vpop.f32.mrf.mxu1 }
 0x4f1   : > { %v12008_v22 = vadd.f32 %v4073_v59, %v11841_v60 }
 0x4f3   : > { %7316 = vmatmul.msk.bf16.gmra.mxu1 %vm3063_vm5, %v11991_v63  ;;  %14252 = vst [vmem:[#allocation89_spill] sm:$0xff] %v12008_v22 }
 0x4f5   : > { %5244 = vperm.xlu2 %7765, %v372_v8  }
 0x4f6   : > { %7764 = vset.pattern.permute.xlu1 %v13936_v18  ;;  %v7957_v18 = vld [vmem:[%s10852_s26 + $0x70] sm:$0xff] }
 0x4f7   : > { %5239 = vperm.xlu1 %7764, %v371_v40   ;;  %v12022_v27 = vpack.c.bf16 %v7958_v0, %v7957_v18 }
 0x4f8   : > { %v4075_v17 = vpop.f32.mrf.mxu1 }
 0x4f9   : > { %v12011_v35 = vadd.f32 %v4075_v17, %v11841_v60 }
 0x4fb   : > { %14253 = vst [vmem:[#allocation84_spill] sm:$0xff] %v12011_v35  ;;  %5128 = vrot.lane.b32.xlu0 %v12011_v35, %s7980_s22  ;;  %v4089_v11 = vpack.c.bf16 %v12011_v35, %v12008_v22 }
 0x4fd   : > { %5126 = vrot.lane.b32.xlu2 %v12008_v22, %s7980_s22  ;;  %4195 = vmatmul.bf16.gmra.mxu2 %v4089_v11 }
 0x4fe   : > { %7767 = vset.pattern.permute.xlu2 %v14225_v14 }
 0x4ff   : > { %7766 = vset.pattern.permute.xlu1 %v14217_v3 }
 0x500   : > { %v4078_v13 = vpop.f32.mrf.mxu1  ;;  %5325 = vperm.xlu1 %7766, %v372_v8   ;;  %v4166_v25 = vpop.f32.mrf.mxu2 }
 0x501   : > { %v12037_v24 = vadd.f32 %v4078_v13, %v11841_v60  ;;  %v4167_v48 = vadd.f32 %v4166_v25, %v12040_v44 }
 0x503   : > { %7317 = vmatmul.msk.bf16.gmra.mxu1 %vm3063_vm5, %v12022_v27  ;;  %5321 = vperm.xlu0 %7758, %v371_v40   ;;  %14254 = vst [vmem:[#allocation85_spill] sm:$0xff] %v12037_v24 }
 0x505   : > { %5418 = vperm.xlu2 %7767, %v371_v40  }
 0x508   : > { %v4080_v34 = vpop.f32.mrf.mxu1  ;;  %5130 = vrot.lane.b32.xlu1 %v12037_v24, %s7980_s22  ;;  %v4168_v12 = vpop.f32.mrf.mxu2 }
 0x509   : > { %v12043_v6 = vadd.f32 %v4080_v34, %v11841_v60  ;;  %v4169_v16 = vadd.f32 %v4168_v12, %v12040_v44 }
 0x50b   : > { %14255 = vst [vmem:[#allocation88_spill] sm:$0xff] %v12043_v6  ;;  %7768 = vset.pattern.permute.xlu0 %v14225_v14  ;;  %v4090_v58 = vpack.c.bf16 %v12043_v6, %v12037_v24  ;;  %v4207_v60 = vmax.f32 %v4169_v16, 0.0  ;;  %v4206_v14 = vmax.f32 %v4167_v48, 0.0 }
 0x50c   : > { %5422 = vperm.xlu0 %7768, %v372_v8  }
 0x50d   : > { %5132 = vrot.lane.b32.xlu2 %v12043_v6, %s7980_s22  ;;  %4200 = vmatmul.bf16.gmra.mxu2 %v4090_v58  ;;  %v4222_v29 = vpack.c.bf16 %v4207_v60, %v4206_v14 }
 0x50e   : > { %7769 = vset.pattern.permute.xlu2 %v14217_v3 }
 0x50f   : > { %4304 = vmatmul.bf16.vlgmr.msrb.gmra.mxu3 %v4222_v29  ;;  %v7599_v29 = vld [vmem:[%s13531_s5 + $0x38] sm:$0xff] }
 0x510   : > { %4434 = vmatpush.bf16.msrb.mxu0 %v7599_v29  ;;  %v7608_v29 = vld [vmem:[%s13529_s3 + $0x128] sm:$0xff] }
 0x52f   : > { %v4171_v55 = vpop.f32.mrf.mxu2 }
 0x530   : > { %v4172_v49 = vadd.f32 %v4171_v55, %v12040_v44 }
 0x532   : > { %v4208_v19 = vmax.f32 %v4172_v49, 0.0  ;;  %v7598_v49 = vld [vmem:[%s13531_s5 + $0x30] sm:$0xff] }
 0x533   : > { %4435 = vmatpush.bf16.msrb.mxu0 %v7598_v49 }
 0x537   : > { %v4173_v15 = vpop.f32.mrf.mxu2 }
 0x538   : > { %v4174_v7 = vadd.f32 %v4173_v15, %v12040_v44  ;;  %v4894_v15 = vunpack.c.h.b16 %v11777_v31 }
 0x53a   : > { %v4209_v53 = vmax.f32 %v4174_v7, 0.0  ;;  %v7597_v7 = vld [vmem:[%s13531_s5 + $0x28] sm:$0xff] }
 0x53b   : > { %4436 = vmatpush.bf16.msrb.mxu0 %v7597_v7 }
 0x53c   : > { %v4223_v56 = vpack.c.bf16 %v4209_v53, %v4208_v19  ;;  %v4900_v19 = vpack.c.b16 %v4894_v15, %v4894_v15 }
 0x53e   : > { %4309 = vmatmul.bf16.gmra.mxu3 %v4223_v56  ;;  %v4934_v56 = vsel %vm4929_vm3, %v4900_v19, 0 }
 0x53f   : > { %4994 = vmatpush.bf16.msra.mxu2 %v4934_v56 }
 0x540   : > { %v4176_v5 = vpop.f32.mrf.mxu2 }
 0x541   : > { %v4177_v52 = vadd.f32 %v4176_v5, %v12040_v44 }
 0x543   : > { %v4210_v28 = vmax.f32 %v4177_v52, 0.0 }
 0x548   : > { %v4178_v42 = vpop.f32.mrf.mxu2 }
 0x549   : > { %v4179_v32 = vadd.f32 %v4178_v42, %v12040_v44  ;;  %v7596_v42 = vld [vmem:[%s13531_s5 + $0x20] sm:$0xff] }
 0x54a   : > { %4437 = vmatpush.bf16.msrb.mxu0 %v7596_v42 }
 0x54b   : > { %v4211_v59 = vmax.f32 %v4179_v32, 0.0 }
 0x54d   : > { %v4224_v8 = vpack.c.bf16 %v4211_v59, %v4210_v28  ;;  %v7595_v59 = vld [vmem:[%s13531_s5 + $0x18] sm:$0xff] }
 0x54e   : > { %4438 = vmatpush.bf16.msrb.mxu0 %v7595_v59 }
 0x54f   : > { %4314 = vmatmul.bf16.gmra.mxu3 %v4224_v8 }
 0x550   : > { %v4181_v40 = vpop.f32.mrf.mxu2 }
 0x551   : > { %v4182_v21 = vadd.f32 %v4181_v40, %v12040_v44  ;;  %v7594_v40 = vld [vmem:[%s13531_s5 + $0x10] sm:$0xff] }
 0x552   : > { %4439 = vmatpush.bf16.msrb.mxu0 %v7594_v40 }
 0x553   : > { %v4212_v11 = vmax.f32 %v4182_v21, 0.0  ;;  %v7593_v21 = vld [vmem:[%s13531_s5 + $0x8] sm:$0xff] }
 0x556   : > { %4440 = vmatpush.bf16.msrb.mxu0 %v7593_v21 }
 0x558   : > { %v4183_v39 = vpop.f32.mrf.mxu2 }
 0x559   : > { %v4184_v17 = vadd.f32 %v4183_v39, %v12040_v44 }
 0x55b   : > { %v4213_v18 = vmax.f32 %v4184_v17, 0.0 }
 0x55d   : > { %v4225_v0 = vpack.c.bf16 %v4213_v18, %v4212_v11 }
 0x55f   : > { %4319 = vmatmul.bf16.gmra.mxu3 %v4225_v0  ;;  %v7592_v0 = vld [vmem:[%s13531_s5] sm:$0xff] }
 0x560   : > { %v4186_v57 = vpop.f32.mrf.mxu2  ;;  %4441 = vmatpush.bf16.msrb.mxu0 %v7592_v0  ;;  %v7302_v0 = vld [vmem:[%s13530_s4 + $0xc] sm:$0xf0] }
 0x561   : > { %v4187_v13 = vadd.f32 %v4186_v57, %v12040_v44  ;;  %v7610_v57 = vld [vmem:[%s13529_s3 + $0x138] sm:$0xff] }
 0x563   : > { %v4214_v9 = vmax.f32 %v4187_v13, 0.0 }
 0x564   : > { %5614 = vmatpush.bf16.msra.mxu0 %v7610_v57 }
 0x568   : > { %v4188_v26 = vpop.f32.mrf.mxu2 }
 0x569   : > { %v4189_v25 = vadd.f32 %v4188_v26, %v12040_v44 }
 0x56b   : > { %v4215_v34 = vmax.f32 %v4189_v25, 0.0  ;;  %v12105_v25 = vperm.slane %v11838_v2, 5 }
 0x56d   : > { %v4226_v46 = vpack.c.bf16 %v4215_v34, %v4214_v9 }
 0x56f   : > { %4324 = vmatmul.bf16.gmra.mxu3 %v4226_v46 }
 0x570   : > { %v4191_v12 = vpop.f32.mrf.mxu2 }
 0x571   : > { %v4192_v58 = vadd.f32 %v4191_v12, %v12040_v44 }
 0x573   : > { %v4216_v60 = vmax.f32 %v4192_v58, 0.0 }
 0x578   : > { %v4193_v48 = vpop.f32.mrf.mxu2 }
 0x579   : > { %v4194_v16 = vadd.f32 %v4193_v48, %v12040_v44 }
 0x57b   : > { %v4217_v41 = vmax.f32 %v4194_v16, 0.0  ;;  %v7609_v16 = vld [vmem:[%s13529_s3 + $0x130] sm:$0xff] }
 0x57c   : > { %5615 = vmatpush.bf16.msra.mxu0 %v7609_v16 }
 0x57d   : > { %v4227_v14 = vpack.c.bf16 %v4217_v41, %v4216_v60  ;;  %v12112_v60 = vpop.permute.xlu2 %5265  ;;  %v12114_v41 = vpop.permute.xlu1 %5174 }
 0x57f   : > { %4329 = vmatmul.bf16.gmra.mxu3 %v4227_v14 }
 0x580   : > { %v4196_v55 = vpop.f32.mrf.mxu2  ;;  %5616 = vmatpush.bf16.msra.mxu0 %v7608_v29 }
 0x581   : > { %v4197_v53 = vadd.f32 %v4196_v55, %v12040_v44 }
 0x583   : > { %v4218_v31 = vmax.f32 %v4197_v53, 0.0 }
 0x585   : > { %v12116_v14 = vpop.permute.xlu2 %5366  ;;  %v12121_v49 = vpop.permute.xlu1 %5362 }
 0x588   : > { %v4198_v5 = vpop.f32.mrf.mxu2 }
 0x589   : > { %v4199_v52 = vadd.f32 %v4198_v5, %v12040_v44 }
 0x58b   : > { %v4219_v32 = vmax.f32 %v4199_v52, 0.0 }
 0x58d   : > { %v4228_v28 = vpack.c.bf16 %v4219_v32, %v4218_v31  ;;  %v12123_v15 = vpop.permute.xlu2 %5273  ;;  %v12127_v56 = vpop.permute.xlu1 %5184  ;;  %v7607_v32 = vld [vmem:[%s13529_s3 + $0x120] sm:$0xff] }
 0x58e   : > { %5617 = vmatpush.bf16.msra.mxu0 %v7607_v32 }
 0x58f   : > { %4334 = vmatmul.bf16.gmra.mxu3 %v4228_v28 }
 0x590   : > { %v4201_v8 = vpop.f32.mrf.mxu2 }
 0x591   : > { %v4202_v39 = vadd.f32 %v4201_v8, %v12040_v44 }
 0x592   : > { %v4305_v11 = vpop.f32.mrf.mxu3 }
 0x593   : > { %v4220_v13 = vmax.f32 %v4202_v39, 0.0 }
 0x595   : > { %v12129_v31 = vpop.permute.xlu2 %5370  ;;  %v12134_v59 = vpop.permute.xlu1 %5277 }
 0x598   : > { %v4203_v17 = vpop.f32.mrf.mxu2 }
 0x599   : > { %v4204_v18 = vadd.f32 %v4203_v17, %v12040_v44  ;;  %v4306_v44 = vadd.f32 %v4305_v11, %v12105_v25 }
 0x59a   : > { %v4307_v34 = vpop.f32.mrf.mxu3 }
 0x59b   : > { %v4221_v26 = vmax.f32 %v4204_v18, 0.0  ;;  %v4308_v46 = vadd.f32 %v4307_v34, %v12105_v25  ;;  %v4345_v12 = vmax.f32 %v4306_v44, 0.0  ;;  %v7600_v18 = vld [vmem:[%s13530_s4 + $0x4] sm:$0xf] }
 0x59c   : > { %v7305_v57 = vor.u32 %v7600_v18, %v7302_v0  ;;  %v7604_v18 = vld [vmem:[%s13529_s3 + $0x108] sm:$0xff]  ;;  %v5170_v0 = vpop.permute.xlu0 %5169 }
 0x59d   : > { %v4229_v9 = vpack.c.bf16 %v4221_v26, %v4220_v13  ;;  %v4346_v58 = vmax.f32 %v4308_v46, 0.0  ;;  %v12136_v8 = vpop.permute.xlu2 %5194  ;;  %v12146_v26 = vpop.permute.xlu1 %5189 }
 0x59e   : > { %4995 = vmatpush.bf16.msra.mxu2 %v7305_v57 }
 0x59f   : > { %4339 = vmatmul.bf16.gmra.mxu3 %v4229_v9  ;;  %v4361_v48 = vpack.c.bf16 %v4346_v58, %v4345_v12  ;;  %v7606_v9 = vld [vmem:[%s13529_s3 + $0x118] sm:$0xff] }
 0x5a0   : > { %5618 = vmatpush.bf16.msra.mxu0 %v7606_v9 }
 0x5a1   : > { %4442 = vmatmul.bf16.vlgmr.msrb.gmra.mxu0 %v4361_v48  ;;  %7318 = vmatmul.msk.bf16.vlgmr.msra.gmra.mxu2 %vm3063_vm5, %v14244_v30 }
 0x5a5   : > { %v12151_v34 = vpop.permute.xlu2 %5378  ;;  %v12156_v58 = vpop.permute.xlu1 %5285 }
 0x5ad   : > { %v12159_v16 = vpop.permute.xlu2 %5204 }
 0x5b1   : > { %7319 = vmatmul.msk.bf16.gmra.mxu2 %vm3063_vm5, %v11885_v45 }
 0x5c1   : > { %v4310_v55 = vpop.f32.mrf.mxu3  ;;  %7320 = vmatmul.msk.bf16.gmra.mxu2 %vm3063_vm5, %v11903_v61 }
 0x5c2   : > { %v4311_v7 = vadd.f32 %v4310_v55, %v12105_v25 }
 0x5c4   : > { %v4347_v5 = vmax.f32 %v4311_v7, 0.0 }
 0x5c9   : > { %v4312_v19 = vpop.f32.mrf.mxu3 }
 0x5ca   : > { %v4313_v53 = vadd.f32 %v4312_v19, %v12105_v25  ;;  %v7605_v19 = vld [vmem:[%s13529_s3 + $0x110] sm:$0xff] }
 0x5cb   : > { %5619 = vmatpush.bf16.msra.mxu0 %v7605_v19 }
 0x5cc   : > { %v4348_v52 = vmax.f32 %v4313_v53, 0.0 }
 0x5ce   : > { %v4362_v42 = vpack.c.bf16 %v4348_v52, %v4347_v5  ;;  %v12166_v5 = vpop.permute.xlu1 %5382  ;;  %v12168_v52 = vpop.permute.xlu2 %5386 }
 0x5cf   : > { %5620 = vmatpush.bf16.msra.mxu0 %v7604_v18 }
 0x5d0   : > { %4447 = vmatmul.bf16.gmra.mxu0 %v4362_v42 }
 0x5d1   : > { %7321 = vmatmul.msk.bf16.gmra.mxu2 %vm3063_vm5, %v11926_v33 }
 0x5d2   : > { %v4315_v28 = vpop.f32.mrf.mxu3 }
 0x5d3   : > { %v4316_v40 = vadd.f32 %v4315_v28, %v12105_v25 }
 0x5d5   : > { %v4349_v17 = vmax.f32 %v4316_v40, 0.0 }
 0x5da   : > { %v4317_v21 = vpop.f32.mrf.mxu3 }
 0x5db   : > { %v4318_v39 = vadd.f32 %v4317_v21, %v12105_v25 }
 0x5dd   : > { %v4350_v11 = vmax.f32 %v4318_v39, 0.0  ;;  %v12172_v39 = vpop.permute.xlu1 %5199 }
 0x5df   : > { %v4363_v13 = vpack.c.bf16 %v4350_v11, %v4349_v17  ;;  %v12174_v11 = vpop.permute.xlu2 %5214 }
 0x5e1   : > { %4452 = vmatmul.bf16.gmra.mxu0 %v4363_v13  ;;  %7322 = vmatmul.msk.bf16.gmra.mxu2 %vm3063_vm5, %v11948_v23 }
 0x5e2   : > { %v4320_v44 = vpop.f32.mrf.mxu3 }
 0x5e3   : > { %v4321_v46 = vadd.f32 %v4320_v44, %v12105_v25  ;;  %v12184_v44 = vpop.f32.mrf.mxu1 }
 0x5e5   : > { %v4351_v29 = vmax.f32 %v4321_v46, 0.0  ;;  %v12181_v13 = vpop.permute.xlu1 %5293 }
 0x5ea   : > { %v4322_v12 = vpop.f32.mrf.mxu3 }
 0x5eb   : > { %v4323_v48 = vadd.f32 %v4322_v12, %v12105_v25  ;;  %v5105_v12 = vpop.permute.xlu2 %5104 }
 0x5ec   : > { %v12260_v4 = vsel %vm5150_vm1, %v5105_v12, %v11864_v43 }
 0x5ed   : > { %v4352_v55 = vmax.f32 %v4323_v48, 0.0 }
 0x5ef   : > { %v4364_v7 = vpack.c.bf16 %v4352_v55, %v4351_v29  ;;  %v12187_v29 = vpop.permute.xlu0 %5179 }
 0x5f1   : > { %4457 = vmatmul.bf16.gmra.mxu0 %v4364_v7  ;;  %7323 = vmatmul.msk.bf16.gmra.mxu2 %vm3063_vm5, %v11970_v62 }
 0x5f2   : > { %v4325_v53 = vpop.f32.mrf.mxu3 }
 0x5f3   : > { %v4326_v42 = vadd.f32 %v4325_v53, %v12105_v25  ;;  %v7603_v53 = vld [vmem:[%s13529_s3 + $0x100] sm:$0xff] }
 0x5f4   : > { %5621 = vmatpush.bf16.msra.mxu0 %v7603_v53 }
 0x5f5   : > { %v4353_v40 = vmax.f32 %v4326_v42, 0.0 }
 0x5fa   : > { %v4327_v32 = vpop.f32.mrf.mxu3 }
 0x5fb   : > { %v4328_v28 = vadd.f32 %v4327_v32, %v12105_v25  ;;  %v5103_v32 = vpop.permute.xlu1 %5102 }
 0x5fd   : > { %v4354_v21 = vmax.f32 %v4328_v28, 0.0  ;;  %v12194_v28 = vpop.f32.mrf.mxu1 }
 0x5ff   : > { %v4365_v17 = vpack.c.bf16 %v4354_v21, %v4353_v40  ;;  %v12196_v40 = vpop.permute.xlu2 %5394  ;;  %v5270_v21 = vpop.permute.xlu0 %5269 }
 0x601   : > { %4462 = vmatmul.bf16.gmra.mxu0 %v4365_v17  ;;  %7324 = vmatmul.msk.bf16.gmra.mxu2 %vm3063_vm5, %v11991_v63 }
 0x602   : > { %v4330_v57 = vpop.f32.mrf.mxu3 }
 0x603   : > { %v4331_v9 = vadd.f32 %v4330_v57, %v12105_v25 }
 0x605   : > { %v4355_v55 = vmax.f32 %v4331_v9, 0.0  ;;  %v12200_v9 = vpop.permute.xlu1 %5209 }
 0x607   : > { %v12211_v53 = vpop.permute.xlu2 %5108 }
 0x60a   : > { %v4332_v46 = vpop.f32.mrf.mxu3 }
 0x60b   : > { %v4333_v48 = vadd.f32 %v4332_v46, %v12105_v25 }
 0x60d   : > { %v4356_v7 = vmax.f32 %v4333_v48, 0.0  ;;  %v12238_v23 = vpop.permute.xlu1 %5106 }
 0x60f   : > { %v4366_v19 = vpack.c.bf16 %v4356_v7, %v4355_v55  ;;  %v12205_v55 = vld [vmem:[%s13533_s7 + $0x8] sm:$0xff]  ;;  %v12207_v7 = vpop.permute.xlu0 %5281 }
 0x610   : > { %v12226_v6 = vperm.slane %v12205_v55, 1 }
 0x611   : > { %4467 = vmatmul.bf16.gmra.mxu0 %v4366_v19  ;;  %v12209_v19 = vpop.f32.mrf.mxu1  ;;  %7325 = vmatmul.msk.bf16.gmra.mxu2 %vm3063_vm5, %v12022_v27 }
 0x612   : > { %v4335_v42 = vpop.f32.mrf.mxu3 }
 0x613   : > { %v4336_v17 = vadd.f32 %v4335_v42, %v12105_v25  ;;  %v12214_v42 = vperm.slane %v12205_v55, 0 }
 0x615   : > { %v4357_v46 = vmax.f32 %v4336_v17, 0.0  ;;  %v12220_v17 = vperm.slane %v11838_v2, 7  ;;  %v5330_v33 = vmul.f32 %v12214_v42, %v5270_v21  ;;  %v5427_v21 = vmul.f32 %v12226_v6, %v12116_v14 }
 0x616   : > { %v5332_v12 = vmul.f32 %v12214_v42, %v12134_v59 }
 0x617   : > { %v5248_v24 = vmul.f32 %v12220_v17, %v5170_v0  ;;  %v5251_v43 = vmul.f32 %v12220_v17, %v12127_v56 }
 0x619   : > { %v12246_v22 = vpop.f32.mrf.mxu1 }
 0x61a   : > { %v4337_v18 = vpop.f32.mrf.mxu3 }
 0x61b   : > { %v4338_v57 = vadd.f32 %v4337_v18, %v12105_v25  ;;  %v12217_v18 = vperm.slane %v11838_v2, 6  ;;  %v5329_v2 = vmul.f32 %v12214_v42, %v12112_v60  ;;  %v12248_v60 = vpop.permute.xlu2 %5224 }
 0x61d   : > { %v4358_v48 = vmax.f32 %v4338_v57, 0.0  ;;  %v5345_v35 = vadd.f32 %v5329_v2, %v5248_v24 }
 0x61f   : > { %v4367_v3 = vpack.c.bf16 %v4358_v48, %v4357_v46  ;;  %v4443_v46 = vpop.f32.mrf.mxu0  ;;  %v5249_v48 = vmul.f32 %v12220_v17, %v12114_v41  ;;  %v5426_v41 = vmul.f32 %v12226_v6, %v12121_v49 }
 0x621   : > { %4472 = vmatmul.bf16.gmra.mxu0 %v4367_v3  ;;  %v12231_v3 = vadd.f32 %v4443_v46, %v12217_v18  ;;  %v5346_v61 = vadd.f32 %v5330_v33, %v5249_v48  ;;  %v12244_v46 = vpop.permute.xlu0 %5289  ;;  %v5442_v45 = vadd.f32 %v5426_v41, %v5345_v35  ;;  %v4880_v35 = vld [vmem:[%s13530_s4 + $0x20] sm:$0xf] }
 0x622   : > { %v4340_v57 = vpop.f32.mrf.mxu3 }
 0x623   : > { %14256 = vst [vmem:[#allocation87_spill] sm:$0xff] %v12231_v3  ;;  %4499 = vrot.lane.b32.xlu1 %v12231_v3, %s7981_s21  ;;  %v4341_v0 = vadd.f32 %v4340_v57, %v12105_v25  ;;  %v5443_v33 = vadd.f32 %v5427_v21, %v5346_v61  ;;  %v12253_v3 = vperm.slane %v12205_v55, 2  ;;  %v12263_v61 = vpop.permute.xlu1 %5301  ;;  %v7618_v21 = vld [vmem:[%s13529_s3 + $0x178] sm:$0xff] }
 0x624   : > { %5802 = vmatpush.bf16.msrb.mxu1 %v7618_v21 }
 0x625   : > { %v4359_v49 = vmax.f32 %v4341_v0, 0.0  ;;  %v5460_v24 = vadd.f32 %v12253_v3, %v5443_v33  ;;  %v12291_v0 = vpop.permute.xlu2 %5110  ;;  %v5348_v33 = vadd.f32 %v5332_v12, %v5251_v43 }
 0x627   : > { %v4445_v51 = vpop.f32.mrf.mxu0  ;;  %v5476_v2 = vadd.f32 %v5460_v24, %v12260_v4 }
 0x628   : > { %v12256_v30 = vadd.f32 %v4445_v51, %v12217_v18  ;;  %v12272_v51 = vsel %vm5150_vm1, %v5103_v32, %v11847_v1  ;;  %v12286_v1 = vld [vmem:[%s13533_s7 + $0x10] sm:$0x7]  ;;  %v12288_v32 = vpop.f32.mrf.mxu1 }
 0x629   : > { %v5375_v41 = vpop.permute.xlu0 %5374  ;;  %v12300_v24 = vperm.slane %v12286_v1, 0 }
 0x62a   : > { %v4342_v14 = vpop.f32.mrf.mxu3  ;;  %4501 = vrot.lane.b32.xlu2 %v12256_v30, %s7981_s21 }
 0x62b   : > { %v4343_v48 = vadd.f32 %v4342_v14, %v12105_v25  ;;  %v4895_v25 = vunpack.c.l.b16 %v4880_v35  ;;  %v5250_v35 = vmul.f32 %v12220_v17, %v12187_v29  ;;  %v12318_v29 = vsel %vm5150_vm1, %v12211_v53, %v11895_v20  ;;  %v7617_v20 = vld [vmem:[%s13529_s3 + $0x170] sm:$0xff] }
 0x62c   : > { %v5252_v53 = vmul.f32 %v12220_v17, %v12146_v26  ;;  %5803 = vmatpush.bf16.msrb.mxu1 %v7617_v20  ;;  %v12365_v20 = vsel %vm5150_vm1, %v12291_v0, %v11910_v10  ;;  %v7616_v10 = vld [vmem:[%s13529_s3 + $0x168] sm:$0xff]  ;;  %v5254_v0 = vmul.f32 %v12220_v17, %v12172_v39 }
 0x62d   : > { %v4360_v47 = vmax.f32 %v4343_v48, 0.0  ;;  %v4901_v56 = vpack.c.b16 %v4895_v25, %v4895_v25  ;;  %v5429_v48 = vmul.f32 %v12226_v6, %v5375_v41  ;;  %v5428_v25 = vmul.f32 %v12226_v6, %v12129_v31 }
 0x62f   : > { %v4368_v57 = vpack.c.bf16 %v4360_v47, %v4359_v49  ;;  %v5459_v47 = vadd.f32 %v12253_v3, %v5442_v45  ;;  %v5492_v45 = vadd.f32 %v5476_v2, %v12194_v28  ;;  %v4937_v14 = vsel %vm4929_vm3, %v4901_v56, 0 }
 0x630   : > { %5043 = vmatpush.bf16.msra.mxu3 %v4937_v14  ;;  %v5445_v43 = vadd.f32 %v5429_v48, %v5348_v33  ;;  %v4960_v21 = vpop.f32.mrf.mxu1  ;;  %v12323_v14 = vsel %vm5150_vm1, %v12238_v23, %v11888_v38  ;;  %v5253_v33 = vmul.f32 %v12220_v17, %v12136_v8  ;;  %v5334_v48 = vmul.f32 %v12214_v42, %v12156_v58 }
 0x631   : > { %4477 = vmatmul.bf16.gmra.mxu0 %v4368_v57  ;;  %v5475_v59 = vadd.f32 %v5459_v47, %v12272_v51  ;;  %v5331_v57 = vmul.f32 %v12214_v42, %v12123_v15  ;;  %v5509_v28 = vadd.f32 %v12300_v24, %v5492_v45  ;;  %v12310_v47 = vpop.permute.xlu1 %5398  ;;  %v5391_v31 = vpop.permute.xlu0 %5390  ;;  %v5333_v38 = vmul.f32 %v12214_v42, %v12207_v7 }
 0x632   : > { %v5462_v56 = vadd.f32 %v12253_v3, %v5445_v43  ;;  %v5430_v7 = vmul.f32 %v12226_v6, %v12151_v34  ;;  %5804 = vmatpush.bf16.msrb.mxu1 %v7616_v10 }
 0x633   : > { %v5491_v49 = vadd.f32 %v5475_v59, %v12184_v44  ;;  %v5347_v44 = vadd.f32 %v5331_v57, %v5250_v35  ;;  %v5525_v2 = vmax.f32 %v5509_v28, 0.0  ;;  %v12313_v59 = vpop.permute.xlu2 %5402  ;;  %v5350_v28 = vadd.f32 %v5334_v48, %v5253_v33 }
 0x634   : > { %v5478_v57 = vadd.f32 %v5462_v56, %v12318_v29  ;;  %v5431_v35 = vmul.f32 %v12226_v6, %v12166_v5 }
 0x635   : > { %v5508_v12 = vadd.f32 %v12300_v24, %v5491_v49  ;;  %v5444_v41 = vadd.f32 %v5428_v25, %v5347_v44 }
 0x636   : > { %v5494_v8 = vadd.f32 %v5478_v57, %v12246_v22 }
 0x637   : > { %v5524_v15 = vmax.f32 %v5508_v12, 0.0  ;;  %v5461_v49 = vadd.f32 %v12253_v3, %v5444_v41  ;;  %v5349_v12 = vadd.f32 %v5333_v38, %v5252_v53 }
 0x638   : > { %v12347_v43 = vpop.f32.mrf.mxu1  ;;  %v5511_v44 = vadd.f32 %v12300_v24, %v5494_v8 }
 0x639   : > { %v5540_v45 = vpack.c.bf16 %v5525_v2, %v5524_v15  ;;  %v5477_v23 = vadd.f32 %v5461_v49, %v12323_v14  ;;  %v12340_v58 = vpop.permute.xlu1 %5219  ;;  %v5113_v26 = vpop.permute.xlu0 %5112  ;;  %v5447_v2 = vadd.f32 %v5431_v35, %v5350_v28  ;;  %v5446_v56 = vadd.f32 %v5430_v7, %v5349_v12 }
 0x63a   : > { %v5527_v15 = vmax.f32 %v5511_v44, 0.0  ;;  %v5432_v44 = vmul.f32 %v12226_v6, %v12168_v52 }
 0x63b   : > { %v5493_v25 = vadd.f32 %v5477_v23, %v12209_v19  ;;  %v5117_v22 = vpop.permute.xlu2 %5116  ;;  %v5464_v5 = vadd.f32 %v12253_v3, %v5447_v2  ;;  %v12356_v19 = vsel %vm5150_vm1, %v5113_v26, %v11913_v36  ;;  %v5463_v34 = vadd.f32 %v12253_v3, %v5446_v56 }
 0x63c   : > { %v5255_v23 = vmul.f32 %v12220_v17, %v12159_v16  ;;  %v5336_v36 = vmul.f32 %v12214_v42, %v12181_v13  ;;  %v5335_v16 = vmul.f32 %v12214_v42, %v12244_v46  ;;  %v5433_v26 = vmul.f32 %v12226_v6, %v5391_v31 }
 0x63d   : > { %v5510_v41 = vadd.f32 %v12300_v24, %v5493_v25  ;;  %v5480_v28 = vadd.f32 %v5464_v5, %v12356_v19  ;;  %v5479_v13 = vadd.f32 %v5463_v34, %v12365_v20  ;;  %v12406_v34 = vsel %vm5150_vm1, %v5117_v22, %v11937_v50 }
 0x63e   : > { %v5352_v25 = vadd.f32 %v5336_v36, %v5255_v23  ;;  %v5351_v39 = vadd.f32 %v5335_v16, %v5254_v0  ;;  %v5257_v16 = vmul.f32 %v12220_v17, %v12174_v11  ;;  %v5338_v50 = vmul.f32 %v12214_v42, %v12263_v61 }
 0x63f   : > { %v5496_v35 = vadd.f32 %v5480_v28, %v4960_v21  ;;  %v5495_v7 = vadd.f32 %v5479_v13, %v12288_v32  ;;  %v7615_v13 = vld [vmem:[%s13529_s3 + $0x160] sm:$0xff] }
 0x640   : > { %v4965_v38 = vpop.f32.mrf.mxu1  ;;  %v5449_v21 = vadd.f32 %v5433_v26, %v5352_v25  ;;  %v5448_v32 = vadd.f32 %v5432_v44, %v5351_v39  ;;  %5805 = vmatpush.bf16.msrb.mxu1 %v7615_v13  ;;  %v5354_v26 = vadd.f32 %v5338_v50, %v5257_v16  ;;  %v7308_v13 = vld [vmem:[%s13530_s4 + $0x8] sm:$0xf] }
 0x641   : > { %5622 = vmatmul.bf16.vlgmr.msra.gmra.mxu0 %v5540_v45  ;;  %v5526_v45 = vmax.f32 %v5510_v41, 0.0  ;;  %v5115_v33 = vpop.permute.xlu1 %5114  ;;  %v12367_v53 = vpop.permute.xlu0 %5406  ;;  %v5513_v2 = vadd.f32 %v12300_v24, %v5496_v35  ;;  %v5512_v56 = vadd.f32 %v12300_v24, %v5495_v7  ;;  %v5435_v7 = vmul.f32 %v12226_v6, %v12310_v47 }
 0x642   : > { %v5466_v5 = vadd.f32 %v12253_v3, %v5449_v21  ;;  %v5465_v23 = vadd.f32 %v12253_v3, %v5448_v32  ;;  %v12416_v0 = vsel %vm5150_vm1, %v5115_v33, %v11929_v54  ;;  %v5256_v54 = vmul.f32 %v12220_v17, %v12200_v9 }
 0x643   : > { %v5541_v57 = vpack.c.bf16 %v5527_v15, %v5526_v45  ;;  %v12373_v8 = vpop.permute.xlu2 %5118  ;;  %v5529_v52 = vmax.f32 %v5513_v2, 0.0  ;;  %v5434_v2 = vmul.f32 %v12226_v6, %v12196_v40 }
 0x644   : > { %v5482_v22 = vadd.f32 %v5466_v5, %v12406_v34  ;;  %v5481_v11 = vadd.f32 %v5465_v23, %v12416_v0 }
 0x646   : > { %v5498_v25 = vadd.f32 %v5482_v22, %v4965_v38  ;;  %v5497_v44 = vadd.f32 %v5481_v11, %v12347_v43  ;;  %v5451_v38 = vadd.f32 %v5435_v7, %v5354_v26  ;;  %v7614_v7 = vld [vmem:[%s13529_s3 + $0x158] sm:$0xff] }
 0x647   : > { %5806 = vmatpush.bf16.msrb.mxu1 %v7614_v7 }
 0x648   : > { %v12399_v15 = vpop.f32.mrf.mxu1  ;;  %v5515_v21 = vadd.f32 %v12300_v24, %v5498_v25 }
 0x649   : > { %v5310_v46 = vpop.permute.xlu1 %5309  ;;  %v5298_v31 = vpop.permute.xlu0 %5297 }
 0x64a   : > { %v5337_v33 = vmul.f32 %v12214_v42, %v5298_v31  ;;  %v5514_v31 = vadd.f32 %v12300_v24, %v5497_v44  ;;  %v5340_v11 = vmul.f32 %v12214_v42, %v5310_v46  ;;  %v14257_v44 = vld [vmem:[#allocation73_spill] sm:$0xff] }
 0x64b   : > { %v12401_v45 = vpop.permute.xlu2 %5234 }
 0x64c   : > { %v5353_v9 = vadd.f32 %v5337_v33, %v5256_v54  ;;  %v5530_v5 = vmax.f32 %v5514_v31, 0.0  ;;  %v7602_v54 = vld [vmem:[%s13530_s4 + $0x10] sm:$0xf0]  ;;  %v5261_v7 = vmul.f32 %v12220_v17, %v12401_v45 }
 0x64d   : > { %v4448_v48 = vpop.f32.mrf.mxu0  ;;  %v7309_v33 = vor.u32 %v7602_v54, %v7308_v13 }
 0x64e   : > { %v12360_v49 = vadd.f32 %v4448_v48, %v12217_v18  ;;  %v5528_v48 = vmax.f32 %v5512_v56, 0.0  ;;  %v5450_v47 = vadd.f32 %v5434_v2, %v5353_v9  ;;  %v5436_v2 = vmul.f32 %v12226_v6, %v12313_v59 }
 0x64f   : > { %5044 = vmatpush.bf16.msra.mxu3 %v7309_v33  ;;  %v5437_v9 = vmul.f32 %v12226_v6, %v12367_v53 }
 0x650   : > { %4503 = vrot.lane.b32.xlu0 %v12360_v49, %s7981_s21  ;;  %v5542_v10 = vpack.c.bf16 %v5529_v52, %v5528_v48  ;;  %v4970_v61 = vpop.f32.mrf.mxu1  ;;  %v5531_v52 = vmax.f32 %v5515_v21, 0.0  ;;  %v5468_v48 = vadd.f32 %v12253_v3, %v5451_v38  ;;  %v5467_v16 = vadd.f32 %v12253_v3, %v5450_v47  ;;  %v14258_v47 = vld [vmem:[#allocation37_spill] sm:$0xff] }
 0x651   : > { %5627 = vmatmul.bf16.gmra.mxu0 %v5541_v57  ;;  %v12409_v36 = vpop.permute.xlu1 %5229  ;;  %v5121_v35 = vpop.permute.xlu0 %5120 }
 0x652   : > { %v12449_v40 = vsel %vm5150_vm1, %v5121_v35, %v11960_v37  ;;  %v5543_v22 = vpack.c.bf16 %v5531_v52, %v5530_v5  ;;  %v5259_v37 = vmul.f32 %v12220_v17, %v12248_v60  ;;  %v5258_v35 = vmul.f32 %v12220_v17, %v12340_v58  ;;  %7326 = vmatmul.msk.bf16.vlgmr.msra.gmra.mxu3 %vm3063_vm5, %v14258_v47 }
 0x653   : > { %v5484_v26 = vadd.f32 %v5468_v48, %v12449_v40  ;;  %v12478_v60 = vsel %vm5150_vm1, %v12373_v8, %v14257_v44  ;;  %v14260_v44 = vld [vmem:[#allocation25_spill] sm:$0xff]  ;;  %v5260_v45 = vmul.f32 %v12220_v17, %v12409_v36 }
 0x654   : > { %v5483_v58 = vadd.f32 %v5467_v16, %v12478_v60  ;;  %v5356_v21 = vadd.f32 %v5340_v11, %v5259_v37  ;;  %v14259_v37 = vld [vmem:[#allocation90_spill] sm:$0xff] }
 0x655   : > { %v4450_v12 = vpop.f32.mrf.mxu0  ;;  %v5500_v46 = vadd.f32 %v5484_v26, %v4970_v61 }
 0x656   : > { %v12394_v41 = vadd.f32 %v4450_v12, %v12217_v18  ;;  %v12434_v12 = vpop.permute.xlu2 %5410  ;;  %v5499_v38 = vadd.f32 %v5483_v58, %v12399_v15  ;;  %v5453_v48 = vadd.f32 %v5437_v9, %v5356_v21  ;;  %v7613_v9 = vld [vmem:[%s13529_s3 + $0x150] sm:$0xff] }
 0x657   : > { %5807 = vmatpush.bf16.msrb.mxu1 %v7613_v9 }
 0x658   : > { %4505 = vrot.lane.b32.xlu1 %v12394_v41, %s7981_s21  ;;  %v5470_v54 = vadd.f32 %v12253_v3, %v5453_v48  ;;  %v14261_v48 = vld [vmem:[#allocation41_spill] sm:$0xff] }
 0x659   : > { %v5318_v32 = vpop.permute.xlu1 %5317  ;;  %v5306_v43 = vpop.permute.xlu0 %5305 }
 0x65a   : > { %v5339_v25 = vmul.f32 %v12214_v42, %v5306_v43  ;;  %v5517_v43 = vadd.f32 %v12300_v24, %v5500_v46  ;;  %v5342_v46 = vmul.f32 %v12214_v42, %v5318_v32 }
 0x65c   : > { %v5355_v31 = vadd.f32 %v5339_v25, %v5258_v35  ;;  %v5533_v15 = vmax.f32 %v5517_v43, 0.0 }
 0x65e   : > { %v4453_v57 = vpop.f32.mrf.mxu0  ;;  %v5452_v53 = vadd.f32 %v5436_v2, %v5355_v31  ;;  %v5358_v31 = vadd.f32 %v5342_v46, %v5261_v7 }
 0x65f   : > { %v12412_v28 = vadd.f32 %v4453_v57, %v12217_v18  ;;  %v12451_v57 = vpop.f32.mrf.mxu1 }
 0x660   : > { %v5469_v13 = vadd.f32 %v12253_v3, %v5452_v53  ;;  %v5438_v53 = vmul.f32 %v12226_v6, %v12434_v12 }
 0x661   : > { %4507 = vrot.lane.b32.xlu2 %v12412_v28, %s7981_s21  ;;  %5632 = vmatmul.bf16.gmra.mxu0 %v5542_v10  ;;  %v5125_v10 = vpop.permute.xlu2 %5124  ;;  %v5314_v8 = vpop.permute.xlu0 %5313 }
 0x662   : > { %v12499_v35 = vsel %vm5150_vm1, %v5125_v10, %v14259_v37  ;;  %7327 = vmatmul.msk.bf16.gmra.mxu3 %vm3063_vm5, %v14261_v48 }
 0x663   : > { %v5486_v10 = vadd.f32 %v5470_v54, %v12499_v35 }
 0x666   : > { %v4455_v39 = vpop.f32.mrf.mxu0 }
 0x667   : > { %v12441_v56 = vadd.f32 %v4455_v39, %v12217_v18  ;;  %v5123_v39 = vpop.permute.xlu1 %5122  ;;  %v4975_v5 = vpop.f32.mrf.mxu1 }
 0x668   : > { %v12508_v58 = vsel %vm5150_vm1, %v5123_v39, %v14260_v44  ;;  %v5502_v32 = vadd.f32 %v5486_v10, %v4975_v5 }
 0x669   : > { %4509 = vrot.lane.b32.xlu0 %v12441_v56, %s7981_s21  ;;  %v5245_v59 = vpop.permute.xlu2 %5244  ;;  %v5129_v33 = vpop.permute.xlu0 %5128  ;;  %v5485_v2 = vadd.f32 %v5469_v13, %v12508_v58 }
 0x66a   : > { %v5519_v36 = vadd.f32 %v12300_v24, %v5502_v32 }
 0x66b   : > { %v5501_v47 = vadd.f32 %v5485_v2, %v12451_v57 }
 0x66c   : > { %v5535_v13 = vmax.f32 %v5519_v36, 0.0 }
 0x66e   : > { %v4458_v23 = vpop.f32.mrf.mxu0 }
 0x66f   : > { %v12455_v50 = vadd.f32 %v4458_v23, %v12217_v18  ;;  %v5516_v23 = vadd.f32 %v12300_v24, %v5499_v38  ;;  %v5415_v16 = vpop.permute.xlu1 %5414  ;;  %v4978_v21 = vpop.f32.mrf.mxu1  ;;  %v5341_v38 = vmul.f32 %v12214_v42, %v5314_v8 }
 0x671   : > { %4511 = vrot.lane.b32.xlu1 %v12455_v50, %s7981_s21  ;;  %5637 = vmatmul.bf16.gmra.mxu0 %v5543_v22  ;;  %v5532_v22 = vmax.f32 %v5516_v23, 0.0  ;;  %v5127_v39 = vpop.permute.xlu2 %5126  ;;  %v5322_v5 = vpop.permute.xlu0 %5321 }
 0x673   : > { %v5544_v26 = vpack.c.bf16 %v5533_v15, %v5532_v22  ;;  %v5357_v15 = vadd.f32 %v5341_v38, %v5260_v45  ;;  %v5518_v22 = vadd.f32 %v12300_v24, %v5501_v47  ;;  %v5263_v45 = vmul.f32 %v12220_v17, %v5245_v59 }
 0x676   : > { %v4460_v52 = vpop.f32.mrf.mxu0 }
 0x677   : > { %v12490_v61 = vadd.f32 %v4460_v52, %v12217_v18  ;;  %v5439_v52 = vmul.f32 %v12226_v6, %v5415_v16  ;;  %v5240_v43 = vpop.permute.xlu1 %5239  ;;  %v5454_v16 = vadd.f32 %v5438_v53, %v5357_v15  ;;  %v4980_v54 = vpop.f32.mrf.mxu1 }
 0x678   : > { %v5262_v38 = vmul.f32 %v12220_v17, %v5240_v43 }
 0x679   : > { %4513 = vrot.lane.b32.xlu2 %v12490_v61, %s7981_s21  ;;  %v5455_v57 = vadd.f32 %v5439_v52, %v5358_v31  ;;  %v5419_v37 = vpop.permute.xlu2 %5418  ;;  %v5471_v46 = vadd.f32 %v12253_v3, %v5454_v16  ;;  %v5343_v31 = vmul.f32 %v12214_v42, %v5322_v5  ;;  %v14263_v52 = vld [vmem:[#allocation89_spill] sm:$0xff]  ;;  %v5423_v59 = vpop.permute.xlu0 %5422  ;;  %v14264_v5 = vld [vmem:[#allocation38_spill] sm:$0xff] }
 0x67a   : > { %v12555_v48 = vsel %vm5150_vm1, %v5127_v39, %v14263_v52  ;;  %v5441_v36 = vmul.f32 %v12226_v6, %v5423_v59  ;;  %7328 = vmatmul.msk.bf16.gmra.mxu3 %vm3063_vm5, %v14264_v5 }
 0x67b   : > { %v5472_v12 = vadd.f32 %v12253_v3, %v5455_v57  ;;  %v5487_v17 = vadd.f32 %v5471_v46, %v12555_v48  ;;  %v5359_v15 = vadd.f32 %v5343_v31, %v5262_v38  ;;  %v14265_v46 = vld [vmem:[#allocation85_spill] sm:$0xff]  ;;  %v14266_v31 = vld [vmem:[#allocation88_spill] sm:$0xff] }
 0x67e   : > { %v4463_v11 = vpop.f32.mrf.mxu0 }
 0x67f   : > { %v12502_v25 = vadd.f32 %v4463_v11, %v12217_v18  ;;  %v5534_v11 = vmax.f32 %v5518_v22, 0.0  ;;  %v5326_v2 = vpop.permute.xlu1 %5325  ;;  %v4983_v22 = vpop.f32.mrf.mxu1 }
 0x680   : > { %v5344_v32 = vmul.f32 %v12214_v42, %v5326_v2  ;;  %v5440_v42 = vmul.f32 %v12226_v6, %v5419_v37 }
 0x681   : > { %4515 = vrot.lane.b32.xlu0 %v12502_v25, %s7981_s21  ;;  %5642 = vmatmul.bf16.gmra.mxu0 %v5544_v26  ;;  %v14262_v26 = vld [vmem:[#allocation84_spill] sm:$0xff]  ;;  %v5545_v9 = vpack.c.bf16 %v5535_v13, %v5534_v11  ;;  %v5133_v16 = vpop.permute.xlu2 %5132 }
 0x682   : > { %v12537_v7 = vsel %vm5150_vm1, %v5129_v33, %v14262_v26  ;;  %v7612_v33 = vld [vmem:[%s13529_s3 + $0x148] sm:$0xff]  ;;  %v5360_v53 = vadd.f32 %v5344_v32, %v5263_v45  ;;  %v5456_v11 = vadd.f32 %v5440_v42, %v5359_v15 }
 0x683   : > { %v5488_v47 = vadd.f32 %v5472_v12, %v12537_v7  ;;  %5808 = vmatpush.bf16.msrb.mxu1 %v7612_v33  ;;  %v14267_v42 = vld [vmem:[#allocation87_spill] sm:$0xff] }
 0x684   : > { %v5473_v26 = vadd.f32 %v12253_v3, %v5456_v11  ;;  %v14268_v15 = vld [vmem:[#allocation3_spill] sm:$0xff] }
 0x685   : > { %v5504_v43 = vadd.f32 %v5488_v47, %v4980_v54  ;;  %v12580_v47 = vsel %vm5150_vm1, %v5133_v16, %v14266_v31 }
 0x686   : > { %v4465_v23 = vpop.f32.mrf.mxu0 }
 0x687   : > { %v12529_v8 = vadd.f32 %v4465_v23, %v12217_v18  ;;  %v5503_v23 = vadd.f32 %v5487_v17, %v4978_v21  ;;  %v5521_v39 = vadd.f32 %v12300_v24, %v5504_v43  ;;  %v5131_v37 = vpop.permute.xlu1 %5130  ;;  %v5457_v21 = vadd.f32 %v5441_v36, %v5360_v53  ;;  %v4985_v33 = vpop.f32.mrf.mxu1 }
 0x688   : > { %v12573_v2 = vsel %vm5150_vm1, %v5131_v37, %v14265_v46 }
 0x689   : > { %4517 = vrot.lane.b32.xlu1 %v12529_v8, %s7981_s21  ;;  %v5520_v54 = vadd.f32 %v12300_v24, %v5503_v23  ;;  %v5537_v6 = vmax.f32 %v5521_v39, 0.0  ;;  %v4502_v32 = vpop.permute.xlu2 %4501  ;;  %v5489_v52 = vadd.f32 %v5473_v26, %v12573_v2 }
 0x68a   : > { %v4548_v17 = vsub.f32 %v12256_v30, %v4502_v32  ;;  %7329 = vmatmul.msk.bf16.gmra.mxu3 %vm3063_vm5, %v14268_v15 }
 0x68b   : > { %v5536_v12 = vmax.f32 %v5520_v54, 0.0  ;;  %v5505_v53 = vadd.f32 %v5489_v52, %v4983_v22  ;;  %v4997_v54 = vpop.f32.mrf.mxu2  ;;  %v12618_v52 = vperm.slane %v12205_v55, 3 }
 0x68c   : > { %v4565_v36 = vmul.f32 1.442695, %v4548_v17 }
 0x68d   : > { %v5546_v38 = vpack.c.bf16 %v5537_v6, %v5536_v12  ;;  %v5522_v11 = vadd.f32 %v12300_v24, %v5505_v53 }
 0x68e   : > { %v4468_v44 = vpop.f32.mrf.mxu0  ;;  %7879 = vpow2.f32 %v4565_v36 }
 0x68f   : > { %v12541_v10 = vadd.f32 %v4468_v44, %v12217_v18  ;;  %v5474_v44 = vadd.f32 %v12253_v3, %v5457_v21  ;;  %v5538_v22 = vmax.f32 %v5522_v11, 0.0 }
 0x691   : > { %4519 = vrot.lane.b32.xlu2 %v12541_v10, %s7981_s21  ;;  %5647 = vmatmul.bf16.gmra.mxu0 %v5545_v9  ;;  %v5490_v59 = vadd.f32 %v5474_v44, %v12580_v47 }
 0x693   : > { %v5506_v43 = vadd.f32 %v5490_v59, %v4985_v33  ;;  %v4999_v44 = vpop.f32.mrf.mxu2 }
 0x694   : > { %v7880_v12 = vpop.eup %7879 }
 0x695   : > { %v4500_v3 = vpop.permute.xlu1 %4499  ;;  %v12605_v46 = vadd.f32 1.0, %v7880_v12 }
 0x696   : > { %v4470_v57 = vpop.f32.mrf.mxu0  ;;  %v4547_v23 = vsub.f32 %v14267_v42, %v4500_v3 }
 0x697   : > { %v12564_v13 = vadd.f32 %v4470_v57, %v12217_v18  ;;  %v5523_v57 = vadd.f32 %v12300_v24, %v5506_v43  ;;  %v7611_v24 = vld [vmem:[%s13529_s3 + $0x140] sm:$0xff]  ;;  %vm4631_vm10 = vweird.f32 %v12605_v46 }
 0x698   : > { %v4563_v39 = vmul.f32 1.442695, %v4547_v23  ;;  %5809 = vmatpush.bf16.msrb.mxu1 %v7611_v24  ;;  %v12635_v24 = vperm.slane %v12286_v1, 1 }
 0x699   : > { %4521 = vrot.lane.b32.xlu0 %v12564_v13, %s7981_s21  ;;  %v5539_v30 = vmax.f32 %v5523_v57, 0.0  ;;  %v7982_v57 = vmov 3  }
 0x69a   : > { %7881 = vpow2.f32 %v4563_v39  ;;  %7770 = vset.pattern.permute.xlu0 %v7982_v57  ;;  %7771 = vset.pattern.permute.xlu1 %v7982_v57 }
 0x69b   : > { %v5547_v6 = vpack.c.bf16 %v5539_v30, %v5538_v22  ;;  %7883 = vrcp.f32 %v12605_v46  ;;  %v12615_v33 = vpop.f32.mrf.mxu2 }
 0x69e   : > { %v4473_v9 = vpop.f32.mrf.mxu0 }
 0x69f   : > { %v12576_v45 = vadd.f32 %v4473_v9, %v12217_v18 }
 0x6a0   : > { %v7882_v26 = vpop.eup %7881 }
 0x6a1   : > { %4523 = vrot.lane.b32.xlu1 %v12576_v45, %s7981_s21  ;;  %5652 = vmatmul.bf16.gmra.mxu0 %v5546_v38  ;;  %v4595_v9 = vadd.f32 1.0, %v7882_v26  ;;  %v14269_v38 = vld [vmem:[#allocation40_spill] sm:$0xff]  ;;  %v12620_v3 = vpop.eup %7883 }
 0x6a2   : > { %7330 = vmatmul.msk.bf16.gmra.mxu3 %vm3063_vm5, %v14269_v38  ;;  %vm4632_vm2 = vweird.f32 %v12620_v3 }
 0x6a3   : > { %7885 = vrcp.f32 %v4595_v9  ;;  %v12626_v53 = vpop.f32.mrf.mxu2  ;;  %v4622_v30 = vand.u32 2147483648, %v4595_v9  ;;  %v4620_v12 = vand.u32 2147483647, %v4595_v9  ;;  %vm4616_vm14 = vweird.f32 %v4595_v9  ;;  %vm12651_vm13 = vmor %vm4631_vm10, %vm4632_vm2 }
 0x6a5   : > { %vm4621_vm0 = vcmp.eq.f32.partialorder %v4620_v12, 8.507059e+37 }
 0x6a6   : > { %v4475_v5 = vpop.f32.mrf.mxu0 }
 0x6a7   : > { %v12592_v16 = vadd.f32 %v4475_v5, %v12217_v18 }
 0x6a9   : > { %4525 = vrot.lane.b32.xlu2 %v12592_v16, %s7981_s21  ;;  %v7886_v43 = vpop.eup %7885 }
 0x6aa   : > { %v4612_v15 = vmul.f32 %v7886_v43, %v4595_v9  ;;  %vm4617_vm6 = vweird.f32 %v7886_v43 }
 0x6ab   : > { %vm4618_vm4 = vmor %vm4616_vm14, %vm4617_vm6 }
 0x6ac   : > { %v4613_v11 = vsub.f32 1.0, %v4612_v15 }
 0x6ae   : > { %v4478_v37 = vpop.f32.mrf.mxu0 }
 0x6af   : > { %v12598_v21 = vadd.f32 %v4478_v37, %v12217_v18 }
 0x6b1   : > { %4527 = vrot.lane.b32.xlu0 %v12598_v21, %s7981_s21  ;;  %5657 = vmatmul.bf16.gmra.mxu0 %v5547_v6  ;;  %v4614_v6 = vmul.f32 %v7886_v43, %v4613_v11 }
 0x6b2   : > { %7331 = vmatmul.msk.bf16.gmra.mxu3 %vm3063_vm5, %v11970_v62  ;;  %v4623_v62 = vor.u32 1.1754944e-38, %v4622_v30 }
 0x6b6   : > { %v4480_v32 = vpop.f32.mrf.mxu0 }
 0x6b7   : > { %v12611_v31 = vadd.f32 %v4480_v32, %v12217_v18  ;;  %v4627_v18 = vmul.f32 %v12620_v3, %v12605_v46  ;;  %v4615_v32 = vadd.f32 %v7886_v43, %v4614_v6 }
 0x6b9   : > { %4529 = vrot.lane.b32.xlu1 %v12611_v31, %s7981_s21  ;;  %v4628_v39 = vsub.f32 1.0, %v4627_v18 }
 0x6bb   : > { %v4508_v59 = vpop.permute.xlu2 %4507 }
 0x6bc   : > { %v4551_v42 = vsub.f32 %v12412_v28, %v4508_v59 }
 0x6be   : > { %v5623_v17 = vpop.f32.mrf.mxu0  ;;  %v4571_v36 = vmul.f32 1.442695, %v4551_v42  ;;  %v4619_v42 = vsel %vm4618_vm4, %v7886_v43, %v4615_v32 }
 0x6bf   : > { %v5624_v23 = vadd.f32 %v5623_v17, %v12618_v52  ;;  %v4635_v17 = vand.u32 2147483647, %v12605_v46  ;;  %v4624_v15 = vsel %vm4621_vm0, %v4623_v62, %v4619_v42 }
 0x6c0   : > { %7887 = vpow2.f32 %v4571_v36  ;;  %6041 = vperm.xlu2 %7769, %v4624_v15   ;;  %6312 = vperm.xlu0 %7770, %v4624_v15  }
 0x6c1   : > { %v5663_v5 = vadd.f32 %v5624_v23, %v12272_v51  ;;  %vm4636_vm3 = vcmp.eq.f32.partialorder %v4635_v17, 8.507059e+37 }
 0x6c2   : > { %v4504_v55 = vpop.permute.xlu0 %4503  ;;  %7332 = vmatmul.msk.bf16.gmra.mxu3 %vm3063_vm5, %v11991_v63 }
 0x6c3   : > { %v4549_v28 = vsub.f32 %v12360_v49, %v4504_v55  ;;  %v5679_v26 = vadd.f32 %v5663_v5, %v4997_v54  ;;  %v4629_v49 = vmul.f32 %v12620_v3, %v4628_v39  ;;  %v4637_v54 = vand.u32 2147483648, %v12605_v46  ;;  %v12647_v55 = vpop.f32.mrf.mxu2 }
 0x6c4   : > { %v4851_v5 = vsub.f32 1.0, %v4624_v15 }
 0x6c5   : > { %v4567_v22 = vmul.f32 1.442695, %v4549_v28  ;;  %v4630_v1 = vadd.f32 %v12620_v3, %v4629_v49  ;;  %v5696_v23 = vadd.f32 %v12635_v24, %v5679_v26  ;;  %v4638_v30 = vor.u32 1.1754944e-38, %v4637_v54 }
 0x6c6   : > { %v5625_v37 = vpop.f32.mrf.mxu0  ;;  %v7888_v39 = vpop.eup %7887  ;;  %6392 = vperm.xlu1 %7771, %v4851_v5  }
 0x6c7   : > { %v5626_v38 = vadd.f32 %v5625_v37, %v12618_v52  ;;  %7889 = vpow2.f32 %v4567_v22  ;;  %v4634_v46 = vsel %vm12651_vm13, %v12620_v3, %v4630_v1  ;;  %v5712_v22 = vmax.f32 %v5696_v23, 0.0 }
 0x6c8   : > { %v4639_v26 = vsel %vm4636_vm3, %v4638_v30, %v4634_v46  ;;  %7775 = vset.pattern.permute.xlu2 %v7982_v57 }
 0x6c9   : > { %v5664_v59 = vadd.f32 %v5626_v38, %v12260_v4  ;;  %v12660_v38 = vadd.f32 1.0, %v7888_v39  ;;  %v4852_v3 = vsub.f32 1.0, %v4639_v26  ;;  %v7626_v39 = vld [vmem:[%s13529_s3 + $0x1b8] sm:$0xff] }
 0x6ca   : > { %v4506_v9 = vpop.permute.xlu1 %4505  ;;  %5990 = vmatpush.bf16.msrb.mxu2 %v7626_v39 }
 0x6cb   : > { %v5680_v18 = vadd.f32 %v5664_v59, %v4999_v44  ;;  %v4550_v36 = vsub.f32 %v12394_v41, %v4506_v9  ;;  %v14272_v59 = vmov 1   ;;  %6396 = vperm.xlu2 %7775, %v4852_v3   ;;  %v12667_v42 = vpop.f32.mrf.mxu2  ;;  %vm4676_vm4 = vweird.f32 %v12660_v38 }
 0x6cc   : > { %7773 = vset.pattern.permute.xlu0 %v14272_v59 }
 0x6cd   : > { %v5697_v44 = vadd.f32 %v12635_v24, %v5680_v18  ;;  %v7890_v28 = vpop.eup %7889  ;;  %v4569_v41 = vmul.f32 1.442695, %v4550_v36  ;;  %6046 = vperm.xlu0 %7773, %v4639_v26  }
 0x6ce   : > { %v5628_v11 = vpop.f32.mrf.mxu0  ;;  %v4597_v37 = vadd.f32 1.0, %v7890_v28  ;;  %7772 = vset.pattern.permute.xlu1 %v14272_v59 }
 0x6cf   : > { %v5713_v6 = vmax.f32 %v5697_v44, 0.0  ;;  %v5629_v12 = vadd.f32 %v5628_v11, %v12618_v52  ;;  %7891 = vpow2.f32 %v4569_v41  ;;  %6137 = vperm.xlu1 %7772, %v4851_v5  }
 0x6d0   : > { %7893 = vrcp.f32 %v4597_v37  ;;  %v4652_v28 = vand.u32 2147483648, %v4597_v37  ;;  %v4650_v11 = vand.u32 2147483647, %v4597_v37  ;;  %vm4646_vm8 = vweird.f32 %v4597_v37 }
 0x6d1   : > { %v5728_v32 = vpack.c.bf16 %v5713_v6, %v5712_v22  ;;  %v5665_v49 = vadd.f32 %v5629_v12, %v12323_v14  ;;  %7895 = vrcp.f32 %v12660_v38 }
 0x6d2   : > { %vm4651_vm12 = vcmp.eq.f32.partialorder %v4650_v11, 8.507059e+37  ;;  %7333 = vmatmul.msk.bf16.gmra.mxu3 %vm3063_vm5, %v12022_v27 }
 0x6d3   : > { %5810 = vmatmul.bf16.vlgmr.msrb.gmra.mxu1 %v5728_v32  ;;  %v5681_v23 = vadd.f32 %v5665_v49, %v12615_v33  ;;  %v4514_v43 = vpop.permute.xlu2 %4513  ;;  %7776 = vset.pattern.permute.xlu2 %v14272_v59 }
 0x6d4   : > { %v4554_v30 = vsub.f32 %v12490_v61, %v4514_v43  ;;  %6142 = vperm.xlu2 %7776, %v4852_v3   ;;  %v4653_v61 = vor.u32 1.1754944e-38, %v4652_v28 }
 0x6d5   : > { %v7892_v62 = vpop.eup %7891  ;;  %v5698_v33 = vadd.f32 %v12635_v24, %v5681_v23 }
 0x6d6   : > { %v5630_v17 = vpop.f32.mrf.mxu0  ;;  %v7894_v1 = vpop.eup %7893  ;;  %v12671_v54 = vadd.f32 1.0, %v7892_v62  ;;  %v4577_v3 = vmul.f32 1.442695, %v4554_v30 }
 0x6d7   : > { %v5631_v18 = vadd.f32 %v5630_v17, %v12618_v52  ;;  %v4642_v9 = vmul.f32 %v7894_v1, %v4597_v37  ;;  %v12680_v63 = vpop.eup %7895  ;;  %vm4647_vm9 = vweird.f32 %v7894_v1  ;;  %v5714_v62 = vmax.f32 %v5698_v33, 0.0  ;;  %7774 = vset.pattern.permute.xlu1 %v7982_v57 }
 0x6d8   : > { %7897 = vrcp.f32 %v12671_v54  ;;  %v4672_v6 = vmul.f32 %v12680_v63, %v12660_v38  ;;  %vm4648_vm7 = vmor %vm4646_vm8, %vm4647_vm9  ;;  %6316 = vperm.xlu1 %7774, %v4639_v26   ;;  %v4667_v26 = vand.u32 2147483648, %v12671_v54  ;;  %vm4661_vm11 = vweird.f32 %v12671_v54 }
 0x6d9   : > { %v5666_v15 = vadd.f32 %v5631_v18, %v12318_v29  ;;  %v4643_v36 = vsub.f32 1.0, %v4642_v9  ;;  %v12694_v9 = vpop.f32.mrf.mxu2  ;;  %vm4677_vm5 = vweird.f32 %v12680_v63 }
 0x6da   : > { %vm12738_vm2 = vmor %vm4676_vm4, %vm4677_vm5 }
 0x6db   : > { %v5682_v44 = vadd.f32 %v5666_v15, %v12626_v53  ;;  %v4510_v46 = vpop.permute.xlu0 %4509  ;;  %v4644_v41 = vmul.f32 %v7894_v1, %v4643_v36  ;;  %v4673_v36 = vsub.f32 1.0, %v4672_v6 }
 0x6dc   : > { %v4552_v5 = vsub.f32 %v12441_v56, %v4510_v46  ;;  %7778 = vset.pattern.permute.xlu2 %v7982_v57 }
 0x6dd   : > { %v5699_v22 = vadd.f32 %v12635_v24, %v5682_v44  ;;  %v4645_v32 = vadd.f32 %v7894_v1, %v4644_v41  ;;  %v7625_v44 = vld [vmem:[%s13529_s3 + $0x1b0] sm:$0xff]  ;;  %v4674_v6 = vmul.f32 %v12680_v63, %v4673_v36 }
 0x6de   : > { %v4573_v53 = vmul.f32 1.442695, %v4552_v5  ;;  %v5633_v12 = vpop.f32.mrf.mxu0  ;;  %v7898_v49 = vpop.eup %7897  ;;  %v4665_v5 = vand.u32 2147483647, %v12671_v54  ;;  %5991 = vmatpush.bf16.msrb.mxu2 %v7625_v44 }
 0x6df   : > { %v5634_v56 = vadd.f32 %v5633_v12, %v12618_v52  ;;  %v5715_v17 = vmax.f32 %v5699_v22, 0.0  ;;  %v4657_v23 = vmul.f32 %v7898_v49, %v12671_v54  ;;  %v4649_v18 = vsel %vm4648_vm7, %v7894_v1, %v4645_v32 }
 0x6e0   : > { %7899 = vpow2.f32 %v4573_v53  ;;  %v12696_v15 = vsel %vm4651_vm12, %v4653_v61, %v4649_v18  ;;  %vm4662_vm15 = vweird.f32 %v7898_v49  ;;  %v4668_v32 = vor.u32 1.1754944e-38, %v4667_v26  ;;  %7777 = vset.pattern.permute.xlu1 %v14272_v59 }
 0x6e1   : > { %v5729_v37 = vpack.c.bf16 %v5715_v17, %v5714_v62  ;;  %v4658_v43 = vsub.f32 1.0, %v4657_v23  ;;  %v4853_v39 = vsub.f32 1.0, %v12696_v15  ;;  %v5667_v46 = vadd.f32 %v5634_v56, %v12365_v20  ;;  %6320 = vperm.xlu2 %7778, %v12696_v15   ;;  %vm4663_vm6 = vmor %vm4661_vm11, %vm4662_vm15  ;;  %6051 = vperm.xlu1 %7777, %v12696_v15   ;;  %v12724_v62 = vpop.f32.mrf.mxu2 }
 0x6e2   : > { %7901 = vpow2.f32 %v4577_v3  ;;  %vm4666_vm14 = vcmp.eq.f32.partialorder %v4665_v5, 8.507059e+37  ;;  %v4675_v17 = vadd.f32 %v12680_v63, %v4674_v6  ;;  %v4682_v3 = vand.u32 2147483648, %v12660_v38 }
 0x6e3   : > { %v4512_v33 = vpop.permute.xlu1 %4511  ;;  %5815 = vmatmul.bf16.gmra.mxu1 %v5729_v37  ;;  %6147 = vperm.xlu0 %7773, %v4853_v39   ;;  %v4659_v28 = vmul.f32 %v7898_v49, %v4658_v43  ;;  %v5683_v53 = vadd.f32 %v5667_v46, %v12647_v55  ;;  %v4680_v15 = vand.u32 2147483647, %v12660_v38 }
 0x6e4   : > { %v4553_v1 = vsub.f32 %v12455_v50, %v4512_v33  ;;  %v4679_v33 = vsel %vm12738_vm2, %v12680_v63, %v4675_v17  ;;  %v4683_v5 = vor.u32 1.1754944e-38, %v4682_v3 }
 0x6e5   : > { %v4660_v22 = vadd.f32 %v7898_v49, %v4659_v28  ;;  %v5700_v18 = vadd.f32 %v12635_v24, %v5683_v53  ;;  %vm4681_vm0 = vcmp.eq.f32.partialorder %v4680_v15, 8.507059e+37 }
 0x6e6   : > { %v7900_v41 = vpop.eup %7899  ;;  %v4575_v11 = vmul.f32 1.442695, %v4553_v1  ;;  %v5635_v30 = vpop.f32.mrf.mxu0 }
 0x6e7   : > { %v12711_v50 = vadd.f32 1.0, %v7900_v41  ;;  %v5636_v12 = vadd.f32 %v5635_v30, %v12618_v52  ;;  %v4664_v56 = vsel %vm4663_vm6, %v7898_v49, %v4660_v22  ;;  %v5716_v1 = vmax.f32 %v5700_v18, 0.0 }
 0x6e8   : > { %7903 = vpow2.f32 %v4575_v11  ;;  %v12720_v54 = vsel %vm4666_vm14, %v4668_v32, %v4664_v56  ;;  %v7902_v49 = vpop.eup %7901  ;;  %v12751_v30 = vsel %vm4681_vm0, %v4683_v5, %v4679_v33 }
 0x6e9   : > { %7905 = vrcp.f32 %v12711_v50  ;;  %v5668_v27 = vadd.f32 %v5636_v12, %v12356_v19  ;;  %v4854_v55 = vsub.f32 1.0, %v12720_v54  ;;  %v12742_v44 = vadd.f32 1.0, %v7902_v49  ;;  %6400 = vperm.xlu2 %7778, %v4853_v39   ;;  %7779 = vset.pattern.permute.xlu1 %v7982_v57  ;;  %v12757_v22 = vpop.f32.mrf.mxu2 }
 0x6ea   : > { %6324 = vperm.xlu1 %7779, %v12720_v54   ;;  %v4855_v12 = vsub.f32 1.0, %v12751_v30  ;;  %vm4691_vm10 = vweird.f32 %v12711_v50  ;;  %v4695_v18 = vand.u32 2147483647, %v12711_v50  ;;  %v4697_v3 = vand.u32 2147483648, %v12711_v50 }
 0x6eb   : > { %v5684_v61 = vadd.f32 %v5668_v27, %v12667_v42  ;;  %v4520_v23 = vpop.permute.xlu2 %4519  ;;  %7781 = vset.pattern.permute.xlu0 %v7982_v57  ;;  %vm4721_vm11 = vweird.f32 %v12742_v44 }
 0x6ec   : > { %v4557_v37 = vsub.f32 %v12541_v10, %v4520_v23  ;;  %6404 = vperm.xlu0 %7781, %v4854_v55   ;;  %vm4696_vm9 = vcmp.eq.f32.partialorder %v4695_v18, 8.507059e+37 }
 0x6ed   : > { %v5701_v36 = vadd.f32 %v12635_v24, %v5684_v61 }
 0x6ee   : > { %v7904_v43 = vpop.eup %7903  ;;  %v4583_v46 = vmul.f32 1.442695, %v4557_v37  ;;  %v5638_v10 = vpop.f32.mrf.mxu0 }
 0x6ef   : > { %v7906_v26 = vpop.eup %7905  ;;  %v12747_v38 = vadd.f32 1.0, %v7904_v43  ;;  %v5717_v28 = vmax.f32 %v5701_v36, 0.0  ;;  %v5639_v41 = vadd.f32 %v5638_v10, %v12618_v52 }
 0x6f0   : > { %7907 = vpow2.f32 %v4583_v46  ;;  %v4687_v63 = vmul.f32 %v7906_v26, %v12711_v50  ;;  %vm4692_vm13 = vweird.f32 %v7906_v26 }
 0x6f1   : > { %7909 = vrcp.f32 %v12747_v38  ;;  %v5730_v11 = vpack.c.bf16 %v5717_v28, %v5716_v1  ;;  %v5669_v6 = vadd.f32 %v5639_v41, %v12416_v0  ;;  %6328 = vperm.xlu2 %7778, %v12751_v30   ;;  %vm12777_vm3 = vmor %vm4691_vm10, %vm4692_vm13  ;;  %v4698_v28 = vor.u32 1.1754944e-38, %v4697_v3 }
 0x6f2   : > { %7911 = vrcp.f32 %v12742_v44  ;;  %v4688_v32 = vsub.f32 1.0, %v4687_v63  ;;  %7780 = vset.pattern.permute.xlu1 %v14272_v59  ;;  %v12794_v63 = vpop.f32.mrf.mxu2  ;;  %vm4706_vm7 = vweird.f32 %v12747_v38 }
 0x6f3   : > { %5820 = vmatmul.bf16.gmra.mxu1 %v5730_v11  ;;  %v4516_v39 = vpop.permute.xlu0 %4515  ;;  %v5685_v36 = vadd.f32 %v5669_v6, %v12694_v9  ;;  %6056 = vperm.xlu1 %7780, %v12720_v54   ;;  %v4712_v6 = vand.u32 2147483648, %v12747_v38 }
 0x6f4   : > { %v4555_v53 = vsub.f32 %v12502_v25, %v4516_v39  ;;  %7784 = vset.pattern.permute.xlu0 %v14272_v59  ;;  %v4689_v49 = vmul.f32 %v7906_v26, %v4688_v32 }
 0x6f5   : > { %6157 = vperm.xlu0 %7784, %v4855_v12   ;;  %v5702_v41 = vadd.f32 %v12635_v24, %v5685_v36 }
 0x6f6   : > { %v7908_v56 = vpop.eup %7907  ;;  %v4579_v27 = vmul.f32 1.442695, %v4555_v53  ;;  %v5640_v17 = vpop.f32.mrf.mxu0  ;;  %v4690_v42 = vadd.f32 %v7906_v26, %v4689_v49 }
 0x6f7   : > { %v7910_v61 = vpop.eup %7909  ;;  %v12766_v23 = vadd.f32 1.0, %v7908_v56  ;;  %v5641_v25 = vadd.f32 %v5640_v17, %v12618_v52 }
 0x6f8   : > { %v12772_v37 = vpop.eup %7911  ;;  %v4702_v15 = vmul.f32 %v7910_v61, %v12747_v38  ;;  %7913 = vpow2.f32 %v4579_v27  ;;  %v4694_v33 = vsel %vm12777_vm3, %v7906_v26, %v4690_v42  ;;  %v7624_v26 = vld [vmem:[%s13529_s3 + $0x1a8] sm:$0xff]  ;;  %vm4707_vm8 = vweird.f32 %v7910_v61 }
 0x6f9   : > { %v5670_v43 = vadd.f32 %v5641_v25, %v12406_v34  ;;  %v4717_v50 = vmul.f32 %v12772_v37, %v12742_v44  ;;  %7915 = vrcp.f32 %v12766_v23  ;;  %v12796_v39 = vsel %vm4696_vm9, %v4698_v28, %v4694_v33  ;;  %5992 = vmatpush.bf16.msrb.mxu2 %v7624_v26  ;;  %7782 = vset.pattern.permute.xlu2 %v14272_v59  ;;  %vm4708_vm12 = vmor %vm4706_vm7, %vm4707_vm8 }
 0x6fa   : > { %v4703_v10 = vsub.f32 1.0, %v4702_v15  ;;  %v4710_v27 = vand.u32 2147483647, %v12747_v38  ;;  %v5718_v25 = vmax.f32 %v5702_v41, 0.0  ;;  %6061 = vperm.xlu2 %7782, %v12751_v30   ;;  %v4713_v42 = vor.u32 1.1754944e-38, %v4712_v6 }
 0x6fb   : > { %v5686_v9 = vadd.f32 %v5670_v43, %v12724_v62  ;;  %v4518_v1 = vpop.permute.xlu1 %4517  ;;  %v4718_v43 = vsub.f32 1.0, %v4717_v50  ;;  %6152 = vperm.xlu1 %7780, %v4854_v55   ;;  %v4725_v6 = vand.u32 2147483647, %v12742_v44  ;;  %vm4722_vm6 = vweird.f32 %v12772_v37 }
 0x6fc   : > { %v4556_v5 = vsub.f32 %v12529_v8, %v4518_v1  ;;  %v4704_v11 = vmul.f32 %v7910_v61, %v4703_v10  ;;  %vm4711_vm15 = vcmp.eq.f32.partialorder %v4710_v27, 8.507059e+37  ;;  %vm4766_vm4 = vweird.f32 %v12766_v23  ;;  %vm12872_vm13 = vmor %vm4721_vm11, %vm4722_vm6 }
 0x6fd   : > { %v5703_v62 = vadd.f32 %v12635_v24, %v5686_v9  ;;  %7785 = vset.pattern.permute.xlu0 %v7982_v57  ;;  %v4719_v50 = vmul.f32 %v12772_v37, %v4718_v43  ;;  %vm4726_vm9 = vcmp.eq.f32.partialorder %v4725_v6, 8.507059e+37 }
 0x6fe   : > { %v7914_v53 = vpop.eup %7913  ;;  %v4581_v32 = vmul.f32 1.442695, %v4556_v5  ;;  %v5643_v8 = vpop.f32.mrf.mxu0  ;;  %v4705_v56 = vadd.f32 %v7910_v61, %v4704_v11  ;;  %6332 = vperm.xlu0 %7785, %v12796_v39   ;;  %v4856_v11 = vsub.f32 1.0, %v12796_v39 }
 0x6ff   : > { %v12803_v17 = vadd.f32 1.0, %v7914_v53  ;;  %v5644_v49 = vadd.f32 %v5643_v8, %v12618_v52  ;;  %v5719_v18 = vmax.f32 %v5703_v62, 0.0  ;;  %v12810_v15 = vpop.eup %7915  ;;  %v12822_v5 = vpop.f32.mrf.mxu2  ;;  %v4720_v27 = vadd.f32 %v12772_v37, %v4719_v50 }
 0x700   : > { %7917 = vpow2.f32 %v4581_v32  ;;  %v4709_v3 = vsel %vm4708_vm12, %v7910_v61, %v4705_v56  ;;  %v4762_v10 = vmul.f32 %v12810_v15, %v12766_v23  ;;  %v4727_v32 = vand.u32 2147483648, %v12742_v44 }
 0x701   : > { %7919 = vrcp.f32 %v12803_v17  ;;  %v5671_v38 = vadd.f32 %v5644_v49, %v12478_v60  ;;  %v5731_v36 = vpack.c.bf16 %v5719_v18, %v5718_v25  ;;  %v12814_v46 = vsel %vm4711_vm15, %v4713_v42, %v4709_v3  ;;  %v7623_v42 = vld [vmem:[%s13529_s3 + $0x1a0] sm:$0xff] }
 0x702   : > { %v4857_v28 = vsub.f32 1.0, %v12814_v46  ;;  %7786 = vset.pattern.permute.xlu2 %v7982_v57  ;;  %vm4736_vm14 = vweird.f32 %v12803_v17  ;;  %v4740_v56 = vand.u32 2147483647, %v12803_v17  ;;  %v4742_v3 = vand.u32 2147483648, %v12803_v17  ;;  %5993 = vmatpush.bf16.msrb.mxu2 %v7623_v42 }
 0x703   : > { %5825 = vmatmul.bf16.gmra.mxu1 %v5731_v36  ;;  %v4526_v61 = vpop.permute.xlu2 %4525  ;;  %v5687_v33 = vadd.f32 %v5671_v38, %v12757_v22  ;;  %v4763_v22 = vsub.f32 1.0, %v4762_v10  ;;  %6412 = vperm.xlu2 %7786, %v4856_v11   ;;  %vm4767_vm2 = vweird.f32 %v12810_v15 }
 0x704   : > { %v4560_v54 = vsub.f32 %v12592_v16, %v4526_v61  ;;  %7783 = vset.pattern.permute.xlu1 %v7982_v57  ;;  %v4772_v61 = vand.u32 2147483648, %v12766_v23  ;;  %v4743_v50 = vor.u32 1.1754944e-38, %v4742_v3  ;;  %vm4741_vm10 = vcmp.eq.f32.partialorder %v4740_v56, 8.507059e+37  ;;  %vm4768_vm3 = vmor %vm4766_vm4, %vm4767_vm2 }
 0x705   : > { %v5704_v16 = vadd.f32 %v12635_v24, %v5687_v33  ;;  %6408 = vperm.xlu1 %7783, %v4855_v12   ;;  %v4764_v43 = vmul.f32 %v12810_v15, %v4763_v22  ;;  %v4770_v22 = vand.u32 2147483647, %v12766_v23 }
 0x706   : > { %v7918_v9 = vpop.eup %7917  ;;  %v5645_v1 = vpop.f32.mrf.mxu0  ;;  %7789 = vset.pattern.permute.xlu0 %v14272_v59  ;;  %v4589_v49 = vmul.f32 1.442695, %v4560_v54 }
 0x707   : > { %v7920_v41 = vpop.eup %7919  ;;  %v12825_v26 = vadd.f32 1.0, %v7918_v9  ;;  %v5646_v55 = vadd.f32 %v5645_v1, %v12618_v52  ;;  %6167 = vperm.xlu0 %7789, %v4857_v28   ;;  %v5720_v10 = vmax.f32 %v5704_v16, 0.0  ;;  %v4765_v30 = vadd.f32 %v12810_v15, %v4764_v43 }
 0x708   : > { %v4732_v62 = vmul.f32 %v7920_v41, %v12803_v17  ;;  %vm4737_vm5 = vweird.f32 %v7920_v41  ;;  %vm4771_vm8 = vcmp.eq.f32.partialorder %v4770_v22, 8.507059e+37 }
 0x709   : > { %v5672_v53 = vadd.f32 %v5646_v55, %v12449_v40  ;;  %7921 = vrcp.f32 %v12825_v26  ;;  %vm4738_vm0 = vmor %vm4736_vm14, %vm4737_vm5  ;;  %v5024_v55 = vpop.f32.mrf.mxu2  ;;  %v4769_v44 = vsel %vm4768_vm3, %v12810_v15, %v4765_v30  ;;  %vm4751_vm12 = vweird.f32 %v12825_v26 }
 0x70a   : > { %v4733_v8 = vsub.f32 1.0, %v4732_v62  ;;  %7923 = vpow2.f32 %v4589_v49  ;;  %v4773_v49 = vor.u32 1.1754944e-38, %v4772_v61  ;;  %v4757_v61 = vand.u32 2147483648, %v12825_v26 }
 0x70b   : > { %v5688_v25 = vadd.f32 %v5672_v53, %v12794_v63  ;;  %v4522_v18 = vpop.permute.xlu0 %4521  ;;  %6336 = vperm.xlu2 %7786, %v12814_v46  }
 0x70c   : > { %v4558_v38 = vsub.f32 %v12564_v13, %v4522_v18  ;;  %v4734_v36 = vmul.f32 %v7920_v41, %v4733_v8  ;;  %v4728_v8 = vor.u32 1.1754944e-38, %v4727_v32  ;;  %v12893_v3 = vsel %vm4771_vm8, %v4773_v49, %v4769_v44 }
 0x70d   : > { %v5705_v63 = vadd.f32 %v12635_v24, %v5688_v25  ;;  %7787 = vset.pattern.permute.xlu1 %v14272_v59  ;;  %v4861_v42 = vsub.f32 1.0, %v12893_v3  ;;  %v4758_v62 = vor.u32 1.1754944e-38, %v4757_v61 }
 0x70e   : > { %v4585_v33 = vmul.f32 1.442695, %v4558_v38  ;;  %v5648_v13 = vpop.f32.mrf.mxu0  ;;  %v4735_v9 = vadd.f32 %v7920_v41, %v4734_v36  ;;  %6162 = vperm.xlu1 %7787, %v4856_v11  }
 0x70f   : > { %v5721_v12 = vmax.f32 %v5705_v63, 0.0  ;;  %v5649_v1 = vadd.f32 %v5648_v13, %v12618_v52  ;;  %7791 = vset.pattern.permute.xlu0 %v7982_v57  ;;  %v7922_v16 = vpop.eup %7921 }
 0x710   : > { %7925 = vpow2.f32 %v4585_v33  ;;  %v4739_v54 = vsel %vm4738_vm0, %v7920_v41, %v4735_v9  ;;  %v4724_v41 = vsel %vm12872_vm13, %v12772_v37, %v4720_v27  ;;  %v4747_v25 = vmul.f32 %v7922_v16, %v12825_v26  ;;  %v7924_v18 = vpop.eup %7923  ;;  %v7622_v33 = vld [vmem:[%s13529_s3 + $0x198] sm:$0xff] }
 0x711   : > { %v12876_v17 = vsel %vm4741_vm10, %v4743_v50, %v4739_v54  ;;  %v5732_v53 = vpack.c.bf16 %v5721_v12, %v5720_v10  ;;  %v5673_v56 = vadd.f32 %v5649_v1, %v12508_v58  ;;  %v12891_v23 = vsel %vm4726_vm9, %v4728_v8, %v4724_v41  ;;  %5994 = vmatpush.bf16.msrb.mxu2 %v7622_v33 }
 0x712   : > { %6344 = vperm.xlu0 %7791, %v12876_v17   ;;  %v4858_v38 = vsub.f32 1.0, %v12891_v23  ;;  %v4748_v36 = vsub.f32 1.0, %v4747_v25  ;;  %v12903_v43 = vadd.f32 1.0, %v7924_v18  ;;  %vm4752_vm7 = vweird.f32 %v7922_v16 }
 0x713   : > { %5830 = vmatmul.bf16.gmra.mxu1 %v5732_v53  ;;  %v5689_v27 = vadd.f32 %v5673_v56, %v12822_v5  ;;  %v5027_v5 = vpop.f32.mrf.mxu2  ;;  %v4755_v9 = vand.u32 2147483647, %v12825_v26  ;;  %vm4753_vm15 = vmor %vm4751_vm12, %vm4752_vm7  ;;  %v4524_v26 = vpop.permute.xlu1 %4523 }
 0x714   : > { %6420 = vperm.xlu2 %7786, %v4858_v38   ;;  %v4749_v13 = vmul.f32 %v7922_v16, %v4748_v36  ;;  %vm4811_vm0 = vweird.f32 %v12903_v43 }
 0x715   : > { %v5706_v11 = vadd.f32 %v12635_v24, %v5689_v27  ;;  %vm4756_vm11 = vcmp.eq.f32.partialorder %v4755_v9, 8.507059e+37 }
 0x716   : > { %v7926_v37 = vpop.eup %7925  ;;  %v5650_v15 = vpop.f32.mrf.mxu0  ;;  %7788 = vset.pattern.permute.xlu1 %v7982_v57  ;;  %v4750_v1 = vadd.f32 %v7922_v16, %v4749_v13 }
 0x717   : > { %v12897_v32 = vadd.f32 1.0, %v7926_v37  ;;  %v5651_v6 = vadd.f32 %v5650_v15, %v12618_v52  ;;  %6416 = vperm.xlu1 %7788, %v4857_v28   ;;  %v5722_v54 = vmax.f32 %v5706_v11, 0.0  ;;  %v7621_v37 = vld [vmem:[%s13529_s3 + $0x190] sm:$0xff] }
 0x718   : > { %v4754_v41 = vsel %vm4753_vm15, %v7922_v16, %v4750_v1  ;;  %5995 = vmatpush.bf16.msrb.mxu2 %v7621_v37 }
 0x719   : > { %7927 = vrcp.f32 %v12897_v32  ;;  %v5674_v10 = vadd.f32 %v5651_v6, %v12499_v35  ;;  %v12925_v8 = vsel %vm4756_vm11, %v4758_v62, %v4754_v41  ;;  %v7620_v6 = vld [vmem:[%s13529_s3 + $0x188] sm:$0xff]  ;;  %v4787_v33 = vand.u32 2147483648, %v12897_v32 }
 0x71a   : > { %6432 = vperm.xlu0 %7791, %v4861_v42   ;;  %7929 = vrcp.f32 %v12903_v43  ;;  %v4860_v28 = vsub.f32 1.0, %v12925_v8  ;;  %vm4781_vm14 = vweird.f32 %v12897_v32  ;;  %v4559_v62 = vsub.f32 %v12576_v45, %v4524_v26 }
 0x71b   : > { %v5690_v63 = vadd.f32 %v5674_v10, %v5024_v55  ;;  %v5029_v18 = vpop.f32.mrf.mxu2 }
 0x71c   : > { %6428 = vperm.xlu2 %7786, %v4860_v28   ;;  %5996 = vmatpush.bf16.msrb.mxu2 %v7620_v6 }
 0x71d   : > { %v5707_v30 = vadd.f32 %v12635_v24, %v5690_v63 }
 0x71e   : > { %v5653_v12 = vpop.f32.mrf.mxu0 }
 0x71f   : > { %v7928_v50 = vpop.eup %7927  ;;  %v5723_v55 = vmax.f32 %v5707_v30, 0.0  ;;  %v5654_v22 = vadd.f32 %v5653_v12, %v12618_v52  ;;  %6340 = vperm.xlu1 %7788, %v12891_v23   ;;  %v4785_v12 = vand.u32 2147483647, %v12897_v32 }
 0x720   : > { %v4777_v53 = vmul.f32 %v7928_v50, %v12897_v32  ;;  %v12928_v49 = vpop.eup %7929  ;;  %vm4782_vm6 = vweird.f32 %v7928_v50 }
 0x721   : > { %v5733_v44 = vpack.c.bf16 %v5723_v55, %v5722_v54  ;;  %v5675_v25 = vadd.f32 %v5654_v22, %v12555_v48  ;;  %v4807_v15 = vmul.f32 %v12928_v49, %v12903_v43  ;;  %vm12948_vm5 = vmor %vm4781_vm14, %vm4782_vm6  ;;  %vm4786_vm4 = vcmp.eq.f32.partialorder %v4785_v12, 8.507059e+37 }
 0x722   : > { %v4778_v56 = vsub.f32 1.0, %v4777_v53  ;;  %vm4812_vm2 = vweird.f32 %v12928_v49 }
 0x723   : > { %5835 = vmatmul.bf16.gmra.mxu1 %v5733_v44  ;;  %v5691_v36 = vadd.f32 %v5675_v25, %v5027_v5  ;;  %v4808_v61 = vsub.f32 1.0, %v4807_v15  ;;  %v5032_v41 = vpop.f32.mrf.mxu2  ;;  %v4528_v26 = vpop.permute.xlu0 %4527  ;;  %v4817_v15 = vand.u32 2147483648, %v12903_v43  ;;  %vm12972_vm10 = vmor %vm4811_vm0, %vm4812_vm2 }
 0x724   : > { %v4779_v16 = vmul.f32 %v7928_v50, %v4778_v56  ;;  %7795 = vset.pattern.permute.xlu2 %v14272_v59 }
 0x725   : > { %v5708_v13 = vadd.f32 %v12635_v24, %v5691_v36  ;;  %6182 = vperm.xlu2 %7795, %v4860_v28   ;;  %v4809_v22 = vmul.f32 %v12928_v49, %v4808_v61  ;;  %v4859_v36 = vsub.f32 1.0, %v12876_v17  ;;  %v12981_v61 = vpop.f32.mrf.mxu3 }
 0x726   : > { %v5655_v27 = vpop.f32.mrf.mxu0  ;;  %v4780_v63 = vadd.f32 %v7928_v50, %v4779_v16 }
 0x727   : > { %v5656_v10 = vadd.f32 %v5655_v27, %v12618_v52  ;;  %7790 = vset.pattern.permute.xlu1 %v14272_v59  ;;  %v5724_v44 = vmax.f32 %v5708_v13, 0.0  ;;  %v4810_v45 = vadd.f32 %v12928_v49, %v4809_v22 }
 0x728   : > { %v4784_v55 = vsel %vm12948_vm5, %v7928_v50, %v4780_v63  ;;  %6172 = vperm.xlu1 %7790, %v4858_v38   ;;  %v4815_v38 = vand.u32 2147483647, %v12903_v43 }
 0x729   : > { %v5676_v11 = vadd.f32 %v5656_v10, %v12537_v7  ;;  %v4561_v10 = vsub.f32 %v12598_v21, %v4528_v26  ;;  %v4814_v63 = vsel %vm12972_vm10, %v12928_v49, %v4810_v45  ;;  %v7619_v49 = vld [vmem:[%s13529_s3 + $0x180] sm:$0xff] }
 0x72a   : > { %vm4816_vm13 = vcmp.eq.f32.partialorder %v4815_v38, 8.507059e+37  ;;  %5997 = vmatpush.bf16.msrb.mxu2 %v7619_v49 }
 0x72b   : > { %v5692_v9 = vadd.f32 %v5676_v11, %v5029_v18  ;;  %v4530_v30 = vpop.permute.xlu1 %4529  ;;  %v4587_v18 = vmul.f32 1.442695, %v4559_v62 }
 0x72c   : > { %v4562_v5 = vsub.f32 %v12611_v31, %v4530_v30  ;;  %v4788_v31 = vor.u32 1.1754944e-38, %v4787_v33  ;;  %v5034_v30 = vpop.f32.mrf.mxu2 }
 0x72d   : > { %v5709_v54 = vadd.f32 %v12635_v24, %v5692_v9  ;;  %v4818_v9 = vor.u32 1.1754944e-38, %v4817_v15 }
 0x72e   : > { %v4593_v53 = vmul.f32 1.442695, %v4562_v5  ;;  %v5658_v32 = vpop.f32.mrf.mxu0  ;;  %v12961_v50 = vsel %vm4786_vm4, %v4788_v31, %v4784_v55  ;;  %v4591_v5 = vmul.f32 1.442695, %v4561_v10 }
 0x72f   : > { %v5725_v56 = vmax.f32 %v5709_v54, 0.0  ;;  %v5659_v25 = vadd.f32 %v5658_v32, %v12618_v52  ;;  %v4862_v16 = vsub.f32 1.0, %v12961_v50  ;;  %v12986_v12 = vsel %vm4816_vm13, %v4818_v9, %v4814_v63  ;;  %v13015_v63 = vld [vmem:[%s13533_s7 + $0x8] sm:$0xff] }
 0x730   : > { %7931 = vpow2.f32 %v4593_v53  ;;  %7792 = vset.pattern.permute.xlu1 %v7982_v57  ;;  %v13763_v55 = vsub.f32 1.0, %v12986_v12 }
 0x731   : > { %v5734_v28 = vpack.c.bf16 %v5725_v56, %v5724_v44  ;;  %v5677_v37 = vadd.f32 %v5659_v25, %v12573_v2  ;;  %6192 = vperm.xlu2 %7795, %v4862_v16   ;;  %7933 = vpow2.f32 %v4587_v18  ;;  %6424 = vperm.xlu1 %7792, %v4859_v36   ;;  %v5048_v44 = vpop.f32.mrf.mxu3 }
 0x733   : > { %5840 = vmatmul.bf16.gmra.mxu1 %v5734_v28  ;;  %v5693_v33 = vadd.f32 %v5677_v37, %v5032_v41 }
 0x735   : > { %v5710_v1 = vadd.f32 %v12635_v24, %v5693_v33 }
 0x736   : > { %v7932_v6 = vpop.eup %7931  ;;  %v5660_v11 = vpop.f32.mrf.mxu0 }
 0x737   : > { %v4610_v43 = vadd.f32 1.0, %v7932_v6  ;;  %v5661_v13 = vadd.f32 %v5660_v11, %v12618_v52  ;;  %v7934_v52 = vpop.eup %7933  ;;  %v5726_v32 = vmax.f32 %v5710_v1, 0.0 }
 0x738   : > { %v12997_v53 = vadd.f32 1.0, %v7934_v52 }
 0x739   : > { %7935 = vrcp.f32 %v4610_v43  ;;  %v5678_v21 = vadd.f32 %v5661_v13, %v12580_v47  ;;  %7798 = vset.pattern.permute.xlu2 %v7982_v57  ;;  %7793 = vset.pattern.permute.xlu1 %v14272_v59  ;;  %v4845_v45 = vand.u32 2147483647, %v4610_v43  ;;  %vm4841_vm9 = vweird.f32 %v4610_v43  ;;  %v5051_v10 = vpop.f32.mrf.mxu3 }
 0x73a   : > { %7937 = vpow2.f32 %v4591_v5  ;;  %6444 = vperm.xlu2 %7798, %v13763_v55   ;;  %6177 = vperm.xlu1 %7793, %v4859_v36   ;;  %vm4796_vm15 = vweird.f32 %v12997_v53 }
 0x73b   : > { %v5694_v54 = vadd.f32 %v5678_v21, %v5034_v30  ;;  %7939 = vrcp.f32 %v12997_v53  ;;  %vm4846_vm7 = vcmp.eq.f32.partialorder %v4845_v45, 8.507059e+37 }
 0x73d   : > { %v5711_v22 = vadd.f32 %v12635_v24, %v5694_v54  ;;  %v4847_v24 = vand.u32 2147483648, %v4610_v43 }
 0x73f   : > { %v7936_v62 = vpop.eup %7935  ;;  %v5727_v41 = vmax.f32 %v5711_v22, 0.0  ;;  %v4848_v15 = vor.u32 1.1754944e-38, %v4847_v24 }
 0x740   : > { %v4837_v31 = vmul.f32 %v7936_v62, %v4610_v43  ;;  %v7938_v28 = vpop.eup %7937  ;;  %vm4842_vm3 = vweird.f32 %v7936_v62  ;;  %v13018_v43 = vperm.slane %v13015_v63, 4 }
 0x741   : > { %v5735_v56 = vpack.c.bf16 %v5727_v41, %v5726_v32  ;;  %v13001_v37 = vadd.f32 1.0, %v7938_v28  ;;  %vm4843_vm8 = vmor %vm4841_vm9, %vm4842_vm3  ;;  %v7940_v27 = vpop.eup %7939  ;;  %v5053_v5 = vpop.f32.mrf.mxu3  ;;  %v7960_v32 = vld [vmem:[%s13533_s7 + $0x10] sm:$0x7] }
 0x742   : > { %v4838_v25 = vsub.f32 1.0, %v4837_v31  ;;  %7794 = vset.pattern.permute.xlu1 %v7982_v57  ;;  %v4792_v11 = vmul.f32 %v7940_v27, %v12997_v53  ;;  %vm4797_vm12 = vweird.f32 %v7940_v27  ;;  %v13031_v41 = vperm.slane %v7960_v32, 2 }
 0x743   : > { %5845 = vmatmul.bf16.gmra.mxu1 %v5735_v56  ;;  %6348 = vperm.xlu1 %7794, %v12925_v8   ;;  %7941 = vrcp.f32 %v13001_v37  ;;  %v4802_v31 = vand.u32 2147483648, %v12997_v53  ;;  %vm4798_vm11 = vmor %vm4796_vm15, %vm4797_vm12  ;;  %vm4826_vm5 = vweird.f32 %v13001_v37 }
 0x744   : > { %v4839_v18 = vmul.f32 %v7936_v62, %v4838_v25  ;;  %v4793_v33 = vsub.f32 1.0, %v4792_v11 }
 0x746   : > { %v4840_v26 = vadd.f32 %v7936_v62, %v4839_v18  ;;  %v4794_v21 = vmul.f32 %v7940_v27, %v4793_v33  ;;  %v4803_v18 = vor.u32 1.1754944e-38, %v4802_v31 }
 0x748   : > { %v4844_v38 = vsel %vm4843_vm8, %v7936_v62, %v4840_v26  ;;  %v4795_v22 = vadd.f32 %v7940_v27, %v4794_v21 }
 0x749   : > { %v13003_v6 = vsel %vm4846_vm7, %v4848_v15, %v4844_v38  ;;  %v7942_v9 = vpop.eup %7941  ;;  %v5056_v45 = vpop.f32.mrf.mxu3 }
 0x74a   : > { %v13762_v36 = vsub.f32 1.0, %v13003_v6  ;;  %v4822_v49 = vmul.f32 %v7942_v9, %v13001_v37  ;;  %v4799_v25 = vsel %vm4798_vm11, %v7940_v27, %v4795_v22  ;;  %vm4827_vm14 = vweird.f32 %v7942_v9 }
 0x74b   : > { %7796 = vset.pattern.permute.xlu1 %v14272_v59  ;;  %vm4828_vm4 = vmor %vm4826_vm5, %vm4827_vm14 }
 0x74c   : > { %6452 = vperm.xlu2 %7798, %v13762_v36   ;;  %6187 = vperm.xlu1 %7796, %v4861_v42   ;;  %v4823_v54 = vsub.f32 1.0, %v4822_v49 }
 0x750   : > { %v5811_v13 = vpop.f32.mrf.mxu1 }
 0x751   : > { %v5812_v30 = vadd.f32 %v5811_v13, %v13018_v43 }
 0x753   : > { %v5851_v1 = vadd.f32 %v5812_v30, %v12272_v51  ;;  %v4800_v51 = vand.u32 2147483647, %v12997_v53 }
 0x754   : > { %7804 = vset.pattern.permute.xlu2 %v14272_v59  ;;  %7797 = vset.pattern.permute.xlu1 %v7982_v57 }
 0x755   : > { %v5867_v62 = vadd.f32 %v5851_v1, %v12981_v61  ;;  %v4824_v61 = vmul.f32 %v7942_v9, %v4823_v54  ;;  %6436 = vperm.xlu1 %7797, %v4862_v16   ;;  %vm4801_vm6 = vcmp.eq.f32.partialorder %v4800_v51, 8.507059e+37  ;;  %v4832_v16 = vand.u32 2147483648, %v13001_v37 }
 0x756   : > { %v13043_v15 = vsel %vm4801_vm6, %v4803_v18, %v4799_v25 }
 0x757   : > { %v5884_v24 = vadd.f32 %v13031_v41, %v5867_v62  ;;  %v13764_v27 = vsub.f32 1.0, %v13043_v15  ;;  %v4833_v49 = vor.u32 1.1754944e-38, %v4832_v16 }
 0x758   : > { %v5813_v52 = vpop.f32.mrf.mxu1 }
 0x759   : > { %v5814_v42 = vadd.f32 %v5813_v52, %v13018_v43  ;;  %v5900_v38 = vmax.f32 %v5884_v24, 0.0  ;;  %v5058_v52 = vpop.f32.mrf.mxu3 }
 0x75b   : > { %v5852_v56 = vadd.f32 %v5814_v42, %v12260_v4  ;;  %v4825_v4 = vadd.f32 %v7942_v9, %v4824_v61 }
 0x75d   : > { %v5868_v28 = vadd.f32 %v5852_v56, %v5048_v44  ;;  %v4830_v44 = vand.u32 2147483647, %v13001_v37  ;;  %6440 = vperm.xlu1 %7797, %v13764_v27   ;;  %v4829_v30 = vsel %vm4828_vm4, %v7942_v9, %v4825_v4 }
 0x75f   : > { %v5885_v26 = vadd.f32 %v13031_v41, %v5868_v28  ;;  %vm4831_vm2 = vcmp.eq.f32.partialorder %v4830_v44, 8.507059e+37 }
 0x760   : > { %v5816_v53 = vpop.f32.mrf.mxu1  ;;  %v13053_v1 = vsel %vm4831_vm2, %v4833_v49, %v4829_v30 }
 0x761   : > { %v5901_v11 = vmax.f32 %v5885_v26, 0.0  ;;  %v5817_v33 = vadd.f32 %v5816_v53, %v13018_v43  ;;  %v4865_v37 = vsub.f32 1.0, %v13053_v1 }
 0x763   : > { %v5916_v13 = vpack.c.bf16 %v5901_v11, %v5900_v38  ;;  %v5853_v21 = vadd.f32 %v5817_v33, %v12323_v14 }
 0x765   : > { %5998 = vmatmul.bf16.vlgmr.msrb.gmra.mxu2 %v5916_v13  ;;  %v5869_v22 = vadd.f32 %v5853_v21, %v5051_v10  ;;  %6448 = vperm.xlu1 %7797, %v4865_v37   ;;  %v5061_v10 = vpop.f32.mrf.mxu3 }
 0x767   : > { %v5886_v14 = vadd.f32 %v13031_v41, %v5869_v22 }
 0x768   : > { %v5818_v54 = vpop.f32.mrf.mxu1 }
 0x769   : > { %v5819_v62 = vadd.f32 %v5818_v54, %v13018_v43  ;;  %v5902_v56 = vmax.f32 %v5886_v14, 0.0 }
 0x76b   : > { %v5854_v32 = vadd.f32 %v5819_v62, %v12318_v29 }
 0x76d   : > { %v5870_v9 = vadd.f32 %v5854_v32, %v5053_v5  ;;  %v5063_v26 = vpop.f32.mrf.mxu3 }
 0x76f   : > { %v5887_v42 = vadd.f32 %v13031_v41, %v5870_v9 }
 0x770   : > { %v5821_v31 = vpop.f32.mrf.mxu1 }
 0x771   : > { %v5822_v51 = vadd.f32 %v5821_v31, %v13018_v43  ;;  %v5903_v61 = vmax.f32 %v5887_v42, 0.0 }
 0x773   : > { %v5917_v25 = vpack.c.bf16 %v5903_v61, %v5902_v56  ;;  %v5855_v24 = vadd.f32 %v5822_v51, %v12365_v20 }
 0x775   : > { %6003 = vmatmul.bf16.gmra.mxu2 %v5917_v25  ;;  %v5871_v29 = vadd.f32 %v5855_v24, %v5056_v45  ;;  %v5066_v20 = vpop.f32.mrf.mxu3 }
 0x777   : > { %v5888_v4 = vadd.f32 %v13031_v41, %v5871_v29  ;;  %v13080_v29 = vpop.permute.xlu1 %6392 }
 0x778   : > { %v5823_v28 = vpop.f32.mrf.mxu1 }
 0x779   : > { %v5824_v18 = vadd.f32 %v5823_v28, %v13018_v43  ;;  %v5904_v16 = vmax.f32 %v5888_v4, 0.0 }
 0x77b   : > { %v5856_v5 = vadd.f32 %v5824_v18, %v12356_v19 }
 0x77d   : > { %v5872_v53 = vadd.f32 %v5856_v5, %v5058_v52  ;;  %v5068_v22 = vpop.f32.mrf.mxu3 }
 0x77f   : > { %v5889_v38 = vadd.f32 %v13031_v41, %v5872_v53 }
 0x780   : > { %v5826_v11 = vpop.f32.mrf.mxu1 }
 0x781   : > { %v5827_v33 = vadd.f32 %v5826_v11, %v13018_v43  ;;  %v5905_v44 = vmax.f32 %v5889_v38, 0.0 }
 0x783   : > { %v5918_v13 = vpack.c.bf16 %v5905_v44, %v5904_v16  ;;  %v5857_v30 = vadd.f32 %v5827_v33, %v12416_v0  ;;  %v6138_v16 = vpop.permute.xlu1 %6137 }
 0x785   : > { %6008 = vmatmul.bf16.gmra.mxu2 %v5918_v13  ;;  %v5873_v21 = vadd.f32 %v5857_v30, %v5061_v10  ;;  %v5071_v56 = vpop.f32.mrf.mxu3 }
 0x787   : > { %v5890_v52 = vadd.f32 %v13031_v41, %v5873_v21 }
 0x788   : > { %v5828_v45 = vpop.f32.mrf.mxu1 }
 0x789   : > { %v5829_v19 = vadd.f32 %v5828_v45, %v13018_v43  ;;  %v5906_v14 = vmax.f32 %v5890_v52, 0.0 }
 0x78b   : > { %v5858_v49 = vadd.f32 %v5829_v19, %v12406_v34  ;;  %v13089_v52 = vpop.permute.xlu1 %6316 }
 0x78d   : > { %v5874_v54 = vadd.f32 %v5858_v49, %v5063_v26  ;;  %v5073_v53 = vpop.f32.mrf.mxu3 }
 0x78f   : > { %v5891_v62 = vadd.f32 %v13031_v41, %v5874_v54 }
 0x790   : > { %v5831_v32 = vpop.f32.mrf.mxu1 }
 0x791   : > { %v5832_v9 = vadd.f32 %v5831_v32, %v13018_v43  ;;  %v5907_v42 = vmax.f32 %v5891_v62, 0.0 }
 0x793   : > { %v5919_v31 = vpack.c.bf16 %v5907_v42, %v5906_v14  ;;  %v5859_v0 = vadd.f32 %v5832_v9, %v12478_v60 }
 0x795   : > { %6013 = vmatmul.bf16.gmra.mxu2 %v5919_v31  ;;  %v5875_v61 = vadd.f32 %v5859_v0, %v5066_v20  ;;  %v5076_v13 = vpop.f32.mrf.mxu3 }
 0x797   : > { %v5892_v25 = vadd.f32 %v13031_v41, %v5875_v61 }
 0x798   : > { %v5833_v51 = vpop.f32.mrf.mxu1 }
 0x799   : > { %v5834_v34 = vadd.f32 %v5833_v51, %v13018_v43  ;;  %v5908_v5 = vmax.f32 %v5892_v25, 0.0  ;;  %v13097_v51 = vpop.permute.xlu1 %6051 }
 0x79b   : > { %v5860_v10 = vadd.f32 %v5834_v34, %v12449_v40 }
 0x79d   : > { %v5876_v24 = vadd.f32 %v5860_v10, %v5068_v22  ;;  %v13091_v22 = vpop.permute.xlu2 %6041 }
 0x79f   : > { %v5893_v28 = vadd.f32 %v13031_v41, %v5876_v24 }
 0x7a0   : > { %v5836_v18 = vpop.f32.mrf.mxu1 }
 0x7a1   : > { %v5909_v26 = vmax.f32 %v5893_v28, 0.0  ;;  %v5837_v60 = vadd.f32 %v5836_v18, %v13018_v43 }
 0x7a3   : > { %v5920_v4 = vpack.c.bf16 %v5909_v26, %v5908_v5  ;;  %v5861_v38 = vadd.f32 %v5837_v60, %v12508_v58  ;;  %v13102_v5 = vpop.permute.xlu1 %6324 }
 0x7a5   : > { %6018 = vmatmul.bf16.gmra.mxu2 %v5920_v4  ;;  %v5877_v33 = vadd.f32 %v5861_v38, %v5071_v56  ;;  %v6397_v56 = vpop.permute.xlu2 %6396 }
 0x7a7   : > { %v5894_v20 = vadd.f32 %v13031_v41, %v5877_v33 }
 0x7a8   : > { %v5838_v11 = vpop.f32.mrf.mxu1 }
 0x7a9   : > { %v5839_v40 = vadd.f32 %v5838_v11, %v13018_v43  ;;  %v5910_v19 = vmax.f32 %v5894_v20, 0.0 }
 0x7ab   : > { %v5862_v44 = vadd.f32 %v5839_v40, %v12499_v35  ;;  %v5078_v35 = vpop.f32.mrf.mxu3  ;;  %v13108_v20 = vpop.permute.xlu1 %6056 }
 0x7ad   : > { %v5878_v30 = vadd.f32 %v5862_v44, %v5073_v53  ;;  %v6143_v26 = vpop.permute.xlu2 %6142 }
 0x7af   : > { %v5895_v45 = vadd.f32 %v13031_v41, %v5878_v30 }
 0x7b0   : > { %v5841_v21 = vpop.f32.mrf.mxu1 }
 0x7b1   : > { %v5911_v49 = vmax.f32 %v5895_v45, 0.0  ;;  %v5842_v54 = vadd.f32 %v5841_v21, %v13018_v43 }
 0x7b3   : > { %v5921_v58 = vpack.c.bf16 %v5911_v49, %v5910_v19  ;;  %v5863_v62 = vadd.f32 %v5842_v54, %v12555_v48  ;;  %v5081_v10 = vpop.f32.mrf.mxu3  ;;  %v6153_v45 = vpop.permute.xlu1 %6152 }
 0x7b4   : > { %v13112_v19 = vpop.permute.xlu0 %6312 }
 0x7b5   : > { %6023 = vmatmul.bf16.gmra.mxu2 %v5921_v58  ;;  %v5879_v9 = vadd.f32 %v5863_v62, %v5076_v13 }
 0x7b7   : > { %v5896_v31 = vadd.f32 %v13031_v41, %v5879_v9 }
 0x7b8   : > { %v5843_v32 = vpop.f32.mrf.mxu1 }
 0x7b9   : > { %v5844_v14 = vadd.f32 %v5843_v32, %v13018_v43  ;;  %v5912_v25 = vmax.f32 %v5896_v31, 0.0 }
 0x7bb   : > { %v5864_v42 = vadd.f32 %v5844_v14, %v12537_v7  ;;  %v5083_v4 = vpop.f32.mrf.mxu3 }
 0x7bd   : > { %v5880_v0 = vadd.f32 %v5864_v42, %v5078_v35  ;;  %v13127_v35 = vpop.permute.xlu0 %6046 }
 0x7bf   : > { %v5897_v61 = vadd.f32 %v13031_v41, %v5880_v0 }
 0x7c0   : > { %v5846_v34 = vpop.f32.mrf.mxu1 }
 0x7c1   : > { %v5913_v48 = vmax.f32 %v5897_v61, 0.0  ;;  %v5847_v24 = vadd.f32 %v5846_v34, %v13018_v43 }
 0x7c3   : > { %v5922_v28 = vpack.c.bf16 %v5913_v48, %v5912_v25  ;;  %v5865_v18 = vadd.f32 %v5847_v24, %v12573_v2  ;;  %v13110_v2 = vpop.permute.xlu2 %6320 }
 0x7c5   : > { %6028 = vmatmul.bf16.gmra.mxu2 %v5922_v28  ;;  %v5881_v60 = vadd.f32 %v5865_v18, %v5081_v10 }
 0x7c7   : > { %v5898_v11 = vadd.f32 %v13031_v41, %v5881_v60 }
 0x7c8   : > { %v5848_v7 = vpop.f32.mrf.mxu1 }
 0x7c9   : > { %v5849_v53 = vadd.f32 %v5848_v7, %v13018_v43  ;;  %v5914_v44 = vmax.f32 %v5898_v11, 0.0  ;;  %v13115_v43 = vperm.slane %v13015_v63, 5 }
 0x7cb   : > { %v5866_v38 = vadd.f32 %v5849_v53, %v12580_v47  ;;  %v6401_v21 = vpop.permute.xlu2 %6400  ;;  %v6409_v47 = vpop.permute.xlu1 %6408 }
 0x7cd   : > { %v5882_v33 = vadd.f32 %v5866_v38, %v5083_v4 }
 0x7cf   : > { %v5899_v40 = vadd.f32 %v13031_v41, %v5882_v33 }
 0x7d1   : > { %v5915_v13 = vmax.f32 %v5899_v40, 0.0 }
 0x7d3   : > { %v5923_v30 = vpack.c.bf16 %v5915_v13, %v5914_v44  ;;  %v13117_v49 = vpop.permute.xlu2 %6328  ;;  %v6163_v63 = vpop.permute.xlu1 %6162 }
 0x7d5   : > { %6033 = vmatmul.bf16.gmra.mxu2 %v5923_v30 }
 0x7db   : > { %v13129_v9 = vpop.permute.xlu2 %6061  ;;  %v6417_v61 = vpop.permute.xlu1 %6416 }
 0x7e3   : > { %v6413_v34 = vpop.permute.xlu2 %6412  ;;  %v13150_v18 = vpop.permute.xlu1 %6340 }
 0x7e8   : > { %v5999_v54 = vpop.f32.mrf.mxu2 }
 0x7e9   : > { %v13120_v41 = vadd.f32 %v5999_v54, %v13115_v43 }
 0x7eb   : > { %v6455_v58 = vmul.f32 %v13080_v29, %v13120_v41  ;;  %v6215_v62 = vmul.f32 %v6138_v16, %v13120_v41  ;;  %v6148_v29 = vpop.permute.xlu0 %6147  ;;  %v13152_v7 = vpop.permute.xlu2 %6336 }
 0x7ec   : > { %v13163_v38 = vpop.permute.xlu1 %6172 }
 0x7ed   : > { %6487 = vrot.lane.b32.xlu2 %v6455_v58, %s7980_s22  ;;  %6247 = vrot.lane.b32.xlu1 %v6215_v62, %s7980_s22 }
 0x7f0   : > { %v6001_v32 = vpop.f32.mrf.mxu2 }
 0x7f1   : > { %v13132_v14 = vadd.f32 %v6001_v32, %v13115_v43 }
 0x7f3   : > { %v6456_v42 = vmul.f32 %v6397_v56, %v13132_v14  ;;  %v6216_v31 = vmul.f32 %v6143_v26, %v13132_v14  ;;  %v6405_v48 = vpop.permute.xlu0 %6404  ;;  %v6421_v11 = vpop.permute.xlu2 %6420 }
 0x7f5   : > { %6489 = vrot.lane.b32.xlu0 %v6456_v42, %s7980_s22  ;;  %6249 = vrot.lane.b32.xlu2 %v6216_v31, %s7980_s22 }
 0x7f6   : > { %6356 = vperm.xlu1 %7797, %v12961_v50  }
 0x7f8   : > { %v6004_v16 = vpop.f32.mrf.mxu2 }
 0x7f9   : > { %v13140_v0 = vadd.f32 %v6004_v16, %v13115_v43 }
 0x7fb   : > { %v6457_v10 = vmul.f32 %v6401_v21, %v13140_v0  ;;  %v6217_v24 = vmul.f32 %v6148_v29, %v13140_v0  ;;  %v6158_v44 = vpop.permute.xlu0 %6157 }
 0x7fd   : > { %6352 = vperm.xlu0 %7791, %v12893_v3   ;;  %6491 = vrot.lane.b32.xlu2 %v6457_v10, %s7980_s22 }
 0x800   : > { %v6006_v56 = vpop.f32.mrf.mxu2 }
 0x801   : > { %v13146_v25 = vadd.f32 %v6006_v56, %v13115_v43 }
 0x803   : > { %v6458_v28 = vmul.f32 %v6405_v48, %v13146_v25  ;;  %v6218_v4 = vmul.f32 %v6153_v45, %v13146_v25  ;;  %v6425_v45 = vpop.permute.xlu1 %6424  ;;  %v13174_v58 = vpop.permute.xlu0 %6332 }
 0x805   : > { %6251 = vrot.lane.b32.xlu2 %v6217_v24, %s7980_s22  ;;  %6493 = vrot.lane.b32.xlu0 %v6458_v28, %s7980_s22 }
 0x808   : > { %v6009_v26 = vpop.f32.mrf.mxu2 }
 0x809   : > { %v13157_v60 = vadd.f32 %v6009_v26, %v13115_v43 }
 0x80b   : > { %v6459_v53 = vmul.f32 %v6409_v47, %v13157_v60  ;;  %v6219_v30 = vmul.f32 %v6158_v44, %v13157_v60  ;;  %v6429_v47 = vpop.permute.xlu2 %6428  ;;  %v6178_v31 = vpop.permute.xlu1 %6177 }
 0x80d   : > { %6495 = vrot.lane.b32.xlu1 %v6459_v53, %s7980_s22  ;;  %6253 = vrot.lane.b32.xlu0 %v6218_v4, %s7980_s22 }
 0x810   : > { %v6011_v33 = vpop.f32.mrf.mxu2 }
 0x811   : > { %v13166_v40 = vadd.f32 %v6011_v33, %v13115_v43 }
 0x813   : > { %v6460_v13 = vmul.f32 %v6413_v34, %v13166_v40  ;;  %v6220_v54 = vmul.f32 %v6163_v63, %v13166_v40  ;;  %v13182_v29 = vpop.permute.xlu2 %6182  ;;  %v6168_v63 = vpop.permute.xlu0 %6167 }
 0x814   : > { %v13192_v24 = vpop.permute.xlu1 %6348 }
 0x815   : > { %6497 = vrot.lane.b32.xlu2 %v6460_v13, %s7980_s22  ;;  %6255 = vrot.lane.b32.xlu1 %v6219_v30, %s7980_s22 }
 0x818   : > { %v6014_v21 = vpop.f32.mrf.mxu2 }
 0x819   : > { %v13177_v62 = vadd.f32 %v6014_v21, %v13115_v43 }
 0x81b   : > { %v6461_v16 = vmul.f32 %v6417_v61, %v13177_v62  ;;  %v13194_v28 = vpop.permute.xlu2 %6192  ;;  %v13197_v61 = vpop.permute.xlu0 %6344 }
 0x81d   : > { %6257 = vrot.lane.b32.xlu2 %v6220_v54, %s7980_s22 }
 0x820   : > { %v6016_v32 = vpop.f32.mrf.mxu2 }
 0x821   : > { %v13180_v42 = vadd.f32 %v6016_v32, %v13115_v43 }
 0x823   : > { %v6462_v34 = vmul.f32 %v6421_v11, %v13180_v42  ;;  %v13204_v11 = vpop.permute.xlu1 %6187  ;;  %v6445_v33 = vpop.permute.xlu2 %6444 }
 0x824   : > { %v6433_v30 = vpop.permute.xlu0 %6432 }
 0x825   : > { %6499 = vrot.lane.b32.xlu2 %v6461_v16, %s7980_s22  ;;  %6501 = vrot.lane.b32.xlu0 %v6462_v34, %s7980_s22 }
 0x828   : > { %v6019_v10 = vpop.f32.mrf.mxu2 }
 0x829   : > { %v13189_v56 = vadd.f32 %v6019_v10, %v13115_v43 }
 0x82b   : > { %v6463_v48 = vmul.f32 %v6425_v45, %v13189_v56  ;;  %v13211_v21 = vpop.permute.xlu2 %6452  ;;  %v6437_v54 = vpop.permute.xlu1 %6436 }
 0x82d   : > { %6503 = vrot.lane.b32.xlu2 %v6463_v48, %s7980_s22 }
 0x830   : > { %v6021_v26 = vpop.f32.mrf.mxu2 }
 0x831   : > { %v13200_v53 = vadd.f32 %v6021_v26, %v13115_v43 }
 0x833   : > { %v6464_v4 = vmul.f32 %v6429_v47, %v13200_v53  ;;  %v6441_v26 = vpop.permute.xlu1 %6440 }
 0x835   : > { %6505 = vrot.lane.b32.xlu1 %v6464_v4, %s7980_s22 }
 0x838   : > { %v6024_v44 = vpop.f32.mrf.mxu2 }
 0x839   : > { %v13207_v13 = vadd.f32 %v6024_v44, %v13115_v43  ;;  %v6221_v44 = vmul.f32 %v6168_v63, %v13177_v62 }
 0x83b   : > { %v6465_v45 = vmul.f32 %v6433_v30, %v13207_v13  ;;  %v6120_v30 = vmul.f32 %v13127_v35, %v13132_v14  ;;  %v6119_v35 = vmul.f32 %v13091_v22, %v13120_v41  ;;  %v6376_v22 = vmul.f32 %v13089_v52, %v13132_v14 }
 0x83c   : > { %v6222_v14 = vmul.f32 %v13163_v38, %v13180_v42  ;;  %v6379_v38 = vmul.f32 %v13117_v49, %v13157_v60 }
 0x83d   : > { %6507 = vrot.lane.b32.xlu2 %v6465_v45, %s7980_s22 }
 0x840   : > { %v6026_v32 = vpop.f32.mrf.mxu2 }
 0x841   : > { %v13214_v47 = vadd.f32 %v6026_v32, %v13115_v43 }
 0x843   : > { %v6466_v16 = vmul.f32 %v6437_v54, %v13214_v47 }
 0x845   : > { %6509 = vrot.lane.b32.xlu1 %v6466_v16, %s7980_s22  ;;  %v13231_v16 = vpop.permute.xlu1 %6448 }
 0x847   : > { %v6488_v34 = vpop.permute.xlu2 %6487 }
 0x848   : > { %v6029_v10 = vpop.f32.mrf.mxu2 }
 0x849   : > { %v13219_v48 = vadd.f32 %v6029_v10, %v13115_v43 }
 0x84b   : > { %v6467_v4 = vmul.f32 %v6441_v26, %v13219_v48 }
 0x84d   : > { %6511 = vrot.lane.b32.xlu0 %v6467_v4, %s7980_s22  ;;  %6259 = vrot.lane.b32.xlu1 %v6221_v44, %s7980_s22  ;;  %v6121_v4 = vmul.f32 %v13097_v51, %v13140_v0 }
 0x84f   : > { %v6250_v45 = vpop.permute.xlu2 %6249 }
 0x850   : > { %v13227_v54 = vadd.f32 %v6250_v45, %v6120_v30  ;;  %v6031_v32 = vpop.f32.mrf.mxu2 }
 0x851   : > { %v13234_v10 = vadd.f32 %v6031_v32, %v13115_v43 }
 0x853   : > { %v6468_v26 = vmul.f32 %v6445_v33, %v13234_v10  ;;  %v6223_v33 = vmul.f32 %v6178_v31, %v13189_v56  ;;  %v7634_v31 = vld [vmem:[%s13529_s3 + $0x1f8] sm:$0xff] }
 0x854   : > { %6705 = vmatpush.bf16.msrb.mxu3 %v7634_v31 }
 0x855   : > { %6368 = vperm.xlu0 %7791, %v13053_v1   ;;  %6360 = vperm.xlu1 %7797, %v13043_v15  }
 0x857   : > { %v6492_v63 = vpop.permute.xlu2 %6491 }
 0x85d   : > { %6513 = vrot.lane.b32.xlu1 %v6468_v26, %s7980_s22  ;;  %7813 = vset.pattern.permute.xlu0 %v14272_v59  ;;  %v6375_v26 = vmul.f32 %v13112_v19, %v13120_v41 }
 0x85e   : > { %7807 = vset.pattern.permute.xlu1 %v14272_v59 }
 0x85f   : > { %v6248_v44 = vpop.permute.xlu1 %6247  ;;  %v6252_v30 = vpop.permute.xlu2 %6251  ;;  %v6535_v51 = vadd.f32 %v6488_v34, %v6375_v26 }
 0x860   : > { %v13244_v45 = vadd.f32 %v6248_v44, %v6119_v35  ;;  %v13246_v32 = vadd.f32 %v6252_v30, %v6121_v4  ;;  %v14283_v4 = vsub.f32 1.0, %v13043_v15  ;;  %v6380_v44 = vmul.f32 %v13174_v58, %v13166_v40 }
 0x865   : > { %6263 = vrot.lane.b32.xlu1 %v6223_v33, %s7980_s22 }
 0x867   : > { %v6490_v36 = vpop.permute.xlu0 %6489 }
 0x868   : > { %v6536_v55 = vadd.f32 %v6490_v36, %v6376_v22  ;;  %v6377_v36 = vmul.f32 %v13110_v2, %v13140_v0 }
 0x86a   : > { %v7799_v27 = vpack.i.bf16 %v6536_v55, %v6535_v51  ;;  %v6378_v55 = vmul.f32 %v13102_v5, %v13146_v25  ;;  %v6537_v52 = vadd.f32 %v6492_v63, %v6377_v36  ;;  %v6122_v5 = vmul.f32 %v13108_v20, %v13146_v25 }
 0x86b   : > { %v6123_v20 = vmul.f32 %v13129_v9, %v13157_v60  ;;  %v6381_v9 = vmul.f32 %v13152_v7, %v13177_v62  ;;  %v6382_v60 = vmul.f32 %v13150_v18, %v13180_v42  ;;  %v7630_v18 = vld [vmem:[%s13529_s3 + $0x1d8] sm:$0xff]  ;;  %v7629_v7 = vld [vmem:[%s13529_s3 + $0x1d0] sm:$0xff] }
 0x86c   : > { %7800 = vrot.lane.b32.xlu2 %v7799_v27, %s7980_s22  ;;  %v13268_v27 = vpop.permute.xlu1 %6356 }
 0x86d   : > { %6207 = vperm.xlu1 %7807, %v4865_v37  }
 0x86f   : > { %v13260_v35 = vpop.permute.xlu0 %6352  ;;  %v6498_v34 = vpop.permute.xlu2 %6497 }
 0x870   : > { %v6540_v33 = vadd.f32 %v6498_v34, %v6380_v44 }
 0x874   : > { %6071 = vperm.xlu2 %7804, %v12814_v46   ;;  %v7633_v46 = vld [vmem:[%s13529_s3 + $0x1f0] sm:$0xff] }
 0x875   : > { %7824 = vset.pattern.permute.xlu1 %v7982_v57  ;;  %6706 = vmatpush.bf16.msrb.mxu3 %v7633_v46  ;;  %v6383_v46 = vmul.f32 %v13197_v61, %v13189_v56  ;;  %v7627_v61 = vld [vmem:[%s13529_s3 + $0x1c0] sm:$0xff] }
 0x877   : > { %v6494_v37 = vpop.permute.xlu0 %6493  ;;  %v13292_v51 = vpop.permute.xlu2 %6257 }
 0x878   : > { %v6538_v19 = vadd.f32 %v6494_v37, %v6378_v55  ;;  %v6034_v55 = vpop.f32.mrf.mxu2 }
 0x87a   : > { %v7808_v41 = vpack.i.bf16 %v6538_v19, %v6537_v52  ;;  %v14284_v52 = vsub.f32 1.0, %v12986_v12 }
 0x87c   : > { %6261 = vrot.lane.b32.xlu2 %v6222_v14, %s7980_s22  ;;  %7809 = vrot.lane.b32.xlu0 %v7808_v41, %s7980_s22 }
 0x87f   : > { %v6496_v2 = vpop.permute.xlu1 %6495  ;;  %v6254_v0 = vpop.permute.xlu0 %6253 }
 0x880   : > { %v13279_v63 = vadd.f32 %v6254_v0, %v6122_v5  ;;  %v6539_v30 = vadd.f32 %v6496_v2, %v6379_v38  ;;  %v6500_v49 = vpop.permute.xlu2 %6499  ;;  %v6036_v19 = vpop.f32.mrf.mxu2  ;;  %v14285_v2 = vsub.f32 1.0, %v13003_v6  ;;  %v13337_v0 = vadd.f32 %v6034_v55, %v13115_v43 }
 0x881   : > { %v6541_v31 = vadd.f32 %v6500_v49, %v6381_v9  ;;  %v13328_v14 = vadd.f32 %v6036_v19, %v13115_v43  ;;  %v6225_v43 = vmul.f32 %v13204_v11, %v13207_v13 }
 0x882   : > { %v7814_v22 = vpack.i.bf16 %v6540_v33, %v6539_v30  ;;  %v6386_v30 = vmul.f32 %v13268_v27, %v13214_v47 }
 0x883   : > { %v6470_v44 = vmul.f32 %v13211_v21, %v13328_v14 }
 0x884   : > { %6197 = vperm.xlu2 %7804, %v14283_v4   ;;  %6066 = vperm.xlu0 %7813, %v12796_v39   ;;  %v7632_v39 = vld [vmem:[%s13529_s3 + $0x1e8] sm:$0xff] }
 0x885   : > { %6707 = vmatpush.bf16.msrb.mxu3 %v7632_v39 }
 0x887   : > { %v6256_v25 = vpop.permute.xlu1 %6255 }
 0x888   : > { %v13290_v26 = vadd.f32 %v6256_v25, %v6123_v20  ;;  %v6504_v41 = vpop.permute.xlu2 %6503  ;;  %v6385_v20 = vmul.f32 %v13260_v35, %v13207_v13 }
 0x889   : > { %v6543_v34 = vadd.f32 %v6504_v41, %v6383_v46 }
 0x88c   : > { %7805 = vset.pattern.permute.xlu2 %v7982_v57  ;;  %7815 = vrot.lane.b32.xlu0 %v7814_v22, %s7980_s22 }
 0x88d   : > { %6364 = vperm.xlu2 %7805, %v12986_v12  }
 0x894   : > { %6076 = vperm.xlu0 %7813, %v12891_v23   ;;  %v7631_v23 = vld [vmem:[%s13529_s3 + $0x1e0] sm:$0xff] }
 0x895   : > { %7806 = vset.pattern.permute.xlu2 %v14272_v59  ;;  %6708 = vmatpush.bf16.msrb.mxu3 %v7631_v23 }
 0x896   : > { %6081 = vperm.xlu2 %7806, %v12876_v17   ;;  %v6224_v17 = vmul.f32 %v13182_v29, %v13200_v53  ;;  %v7628_v29 = vld [vmem:[%s13529_s3 + $0x1c8] sm:$0xff] }
 0x897   : > { %v6502_v58 = vpop.permute.xlu0 %6501  ;;  %v6508_v21 = vpop.permute.xlu2 %6507 }
 0x898   : > { %v6542_v36 = vadd.f32 %v6502_v58, %v6382_v60 }
 0x899   : > { %6709 = vmatpush.bf16.msrb.mxu3 %v7630_v18 }
 0x89a   : > { %v7819_v37 = vpack.i.bf16 %v6542_v36, %v6541_v31 }
 0x89c   : > { %6202 = vperm.xlu0 %7813, %v14284_v52   ;;  %7820 = vrot.lane.b32.xlu1 %v7819_v37, %s7980_s22 }
 0x89d   : > { %6710 = vmatpush.bf16.msrb.mxu3 %v7629_v7 }
 0x89e   : > { %6265 = vrot.lane.b32.xlu2 %v6224_v17, %s7980_s22 }
 0x8a1   : > { %6711 = vmatpush.bf16.msrb.mxu3 %v7628_v29 }
 0x8a4   : > { %6086 = vperm.xlu0 %7813, %v12925_v8   ;;  %6372 = vperm.xlu1 %7824, %v13003_v6   ;;  %v6384_v8 = vmul.f32 %v13192_v24, %v13200_v53  ;;  %v6469_v24 = vmul.f32 %v13231_v16, %v13337_v0 }
 0x8a5   : > { %6712 = vmatpush.bf16.msrb.mxu3 %v7627_v61 }
 0x8a6   : > { %6212 = vperm.xlu2 %7806, %v14285_v2  }
 0x8a7   : > { %v6506_v5 = vpop.permute.xlu1 %6505 }
 0x8a8   : > { %v6544_v38 = vadd.f32 %v6506_v5, %v6384_v8 }
 0x8aa   : > { %v7825_v4 = vpack.i.bf16 %v6544_v38, %v6543_v34 }
 0x8ac   : > { %7826 = vrot.lane.b32.xlu0 %v7825_v4, %s7980_s22  ;;  %6517 = vrot.lane.b32.xlu1 %v6470_v44, %s7980_s22 }
 0x8ad   : > { %7840 = vset.pattern.permute.xlu1 %v14272_v59  ;;  %v6545_v59 = vadd.f32 %v6508_v21, %v6385_v20 }
 0x8ae   : > { %6515 = vrot.lane.b32.xlu2 %v6469_v24, %s7980_s22 }
 0x8b4   : > { %6096 = vperm.xlu0 %7813, %v12961_v50   ;;  %6267 = vrot.lane.b32.xlu1 %v6225_v43, %s7980_s22  ;;  %v6226_v50 = vmul.f32 %v13194_v28, %v13214_v47 }
 0x8b6   : > { %6091 = vperm.xlu2 %7806, %v12893_v3  }
 0x8b7   : > { %v6510_v16 = vpop.permute.xlu1 %6509 }
 0x8b8   : > { %v6546_v25 = vadd.f32 %v6510_v16, %v6386_v30 }
 0x8ba   : > { %v7830_v33 = vpack.i.bf16 %v6546_v25, %v6545_v59 }
 0x8bc   : > { %6106 = vperm.xlu0 %7813, %v12986_v12   ;;  %7831 = vrot.lane.b32.xlu1 %v7830_v33, %s7980_s22 }
 0x8be   : > { %6269 = vrot.lane.b32.xlu2 %v6226_v50, %s7980_s22 }
 0x8bf   : > { %v6260_v27 = vpop.permute.xlu1 %6259  ;;  %v6512_v60 = vpop.permute.xlu0 %6511 }
 0x8c4   : > { %7846 = vset.pattern.permute.xlu0 %v7982_v57 }
 0x8c6   : > { %6101 = vperm.xlu2 %7806, %v13043_v15   ;;  %v7801_v11 = vpop.permute.xlu2 %7800 }
 0x8c7   : > { %v7803_v35 = vunpack.i.h.bf16 %v7801_v11  ;;  %v7802_v3 = vunpack.i.l.bf16 %v7801_v11  ;;  %v6361_v28 = vpop.permute.xlu1 %6360  ;;  %v6369_v36 = vpop.permute.xlu0 %6368 }
 0x8c8   : > { %v6387_v31 = vmul.f32 %v6361_v28, %v13219_v48  ;;  %v7639_v28 = vld [vmem:[%s13532_s6 + $0x20] sm:$0xff] }
 0x8c9   : > { %v6616_v22 = vsel %vm5150_vm1, %v13227_v54, %v7803_v35  ;;  %v6615_v12 = vsel %vm5150_vm1, %v13244_v45, %v7802_v3 }
 0x8ca   : > { %v6631_v39 = vpack.c.bf16 %v6616_v22, %v6615_v12  ;;  %v6547_v37 = vadd.f32 %v6512_v60, %v6387_v31  ;;  %v7640_v12 = vld [vmem:[%s13532_s6 + $0x28] sm:$0xff]  ;;  %v6389_v60 = vmul.f32 %v6369_v36, %v13337_v0 }
 0x8cc   : > { %6713 = vmatmul.bf16.vlgmr.msrb.gmra.mxu3 %v6631_v39 }
 0x8ce   : > { %v6072_v49 = vpop.permute.xlu2 %6071 }
 0x8cf   : > { %v6514_v58 = vpop.permute.xlu1 %6513 }
 0x8d6   : > { %v6262_v9 = vpop.permute.xlu2 %6261 }
 0x8d7   : > { %v13373_v55 = vpop.permute.xlu1 %6263 }
 0x8de   : > { %v6198_v57 = vpop.permute.xlu2 %6197 }
 0x8df   : > { %v6227_v15 = vmul.f32 %v6198_v57, %v13219_v48  ;;  %v6208_v41 = vpop.permute.xlu1 %6207 }
 0x8e0   : > { %v6229_v8 = vmul.f32 %v6208_v41, %v13337_v0 }
 0x8e1   : > { %6271 = vrot.lane.b32.xlu1 %v6227_v15, %s7980_s22 }
 0x8e7   : > { %v6365_v54 = vpop.permute.xlu2 %6364 }
 0x8e8   : > { %v6388_v45 = vmul.f32 %v6365_v54, %v13234_v10 }
 0x8e9   : > { %6111 = vperm.xlu1 %7840, %v13053_v1  }
 0x8ea   : > { %v6548_v23 = vadd.f32 %v6514_v58, %v6388_v45 }
 0x8ec   : > { %v7835_v52 = vpack.i.bf16 %v6548_v23, %v6547_v37 }
 0x8ee   : > { %7836 = vrot.lane.b32.xlu0 %v7835_v52, %s7980_s22  ;;  %v7810_v17 = vpop.permute.xlu0 %7809 }
 0x8ef   : > { %v7812_v18 = vunpack.i.h.bf16 %v7810_v17  ;;  %v7811_v7 = vunpack.i.l.bf16 %v7810_v17 }
 0x8f0   : > { %v6082_v19 = vpop.permute.xlu2 %6081 }
 0x8f1   : > { %v6617_v29 = vsel %vm5150_vm1, %v13246_v32, %v7811_v7  ;;  %v6618_v46 = vsel %vm5150_vm1, %v13279_v63, %v7812_v18  ;;  %v6127_v39 = vmul.f32 %v6082_v19, %v13189_v56 }
 0x8f2   : > { %v6632_v2 = vpack.c.bf16 %v6618_v46, %v6617_v29 }
 0x8f3   : > { %v6303_v57 = vadd.f32 %v13373_v55, %v6127_v39 }
 0x8f4   : > { %6718 = vmatmul.bf16.gmra.mxu3 %v6632_v2 }
 0x8f6   : > { %6275 = vrot.lane.b32.xlu0 %v6229_v8, %s7980_s22  ;;  %v6067_v1 = vpop.permute.xlu0 %6066 }
 0x8f7   : > { %v6124_v34 = vmul.f32 %v6067_v1, %v13166_v40  ;;  %v7642_v40 = vld [vmem:[%s13532_s6 + $0x38] sm:$0xff] }
 0x8f8   : > { %v6266_v5 = vpop.permute.xlu2 %6265  ;;  %6843 = vmatpush.bf16.msrb.mxu0 %v7642_v40 }
 0x8f9   : > { %v6300_v4 = vadd.f32 %v13292_v51, %v6124_v34  ;;  %v6125_v51 = vmul.f32 %v6072_v49, %v13177_v62  ;;  %v7641_v62 = vld [vmem:[%s13532_s6 + $0x30] sm:$0xff] }
 0x8fb   : > { %v6301_v16 = vadd.f32 %v6260_v27, %v6125_v51 }
 0x8fc   : > { %6844 = vmatpush.bf16.msrb.mxu0 %v7641_v62 }
 0x8fe   : > { %v7816_v38 = vpop.permute.xlu0 %7815 }
 0x8ff   : > { %v7818_v44 = vunpack.i.h.bf16 %v7816_v38  ;;  %v7817_v61 = vunpack.i.l.bf16 %v7816_v38 }
 0x900   : > { %v6213_v24 = vpop.permute.xlu2 %6212  ;;  %6845 = vmatpush.bf16.msrb.mxu0 %v7640_v12 }
 0x901   : > { %v6230_v32 = vmul.f32 %v6213_v24, %v13328_v14  ;;  %v6619_v63 = vsel %vm5150_vm1, %v13290_v26, %v7817_v61  ;;  %v6620_v43 = vsel %vm5150_vm1, %v6300_v4, %v7818_v44  ;;  %v7638_v4 = vld [vmem:[%s13532_s6 + $0x18] sm:$0xff]  ;;  %v7635_v44 = vld [vmem:[%s13532_s6] sm:$0xff]  ;;  %v13437_v24 = vld [vmem:[%s13533_s7 + $0x8] sm:$0xff] }
 0x902   : > { %v6633_v21 = vpack.c.bf16 %v6620_v43, %v6619_v63 }
 0x903   : > { %6277 = vrot.lane.b32.xlu1 %v6230_v32, %s7980_s22  ;;  %v13440_v32 = vperm.slane %v13437_v24, 6 }
 0x904   : > { %6723 = vmatmul.bf16.gmra.mxu3 %v6633_v21  ;;  %6846 = vmatpush.bf16.msrb.mxu0 %v7639_v28 }
 0x906   : > { %v6077_v30 = vpop.permute.xlu0 %6076 }
 0x907   : > { %v6126_v20 = vmul.f32 %v6077_v30, %v13180_v42 }
 0x908   : > { %v6516_v49 = vpop.permute.xlu2 %6515  ;;  %6847 = vmatpush.bf16.msrb.mxu0 %v7638_v4 }
 0x909   : > { %v6302_v26 = vadd.f32 %v6262_v9, %v6126_v20  ;;  %v6549_v15 = vadd.f32 %v6516_v49, %v6389_v60 }
 0x90e   : > { %v7821_v59 = vpop.permute.xlu1 %7820  ;;  %v6203_v25 = vpop.permute.xlu0 %6202 }
 0x90f   : > { %v7823_v33 = vunpack.i.h.bf16 %v7821_v59  ;;  %v7822_v50 = vunpack.i.l.bf16 %v7821_v59  ;;  %v6228_v11 = vmul.f32 %v6203_v25, %v13234_v10 }
 0x910   : > { %v6092_v36 = vpop.permute.xlu2 %6091 }
 0x911   : > { %6273 = vrot.lane.b32.xlu2 %v6228_v11, %s7980_s22  ;;  %v6621_v35 = vsel %vm5150_vm1, %v6301_v16, %v7822_v50  ;;  %v6622_v3 = vsel %vm5150_vm1, %v6302_v26, %v7823_v33  ;;  %v6129_v19 = vmul.f32 %v6092_v36, %v13207_v13  ;;  %v7637_v13 = vld [vmem:[%s13532_s6 + $0x10] sm:$0xff] }
 0x912   : > { %v6634_v22 = vpack.c.bf16 %v6622_v3, %v6621_v35  ;;  %6848 = vmatpush.bf16.msrb.mxu0 %v7637_v13 }
 0x914   : > { %6728 = vmatmul.bf16.gmra.mxu3 %v6634_v22 }
 0x916   : > { %v6373_v42 = vpop.permute.xlu1 %6372  ;;  %v6087_v27 = vpop.permute.xlu0 %6086 }
 0x917   : > { %v6128_v9 = vmul.f32 %v6087_v27, %v13200_v53  ;;  %v6390_v58 = vmul.f32 %v6373_v42, %v13328_v14 }
 0x918   : > { %v6270_v41 = vpop.permute.xlu2 %6269 }
 0x919   : > { %6116 = vperm.xlu2 %7806, %v13003_v6   ;;  %v6304_v6 = vadd.f32 %v6266_v5, %v6128_v9 }
 0x91e   : > { %v6518_v31 = vpop.permute.xlu1 %6517  ;;  %v7827_v54 = vpop.permute.xlu0 %7826 }
 0x91f   : > { %v6550_v56 = vadd.f32 %v6518_v31, %v6390_v58  ;;  %v7829_v45 = vunpack.i.h.bf16 %v7827_v54  ;;  %v7828_v37 = vunpack.i.l.bf16 %v7827_v54 }
 0x920   : > { %v6102_v16 = vpop.permute.xlu2 %6101 }
 0x921   : > { %v7841_v23 = vpack.i.bf16 %v6550_v56, %v6549_v15  ;;  %v6623_v52 = vsel %vm5150_vm1, %v6303_v57, %v7828_v37  ;;  %v6624_v17 = vsel %vm5150_vm1, %v6304_v6, %v7829_v45  ;;  %v6131_v26 = vmul.f32 %v6102_v16, %v13219_v48 }
 0x922   : > { %v6635_v53 = vpack.c.bf16 %v6624_v17, %v6623_v52  ;;  %v13463_v16 = vperm.slane %v13437_v24, 7 }
 0x923   : > { %7842 = vrot.lane.b32.xlu2 %v7841_v23, %s7980_s22 }
 0x924   : > { %6733 = vmatmul.bf16.gmra.mxu3 %v6635_v53 }
 0x926   : > { %v6268_v18 = vpop.permute.xlu1 %6267  ;;  %v6097_v55 = vpop.permute.xlu0 %6096 }
 0x927   : > { %v6130_v7 = vmul.f32 %v6097_v55, %v13214_v47  ;;  %v6305_v46 = vadd.f32 %v6268_v18, %v6129_v19  ;;  %v7636_v47 = vld [vmem:[%s13532_s6 + $0x8] sm:$0xff] }
 0x928   : > { %6849 = vmatpush.bf16.msrb.mxu0 %v7636_v47 }
 0x929   : > { %v6306_v2 = vadd.f32 %v6270_v41, %v6130_v7 }
 0x92c   : > { %6850 = vmatpush.bf16.msrb.mxu0 %v7635_v44 }
 0x92e   : > { %v7832_v29 = vpop.permute.xlu1 %7831  ;;  %v6107_v20 = vpop.permute.xlu0 %6106 }
 0x92f   : > { %v7834_v8 = vunpack.i.h.bf16 %v7832_v29  ;;  %v7833_v1 = vunpack.i.l.bf16 %v7832_v29  ;;  %v6132_v33 = vmul.f32 %v6107_v20, %v13234_v10 }
 0x931   : > { %v6625_v5 = vsel %vm5150_vm1, %v6305_v46, %v7833_v1  ;;  %v6626_v34 = vsel %vm5150_vm1, %v6306_v2, %v7834_v8 }
 0x932   : > { %v6636_v38 = vpack.c.bf16 %v6626_v34, %v6625_v5 }
 0x934   : > { %6738 = vmatmul.bf16.gmra.mxu3 %v6636_v38 }
 0x94f   : > { %v6714_v61 = vpop.f32.mrf.mxu3 }
 0x950   : > { %v6715_v63 = vadd.f32 %v6714_v61, %v13440_v32 }
 0x952   : > { %v6754_v40 = vmax.f32 %v6715_v63, 0.0 }
 0x953   : > { %v6272_v25 = vpop.permute.xlu1 %6271 }
 0x954   : > { %v6307_v35 = vadd.f32 %v6272_v25, %v6131_v26 }
 0x957   : > { %v6716_v43 = vpop.f32.mrf.mxu3 }
 0x958   : > { %v6717_v21 = vadd.f32 %v6716_v43, %v13440_v32 }
 0x95a   : > { %v6755_v30 = vmax.f32 %v6717_v21, 0.0 }
 0x95b   : > { %v6112_v12 = vpop.permute.xlu1 %6111 }
 0x95c   : > { %v6770_v51 = vpack.c.bf16 %v6755_v30, %v6754_v40  ;;  %v6133_v48 = vmul.f32 %v6112_v12, %v13337_v0 }
 0x95e   : > { %6851 = vmatmul.bf16.vlgmr.msrb.gmra.mxu0 %v6770_v51 }
 0x960   : > { %v7837_v59 = vpop.permute.xlu0 %7836 }
 0x961   : > { %v7838_v50 = vunpack.i.l.bf16 %v7837_v59  ;;  %v7839_v3 = vunpack.i.h.bf16 %v7837_v59 }
 0x963   : > { %v6627_v62 = vsel %vm5150_vm1, %v6307_v35, %v7838_v50 }
 0x968   : > { %v6276_v28 = vpop.permute.xlu0 %6275 }
 0x969   : > { %v6309_v60 = vadd.f32 %v6276_v28, %v6133_v48 }
 0x96b   : > { %v6274_v11 = vpop.permute.xlu2 %6273 }
 0x96c   : > { %v6308_v22 = vadd.f32 %v6274_v11, %v6132_v33 }
 0x96e   : > { %v6628_v42 = vsel %vm5150_vm1, %v6308_v22, %v7839_v3 }
 0x96f   : > { %v6637_v27 = vpack.c.bf16 %v6628_v42, %v6627_v62 }
 0x971   : > { %6743 = vmatmul.bf16.gmra.mxu3 %v6637_v27 }
 0x973   : > { %v6117_v39 = vpop.permute.xlu2 %6116 }
 0x974   : > { %v6134_v9 = vmul.f32 %v6117_v39, %v13328_v14 }
 0x975   : > { %v6278_v10 = vpop.permute.xlu1 %6277 }
 0x976   : > { %v6310_v57 = vadd.f32 %v6278_v10, %v6134_v9 }
 0x977   : > { %v6719_v49 = vpop.f32.mrf.mxu3 }
 0x978   : > { %v6720_v15 = vadd.f32 %v6719_v49, %v13440_v32 }
 0x97a   : > { %v6756_v52 = vmax.f32 %v6720_v15, 0.0 }
 0x97d   : > { %v7843_v58 = vpop.permute.xlu2 %7842 }
 0x97e   : > { %v7845_v31 = vunpack.i.h.bf16 %v7843_v58  ;;  %v7844_v54 = vunpack.i.l.bf16 %v7843_v58 }
 0x97f   : > { %v6721_v6 = vpop.f32.mrf.mxu3 }
 0x980   : > { %v6722_v56 = vadd.f32 %v6721_v6, %v13440_v32  ;;  %v6629_v45 = vsel %vm5150_vm1, %v6309_v60, %v7844_v54  ;;  %v6630_v37 = vsel %vm5150_vm1, %v6310_v57, %v7845_v31  ;;  %vm6892_vm1 = vcmask 23552  }
 0x981   : > { %v6638_v23 = vpack.c.bf16 %v6630_v37, %v6629_v45 }
 0x982   : > { %v6757_v14 = vmax.f32 %v6722_v56, 0.0 }
 0x983   : > { %6748 = vmatmul.bf16.gmra.mxu3 %v6638_v23 }
 0x984   : > { %v6771_v0 = vpack.c.bf16 %v6757_v14, %v6756_v52 }
 0x986   : > { %6856 = vmatmul.bf16.gmra.mxu0 %v6771_v0 }
 0x987   : > { %v6724_v17 = vpop.f32.mrf.mxu3 }
 0x988   : > { %v6725_v53 = vadd.f32 %v6724_v17, %v13440_v32 }
 0x98a   : > { %v6758_v55 = vmax.f32 %v6725_v53, 0.0 }
 0x98f   : > { %v6726_v36 = vpop.f32.mrf.mxu3 }
 0x990   : > { %v6727_v18 = vadd.f32 %v6726_v36, %v13440_v32 }
 0x992   : > { %v6759_v7 = vmax.f32 %v6727_v18, 0.0 }
 0x994   : > { %v6772_v19 = vpack.c.bf16 %v6759_v7, %v6758_v55 }
 0x996   : > { %6861 = vmatmul.bf16.gmra.mxu0 %v6772_v19 }
 0x997   : > { %v6729_v41 = vpop.f32.mrf.mxu3 }
 0x998   : > { %v6730_v29 = vadd.f32 %v6729_v41, %v13440_v32 }
 0x99a   : > { %v6760_v8 = vmax.f32 %v6730_v29, 0.0 }
 0x99f   : > { %v6731_v46 = vpop.f32.mrf.mxu3 }
 0x9a0   : > { %v6732_v2 = vadd.f32 %v6731_v46, %v13440_v32 }
 0x9a2   : > { %v6761_v1 = vmax.f32 %v6732_v2, 0.0 }
 0x9a4   : > { %v6773_v5 = vpack.c.bf16 %v6761_v1, %v6760_v8 }
 0x9a6   : > { %6866 = vmatmul.bf16.gmra.mxu0 %v6773_v5 }
 0x9a7   : > { %v6734_v34 = vpop.f32.mrf.mxu3 }
 0x9a8   : > { %v6735_v38 = vadd.f32 %v6734_v34, %v13440_v32 }
 0x9aa   : > { %v6762_v47 = vmax.f32 %v6735_v38, 0.0 }
 0x9af   : > { %v6736_v4 = vpop.f32.mrf.mxu3 }
 0x9b0   : > { %v6737_v13 = vadd.f32 %v6736_v4, %v13440_v32 }
 0x9b2   : > { %v6763_v44 = vmax.f32 %v6737_v13, 0.0 }
 0x9b4   : > { %v6774_v61 = vpack.c.bf16 %v6763_v44, %v6762_v47 }
 0x9b6   : > { %6871 = vmatmul.bf16.gmra.mxu0 %v6774_v61 }
 0x9b7   : > { %v6739_v63 = vpop.f32.mrf.mxu3 }
 0x9b8   : > { %v6740_v43 = vadd.f32 %v6739_v63, %v13440_v32 }
 0x9ba   : > { %v6764_v30 = vmax.f32 %v6740_v43, 0.0 }
 0x9bf   : > { %v6741_v21 = vpop.f32.mrf.mxu3 }
 0x9c0   : > { %v6742_v40 = vadd.f32 %v6741_v21, %v13440_v32 }
 0x9c2   : > { %v6765_v51 = vmax.f32 %v6742_v40, 0.0 }
 0x9c4   : > { %v6775_v20 = vpack.c.bf16 %v6765_v51, %v6764_v30 }
 0x9c6   : > { %6876 = vmatmul.bf16.gmra.mxu0 %v6775_v20 }
 0x9db   : > { %v6852_v59 = vpop.f32.mrf.mxu0 }
 0x9dc   : > { %v6853_v25 = vadd.f32 %v6852_v59, %v13463_v16 }
 0x9de   : > { %6893 = vst.msk [vmem:[%s13469_s29] sm:$0xff] %vm6892_vm1, %v6853_v25 }
 0x9e3   : > { %v6854_v26 = vpop.f32.mrf.mxu0 }
 0x9e4   : > { %v6855_v33 = vadd.f32 %v6854_v26, %v13463_v16 }
 0x9e6   : > { %6894 = vst.msk [vmem:[%s13469_s29 + $0x8] sm:$0xff] %vm6892_vm1, %v6855_v33 }
 0x9f4   : > { %v6744_v24 = vpop.f32.mrf.mxu3 }
 0x9f5   : > { %v6745_v50 = vadd.f32 %v6744_v24, %v13440_v32 }
 0x9f7   : > { %v6766_v3 = vmax.f32 %v6745_v50, 0.0 }
 0x9fc   : > { %v6746_v11 = vpop.f32.mrf.mxu3 }
 0x9fd   : > { %v6747_v35 = vadd.f32 %v6746_v11, %v13440_v32 }
 0x9ff   : > { %v6767_v22 = vmax.f32 %v6747_v35, 0.0 }
 0xa01   : > { %v6776_v62 = vpack.c.bf16 %v6767_v22, %v6766_v3 }
 0xa03   : > { %v6857_v42 = vpop.f32.mrf.mxu0  ;;  %6881 = vmatmul.bf16.gmra.mxu0 %v6776_v62 }
 0xa04   : > { %v6858_v27 = vadd.f32 %v6857_v42, %v13463_v16 }
 0xa06   : > { %6895 = vst.msk [vmem:[%s13469_s29 + $0x10] sm:$0xff] %vm6892_vm1, %v6858_v27  ;;  %v6749_v12 = vpop.f32.mrf.mxu3 }
 0xa07   : > { %v6750_v28 = vadd.f32 %v6749_v12, %v13440_v32 }
 0xa09   : > { %v6768_v10 = vmax.f32 %v6750_v28, 0.0 }
 0xa0b   : > { %v6859_v39 = vpop.f32.mrf.mxu0 }
 0xa0c   : > { %v6860_v49 = vadd.f32 %v6859_v39, %v13463_v16 }
 0xa0e   : > { %6896 = vst.msk [vmem:[%s13469_s29 + $0x18] sm:$0xff] %vm6892_vm1, %v6860_v49  ;;  %v6751_v9 = vpop.f32.mrf.mxu3 }
 0xa0f   : > { %v6752_v48 = vadd.f32 %v6751_v9, %v13440_v32 }
 0xa11   : > { %v6769_v60 = vmax.f32 %v6752_v48, 0.0 }
 0xa13   : > { %v6777_v58 = vpack.c.bf16 %v6769_v60, %v6768_v10  ;;  %v6862_v57 = vpop.f32.mrf.mxu0 }
 0xa14   : > { %v6863_v15 = vadd.f32 %v6862_v57, %v13463_v16 }
 0xa15   : > { %6886 = vmatmul.bf16.gmra.mxu0 %v6777_v58 }
 0xa16   : > { %6897 = vst.msk [vmem:[%s13469_s29 + $0x20] sm:$0xff] %vm6892_vm1, %v6863_v15 }
 0xa1b   : > { %v6864_v31 = vpop.f32.mrf.mxu0 }
 0xa1c   : > { %v6865_v54 = vadd.f32 %v6864_v31, %v13463_v16 }
 0xa1e   : > { %6898 = vst.msk [vmem:[%s13469_s29 + $0x28] sm:$0xff] %vm6892_vm1, %v6865_v54 }
 0xa23   : > { %v6867_v6 = vpop.f32.mrf.mxu0 }
 0xa24   : > { %v6868_v32 = vadd.f32 %v6867_v6, %v13463_v16 }
 0xa26   : > { %6899 = vst.msk [vmem:[%s13469_s29 + $0x30] sm:$0xff] %vm6892_vm1, %v6868_v32 }
 0xa2b   : > { %v6869_v56 = vpop.f32.mrf.mxu0 }
 0xa2c   : > { %v6870_v45 = vadd.f32 %v6869_v56, %v13463_v16 }
 0xa2e   : > { %6900 = vst.msk [vmem:[%s13469_s29 + $0x38] sm:$0xff] %vm6892_vm1, %v6870_v45 }
 0xa33   : > { %v6872_v37 = vpop.f32.mrf.mxu0 }
 0xa34   : > { %v6873_v23 = vadd.f32 %v6872_v37, %v13463_v16 }
 0xa36   : > { %6901 = vst.msk [vmem:[%s13469_s29 + $0x40] sm:$0xff] %vm6892_vm1, %v6873_v23 }
 0xa3b   : > { %v6874_v52 = vpop.f32.mrf.mxu0 }
 0xa3c   : > { %v6875_v14 = vadd.f32 %v6874_v52, %v13463_v16 }
 0xa3e   : > { %6902 = vst.msk [vmem:[%s13469_s29 + $0x48] sm:$0xff] %vm6892_vm1, %v6875_v14 }
 0xa43   : > { %v6877_v0 = vpop.f32.mrf.mxu0 }
 0xa44   : > { %v6878_v17 = vadd.f32 %v6877_v0, %v13463_v16 }
 0xa46   : > { %6903 = vst.msk [vmem:[%s13469_s29 + $0x50] sm:$0xff] %vm6892_vm1, %v6878_v17 }
 0xa4b   : > { %v6879_v53 = vpop.f32.mrf.mxu0 }
 0xa4c   : > { %v6880_v36 = vadd.f32 %v6879_v53, %v13463_v16 }
 0xa4e   : > { %6904 = vst.msk [vmem:[%s13469_s29 + $0x58] sm:$0xff] %vm6892_vm1, %v6880_v36 }
 0xa80   : > { %v6882_v18 = vpop.f32.mrf.mxu0 }
 0xa81   : > { %v6883_v55 = vadd.f32 %v6882_v18, %v13463_v16 }
 0xa83   : > { %6905 = vst.msk [vmem:[%s13469_s29 + $0x60] sm:$0xff] %vm6892_vm1, %v6883_v55 }
 0xa88   : > { %v6884_v7 = vpop.f32.mrf.mxu0 }
 0xa89   : > { %v6885_v19 = vadd.f32 %v6884_v7, %v13463_v16 }
 0xa8b   : > { %6906 = vst.msk [vmem:[%s13469_s29 + $0x68] sm:$0xff] %vm6892_vm1, %v6885_v19 }
 0xa92   : > { %v6887_v41 = vpop.f32.mrf.mxu0 }
 0xa93   : > { %v6888_v29 = vadd.f32 %v6887_v41, %v13463_v16 }
 0xa95   : > { %6907 = vst.msk [vmem:[%s13469_s29 + $0x70] sm:$0xff] %vm6892_vm1, %v6888_v29 }
 0xa9a   : > { %v6889_v46 = vpop.f32.mrf.mxu0 }
 0xa9b   : > { %v6890_v2 = vadd.f32 %v6889_v46, %v13463_v16 }
 0xa9d   : > { %6908 = vst.msk [vmem:[%s13469_s29 + $0x78] sm:$0xff] %vm6892_vm1, %v6890_v2 }
 0xa9e PF: > { %s18_s27 = sadd.s32 1, %s7968_s27  }
 0xa9f   : > { %p15_p4 = scmp.ge.s32.totalorder %s18_s27, 4  }
 0xaa1   :  { %17 = sbr.rel (!%p15_p4) target bundleno = 1 (0x1), region = 95 }

</bundles_post_ra>
